<compile_context>
chip_gen: v6e
topology: v6e:2x2x1
jax: 0.10.0
libtpu: 0.0.40
codegen_flags: <defaults>
</compile_context>

<pallas_src>
import jax
import jax.numpy as jnp
from jax import lax
from jax.experimental import pallas as pl
from jax.experimental.pallas import tpu as pltpu

_BN_EPS = 1e-5
_CONV_DTYPE = jnp.bfloat16   # MXU-native operand dtype for all conv matmuls
_HP = 128                    # LSTM hidden padded to one 128-lane vreg per gate


# ----------------------------------------------------------------------------
# The single fused Pallas kernel (one grid step = one batch element)
# ----------------------------------------------------------------------------

def _deeplob_kernel(
    x_ref,
    c10_w, c10_a, c11_w, c11_a, c12_w, c12_a,
    c20_w, c20_a, c21_w, c21_a, c22_w, c22_a,
    c30_w, c30_a, c31_w, c31_a, c32_w, c32_a,
    i1z_w, i1m_w, i1_a,
    ib1_w, ib1_a, ib2_w, ib2_a,
    wih_ref, whh_ref, lb_ref,
    fcw_ref, fcb_ref,
    o_ref,
):
    f32 = jnp.float32

    def act_bn(z, a_ref):
        # y = BN(ReLU(z + bias)) with BN folded into per-lane scale/shift rows.
        aux = a_ref[...]                                  # (3, N) f32
        return jnp.maximum(z + aux[0:1, :], 0.0) * aux[1:2, :] + aux[2:3, :]

    def mm(a, w):
        return jnp.dot(a.astype(w.dtype), w, preferred_element_type=f32)

    def conv_w(a, w_ref, a_ref):
        # (1, kw) conv folded into one lane-dense matmul on the (H, W*C) layout.
        return act_bn(mm(a, w_ref[...]), a_ref)

    def conv_h_valid(a, w_ref, a_ref):
        # (kh, 1) valid conv: sum of kh row-shifted matmuls (block-diag weights).
        kh = w_ref.shape[0]
        ho = a.shape[0] - kh + 1
        z = mm(a[0:ho, :], w_ref[0])
        for d in range(1, kh):
            z = z + mm(a[d:d + ho, :], w_ref[d])
        return act_bn(z, a_ref)

    x = x_ref[0].astype(f32)                              # (H, W)

    # conv1 / conv2 / conv3 stacks (all intermediates stay on-core)
    h = conv_w(x, c10_w, c10_a)                           # (H, 20*16)
    h = conv_h_valid(h, c11_w, c11_a)
    h = conv_h_valid(h, c12_w, c12_a)

    h = conv_w(h, c20_w, c20_a)                           # (., 10*16)
    h = conv_h_valid(h, c21_w, c21_a)
    h = conv_h_valid(h, c22_w, c22_a)

    h = conv_w(h, c30_w, c30_a)                           # (., 16)
    h = conv_h_valid(h, c31_w, c31_a)
    z = conv_h_valid(h, c32_w, c32_a)                     # (T, 16)

    t_len = z.shape[0]

    # Row-shift matrices built from 2-D iota (zero rows handle the boundaries).
    rr = lax.broadcasted_iota(jnp.int32, (t_len, t_len), 0)
    cc = lax.broadcasted_iota(jnp.int32, (t_len, t_len), 1)

    def shift_rows(a, off):                               # a[h + off], 0 if OOB
        if off == 0:
            return a
        s_mat = (cc == rr + off).astype(f32)
        return jnp.dot(s_mat, a, preferred_element_type=f32)

    # MaxPool (3,1), stride 1, pad (1,0): padded rows act as -inf.
    row_id = lax.broadcasted_iota(jnp.int32, z.shape, 0)
    neg = jnp.float32(-1e30)
    z_up = jnp.where(row_id < t_len - 1, shift_rows(z, 1), neg)
    z_dn = jnp.where(row_id > 0, shift_rows(z, -1), neg)
    z_max = jnp.maximum(z, jnp.maximum(z_up, z_dn))

    # Fused 1x1 convs of the three inception branches (lane-dense, N = 96).
    pre = act_bn(mm(z, i1z_w[...]) + mm(z_max, i1m_w[...]), i1_a)   # (T, 96)
    b1 = pre[:, 0:32]
    b2 = pre[:, 32:64]
    b3 = pre[:, 64:96]                                    # inception-3 output

    def conv_h_same(a, w_ref, a_ref):
        kh = w_ref.shape[0]
        pad = (kh - 1) // 2
        z_acc = mm(shift_rows(a, -pad), w_ref[0])
        for d in range(1, kh):
            z_acc = z_acc + mm(shift_rows(a, d - pad), w_ref[d])
        return act_bn(z_acc, a_ref)

    o1 = conv_h_same(b1, ib1_w, ib1_a)                    # (T, 32)
    o2 = conv_h_same(b2, ib2_w, ib2_a)                    # (T, 32)

    # ---- LSTM: input projection hoisted out of the recurrence ---------------
    wih = wih_ref[...]                                    # (96, 4*_HP)
    whh = whh_ref[...]                                    # (_HP, 4*_HP)
    gx = (jnp.dot(o1, wih[0:32, :], preferred_element_type=f32)
          + jnp.dot(o2, wih[32:64, :], preferred_element_type=f32)
          + jnp.dot(b3, wih[64:96, :], preferred_element_type=f32)
          + lb_ref[...])                                  # (T, 4*_HP)

    h_t = jnp.zeros((1, _HP), f32)
    c_t = jnp.zeros((1, _HP), f32)
    for t in range(t_len):                                # unrolled (T static)
        gates = gx[t:t + 1, :] + jnp.dot(h_t, whh, preferred_element_type=f32)
        i_g = jax.nn.sigmoid(gates[:, 0:_HP])             # whole-vreg gate slices
        f_g = jax.nn.sigmoid(gates[:, _HP:2 * _HP])
        g_g = jnp.tanh(gates[:, 2 * _HP:3 * _HP])
        o_g = jax.nn.sigmoid(gates[:, 3 * _HP:4 * _HP])
        c_t = f_g * c_t + i_g * g_g
        h_t = o_g * jnp.tanh(c_t)
        # padded gate lanes stay exactly zero (zero weights / bias / gx columns)

    # ---- FC + softmax (fused tail) -------------------------------------------
    logits = jnp.dot(h_t, fcw_ref[...], preferred_element_type=f32) + fcb_ref[...]
    m = jnp.max(logits, axis=1, keepdims=True)
    e = jnp.exp(logits - m)
    o_ref[0] = e / jnp.sum(e, axis=1, keepdims=True)


# ----------------------------------------------------------------------------
# Wrapper-side parameter folding (pure layout plumbing, runs once under jit)
# ----------------------------------------------------------------------------

def _bn_fold(bn):
    scale = bn['gamma'] / jnp.sqrt(bn['var'] + _BN_EPS)
    shift = bn['beta'] - bn['mean'] * scale
    return scale, shift


def _aux(layer, reps):
    """(3, reps*C) rows: [conv bias, BN scale, BN shift] tiled over W positions."""
    scale, shift = _bn_fold(layer['bn'])
    return jnp.stack([jnp.tile(layer['b'], reps),
                      jnp.tile(scale, reps),
                      jnp.tile(shift, reps)]).astype(jnp.float32)


def _wconv_matrix(w, w_in, stride):
    """(1,kw) conv folded into a single (W_in*Cin, W_out*Cout) matmul matrix."""
    cout, cin, _, kw = w.shape
    w_out = (w_in - kw) // stride + 1
    wi = jnp.arange(w_in)
    wo = jnp.arange(w_out)
    m = jnp.zeros((w_in * cin, w_out * cout), jnp.float32)
    for j in range(kw):
        sel = (wi[:, None] == stride * wo[None, :] + j).astype(jnp.float32)
        m = m + jnp.kron(sel, w[:, :, 0, j].T.astype(jnp.float32))
    return m.astype(_CONV_DTYPE)


def _hconv_weights(w, w_spatial):
    """(kh,1) conv: one (W*Cin, W*Cout) block-diagonal matrix per kernel tap."""
    cout, cin, kh, _ = w.shape
    eye = jnp.eye(w_spatial, dtype=jnp.float32)
    taps = [jnp.kron(eye, w[:, :, d, 0].T.astype(jnp.float32)) for d in range(kh)]
    return jnp.stack(taps).astype(_CONV_DTYPE)


def _prepare_operands(p, w_in):
    w1 = (w_in - 2) // 2 + 1
    w2 = (w1 - 2) // 2 + 1
    kw3 = p['conv3'][0]['w'].shape[3]
    w3 = w2 - kw3 + 1
    assert w3 == 1, "conv3 (1,kw) must reduce the LOB feature width to 1"

    ops = []
    ops += [_wconv_matrix(p['conv1'][0]['w'], w_in, 2), _aux(p['conv1'][0], w1)]
    ops += [_hconv_weights(p['conv1'][1]['w'], w1), _aux(p['conv1'][1], w1)]
    ops += [_hconv_weights(p['conv1'][2]['w'], w1), _aux(p['conv1'][2], w1)]

    ops += [_wconv_matrix(p['conv2'][0]['w'], w1, 2), _aux(p['conv2'][0], w2)]
    ops += [_hconv_weights(p['conv2'][1]['w'], w2), _aux(p['conv2'][1], w2)]
    ops += [_hconv_weights(p['conv2'][2]['w'], w2), _aux(p['conv2'][2], w2)]

    ops += [_wconv_matrix(p['conv3'][0]['w'], w2, 1), _aux(p['conv3'][0], w3)]
    ops += [_hconv_weights(p['conv3'][1]['w'], w3), _aux(p['conv3'][1], w3)]
    ops += [_hconv_weights(p['conv3'][2]['w'], w3), _aux(p['conv3'][2], w3)]

    # Fused inception 1x1 convs: branch1/2 read z, branch3 reads maxpool(z).
    cin = p['incept1'][0]['w'].shape[1]
    wz = jnp.zeros((cin, 96), jnp.float32)
    wz = wz.at[:, 0:32].set(p['incept1'][0]['w'][:, :, 0, 0].T)
    wz = wz.at[:, 32:64].set(p['incept2'][0]['w'][:, :, 0, 0].T)
    wm = jnp.zeros((cin, 96), jnp.float32)
    wm = wm.at[:, 64:96].set(p['incept3'][0]['w'][:, :, 0, 0].T)
    aux96 = jnp.concatenate([_aux(p['incept1'][0], 1),
                             _aux(p['incept2'][0], 1),
                             _aux(p['incept3'][0], 1)], axis=1)
    ops += [wz.astype(_CONV_DTYPE), wm.astype(_CONV_DTYPE), aux96]

    ops += [_hconv_weights(p['incept1'][1]['w'], 1), _aux(p['incept1'][1], 1)]
    ops += [_hconv_weights(p['incept2'][1]['w'], 1), _aux(p['incept2'][1], 1)]

    # LSTM weights with each gate zero-padded to a full 128-lane slot.
    hidden = p['lstm']['w_hh'].shape[1]
    feat = p['lstm']['w_ih'].shape[1]
    wih = jnp.zeros((feat, 4 * _HP), jnp.float32)
    whh = jnp.zeros((_HP, 4 * _HP), jnp.float32)
    bias = jnp.zeros((1, 4 * _HP), jnp.float32)
    for g in range(4):
        rows = slice(g * hidden, (g + 1) * hidden)
        lanes = slice(g * _HP, g * _HP + hidden)
        wih = wih.at[:, lanes].set(p['lstm']['w_ih'][rows, :].T)
        whh = whh.at[0:hidden, lanes].set(p['lstm']['w_hh'][rows, :].T)
        bias = bias.at[0, lanes].set(p['lstm']['b_ih'][rows] + p['lstm']['b_hh'][rows])
    ops += [wih, whh, bias]

    length = p['fc']['w'].shape[0]
    fcw = jnp.zeros((_HP, length), jnp.float32).at[0:hidden, :].set(p['fc']['w'].T)
    ops += [fcw, p['fc']['b'].reshape(1, length).astype(jnp.float32)]
    return ops, length


def _const_index_map(ndim):
    return lambda b: (0,) * ndim


def deeplob_forward(params, x):
    B, cin, h_in, w_in = x.shape
    assert cin == 1
    ops, length = _prepare_operands(params, w_in)
    xs = x[:, 0, :, :]                                   # (B, H, W)

    in_specs = [pl.BlockSpec((1, h_in, w_in), lambda b: (b, 0, 0))]
    in_specs += [pl.BlockSpec(a.shape, _const_index_map(a.ndim)) for a in ops]

    out = pl.pallas_call(
        _deeplob_kernel,
        out_shape=jax.ShapeDtypeStruct((B, 1, length), jnp.float32),
        grid=(B,),
        in_specs=in_specs,
        out_specs=pl.BlockSpec((1, 1, length), lambda b: (b, 0, 0)),
        compiler_params=pltpu.CompilerParams(
            dimension_semantics=("parallel",),
            vmem_limit_bytes=32 * 1024 * 1024),
    )(xs, *ops)
    return out.reshape(B, length)


# ----------------------------------------------------------------------------
# Deterministic synthetic parameters (PyTorch-layout tensors)
# ----------------------------------------------------------------------------

def make_params(key, length):
    keys = iter(jax.random.split(key, 128))

    def conv(cout, cin, kh, kw):
        w = 0.25 * jax.random.normal(next(keys), (cout, cin, kh, kw), jnp.float32)
        b = 0.01 * jax.random.normal(next(keys), (cout,), jnp.float32)
        return {'w': w, 'b': b}

    def bn(c):
        return {'gamma': 1.0 + 0.1 * jax.random.normal(next(keys), (c,), jnp.float32),
                'beta': 0.05 * jax.random.normal(next(keys), (c,), jnp.float32),
                'mean': 0.05 * jax.random.normal(next(keys), (c,), jnp.float32),
                'var': 1.0 + 0.5 * jax.random.uniform(next(keys), (c,), jnp.float32)}

    p = {}
    p['conv1'] = [{**conv(16, 1, 1, 2), 'bn': bn(16)},
                  {**conv(16, 16, 4, 1), 'bn': bn(16)},
                  {**conv(16, 16, 4, 1), 'bn': bn(16)}]
    p['conv2'] = [{**conv(16, 16, 1, 2), 'bn': bn(16)},
                  {**conv(16, 16, 4, 1), 'bn': bn(16)},
                  {**conv(16, 16, 4, 1), 'bn': bn(16)}]
    p['conv3'] = [{**conv(16, 16, 1, 10), 'bn': bn(16)},
                  {**conv(16, 16, 4, 1), 'bn': bn(16)},
                  {**conv(16, 16, 4, 1), 'bn': bn(16)}]
    p['incept1'] = [{**conv(32, 16, 1, 1), 'bn': bn(32)},
                    {**conv(32, 32, 3, 1), 'bn': bn(32)}]
    p['incept2'] = [{**conv(32, 16, 1, 1), 'bn': bn(32)},
                    {**conv(32, 32, 5, 1), 'bn': bn(32)}]
    p['incept3'] = [{**conv(32, 16, 1, 1), 'bn': bn(32)}]
    H = 64
    p['lstm'] = {'w_ih': 0.15 * jax.random.normal(next(keys), (4 * H, 96), jnp.float32),
                 'w_hh': 0.15 * jax.random.normal(next(keys), (4 * H, H), jnp.float32),
                 'b_ih': 0.01 * jax.random.normal(next(keys), (4 * H,), jnp.float32),
                 'b_hh': 0.01 * jax.random.normal(next(keys), (4 * H,), jnp.float32)}
    p['fc'] = {'w': 0.2 * jax.random.normal(next(keys), (length, H), jnp.float32),
               'b': 0.01 * jax.random.normal(next(keys), (length,), jnp.float32)}
    return p


if __name__ == "__main__":
    key = jax.random.PRNGKey(0)
    kx, kp = jax.random.split(key)

    # Input: NCHW, 1 channel, 26 time steps, 40 LOB features -> LSTM seq len 8.
    B, T, W, length = 2, 26, 40, 3
    x = jax.random.normal(kx, (B, 1, T, W), jnp.float32)
    params = make_params(kp, length)

    fwd = jax.jit(deeplob_forward)
    y = jax.block_until_ready(fwd(params, x))

    assert y.shape == (B, length), y.shape
    assert bool(jnp.all(jnp.isfinite(y)))
    assert bool(jnp.allclose(jnp.sum(y, axis=1), 1.0, atol=1e-4))
    print("KERNEL_OK")
</pallas_src>

<mosaic_0001>
module attributes {stable_mosaic.version = 11 : i64} {
  func.func @_deeplob_kernel(%arg0: i32, %arg1: memref<1x26x40xf32, #tpu.memory_space<vmem>>, %arg2: memref<40x320xbf16, #tpu.memory_space<vmem>>, %arg3: memref<3x320xf32, #tpu.memory_space<vmem>>, %arg4: memref<4x320x320xbf16, #tpu.memory_space<vmem>>, %arg5: memref<3x320xf32, #tpu.memory_space<vmem>>, %arg6: memref<4x320x320xbf16, #tpu.memory_space<vmem>>, %arg7: memref<3x320xf32, #tpu.memory_space<vmem>>, %arg8: memref<320x160xbf16, #tpu.memory_space<vmem>>, %arg9: memref<3x160xf32, #tpu.memory_space<vmem>>, %arg10: memref<4x160x160xbf16, #tpu.memory_space<vmem>>, %arg11: memref<3x160xf32, #tpu.memory_space<vmem>>, %arg12: memref<4x160x160xbf16, #tpu.memory_space<vmem>>, %arg13: memref<3x160xf32, #tpu.memory_space<vmem>>, %arg14: memref<160x16xbf16, #tpu.memory_space<vmem>>, %arg15: memref<3x16xf32, #tpu.memory_space<vmem>>, %arg16: memref<4x16x16xbf16, #tpu.memory_space<vmem>>, %arg17: memref<3x16xf32, #tpu.memory_space<vmem>>, %arg18: memref<4x16x16xbf16, #tpu.memory_space<vmem>>, %arg19: memref<3x16xf32, #tpu.memory_space<vmem>>, %arg20: memref<16x96xbf16, #tpu.memory_space<vmem>>, %arg21: memref<16x96xbf16, #tpu.memory_space<vmem>>, %arg22: memref<3x96xf32, #tpu.memory_space<vmem>>, %arg23: memref<3x32x32xbf16, #tpu.memory_space<vmem>>, %arg24: memref<3x32xf32, #tpu.memory_space<vmem>>, %arg25: memref<5x32x32xbf16, #tpu.memory_space<vmem>>, %arg26: memref<3x32xf32, #tpu.memory_space<vmem>>, %arg27: memref<96x512xf32, #tpu.memory_space<vmem>>, %arg28: memref<128x512xf32, #tpu.memory_space<vmem>>, %arg29: memref<1x512xf32, #tpu.memory_space<vmem>>, %arg30: memref<128x3xf32, #tpu.memory_space<vmem>>, %arg31: memref<1x3xf32, #tpu.memory_space<vmem>>, %arg32: memref<1x1x3xf32, #tpu.memory_space<vmem>>) attributes {dimension_semantics = [#tpu.dimension_semantics<parallel>], iteration_bounds = array<i64: 2>, scalar_prefetch = 0 : i64, scratch_operands = 0 : i64, tpu.core_type = #tpu.core_type<tc>, window_params = [{transform_indices = @transform_0, window_bounds = array<i64: 1, 26, 40>}, {pipeline_mode = #tpu.pipeline_mode<synchronous>, transform_indices = @transform_1, window_bounds = array<i64: 40, 320>}, {pipeline_mode = #tpu.pipeline_mode<synchronous>, transform_indices = @transform_2, window_bounds = array<i64: 3, 320>}, {pipeline_mode = #tpu.pipeline_mode<synchronous>, transform_indices = @transform_3, window_bounds = array<i64: 4, 320, 320>}, {pipeline_mode = #tpu.pipeline_mode<synchronous>, transform_indices = @transform_4, window_bounds = array<i64: 3, 320>}, {pipeline_mode = #tpu.pipeline_mode<synchronous>, transform_indices = @transform_5, window_bounds = array<i64: 4, 320, 320>}, {pipeline_mode = #tpu.pipeline_mode<synchronous>, transform_indices = @transform_6, window_bounds = array<i64: 3, 320>}, {pipeline_mode = #tpu.pipeline_mode<synchronous>, transform_indices = @transform_7, window_bounds = array<i64: 320, 160>}, {pipeline_mode = #tpu.pipeline_mode<synchronous>, transform_indices = @transform_8, window_bounds = array<i64: 3, 160>}, {pipeline_mode = #tpu.pipeline_mode<synchronous>, transform_indices = @transform_9, window_bounds = array<i64: 4, 160, 160>}, {pipeline_mode = #tpu.pipeline_mode<synchronous>, transform_indices = @transform_10, window_bounds = array<i64: 3, 160>}, {pipeline_mode = #tpu.pipeline_mode<synchronous>, transform_indices = @transform_11, window_bounds = array<i64: 4, 160, 160>}, {pipeline_mode = #tpu.pipeline_mode<synchronous>, transform_indices = @transform_12, window_bounds = array<i64: 3, 160>}, {pipeline_mode = #tpu.pipeline_mode<synchronous>, transform_indices = @transform_13, window_bounds = array<i64: 160, 16>}, {pipeline_mode = #tpu.pipeline_mode<synchronous>, transform_indices = @transform_14, window_bounds = array<i64: 3, 16>}, {pipeline_mode = #tpu.pipeline_mode<synchronous>, transform_indices = @transform_15, window_bounds = array<i64: 4, 16, 16>}, {pipeline_mode = #tpu.pipeline_mode<synchronous>, transform_indices = @transform_16, window_bounds = array<i64: 3, 16>}, {pipeline_mode = #tpu.pipeline_mode<synchronous>, transform_indices = @transform_17, window_bounds = array<i64: 4, 16, 16>}, {pipeline_mode = #tpu.pipeline_mode<synchronous>, transform_indices = @transform_18, window_bounds = array<i64: 3, 16>}, {pipeline_mode = #tpu.pipeline_mode<synchronous>, transform_indices = @transform_19, window_bounds = array<i64: 16, 96>}, {pipeline_mode = #tpu.pipeline_mode<synchronous>, transform_indices = @transform_20, window_bounds = array<i64: 16, 96>}, {pipeline_mode = #tpu.pipeline_mode<synchronous>, transform_indices = @transform_21, window_bounds = array<i64: 3, 96>}, {pipeline_mode = #tpu.pipeline_mode<synchronous>, transform_indices = @transform_22, window_bounds = array<i64: 3, 32, 32>}, {pipeline_mode = #tpu.pipeline_mode<synchronous>, transform_indices = @transform_23, window_bounds = array<i64: 3, 32>}, {pipeline_mode = #tpu.pipeline_mode<synchronous>, transform_indices = @transform_24, window_bounds = array<i64: 5, 32, 32>}, {pipeline_mode = #tpu.pipeline_mode<synchronous>, transform_indices = @transform_25, window_bounds = array<i64: 3, 32>}, {pipeline_mode = #tpu.pipeline_mode<synchronous>, transform_indices = @transform_26, window_bounds = array<i64: 96, 512>}, {pipeline_mode = #tpu.pipeline_mode<synchronous>, transform_indices = @transform_27, window_bounds = array<i64: 128, 512>}, {pipeline_mode = #tpu.pipeline_mode<synchronous>, transform_indices = @transform_28, window_bounds = array<i64: 1, 512>}, {pipeline_mode = #tpu.pipeline_mode<synchronous>, transform_indices = @transform_29, window_bounds = array<i64: 128, 3>}, {pipeline_mode = #tpu.pipeline_mode<synchronous>, transform_indices = @transform_30, window_bounds = array<i64: 1, 3>}, {transform_indices = @transform_31, window_bounds = array<i64: 1, 1, 3>}]} {
    %c0 = arith.constant 0 : index
    %c0_0 = arith.constant 0 : index
    %c0_1 = arith.constant 0 : index
    %0 = vector.load %arg1[%c0, %c0_0, %c0_1] : memref<1x26x40xf32, #tpu.memory_space<vmem>>, vector<1x26x40xf32>
    %1 = vector.shape_cast %0 : vector<1x26x40xf32> to vector<26x40xf32>
    %c0_2 = arith.constant 0 : index
    %c0_3 = arith.constant 0 : index
    %2 = vector.load %arg2[%c0_2, %c0_3] : memref<40x320xbf16, #tpu.memory_space<vmem>>, vector<40x320xbf16>
    %3 = arith.truncf %1 : vector<26x40xf32> to vector<26x40xbf16>
    %cst = arith.constant dense<0.000000e+00> : vector<26x320xf32>
    %4 = tpu.matmul %3, %2, %cst {dimension_numbers = #tpu.dot_dimension_numbers<[1], [0], [0], [1], [0, 0, 1, 1], [], []>} : vector<26x40xbf16>, vector<40x320xbf16>, vector<26x320xf32> -> vector<26x320xf32>
    %c0_4 = arith.constant 0 : index
    %c0_5 = arith.constant 0 : index
    %5 = vector.load %arg3[%c0_4, %c0_5] : memref<3x320xf32, #tpu.memory_space<vmem>>, vector<3x320xf32>
    %6 = vector.extract_strided_slice %5 {offsets = [0, 0], sizes = [1, 320], strides = [1, 1]} : vector<3x320xf32> to vector<1x320xf32>
    %7 = vector.broadcast %6 : vector<1x320xf32> to vector<26x320xf32>
    %8 = arith.addf %4, %7 : vector<26x320xf32>
    %cst_6 = arith.constant 0.000000e+00 : f32
    %9 = vector.broadcast %cst_6 : f32 to vector<26x320xf32>
    %10 = arith.maximumf %8, %9 : vector<26x320xf32>
    %11 = vector.extract_strided_slice %5 {offsets = [1, 0], sizes = [1, 320], strides = [1, 1]} : vector<3x320xf32> to vector<1x320xf32>
    %12 = vector.broadcast %11 : vector<1x320xf32> to vector<26x320xf32>
    %13 = arith.mulf %10, %12 : vector<26x320xf32>
    %14 = vector.extract_strided_slice %5 {offsets = [2, 0], sizes = [1, 320], strides = [1, 1]} : vector<3x320xf32> to vector<1x320xf32>
    %15 = vector.broadcast %14 : vector<1x320xf32> to vector<26x320xf32>
    %16 = arith.addf %13, %15 : vector<26x320xf32>
    %17 = vector.extract_strided_slice %16 {offsets = [0, 0], sizes = [23, 320], strides = [1, 1]} : vector<26x320xf32> to vector<23x320xf32>
    %c0_7 = arith.constant 0 : index
    %c0_8 = arith.constant 0 : index
    %c0_9 = arith.constant 0 : index
    %18 = vector.load %arg4[%c0_7, %c0_8, %c0_9] : memref<4x320x320xbf16, #tpu.memory_space<vmem>>, vector<1x320x320xbf16>
    %19 = vector.shape_cast %18 : vector<1x320x320xbf16> to vector<320x320xbf16>
    %20 = arith.truncf %17 : vector<23x320xf32> to vector<23x320xbf16>
    %cst_10 = arith.constant dense<0.000000e+00> : vector<23x320xf32>
    %21 = tpu.matmul %20, %19, %cst_10 {dimension_numbers = #tpu.dot_dimension_numbers<[1], [0], [0], [1], [0, 0, 1, 1], [], []>} : vector<23x320xbf16>, vector<320x320xbf16>, vector<23x320xf32> -> vector<23x320xf32>
    %22 = vector.extract_strided_slice %16 {offsets = [1, 0], sizes = [23, 320], strides = [1, 1]} : vector<26x320xf32> to vector<23x320xf32>
    %c1 = arith.constant 1 : index
    %c0_11 = arith.constant 0 : index
    %c0_12 = arith.constant 0 : index
    %23 = vector.load %arg4[%c1, %c0_11, %c0_12] : memref<4x320x320xbf16, #tpu.memory_space<vmem>>, vector<1x320x320xbf16>
    %24 = vector.shape_cast %23 : vector<1x320x320xbf16> to vector<320x320xbf16>
    %25 = arith.truncf %22 : vector<23x320xf32> to vector<23x320xbf16>
    %cst_13 = arith.constant dense<0.000000e+00> : vector<23x320xf32>
    %26 = tpu.matmul %25, %24, %cst_13 {dimension_numbers = #tpu.dot_dimension_numbers<[1], [0], [0], [1], [0, 0, 1, 1], [], []>} : vector<23x320xbf16>, vector<320x320xbf16>, vector<23x320xf32> -> vector<23x320xf32>
    %27 = arith.addf %21, %26 : vector<23x320xf32>
    %28 = vector.extract_strided_slice %16 {offsets = [2, 0], sizes = [23, 320], strides = [1, 1]} : vector<26x320xf32> to vector<23x320xf32>
    %c2 = arith.constant 2 : index
    %c0_14 = arith.constant 0 : index
    %c0_15 = arith.constant 0 : index
    %29 = vector.load %arg4[%c2, %c0_14, %c0_15] : memref<4x320x320xbf16, #tpu.memory_space<vmem>>, vector<1x320x320xbf16>
    %30 = vector.shape_cast %29 : vector<1x320x320xbf16> to vector<320x320xbf16>
    %31 = arith.truncf %28 : vector<23x320xf32> to vector<23x320xbf16>
    %cst_16 = arith.constant dense<0.000000e+00> : vector<23x320xf32>
    %32 = tpu.matmul %31, %30, %cst_16 {dimension_numbers = #tpu.dot_dimension_numbers<[1], [0], [0], [1], [0, 0, 1, 1], [], []>} : vector<23x320xbf16>, vector<320x320xbf16>, vector<23x320xf32> -> vector<23x320xf32>
    %33 = arith.addf %27, %32 : vector<23x320xf32>
    %34 = vector.extract_strided_slice %16 {offsets = [3, 0], sizes = [23, 320], strides = [1, 1]} : vector<26x320xf32> to vector<23x320xf32>
    %c3 = arith.constant 3 : index
    %c0_17 = arith.constant 0 : index
    %c0_18 = arith.constant 0 : index
    %35 = vector.load %arg4[%c3, %c0_17, %c0_18] : memref<4x320x320xbf16, #tpu.memory_space<vmem>>, vector<1x320x320xbf16>
    %36 = vector.shape_cast %35 : vector<1x320x320xbf16> to vector<320x320xbf16>
    %37 = arith.truncf %34 : vector<23x320xf32> to vector<23x320xbf16>
    %cst_19 = arith.constant dense<0.000000e+00> : vector<23x320xf32>
    %38 = tpu.matmul %37, %36, %cst_19 {dimension_numbers = #tpu.dot_dimension_numbers<[1], [0], [0], [1], [0, 0, 1, 1], [], []>} : vector<23x320xbf16>, vector<320x320xbf16>, vector<23x320xf32> -> vector<23x320xf32>
    %39 = arith.addf %33, %38 : vector<23x320xf32>
    %c0_20 = arith.constant 0 : index
    %c0_21 = arith.constant 0 : index
    %40 = vector.load %arg5[%c0_20, %c0_21] : memref<3x320xf32, #tpu.memory_space<vmem>>, vector<3x320xf32>
    %41 = vector.extract_strided_slice %40 {offsets = [0, 0], sizes = [1, 320], strides = [1, 1]} : vector<3x320xf32> to vector<1x320xf32>
    %42 = vector.broadcast %41 : vector<1x320xf32> to vector<23x320xf32>
    %43 = arith.addf %39, %42 : vector<23x320xf32>
    %cst_22 = arith.constant 0.000000e+00 : f32
    %44 = vector.broadcast %cst_22 : f32 to vector<23x320xf32>
    %45 = arith.maximumf %43, %44 : vector<23x320xf32>
    %46 = vector.extract_strided_slice %40 {offsets = [1, 0], sizes = [1, 320], strides = [1, 1]} : vector<3x320xf32> to vector<1x320xf32>
    %47 = vector.broadcast %46 : vector<1x320xf32> to vector<23x320xf32>
    %48 = arith.mulf %45, %47 : vector<23x320xf32>
    %49 = vector.extract_strided_slice %40 {offsets = [2, 0], sizes = [1, 320], strides = [1, 1]} : vector<3x320xf32> to vector<1x320xf32>
    %50 = vector.broadcast %49 : vector<1x320xf32> to vector<23x320xf32>
    %51 = arith.addf %48, %50 : vector<23x320xf32>
    %52 = vector.extract_strided_slice %51 {offsets = [0, 0], sizes = [20, 320], strides = [1, 1]} : vector<23x320xf32> to vector<20x320xf32>
    %c0_23 = arith.constant 0 : index
    %c0_24 = arith.constant 0 : index
    %c0_25 = arith.constant 0 : index
    %53 = vector.load %arg6[%c0_23, %c0_24, %c0_25] : memref<4x320x320xbf16, #tpu.memory_space<vmem>>, vector<1x320x320xbf16>
    %54 = vector.shape_cast %53 : vector<1x320x320xbf16> to vector<320x320xbf16>
    %55 = arith.truncf %52 : vector<20x320xf32> to vector<20x320xbf16>
    %cst_26 = arith.constant dense<0.000000e+00> : vector<20x320xf32>
    %56 = tpu.matmul %55, %54, %cst_26 {dimension_numbers = #tpu.dot_dimension_numbers<[1], [0], [0], [1], [0, 0, 1, 1], [], []>} : vector<20x320xbf16>, vector<320x320xbf16>, vector<20x320xf32> -> vector<20x320xf32>
    %57 = vector.extract_strided_slice %51 {offsets = [1, 0], sizes = [20, 320], strides = [1, 1]} : vector<23x320xf32> to vector<20x320xf32>
    %c1_27 = arith.constant 1 : index
    %c0_28 = arith.constant 0 : index
    %c0_29 = arith.constant 0 : index
    %58 = vector.load %arg6[%c1_27, %c0_28, %c0_29] : memref<4x320x320xbf16, #tpu.memory_space<vmem>>, vector<1x320x320xbf16>
    %59 = vector.shape_cast %58 : vector<1x320x320xbf16> to vector<320x320xbf16>
    %60 = arith.truncf %57 : vector<20x320xf32> to vector<20x320xbf16>
    %cst_30 = arith.constant dense<0.000000e+00> : vector<20x320xf32>
    %61 = tpu.matmul %60, %59, %cst_30 {dimension_numbers = #tpu.dot_dimension_numbers<[1], [0], [0], [1], [0, 0, 1, 1], [], []>} : vector<20x320xbf16>, vector<320x320xbf16>, vector<20x320xf32> -> vector<20x320xf32>
    %62 = arith.addf %56, %61 : vector<20x320xf32>
    %63 = vector.extract_strided_slice %51 {offsets = [2, 0], sizes = [20, 320], strides = [1, 1]} : vector<23x320xf32> to vector<20x320xf32>
    %c2_31 = arith.constant 2 : index
    %c0_32 = arith.constant 0 : index
    %c0_33 = arith.constant 0 : index
    %64 = vector.load %arg6[%c2_31, %c0_32, %c0_33] : memref<4x320x320xbf16, #tpu.memory_space<vmem>>, vector<1x320x320xbf16>
    %65 = vector.shape_cast %64 : vector<1x320x320xbf16> to vector<320x320xbf16>
    %66 = arith.truncf %63 : vector<20x320xf32> to vector<20x320xbf16>
    %cst_34 = arith.constant dense<0.000000e+00> : vector<20x320xf32>
    %67 = tpu.matmul %66, %65, %cst_34 {dimension_numbers = #tpu.dot_dimension_numbers<[1], [0], [0], [1], [0, 0, 1, 1], [], []>} : vector<20x320xbf16>, vector<320x320xbf16>, vector<20x320xf32> -> vector<20x320xf32>
    %68 = arith.addf %62, %67 : vector<20x320xf32>
    %69 = vector.extract_strided_slice %51 {offsets = [3, 0], sizes = [20, 320], strides = [1, 1]} : vector<23x320xf32> to vector<20x320xf32>
    %c3_35 = arith.constant 3 : index
    %c0_36 = arith.constant 0 : index
    %c0_37 = arith.constant 0 : index
    %70 = vector.load %arg6[%c3_35, %c0_36, %c0_37] : memref<4x320x320xbf16, #tpu.memory_space<vmem>>, vector<1x320x320xbf16>
    %71 = vector.shape_cast %70 : vector<1x320x320xbf16> to vector<320x320xbf16>
    %72 = arith.truncf %69 : vector<20x320xf32> to vector<20x320xbf16>
    %cst_38 = arith.constant dense<0.000000e+00> : vector<20x320xf32>
    %73 = tpu.matmul %72, %71, %cst_38 {dimension_numbers = #tpu.dot_dimension_numbers<[1], [0], [0], [1], [0, 0, 1, 1], [], []>} : vector<20x320xbf16>, vector<320x320xbf16>, vector<20x320xf32> -> vector<20x320xf32>
    %74 = arith.addf %68, %73 : vector<20x320xf32>
    %c0_39 = arith.constant 0 : index
    %c0_40 = arith.constant 0 : index
    %75 = vector.load %arg7[%c0_39, %c0_40] : memref<3x320xf32, #tpu.memory_space<vmem>>, vector<3x320xf32>
    %76 = vector.extract_strided_slice %75 {offsets = [0, 0], sizes = [1, 320], strides = [1, 1]} : vector<3x320xf32> to vector<1x320xf32>
    %77 = vector.broadcast %76 : vector<1x320xf32> to vector<20x320xf32>
    %78 = arith.addf %74, %77 : vector<20x320xf32>
    %cst_41 = arith.constant 0.000000e+00 : f32
    %79 = vector.broadcast %cst_41 : f32 to vector<20x320xf32>
    %80 = arith.maximumf %78, %79 : vector<20x320xf32>
    %81 = vector.extract_strided_slice %75 {offsets = [1, 0], sizes = [1, 320], strides = [1, 1]} : vector<3x320xf32> to vector<1x320xf32>
    %82 = vector.broadcast %81 : vector<1x320xf32> to vector<20x320xf32>
    %83 = arith.mulf %80, %82 : vector<20x320xf32>
    %84 = vector.extract_strided_slice %75 {offsets = [2, 0], sizes = [1, 320], strides = [1, 1]} : vector<3x320xf32> to vector<1x320xf32>
    %85 = vector.broadcast %84 : vector<1x320xf32> to vector<20x320xf32>
    %86 = arith.addf %83, %85 : vector<20x320xf32>
    %c0_42 = arith.constant 0 : index
    %c0_43 = arith.constant 0 : index
    %87 = vector.load %arg8[%c0_42, %c0_43] : memref<320x160xbf16, #tpu.memory_space<vmem>>, vector<320x160xbf16>
    %88 = arith.truncf %86 : vector<20x320xf32> to vector<20x320xbf16>
    %cst_44 = arith.constant dense<0.000000e+00> : vector<20x160xf32>
    %89 = tpu.matmul %88, %87, %cst_44 {dimension_numbers = #tpu.dot_dimension_numbers<[1], [0], [0], [1], [0, 0, 1, 1], [], []>} : vector<20x320xbf16>, vector<320x160xbf16>, vector<20x160xf32> -> vector<20x160xf32>
    %c0_45 = arith.constant 0 : index
    %c0_46 = arith.constant 0 : index
    %90 = vector.load %arg9[%c0_45, %c0_46] : memref<3x160xf32, #tpu.memory_space<vmem>>, vector<3x160xf32>
    %91 = vector.extract_strided_slice %90 {offsets = [0, 0], sizes = [1, 160], strides = [1, 1]} : vector<3x160xf32> to vector<1x160xf32>
    %92 = vector.broadcast %91 : vector<1x160xf32> to vector<20x160xf32>
    %93 = arith.addf %89, %92 : vector<20x160xf32>
    %cst_47 = arith.constant 0.000000e+00 : f32
    %94 = vector.broadcast %cst_47 : f32 to vector<20x160xf32>
    %95 = arith.maximumf %93, %94 : vector<20x160xf32>
    %96 = vector.extract_strided_slice %90 {offsets = [1, 0], sizes = [1, 160], strides = [1, 1]} : vector<3x160xf32> to vector<1x160xf32>
    %97 = vector.broadcast %96 : vector<1x160xf32> to vector<20x160xf32>
    %98 = arith.mulf %95, %97 : vector<20x160xf32>
    %99 = vector.extract_strided_slice %90 {offsets = [2, 0], sizes = [1, 160], strides = [1, 1]} : vector<3x160xf32> to vector<1x160xf32>
    %100 = vector.broadcast %99 : vector<1x160xf32> to vector<20x160xf32>
    %101 = arith.addf %98, %100 : vector<20x160xf32>
    %102 = vector.extract_strided_slice %101 {offsets = [0, 0], sizes = [17, 160], strides = [1, 1]} : vector<20x160xf32> to vector<17x160xf32>
    %c0_48 = arith.constant 0 : index
    %c0_49 = arith.constant 0 : index
    %c0_50 = arith.constant 0 : index
    %103 = vector.load %arg10[%c0_48, %c0_49, %c0_50] : memref<4x160x160xbf16, #tpu.memory_space<vmem>>, vector<1x160x160xbf16>
    %104 = vector.shape_cast %103 : vector<1x160x160xbf16> to vector<160x160xbf16>
    %105 = arith.truncf %102 : vector<17x160xf32> to vector<17x160xbf16>
    %cst_51 = arith.constant dense<0.000000e+00> : vector<17x160xf32>
    %106 = tpu.matmul %105, %104, %cst_51 {dimension_numbers = #tpu.dot_dimension_numbers<[1], [0], [0], [1], [0, 0, 1, 1], [], []>} : vector<17x160xbf16>, vector<160x160xbf16>, vector<17x160xf32> -> vector<17x160xf32>
    %107 = vector.extract_strided_slice %101 {offsets = [1, 0], sizes = [17, 160], strides = [1, 1]} : vector<20x160xf32> to vector<17x160xf32>
    %c1_52 = arith.constant 1 : index
    %c0_53 = arith.constant 0 : index
    %c0_54 = arith.constant 0 : index
    %108 = vector.load %arg10[%c1_52, %c0_53, %c0_54] : memref<4x160x160xbf16, #tpu.memory_space<vmem>>, vector<1x160x160xbf16>
    %109 = vector.shape_cast %108 : vector<1x160x160xbf16> to vector<160x160xbf16>
    %110 = arith.truncf %107 : vector<17x160xf32> to vector<17x160xbf16>
    %cst_55 = arith.constant dense<0.000000e+00> : vector<17x160xf32>
    %111 = tpu.matmul %110, %109, %cst_55 {dimension_numbers = #tpu.dot_dimension_numbers<[1], [0], [0], [1], [0, 0, 1, 1], [], []>} : vector<17x160xbf16>, vector<160x160xbf16>, vector<17x160xf32> -> vector<17x160xf32>
    %112 = arith.addf %106, %111 : vector<17x160xf32>
    %113 = vector.extract_strided_slice %101 {offsets = [2, 0], sizes = [17, 160], strides = [1, 1]} : vector<20x160xf32> to vector<17x160xf32>
    %c2_56 = arith.constant 2 : index
    %c0_57 = arith.constant 0 : index
    %c0_58 = arith.constant 0 : index
    %114 = vector.load %arg10[%c2_56, %c0_57, %c0_58] : memref<4x160x160xbf16, #tpu.memory_space<vmem>>, vector<1x160x160xbf16>
    %115 = vector.shape_cast %114 : vector<1x160x160xbf16> to vector<160x160xbf16>
    %116 = arith.truncf %113 : vector<17x160xf32> to vector<17x160xbf16>
    %cst_59 = arith.constant dense<0.000000e+00> : vector<17x160xf32>
    %117 = tpu.matmul %116, %115, %cst_59 {dimension_numbers = #tpu.dot_dimension_numbers<[1], [0], [0], [1], [0, 0, 1, 1], [], []>} : vector<17x160xbf16>, vector<160x160xbf16>, vector<17x160xf32> -> vector<17x160xf32>
    %118 = arith.addf %112, %117 : vector<17x160xf32>
    %119 = vector.extract_strided_slice %101 {offsets = [3, 0], sizes = [17, 160], strides = [1, 1]} : vector<20x160xf32> to vector<17x160xf32>
    %c3_60 = arith.constant 3 : index
    %c0_61 = arith.constant 0 : index
    %c0_62 = arith.constant 0 : index
    %120 = vector.load %arg10[%c3_60, %c0_61, %c0_62] : memref<4x160x160xbf16, #tpu.memory_space<vmem>>, vector<1x160x160xbf16>
    %121 = vector.shape_cast %120 : vector<1x160x160xbf16> to vector<160x160xbf16>
    %122 = arith.truncf %119 : vector<17x160xf32> to vector<17x160xbf16>
    %cst_63 = arith.constant dense<0.000000e+00> : vector<17x160xf32>
    %123 = tpu.matmul %122, %121, %cst_63 {dimension_numbers = #tpu.dot_dimension_numbers<[1], [0], [0], [1], [0, 0, 1, 1], [], []>} : vector<17x160xbf16>, vector<160x160xbf16>, vector<17x160xf32> -> vector<17x160xf32>
    %124 = arith.addf %118, %123 : vector<17x160xf32>
    %c0_64 = arith.constant 0 : index
    %c0_65 = arith.constant 0 : index
    %125 = vector.load %arg11[%c0_64, %c0_65] : memref<3x160xf32, #tpu.memory_space<vmem>>, vector<3x160xf32>
    %126 = vector.extract_strided_slice %125 {offsets = [0, 0], sizes = [1, 160], strides = [1, 1]} : vector<3x160xf32> to vector<1x160xf32>
    %127 = vector.broadcast %126 : vector<1x160xf32> to vector<17x160xf32>
    %128 = arith.addf %124, %127 : vector<17x160xf32>
    %cst_66 = arith.constant 0.000000e+00 : f32
    %129 = vector.broadcast %cst_66 : f32 to vector<17x160xf32>
    %130 = arith.maximumf %128, %129 : vector<17x160xf32>
    %131 = vector.extract_strided_slice %125 {offsets = [1, 0], sizes = [1, 160], strides = [1, 1]} : vector<3x160xf32> to vector<1x160xf32>
    %132 = vector.broadcast %131 : vector<1x160xf32> to vector<17x160xf32>
    %133 = arith.mulf %130, %132 : vector<17x160xf32>
    %134 = vector.extract_strided_slice %125 {offsets = [2, 0], sizes = [1, 160], strides = [1, 1]} : vector<3x160xf32> to vector<1x160xf32>
    %135 = vector.broadcast %134 : vector<1x160xf32> to vector<17x160xf32>
    %136 = arith.addf %133, %135 : vector<17x160xf32>
    %137 = vector.extract_strided_slice %136 {offsets = [0, 0], sizes = [14, 160], strides = [1, 1]} : vector<17x160xf32> to vector<14x160xf32>
    %c0_67 = arith.constant 0 : index
    %c0_68 = arith.constant 0 : index
    %c0_69 = arith.constant 0 : index
    %138 = vector.load %arg12[%c0_67, %c0_68, %c0_69] : memref<4x160x160xbf16, #tpu.memory_space<vmem>>, vector<1x160x160xbf16>
    %139 = vector.shape_cast %138 : vector<1x160x160xbf16> to vector<160x160xbf16>
    %140 = arith.truncf %137 : vector<14x160xf32> to vector<14x160xbf16>
    %cst_70 = arith.constant dense<0.000000e+00> : vector<14x160xf32>
    %141 = tpu.matmul %140, %139, %cst_70 {dimension_numbers = #tpu.dot_dimension_numbers<[1], [0], [0], [1], [0, 0, 1, 1], [], []>} : vector<14x160xbf16>, vector<160x160xbf16>, vector<14x160xf32> -> vector<14x160xf32>
    %142 = vector.extract_strided_slice %136 {offsets = [1, 0], sizes = [14, 160], strides = [1, 1]} : vector<17x160xf32> to vector<14x160xf32>
    %c1_71 = arith.constant 1 : index
    %c0_72 = arith.constant 0 : index
    %c0_73 = arith.constant 0 : index
    %143 = vector.load %arg12[%c1_71, %c0_72, %c0_73] : memref<4x160x160xbf16, #tpu.memory_space<vmem>>, vector<1x160x160xbf16>
    %144 = vector.shape_cast %143 : vector<1x160x160xbf16> to vector<160x160xbf16>
    %145 = arith.truncf %142 : vector<14x160xf32> to vector<14x160xbf16>
    %cst_74 = arith.constant dense<0.000000e+00> : vector<14x160xf32>
    %146 = tpu.matmul %145, %144, %cst_74 {dimension_numbers = #tpu.dot_dimension_numbers<[1], [0], [0], [1], [0, 0, 1, 1], [], []>} : vector<14x160xbf16>, vector<160x160xbf16>, vector<14x160xf32> -> vector<14x160xf32>
    %147 = arith.addf %141, %146 : vector<14x160xf32>
    %148 = vector.extract_strided_slice %136 {offsets = [2, 0], sizes = [14, 160], strides = [1, 1]} : vector<17x160xf32> to vector<14x160xf32>
    %c2_75 = arith.constant 2 : index
    %c0_76 = arith.constant 0 : index
    %c0_77 = arith.constant 0 : index
    %149 = vector.load %arg12[%c2_75, %c0_76, %c0_77] : memref<4x160x160xbf16, #tpu.memory_space<vmem>>, vector<1x160x160xbf16>
    %150 = vector.shape_cast %149 : vector<1x160x160xbf16> to vector<160x160xbf16>
    %151 = arith.truncf %148 : vector<14x160xf32> to vector<14x160xbf16>
    %cst_78 = arith.constant dense<0.000000e+00> : vector<14x160xf32>
    %152 = tpu.matmul %151, %150, %cst_78 {dimension_numbers = #tpu.dot_dimension_numbers<[1], [0], [0], [1], [0, 0, 1, 1], [], []>} : vector<14x160xbf16>, vector<160x160xbf16>, vector<14x160xf32> -> vector<14x160xf32>
    %153 = arith.addf %147, %152 : vector<14x160xf32>
    %154 = vector.extract_strided_slice %136 {offsets = [3, 0], sizes = [14, 160], strides = [1, 1]} : vector<17x160xf32> to vector<14x160xf32>
    %c3_79 = arith.constant 3 : index
    %c0_80 = arith.constant 0 : index
    %c0_81 = arith.constant 0 : index
    %155 = vector.load %arg12[%c3_79, %c0_80, %c0_81] : memref<4x160x160xbf16, #tpu.memory_space<vmem>>, vector<1x160x160xbf16>
    %156 = vector.shape_cast %155 : vector<1x160x160xbf16> to vector<160x160xbf16>
    %157 = arith.truncf %154 : vector<14x160xf32> to vector<14x160xbf16>
    %cst_82 = arith.constant dense<0.000000e+00> : vector<14x160xf32>
    %158 = tpu.matmul %157, %156, %cst_82 {dimension_numbers = #tpu.dot_dimension_numbers<[1], [0], [0], [1], [0, 0, 1, 1], [], []>} : vector<14x160xbf16>, vector<160x160xbf16>, vector<14x160xf32> -> vector<14x160xf32>
    %159 = arith.addf %153, %158 : vector<14x160xf32>
    %c0_83 = arith.constant 0 : index
    %c0_84 = arith.constant 0 : index
    %160 = vector.load %arg13[%c0_83, %c0_84] : memref<3x160xf32, #tpu.memory_space<vmem>>, vector<3x160xf32>
    %161 = vector.extract_strided_slice %160 {offsets = [0, 0], sizes = [1, 160], strides = [1, 1]} : vector<3x160xf32> to vector<1x160xf32>
    %162 = vector.broadcast %161 : vector<1x160xf32> to vector<14x160xf32>
    %163 = arith.addf %159, %162 : vector<14x160xf32>
    %cst_85 = arith.constant 0.000000e+00 : f32
    %164 = vector.broadcast %cst_85 : f32 to vector<14x160xf32>
    %165 = arith.maximumf %163, %164 : vector<14x160xf32>
    %166 = vector.extract_strided_slice %160 {offsets = [1, 0], sizes = [1, 160], strides = [1, 1]} : vector<3x160xf32> to vector<1x160xf32>
    %167 = vector.broadcast %166 : vector<1x160xf32> to vector<14x160xf32>
    %168 = arith.mulf %165, %167 : vector<14x160xf32>
    %169 = vector.extract_strided_slice %160 {offsets = [2, 0], sizes = [1, 160], strides = [1, 1]} : vector<3x160xf32> to vector<1x160xf32>
    %170 = vector.broadcast %169 : vector<1x160xf32> to vector<14x160xf32>
    %171 = arith.addf %168, %170 : vector<14x160xf32>
    %c0_86 = arith.constant 0 : index
    %c0_87 = arith.constant 0 : index
    %172 = vector.load %arg14[%c0_86, %c0_87] : memref<160x16xbf16, #tpu.memory_space<vmem>>, vector<160x16xbf16>
    %173 = arith.truncf %171 : vector<14x160xf32> to vector<14x160xbf16>
    %cst_88 = arith.constant dense<0.000000e+00> : vector<14x16xf32>
    %174 = tpu.matmul %173, %172, %cst_88 {dimension_numbers = #tpu.dot_dimension_numbers<[1], [0], [0], [1], [0, 0, 1, 1], [], []>} : vector<14x160xbf16>, vector<160x16xbf16>, vector<14x16xf32> -> vector<14x16xf32>
    %c0_89 = arith.constant 0 : index
    %c0_90 = arith.constant 0 : index
    %175 = vector.load %arg15[%c0_89, %c0_90] : memref<3x16xf32, #tpu.memory_space<vmem>>, vector<3x16xf32>
    %176 = vector.extract_strided_slice %175 {offsets = [0, 0], sizes = [1, 16], strides = [1, 1]} : vector<3x16xf32> to vector<1x16xf32>
    %177 = vector.broadcast %176 : vector<1x16xf32> to vector<14x16xf32>
    %178 = arith.addf %174, %177 : vector<14x16xf32>
    %cst_91 = arith.constant 0.000000e+00 : f32
    %179 = vector.broadcast %cst_91 : f32 to vector<14x16xf32>
    %180 = arith.maximumf %178, %179 : vector<14x16xf32>
    %181 = vector.extract_strided_slice %175 {offsets = [1, 0], sizes = [1, 16], strides = [1, 1]} : vector<3x16xf32> to vector<1x16xf32>
    %182 = vector.broadcast %181 : vector<1x16xf32> to vector<14x16xf32>
    %183 = arith.mulf %180, %182 : vector<14x16xf32>
    %184 = vector.extract_strided_slice %175 {offsets = [2, 0], sizes = [1, 16], strides = [1, 1]} : vector<3x16xf32> to vector<1x16xf32>
    %185 = vector.broadcast %184 : vector<1x16xf32> to vector<14x16xf32>
    %186 = arith.addf %183, %185 : vector<14x16xf32>
    %187 = vector.extract_strided_slice %186 {offsets = [0, 0], sizes = [11, 16], strides = [1, 1]} : vector<14x16xf32> to vector<11x16xf32>
    %c0_92 = arith.constant 0 : index
    %c0_93 = arith.constant 0 : index
    %c0_94 = arith.constant 0 : index
    %188 = vector.load %arg16[%c0_92, %c0_93, %c0_94] : memref<4x16x16xbf16, #tpu.memory_space<vmem>>, vector<1x16x16xbf16>
    %189 = vector.shape_cast %188 : vector<1x16x16xbf16> to vector<16x16xbf16>
    %190 = arith.truncf %187 : vector<11x16xf32> to vector<11x16xbf16>
    %cst_95 = arith.constant dense<0.000000e+00> : vector<11x16xf32>
    %191 = tpu.matmul %190, %189, %cst_95 {dimension_numbers = #tpu.dot_dimension_numbers<[1], [0], [0], [1], [0, 0, 1, 1], [], []>} : vector<11x16xbf16>, vector<16x16xbf16>, vector<11x16xf32> -> vector<11x16xf32>
    %192 = vector.extract_strided_slice %186 {offsets = [1, 0], sizes = [11, 16], strides = [1, 1]} : vector<14x16xf32> to vector<11x16xf32>
    %c1_96 = arith.constant 1 : index
    %c0_97 = arith.constant 0 : index
    %c0_98 = arith.constant 0 : index
    %193 = vector.load %arg16[%c1_96, %c0_97, %c0_98] : memref<4x16x16xbf16, #tpu.memory_space<vmem>>, vector<1x16x16xbf16>
    %194 = vector.shape_cast %193 : vector<1x16x16xbf16> to vector<16x16xbf16>
    %195 = arith.truncf %192 : vector<11x16xf32> to vector<11x16xbf16>
    %cst_99 = arith.constant dense<0.000000e+00> : vector<11x16xf32>
    %196 = tpu.matmul %195, %194, %cst_99 {dimension_numbers = #tpu.dot_dimension_numbers<[1], [0], [0], [1], [0, 0, 1, 1], [], []>} : vector<11x16xbf16>, vector<16x16xbf16>, vector<11x16xf32> -> vector<11x16xf32>
    %197 = arith.addf %191, %196 : vector<11x16xf32>
    %198 = vector.extract_strided_slice %186 {offsets = [2, 0], sizes = [11, 16], strides = [1, 1]} : vector<14x16xf32> to vector<11x16xf32>
    %c2_100 = arith.constant 2 : index
    %c0_101 = arith.constant 0 : index
    %c0_102 = arith.constant 0 : index
    %199 = vector.load %arg16[%c2_100, %c0_101, %c0_102] : memref<4x16x16xbf16, #tpu.memory_space<vmem>>, vector<1x16x16xbf16>
    %200 = vector.shape_cast %199 : vector<1x16x16xbf16> to vector<16x16xbf16>
    %201 = arith.truncf %198 : vector<11x16xf32> to vector<11x16xbf16>
    %cst_103 = arith.constant dense<0.000000e+00> : vector<11x16xf32>
    %202 = tpu.matmul %201, %200, %cst_103 {dimension_numbers = #tpu.dot_dimension_numbers<[1], [0], [0], [1], [0, 0, 1, 1], [], []>} : vector<11x16xbf16>, vector<16x16xbf16>, vector<11x16xf32> -> vector<11x16xf32>
    %203 = arith.addf %197, %202 : vector<11x16xf32>
    %204 = vector.extract_strided_slice %186 {offsets = [3, 0], sizes = [11, 16], strides = [1, 1]} : vector<14x16xf32> to vector<11x16xf32>
    %c3_104 = arith.constant 3 : index
    %c0_105 = arith.constant 0 : index
    %c0_106 = arith.constant 0 : index
    %205 = vector.load %arg16[%c3_104, %c0_105, %c0_106] : memref<4x16x16xbf16, #tpu.memory_space<vmem>>, vector<1x16x16xbf16>
    %206 = vector.shape_cast %205 : vector<1x16x16xbf16> to vector<16x16xbf16>
    %207 = arith.truncf %204 : vector<11x16xf32> to vector<11x16xbf16>
    %cst_107 = arith.constant dense<0.000000e+00> : vector<11x16xf32>
    %208 = tpu.matmul %207, %206, %cst_107 {dimension_numbers = #tpu.dot_dimension_numbers<[1], [0], [0], [1], [0, 0, 1, 1], [], []>} : vector<11x16xbf16>, vector<16x16xbf16>, vector<11x16xf32> -> vector<11x16xf32>
    %209 = arith.addf %203, %208 : vector<11x16xf32>
    %c0_108 = arith.constant 0 : index
    %c0_109 = arith.constant 0 : index
    %210 = vector.load %arg17[%c0_108, %c0_109] : memref<3x16xf32, #tpu.memory_space<vmem>>, vector<3x16xf32>
    %211 = vector.extract_strided_slice %210 {offsets = [0, 0], sizes = [1, 16], strides = [1, 1]} : vector<3x16xf32> to vector<1x16xf32>
    %212 = vector.broadcast %211 : vector<1x16xf32> to vector<11x16xf32>
    %213 = arith.addf %209, %212 : vector<11x16xf32>
    %cst_110 = arith.constant 0.000000e+00 : f32
    %214 = vector.broadcast %cst_110 : f32 to vector<11x16xf32>
    %215 = arith.maximumf %213, %214 : vector<11x16xf32>
    %216 = vector.extract_strided_slice %210 {offsets = [1, 0], sizes = [1, 16], strides = [1, 1]} : vector<3x16xf32> to vector<1x16xf32>
    %217 = vector.broadcast %216 : vector<1x16xf32> to vector<11x16xf32>
    %218 = arith.mulf %215, %217 : vector<11x16xf32>
    %219 = vector.extract_strided_slice %210 {offsets = [2, 0], sizes = [1, 16], strides = [1, 1]} : vector<3x16xf32> to vector<1x16xf32>
    %220 = vector.broadcast %219 : vector<1x16xf32> to vector<11x16xf32>
    %221 = arith.addf %218, %220 : vector<11x16xf32>
    %222 = vector.extract_strided_slice %221 {offsets = [0, 0], sizes = [8, 16], strides = [1, 1]} : vector<11x16xf32> to vector<8x16xf32>
    %c0_111 = arith.constant 0 : index
    %c0_112 = arith.constant 0 : index
    %c0_113 = arith.constant 0 : index
    %223 = vector.load %arg18[%c0_111, %c0_112, %c0_113] : memref<4x16x16xbf16, #tpu.memory_space<vmem>>, vector<1x16x16xbf16>
    %224 = vector.shape_cast %223 : vector<1x16x16xbf16> to vector<16x16xbf16>
    %225 = arith.truncf %222 : vector<8x16xf32> to vector<8x16xbf16>
    %cst_114 = arith.constant dense<0.000000e+00> : vector<8x16xf32>
    %226 = tpu.matmul %225, %224, %cst_114 {dimension_numbers = #tpu.dot_dimension_numbers<[1], [0], [0], [1], [0, 0, 1, 1], [], []>} : vector<8x16xbf16>, vector<16x16xbf16>, vector<8x16xf32> -> vector<8x16xf32>
    %227 = vector.extract_strided_slice %221 {offsets = [1, 0], sizes = [8, 16], strides = [1, 1]} : vector<11x16xf32> to vector<8x16xf32>
    %c1_115 = arith.constant 1 : index
    %c0_116 = arith.constant 0 : index
    %c0_117 = arith.constant 0 : index
    %228 = vector.load %arg18[%c1_115, %c0_116, %c0_117] : memref<4x16x16xbf16, #tpu.memory_space<vmem>>, vector<1x16x16xbf16>
    %229 = vector.shape_cast %228 : vector<1x16x16xbf16> to vector<16x16xbf16>
    %230 = arith.truncf %227 : vector<8x16xf32> to vector<8x16xbf16>
    %cst_118 = arith.constant dense<0.000000e+00> : vector<8x16xf32>
    %231 = tpu.matmul %230, %229, %cst_118 {dimension_numbers = #tpu.dot_dimension_numbers<[1], [0], [0], [1], [0, 0, 1, 1], [], []>} : vector<8x16xbf16>, vector<16x16xbf16>, vector<8x16xf32> -> vector<8x16xf32>
    %232 = arith.addf %226, %231 : vector<8x16xf32>
    %233 = vector.extract_strided_slice %221 {offsets = [2, 0], sizes = [8, 16], strides = [1, 1]} : vector<11x16xf32> to vector<8x16xf32>
    %c2_119 = arith.constant 2 : index
    %c0_120 = arith.constant 0 : index
    %c0_121 = arith.constant 0 : index
    %234 = vector.load %arg18[%c2_119, %c0_120, %c0_121] : memref<4x16x16xbf16, #tpu.memory_space<vmem>>, vector<1x16x16xbf16>
    %235 = vector.shape_cast %234 : vector<1x16x16xbf16> to vector<16x16xbf16>
    %236 = arith.truncf %233 : vector<8x16xf32> to vector<8x16xbf16>
    %cst_122 = arith.constant dense<0.000000e+00> : vector<8x16xf32>
    %237 = tpu.matmul %236, %235, %cst_122 {dimension_numbers = #tpu.dot_dimension_numbers<[1], [0], [0], [1], [0, 0, 1, 1], [], []>} : vector<8x16xbf16>, vector<16x16xbf16>, vector<8x16xf32> -> vector<8x16xf32>
    %238 = arith.addf %232, %237 : vector<8x16xf32>
    %239 = vector.extract_strided_slice %221 {offsets = [3, 0], sizes = [8, 16], strides = [1, 1]} : vector<11x16xf32> to vector<8x16xf32>
    %c3_123 = arith.constant 3 : index
    %c0_124 = arith.constant 0 : index
    %c0_125 = arith.constant 0 : index
    %240 = vector.load %arg18[%c3_123, %c0_124, %c0_125] : memref<4x16x16xbf16, #tpu.memory_space<vmem>>, vector<1x16x16xbf16>
    %241 = vector.shape_cast %240 : vector<1x16x16xbf16> to vector<16x16xbf16>
    %242 = arith.truncf %239 : vector<8x16xf32> to vector<8x16xbf16>
    %cst_126 = arith.constant dense<0.000000e+00> : vector<8x16xf32>
    %243 = tpu.matmul %242, %241, %cst_126 {dimension_numbers = #tpu.dot_dimension_numbers<[1], [0], [0], [1], [0, 0, 1, 1], [], []>} : vector<8x16xbf16>, vector<16x16xbf16>, vector<8x16xf32> -> vector<8x16xf32>
    %244 = arith.addf %238, %243 : vector<8x16xf32>
    %c0_127 = arith.constant 0 : index
    %c0_128 = arith.constant 0 : index
    %245 = vector.load %arg19[%c0_127, %c0_128] : memref<3x16xf32, #tpu.memory_space<vmem>>, vector<3x16xf32>
    %246 = vector.extract_strided_slice %245 {offsets = [0, 0], sizes = [1, 16], strides = [1, 1]} : vector<3x16xf32> to vector<1x16xf32>
    %247 = vector.broadcast %246 : vector<1x16xf32> to vector<8x16xf32>
    %248 = arith.addf %244, %247 : vector<8x16xf32>
    %cst_129 = arith.constant 0.000000e+00 : f32
    %249 = vector.broadcast %cst_129 : f32 to vector<8x16xf32>
    %250 = arith.maximumf %248, %249 : vector<8x16xf32>
    %251 = vector.extract_strided_slice %245 {offsets = [1, 0], sizes = [1, 16], strides = [1, 1]} : vector<3x16xf32> to vector<1x16xf32>
    %252 = vector.broadcast %251 : vector<1x16xf32> to vector<8x16xf32>
    %253 = arith.mulf %250, %252 : vector<8x16xf32>
    %254 = vector.extract_strided_slice %245 {offsets = [2, 0], sizes = [1, 16], strides = [1, 1]} : vector<3x16xf32> to vector<1x16xf32>
    %255 = vector.broadcast %254 : vector<1x16xf32> to vector<8x16xf32>
    %256 = arith.addf %253, %255 : vector<8x16xf32>
    %257 = tpu.iota {dimensions = array<i32: 0>} : vector<8x8xi32>
    %258 = tpu.iota {dimensions = array<i32: 1>} : vector<8x8xi32>
    %259 = tpu.iota {dimensions = array<i32: 0>} : vector<8x16xi32>
    %c7_i32 = arith.constant 7 : i32
    %260 = vector.broadcast %c7_i32 : i32 to vector<8x16xi32>
    %261 = arith.cmpi slt, %259, %260 : vector<8x16xi32>
    %c1_i32 = arith.constant 1 : i32
    %262 = vector.broadcast %c1_i32 : i32 to vector<8x8xi32>
    %263 = arith.addi %257, %262 : vector<8x8xi32>
    %264 = arith.cmpi eq, %258, %263 : vector<8x8xi32>
    %265 = arith.extui %264 : vector<8x8xi1> to vector<8x8xi32>
    %266 = arith.sitofp %265 : vector<8x8xi32> to vector<8x8xf32>
    %cst_130 = arith.constant dense<0.000000e+00> : vector<8x16xf32>
    %267 = tpu.matmul %266, %256, %cst_130 {dimension_numbers = #tpu.dot_dimension_numbers<[1], [0], [0], [1], [0, 0, 1, 1], [], []>} : vector<8x8xf32>, vector<8x16xf32>, vector<8x16xf32> -> vector<8x16xf32>
    %cst_131 = arith.constant -1.000000e+30 : f32
    %268 = vector.broadcast %cst_131 : f32 to vector<8x16xf32>
    %269 = arith.select %261, %267, %268 : vector<8x16xi1>, vector<8x16xf32>
    %c0_i32 = arith.constant 0 : i32
    %270 = vector.broadcast %c0_i32 : i32 to vector<8x16xi32>
    %271 = arith.cmpi sgt, %259, %270 : vector<8x16xi32>
    %c-1_i32 = arith.constant -1 : i32
    %272 = vector.broadcast %c-1_i32 : i32 to vector<8x8xi32>
    %273 = arith.addi %257, %272 : vector<8x8xi32>
    %274 = arith.cmpi eq, %258, %273 : vector<8x8xi32>
    %275 = arith.extui %274 : vector<8x8xi1> to vector<8x8xi32>
    %276 = arith.sitofp %275 : vector<8x8xi32> to vector<8x8xf32>
    %cst_132 = arith.constant dense<0.000000e+00> : vector<8x16xf32>
    %277 = tpu.matmul %276, %256, %cst_132 {dimension_numbers = #tpu.dot_dimension_numbers<[1], [0], [0], [1], [0, 0, 1, 1], [], []>} : vector<8x8xf32>, vector<8x16xf32>, vector<8x16xf32> -> vector<8x16xf32>
    %cst_133 = arith.constant -1.000000e+30 : f32
    %278 = vector.broadcast %cst_133 : f32 to vector<8x16xf32>
    %279 = arith.select %271, %277, %278 : vector<8x16xi1>, vector<8x16xf32>
    %280 = arith.maximumf %269, %279 : vector<8x16xf32>
    %281 = arith.maximumf %256, %280 : vector<8x16xf32>
    %c0_134 = arith.constant 0 : index
    %c0_135 = arith.constant 0 : index
    %282 = vector.load %arg20[%c0_134, %c0_135] : memref<16x96xbf16, #tpu.memory_space<vmem>>, vector<16x96xbf16>
    %283 = arith.truncf %256 : vector<8x16xf32> to vector<8x16xbf16>
    %cst_136 = arith.constant dense<0.000000e+00> : vector<8x96xf32>
    %284 = tpu.matmul %283, %282, %cst_136 {dimension_numbers = #tpu.dot_dimension_numbers<[1], [0], [0], [1], [0, 0, 1, 1], [], []>} : vector<8x16xbf16>, vector<16x96xbf16>, vector<8x96xf32> -> vector<8x96xf32>
    %c0_137 = arith.constant 0 : index
    %c0_138 = arith.constant 0 : index
    %285 = vector.load %arg21[%c0_137, %c0_138] : memref<16x96xbf16, #tpu.memory_space<vmem>>, vector<16x96xbf16>
    %286 = arith.truncf %281 : vector<8x16xf32> to vector<8x16xbf16>
    %cst_139 = arith.constant dense<0.000000e+00> : vector<8x96xf32>
    %287 = tpu.matmul %286, %285, %cst_139 {dimension_numbers = #tpu.dot_dimension_numbers<[1], [0], [0], [1], [0, 0, 1, 1], [], []>} : vector<8x16xbf16>, vector<16x96xbf16>, vector<8x96xf32> -> vector<8x96xf32>
    %288 = arith.addf %284, %287 : vector<8x96xf32>
    %c0_140 = arith.constant 0 : index
    %c0_141 = arith.constant 0 : index
    %289 = vector.load %arg22[%c0_140, %c0_141] : memref<3x96xf32, #tpu.memory_space<vmem>>, vector<3x96xf32>
    %290 = vector.extract_strided_slice %289 {offsets = [0, 0], sizes = [1, 96], strides = [1, 1]} : vector<3x96xf32> to vector<1x96xf32>
    %291 = vector.broadcast %290 : vector<1x96xf32> to vector<8x96xf32>
    %292 = arith.addf %288, %291 : vector<8x96xf32>
    %cst_142 = arith.constant 0.000000e+00 : f32
    %293 = vector.broadcast %cst_142 : f32 to vector<8x96xf32>
    %294 = arith.maximumf %292, %293 : vector<8x96xf32>
    %295 = vector.extract_strided_slice %289 {offsets = [1, 0], sizes = [1, 96], strides = [1, 1]} : vector<3x96xf32> to vector<1x96xf32>
    %296 = vector.broadcast %295 : vector<1x96xf32> to vector<8x96xf32>
    %297 = arith.mulf %294, %296 : vector<8x96xf32>
    %298 = vector.extract_strided_slice %289 {offsets = [2, 0], sizes = [1, 96], strides = [1, 1]} : vector<3x96xf32> to vector<1x96xf32>
    %299 = vector.broadcast %298 : vector<1x96xf32> to vector<8x96xf32>
    %300 = arith.addf %297, %299 : vector<8x96xf32>
    %301 = vector.extract_strided_slice %300 {offsets = [0, 0], sizes = [8, 32], strides = [1, 1]} : vector<8x96xf32> to vector<8x32xf32>
    %302 = vector.extract_strided_slice %300 {offsets = [0, 32], sizes = [8, 32], strides = [1, 1]} : vector<8x96xf32> to vector<8x32xf32>
    %303 = vector.extract_strided_slice %300 {offsets = [0, 64], sizes = [8, 32], strides = [1, 1]} : vector<8x96xf32> to vector<8x32xf32>
    %c-1_i32_143 = arith.constant -1 : i32
    %304 = vector.broadcast %c-1_i32_143 : i32 to vector<8x8xi32>
    %305 = arith.addi %257, %304 : vector<8x8xi32>
    %306 = arith.cmpi eq, %258, %305 : vector<8x8xi32>
    %307 = arith.extui %306 : vector<8x8xi1> to vector<8x8xi32>
    %308 = arith.sitofp %307 : vector<8x8xi32> to vector<8x8xf32>
    %cst_144 = arith.constant dense<0.000000e+00> : vector<8x32xf32>
    %309 = tpu.matmul %308, %301, %cst_144 {dimension_numbers = #tpu.dot_dimension_numbers<[1], [0], [0], [1], [0, 0, 1, 1], [], []>} : vector<8x8xf32>, vector<8x32xf32>, vector<8x32xf32> -> vector<8x32xf32>
    %c0_145 = arith.constant 0 : index
    %c0_146 = arith.constant 0 : index
    %c0_147 = arith.constant 0 : index
    %310 = vector.load %arg23[%c0_145, %c0_146, %c0_147] : memref<3x32x32xbf16, #tpu.memory_space<vmem>>, vector<1x32x32xbf16>
    %311 = vector.shape_cast %310 : vector<1x32x32xbf16> to vector<32x32xbf16>
    %312 = arith.truncf %309 : vector<8x32xf32> to vector<8x32xbf16>
    %cst_148 = arith.constant dense<0.000000e+00> : vector<8x32xf32>
    %313 = tpu.matmul %312, %311, %cst_148 {dimension_numbers = #tpu.dot_dimension_numbers<[1], [0], [0], [1], [0, 0, 1, 1], [], []>} : vector<8x32xbf16>, vector<32x32xbf16>, vector<8x32xf32> -> vector<8x32xf32>
    %c1_149 = arith.constant 1 : index
    %c0_150 = arith.constant 0 : index
    %c0_151 = arith.constant 0 : index
    %314 = vector.load %arg23[%c1_149, %c0_150, %c0_151] : memref<3x32x32xbf16, #tpu.memory_space<vmem>>, vector<1x32x32xbf16>
    %315 = vector.shape_cast %314 : vector<1x32x32xbf16> to vector<32x32xbf16>
    %316 = arith.truncf %301 : vector<8x32xf32> to vector<8x32xbf16>
    %cst_152 = arith.constant dense<0.000000e+00> : vector<8x32xf32>
    %317 = tpu.matmul %316, %315, %cst_152 {dimension_numbers = #tpu.dot_dimension_numbers<[1], [0], [0], [1], [0, 0, 1, 1], [], []>} : vector<8x32xbf16>, vector<32x32xbf16>, vector<8x32xf32> -> vector<8x32xf32>
    %318 = arith.addf %313, %317 : vector<8x32xf32>
    %c1_i32_153 = arith.constant 1 : i32
    %319 = vector.broadcast %c1_i32_153 : i32 to vector<8x8xi32>
    %320 = arith.addi %257, %319 : vector<8x8xi32>
    %321 = arith.cmpi eq, %258, %320 : vector<8x8xi32>
    %322 = arith.extui %321 : vector<8x8xi1> to vector<8x8xi32>
    %323 = arith.sitofp %322 : vector<8x8xi32> to vector<8x8xf32>
    %cst_154 = arith.constant dense<0.000000e+00> : vector<8x32xf32>
    %324 = tpu.matmul %323, %301, %cst_154 {dimension_numbers = #tpu.dot_dimension_numbers<[1], [0], [0], [1], [0, 0, 1, 1], [], []>} : vector<8x8xf32>, vector<8x32xf32>, vector<8x32xf32> -> vector<8x32xf32>
    %c2_155 = arith.constant 2 : index
    %c0_156 = arith.constant 0 : index
    %c0_157 = arith.constant 0 : index
    %325 = vector.load %arg23[%c2_155, %c0_156, %c0_157] : memref<3x32x32xbf16, #tpu.memory_space<vmem>>, vector<1x32x32xbf16>
    %326 = vector.shape_cast %325 : vector<1x32x32xbf16> to vector<32x32xbf16>
    %327 = arith.truncf %324 : vector<8x32xf32> to vector<8x32xbf16>
    %cst_158 = arith.constant dense<0.000000e+00> : vector<8x32xf32>
    %328 = tpu.matmul %327, %326, %cst_158 {dimension_numbers = #tpu.dot_dimension_numbers<[1], [0], [0], [1], [0, 0, 1, 1], [], []>} : vector<8x32xbf16>, vector<32x32xbf16>, vector<8x32xf32> -> vector<8x32xf32>
    %329 = arith.addf %318, %328 : vector<8x32xf32>
    %c0_159 = arith.constant 0 : index
    %c0_160 = arith.constant 0 : index
    %330 = vector.load %arg24[%c0_159, %c0_160] : memref<3x32xf32, #tpu.memory_space<vmem>>, vector<3x32xf32>
    %331 = vector.extract_strided_slice %330 {offsets = [0, 0], sizes = [1, 32], strides = [1, 1]} : vector<3x32xf32> to vector<1x32xf32>
    %332 = vector.broadcast %331 : vector<1x32xf32> to vector<8x32xf32>
    %333 = arith.addf %329, %332 : vector<8x32xf32>
    %cst_161 = arith.constant 0.000000e+00 : f32
    %334 = vector.broadcast %cst_161 : f32 to vector<8x32xf32>
    %335 = arith.maximumf %333, %334 : vector<8x32xf32>
    %336 = vector.extract_strided_slice %330 {offsets = [1, 0], sizes = [1, 32], strides = [1, 1]} : vector<3x32xf32> to vector<1x32xf32>
    %337 = vector.broadcast %336 : vector<1x32xf32> to vector<8x32xf32>
    %338 = arith.mulf %335, %337 : vector<8x32xf32>
    %339 = vector.extract_strided_slice %330 {offsets = [2, 0], sizes = [1, 32], strides = [1, 1]} : vector<3x32xf32> to vector<1x32xf32>
    %340 = vector.broadcast %339 : vector<1x32xf32> to vector<8x32xf32>
    %341 = arith.addf %338, %340 : vector<8x32xf32>
    %c-2_i32 = arith.constant -2 : i32
    %342 = vector.broadcast %c-2_i32 : i32 to vector<8x8xi32>
    %343 = arith.addi %257, %342 : vector<8x8xi32>
    %344 = arith.cmpi eq, %258, %343 : vector<8x8xi32>
    %345 = arith.extui %344 : vector<8x8xi1> to vector<8x8xi32>
    %346 = arith.sitofp %345 : vector<8x8xi32> to vector<8x8xf32>
    %cst_162 = arith.constant dense<0.000000e+00> : vector<8x32xf32>
    %347 = tpu.matmul %346, %302, %cst_162 {dimension_numbers = #tpu.dot_dimension_numbers<[1], [0], [0], [1], [0, 0, 1, 1], [], []>} : vector<8x8xf32>, vector<8x32xf32>, vector<8x32xf32> -> vector<8x32xf32>
    %c0_163 = arith.constant 0 : index
    %c0_164 = arith.constant 0 : index
    %c0_165 = arith.constant 0 : index
    %348 = vector.load %arg25[%c0_163, %c0_164, %c0_165] : memref<5x32x32xbf16, #tpu.memory_space<vmem>>, vector<1x32x32xbf16>
    %349 = vector.shape_cast %348 : vector<1x32x32xbf16> to vector<32x32xbf16>
    %350 = arith.truncf %347 : vector<8x32xf32> to vector<8x32xbf16>
    %cst_166 = arith.constant dense<0.000000e+00> : vector<8x32xf32>
    %351 = tpu.matmul %350, %349, %cst_166 {dimension_numbers = #tpu.dot_dimension_numbers<[1], [0], [0], [1], [0, 0, 1, 1], [], []>} : vector<8x32xbf16>, vector<32x32xbf16>, vector<8x32xf32> -> vector<8x32xf32>
    %c-1_i32_167 = arith.constant -1 : i32
    %352 = vector.broadcast %c-1_i32_167 : i32 to vector<8x8xi32>
    %353 = arith.addi %257, %352 : vector<8x8xi32>
    %354 = arith.cmpi eq, %258, %353 : vector<8x8xi32>
    %355 = arith.extui %354 : vector<8x8xi1> to vector<8x8xi32>
    %356 = arith.sitofp %355 : vector<8x8xi32> to vector<8x8xf32>
    %cst_168 = arith.constant dense<0.000000e+00> : vector<8x32xf32>
    %357 = tpu.matmul %356, %302, %cst_168 {dimension_numbers = #tpu.dot_dimension_numbers<[1], [0], [0], [1], [0, 0, 1, 1], [], []>} : vector<8x8xf32>, vector<8x32xf32>, vector<8x32xf32> -> vector<8x32xf32>
    %c1_169 = arith.constant 1 : index
    %c0_170 = arith.constant 0 : index
    %c0_171 = arith.constant 0 : index
    %358 = vector.load %arg25[%c1_169, %c0_170, %c0_171] : memref<5x32x32xbf16, #tpu.memory_space<vmem>>, vector<1x32x32xbf16>
    %359 = vector.shape_cast %358 : vector<1x32x32xbf16> to vector<32x32xbf16>
    %360 = arith.truncf %357 : vector<8x32xf32> to vector<8x32xbf16>
    %cst_172 = arith.constant dense<0.000000e+00> : vector<8x32xf32>
    %361 = tpu.matmul %360, %359, %cst_172 {dimension_numbers = #tpu.dot_dimension_numbers<[1], [0], [0], [1], [0, 0, 1, 1], [], []>} : vector<8x32xbf16>, vector<32x32xbf16>, vector<8x32xf32> -> vector<8x32xf32>
    %362 = arith.addf %351, %361 : vector<8x32xf32>
    %c2_173 = arith.constant 2 : index
    %c0_174 = arith.constant 0 : index
    %c0_175 = arith.constant 0 : index
    %363 = vector.load %arg25[%c2_173, %c0_174, %c0_175] : memref<5x32x32xbf16, #tpu.memory_space<vmem>>, vector<1x32x32xbf16>
    %364 = vector.shape_cast %363 : vector<1x32x32xbf16> to vector<32x32xbf16>
    %365 = arith.truncf %302 : vector<8x32xf32> to vector<8x32xbf16>
    %cst_176 = arith.constant dense<0.000000e+00> : vector<8x32xf32>
    %366 = tpu.matmul %365, %364, %cst_176 {dimension_numbers = #tpu.dot_dimension_numbers<[1], [0], [0], [1], [0, 0, 1, 1], [], []>} : vector<8x32xbf16>, vector<32x32xbf16>, vector<8x32xf32> -> vector<8x32xf32>
    %367 = arith.addf %362, %366 : vector<8x32xf32>
    %c1_i32_177 = arith.constant 1 : i32
    %368 = vector.broadcast %c1_i32_177 : i32 to vector<8x8xi32>
    %369 = arith.addi %257, %368 : vector<8x8xi32>
    %370 = arith.cmpi eq, %258, %369 : vector<8x8xi32>
    %371 = arith.extui %370 : vector<8x8xi1> to vector<8x8xi32>
    %372 = arith.sitofp %371 : vector<8x8xi32> to vector<8x8xf32>
    %cst_178 = arith.constant dense<0.000000e+00> : vector<8x32xf32>
    %373 = tpu.matmul %372, %302, %cst_178 {dimension_numbers = #tpu.dot_dimension_numbers<[1], [0], [0], [1], [0, 0, 1, 1], [], []>} : vector<8x8xf32>, vector<8x32xf32>, vector<8x32xf32> -> vector<8x32xf32>
    %c3_179 = arith.constant 3 : index
    %c0_180 = arith.constant 0 : index
    %c0_181 = arith.constant 0 : index
    %374 = vector.load %arg25[%c3_179, %c0_180, %c0_181] : memref<5x32x32xbf16, #tpu.memory_space<vmem>>, vector<1x32x32xbf16>
    %375 = vector.shape_cast %374 : vector<1x32x32xbf16> to vector<32x32xbf16>
    %376 = arith.truncf %373 : vector<8x32xf32> to vector<8x32xbf16>
    %cst_182 = arith.constant dense<0.000000e+00> : vector<8x32xf32>
    %377 = tpu.matmul %376, %375, %cst_182 {dimension_numbers = #tpu.dot_dimension_numbers<[1], [0], [0], [1], [0, 0, 1, 1], [], []>} : vector<8x32xbf16>, vector<32x32xbf16>, vector<8x32xf32> -> vector<8x32xf32>
    %378 = arith.addf %367, %377 : vector<8x32xf32>
    %c2_i32 = arith.constant 2 : i32
    %379 = vector.broadcast %c2_i32 : i32 to vector<8x8xi32>
    %380 = arith.addi %257, %379 : vector<8x8xi32>
    %381 = arith.cmpi eq, %258, %380 : vector<8x8xi32>
    %382 = arith.extui %381 : vector<8x8xi1> to vector<8x8xi32>
    %383 = arith.sitofp %382 : vector<8x8xi32> to vector<8x8xf32>
    %cst_183 = arith.constant dense<0.000000e+00> : vector<8x32xf32>
    %384 = tpu.matmul %383, %302, %cst_183 {dimension_numbers = #tpu.dot_dimension_numbers<[1], [0], [0], [1], [0, 0, 1, 1], [], []>} : vector<8x8xf32>, vector<8x32xf32>, vector<8x32xf32> -> vector<8x32xf32>
    %c4 = arith.constant 4 : index
    %c0_184 = arith.constant 0 : index
    %c0_185 = arith.constant 0 : index
    %385 = vector.load %arg25[%c4, %c0_184, %c0_185] : memref<5x32x32xbf16, #tpu.memory_space<vmem>>, vector<1x32x32xbf16>
    %386 = vector.shape_cast %385 : vector<1x32x32xbf16> to vector<32x32xbf16>
    %387 = arith.truncf %384 : vector<8x32xf32> to vector<8x32xbf16>
    %cst_186 = arith.constant dense<0.000000e+00> : vector<8x32xf32>
    %388 = tpu.matmul %387, %386, %cst_186 {dimension_numbers = #tpu.dot_dimension_numbers<[1], [0], [0], [1], [0, 0, 1, 1], [], []>} : vector<8x32xbf16>, vector<32x32xbf16>, vector<8x32xf32> -> vector<8x32xf32>
    %389 = arith.addf %378, %388 : vector<8x32xf32>
    %c0_187 = arith.constant 0 : index
    %c0_188 = arith.constant 0 : index
    %390 = vector.load %arg26[%c0_187, %c0_188] : memref<3x32xf32, #tpu.memory_space<vmem>>, vector<3x32xf32>
    %391 = vector.extract_strided_slice %390 {offsets = [0, 0], sizes = [1, 32], strides = [1, 1]} : vector<3x32xf32> to vector<1x32xf32>
    %392 = vector.broadcast %391 : vector<1x32xf32> to vector<8x32xf32>
    %393 = arith.addf %389, %392 : vector<8x32xf32>
    %cst_189 = arith.constant 0.000000e+00 : f32
    %394 = vector.broadcast %cst_189 : f32 to vector<8x32xf32>
    %395 = arith.maximumf %393, %394 : vector<8x32xf32>
    %396 = vector.extract_strided_slice %390 {offsets = [1, 0], sizes = [1, 32], strides = [1, 1]} : vector<3x32xf32> to vector<1x32xf32>
    %397 = vector.broadcast %396 : vector<1x32xf32> to vector<8x32xf32>
    %398 = arith.mulf %395, %397 : vector<8x32xf32>
    %399 = vector.extract_strided_slice %390 {offsets = [2, 0], sizes = [1, 32], strides = [1, 1]} : vector<3x32xf32> to vector<1x32xf32>
    %400 = vector.broadcast %399 : vector<1x32xf32> to vector<8x32xf32>
    %401 = arith.addf %398, %400 : vector<8x32xf32>
    %c0_190 = arith.constant 0 : index
    %c0_191 = arith.constant 0 : index
    %402 = vector.load %arg27[%c0_190, %c0_191] : memref<96x512xf32, #tpu.memory_space<vmem>>, vector<96x512xf32>
    %c0_192 = arith.constant 0 : index
    %c0_193 = arith.constant 0 : index
    %403 = vector.load %arg28[%c0_192, %c0_193] : memref<128x512xf32, #tpu.memory_space<vmem>>, vector<128x512xf32>
    %404 = vector.extract_strided_slice %402 {offsets = [0, 0], sizes = [32, 512], strides = [1, 1]} : vector<96x512xf32> to vector<32x512xf32>
    %cst_194 = arith.constant dense<0.000000e+00> : vector<8x512xf32>
    %405 = tpu.matmul %341, %404, %cst_194 {dimension_numbers = #tpu.dot_dimension_numbers<[1], [0], [0], [1], [0, 0, 1, 1], [], []>} : vector<8x32xf32>, vector<32x512xf32>, vector<8x512xf32> -> vector<8x512xf32>
    %406 = vector.extract_strided_slice %402 {offsets = [32, 0], sizes = [32, 512], strides = [1, 1]} : vector<96x512xf32> to vector<32x512xf32>
    %cst_195 = arith.constant dense<0.000000e+00> : vector<8x512xf32>
    %407 = tpu.matmul %401, %406, %cst_195 {dimension_numbers = #tpu.dot_dimension_numbers<[1], [0], [0], [1], [0, 0, 1, 1], [], []>} : vector<8x32xf32>, vector<32x512xf32>, vector<8x512xf32> -> vector<8x512xf32>
    %408 = arith.addf %405, %407 : vector<8x512xf32>
    %409 = vector.extract_strided_slice %402 {offsets = [64, 0], sizes = [32, 512], strides = [1, 1]} : vector<96x512xf32> to vector<32x512xf32>
    %cst_196 = arith.constant dense<0.000000e+00> : vector<8x512xf32>
    %410 = tpu.matmul %303, %409, %cst_196 {dimension_numbers = #tpu.dot_dimension_numbers<[1], [0], [0], [1], [0, 0, 1, 1], [], []>} : vector<8x32xf32>, vector<32x512xf32>, vector<8x512xf32> -> vector<8x512xf32>
    %411 = arith.addf %408, %410 : vector<8x512xf32>
    %c0_197 = arith.constant 0 : index
    %c0_198 = arith.constant 0 : index
    %412 = vector.load %arg29[%c0_197, %c0_198] : memref<1x512xf32, #tpu.memory_space<vmem>>, vector<1x512xf32>
    %413 = vector.broadcast %412 : vector<1x512xf32> to vector<8x512xf32>
    %414 = arith.addf %411, %413 : vector<8x512xf32>
    %cst_199 = arith.constant 0.000000e+00 : f32
    %415 = vector.broadcast %cst_199 : f32 to vector<1x128xf32>
    %cst_200 = arith.constant 0.000000e+00 : f32
    %416 = vector.broadcast %cst_200 : f32 to vector<1x128xf32>
    %417 = vector.extract_strided_slice %414 {offsets = [0, 0], sizes = [1, 512], strides = [1, 1]} : vector<8x512xf32> to vector<1x512xf32>
    %cst_201 = arith.constant dense<0.000000e+00> : vector<1x512xf32>
    %418 = tpu.matmul %415, %403, %cst_201 {dimension_numbers = #tpu.dot_dimension_numbers<[1], [0], [0], [1], [0, 0, 1, 1], [], []>} : vector<1x128xf32>, vector<128x512xf32>, vector<1x512xf32> -> vector<1x512xf32>
    %419 = arith.addf %417, %418 : vector<1x512xf32>
    %420 = vector.extract_strided_slice %419 {offsets = [0, 0], sizes = [1, 128], strides = [1, 1]} : vector<1x512xf32> to vector<1x128xf32>
    %421 = arith.negf %420 : vector<1x128xf32>
    %422 = math.exp %421 : vector<1x128xf32>
    %cst_202 = arith.constant 1.000000e+00 : f32
    %423 = vector.broadcast %cst_202 : f32 to vector<1x128xf32>
    %424 = arith.addf %423, %422 : vector<1x128xf32>
    %425 = arith.divf %423, %424 : vector<1x128xf32>
    %426 = vector.extract_strided_slice %419 {offsets = [0, 128], sizes = [1, 128], strides = [1, 1]} : vector<1x512xf32> to vector<1x128xf32>
    %427 = arith.negf %426 : vector<1x128xf32>
    %428 = math.exp %427 : vector<1x128xf32>
    %cst_203 = arith.constant 1.000000e+00 : f32
    %429 = vector.broadcast %cst_203 : f32 to vector<1x128xf32>
    %430 = arith.addf %429, %428 : vector<1x128xf32>
    %431 = arith.divf %429, %430 : vector<1x128xf32>
    %432 = vector.extract_strided_slice %419 {offsets = [0, 256], sizes = [1, 128], strides = [1, 1]} : vector<1x512xf32> to vector<1x128xf32>
    %433 = math.tanh %432 : vector<1x128xf32>
    %434 = vector.extract_strided_slice %419 {offsets = [0, 384], sizes = [1, 128], strides = [1, 1]} : vector<1x512xf32> to vector<1x128xf32>
    %435 = arith.negf %434 : vector<1x128xf32>
    %436 = math.exp %435 : vector<1x128xf32>
    %cst_204 = arith.constant 1.000000e+00 : f32
    %437 = vector.broadcast %cst_204 : f32 to vector<1x128xf32>
    %438 = arith.addf %437, %436 : vector<1x128xf32>
    %439 = arith.divf %437, %438 : vector<1x128xf32>
    %440 = arith.mulf %431, %416 : vector<1x128xf32>
    %441 = arith.mulf %425, %433 : vector<1x128xf32>
    %442 = arith.addf %440, %441 : vector<1x128xf32>
    %443 = math.tanh %442 : vector<1x128xf32>
    %444 = arith.mulf %439, %443 : vector<1x128xf32>
    %445 = vector.extract_strided_slice %414 {offsets = [1, 0], sizes = [1, 512], strides = [1, 1]} : vector<8x512xf32> to vector<1x512xf32>
    %cst_205 = arith.constant dense<0.000000e+00> : vector<1x512xf32>
    %446 = tpu.matmul %444, %403, %cst_205 {dimension_numbers = #tpu.dot_dimension_numbers<[1], [0], [0], [1], [0, 0, 1, 1], [], []>} : vector<1x128xf32>, vector<128x512xf32>, vector<1x512xf32> -> vector<1x512xf32>
    %447 = arith.addf %445, %446 : vector<1x512xf32>
    %448 = vector.extract_strided_slice %447 {offsets = [0, 0], sizes = [1, 128], strides = [1, 1]} : vector<1x512xf32> to vector<1x128xf32>
    %449 = arith.negf %448 : vector<1x128xf32>
    %450 = math.exp %449 : vector<1x128xf32>
    %cst_206 = arith.constant 1.000000e+00 : f32
    %451 = vector.broadcast %cst_206 : f32 to vector<1x128xf32>
    %452 = arith.addf %451, %450 : vector<1x128xf32>
    %453 = arith.divf %451, %452 : vector<1x128xf32>
    %454 = vector.extract_strided_slice %447 {offsets = [0, 128], sizes = [1, 128], strides = [1, 1]} : vector<1x512xf32> to vector<1x128xf32>
    %455 = arith.negf %454 : vector<1x128xf32>
    %456 = math.exp %455 : vector<1x128xf32>
    %cst_207 = arith.constant 1.000000e+00 : f32
    %457 = vector.broadcast %cst_207 : f32 to vector<1x128xf32>
    %458 = arith.addf %457, %456 : vector<1x128xf32>
    %459 = arith.divf %457, %458 : vector<1x128xf32>
    %460 = vector.extract_strided_slice %447 {offsets = [0, 256], sizes = [1, 128], strides = [1, 1]} : vector<1x512xf32> to vector<1x128xf32>
    %461 = math.tanh %460 : vector<1x128xf32>
    %462 = vector.extract_strided_slice %447 {offsets = [0, 384], sizes = [1, 128], strides = [1, 1]} : vector<1x512xf32> to vector<1x128xf32>
    %463 = arith.negf %462 : vector<1x128xf32>
    %464 = math.exp %463 : vector<1x128xf32>
    %cst_208 = arith.constant 1.000000e+00 : f32
    %465 = vector.broadcast %cst_208 : f32 to vector<1x128xf32>
    %466 = arith.addf %465, %464 : vector<1x128xf32>
    %467 = arith.divf %465, %466 : vector<1x128xf32>
    %468 = arith.mulf %459, %442 : vector<1x128xf32>
    %469 = arith.mulf %453, %461 : vector<1x128xf32>
    %470 = arith.addf %468, %469 : vector<1x128xf32>
    %471 = math.tanh %470 : vector<1x128xf32>
    %472 = arith.mulf %467, %471 : vector<1x128xf32>
    %473 = vector.extract_strided_slice %414 {offsets = [2, 0], sizes = [1, 512], strides = [1, 1]} : vector<8x512xf32> to vector<1x512xf32>
    %cst_209 = arith.constant dense<0.000000e+00> : vector<1x512xf32>
    %474 = tpu.matmul %472, %403, %cst_209 {dimension_numbers = #tpu.dot_dimension_numbers<[1], [0], [0], [1], [0, 0, 1, 1], [], []>} : vector<1x128xf32>, vector<128x512xf32>, vector<1x512xf32> -> vector<1x512xf32>
    %475 = arith.addf %473, %474 : vector<1x512xf32>
    %476 = vector.extract_strided_slice %475 {offsets = [0, 0], sizes = [1, 128], strides = [1, 1]} : vector<1x512xf32> to vector<1x128xf32>
    %477 = arith.negf %476 : vector<1x128xf32>
    %478 = math.exp %477 : vector<1x128xf32>
    %cst_210 = arith.constant 1.000000e+00 : f32
    %479 = vector.broadcast %cst_210 : f32 to vector<1x128xf32>
    %480 = arith.addf %479, %478 : vector<1x128xf32>
    %481 = arith.divf %479, %480 : vector<1x128xf32>
    %482 = vector.extract_strided_slice %475 {offsets = [0, 128], sizes = [1, 128], strides = [1, 1]} : vector<1x512xf32> to vector<1x128xf32>
    %483 = arith.negf %482 : vector<1x128xf32>
    %484 = math.exp %483 : vector<1x128xf32>
    %cst_211 = arith.constant 1.000000e+00 : f32
    %485 = vector.broadcast %cst_211 : f32 to vector<1x128xf32>
    %486 = arith.addf %485, %484 : vector<1x128xf32>
    %487 = arith.divf %485, %486 : vector<1x128xf32>
    %488 = vector.extract_strided_slice %475 {offsets = [0, 256], sizes = [1, 128], strides = [1, 1]} : vector<1x512xf32> to vector<1x128xf32>
    %489 = math.tanh %488 : vector<1x128xf32>
    %490 = vector.extract_strided_slice %475 {offsets = [0, 384], sizes = [1, 128], strides = [1, 1]} : vector<1x512xf32> to vector<1x128xf32>
    %491 = arith.negf %490 : vector<1x128xf32>
    %492 = math.exp %491 : vector<1x128xf32>
    %cst_212 = arith.constant 1.000000e+00 : f32
    %493 = vector.broadcast %cst_212 : f32 to vector<1x128xf32>
    %494 = arith.addf %493, %492 : vector<1x128xf32>
    %495 = arith.divf %493, %494 : vector<1x128xf32>
    %496 = arith.mulf %487, %470 : vector<1x128xf32>
    %497 = arith.mulf %481, %489 : vector<1x128xf32>
    %498 = arith.addf %496, %497 : vector<1x128xf32>
    %499 = math.tanh %498 : vector<1x128xf32>
    %500 = arith.mulf %495, %499 : vector<1x128xf32>
    %501 = vector.extract_strided_slice %414 {offsets = [3, 0], sizes = [1, 512], strides = [1, 1]} : vector<8x512xf32> to vector<1x512xf32>
    %cst_213 = arith.constant dense<0.000000e+00> : vector<1x512xf32>
    %502 = tpu.matmul %500, %403, %cst_213 {dimension_numbers = #tpu.dot_dimension_numbers<[1], [0], [0], [1], [0, 0, 1, 1], [], []>} : vector<1x128xf32>, vector<128x512xf32>, vector<1x512xf32> -> vector<1x512xf32>
    %503 = arith.addf %501, %502 : vector<1x512xf32>
    %504 = vector.extract_strided_slice %503 {offsets = [0, 0], sizes = [1, 128], strides = [1, 1]} : vector<1x512xf32> to vector<1x128xf32>
    %505 = arith.negf %504 : vector<1x128xf32>
    %506 = math.exp %505 : vector<1x128xf32>
    %cst_214 = arith.constant 1.000000e+00 : f32
    %507 = vector.broadcast %cst_214 : f32 to vector<1x128xf32>
    %508 = arith.addf %507, %506 : vector<1x128xf32>
    %509 = arith.divf %507, %508 : vector<1x128xf32>
    %510 = vector.extract_strided_slice %503 {offsets = [0, 128], sizes = [1, 128], strides = [1, 1]} : vector<1x512xf32> to vector<1x128xf32>
    %511 = arith.negf %510 : vector<1x128xf32>
    %512 = math.exp %511 : vector<1x128xf32>
    %cst_215 = arith.constant 1.000000e+00 : f32
    %513 = vector.broadcast %cst_215 : f32 to vector<1x128xf32>
    %514 = arith.addf %513, %512 : vector<1x128xf32>
    %515 = arith.divf %513, %514 : vector<1x128xf32>
    %516 = vector.extract_strided_slice %503 {offsets = [0, 256], sizes = [1, 128], strides = [1, 1]} : vector<1x512xf32> to vector<1x128xf32>
    %517 = math.tanh %516 : vector<1x128xf32>
    %518 = vector.extract_strided_slice %503 {offsets = [0, 384], sizes = [1, 128], strides = [1, 1]} : vector<1x512xf32> to vector<1x128xf32>
    %519 = arith.negf %518 : vector<1x128xf32>
    %520 = math.exp %519 : vector<1x128xf32>
    %cst_216 = arith.constant 1.000000e+00 : f32
    %521 = vector.broadcast %cst_216 : f32 to vector<1x128xf32>
    %522 = arith.addf %521, %520 : vector<1x128xf32>
    %523 = arith.divf %521, %522 : vector<1x128xf32>
    %524 = arith.mulf %515, %498 : vector<1x128xf32>
    %525 = arith.mulf %509, %517 : vector<1x128xf32>
    %526 = arith.addf %524, %525 : vector<1x128xf32>
    %527 = math.tanh %526 : vector<1x128xf32>
    %528 = arith.mulf %523, %527 : vector<1x128xf32>
    %529 = vector.extract_strided_slice %414 {offsets = [4, 0], sizes = [1, 512], strides = [1, 1]} : vector<8x512xf32> to vector<1x512xf32>
    %cst_217 = arith.constant dense<0.000000e+00> : vector<1x512xf32>
    %530 = tpu.matmul %528, %403, %cst_217 {dimension_numbers = #tpu.dot_dimension_numbers<[1], [0], [0], [1], [0, 0, 1, 1], [], []>} : vector<1x128xf32>, vector<128x512xf32>, vector<1x512xf32> -> vector<1x512xf32>
    %531 = arith.addf %529, %530 : vector<1x512xf32>
    %532 = vector.extract_strided_slice %531 {offsets = [0, 0], sizes = [1, 128], strides = [1, 1]} : vector<1x512xf32> to vector<1x128xf32>
    %533 = arith.negf %532 : vector<1x128xf32>
    %534 = math.exp %533 : vector<1x128xf32>
    %cst_218 = arith.constant 1.000000e+00 : f32
    %535 = vector.broadcast %cst_218 : f32 to vector<1x128xf32>
    %536 = arith.addf %535, %534 : vector<1x128xf32>
    %537 = arith.divf %535, %536 : vector<1x128xf32>
    %538 = vector.extract_strided_slice %531 {offsets = [0, 128], sizes = [1, 128], strides = [1, 1]} : vector<1x512xf32> to vector<1x128xf32>
    %539 = arith.negf %538 : vector<1x128xf32>
    %540 = math.exp %539 : vector<1x128xf32>
    %cst_219 = arith.constant 1.000000e+00 : f32
    %541 = vector.broadcast %cst_219 : f32 to vector<1x128xf32>
    %542 = arith.addf %541, %540 : vector<1x128xf32>
    %543 = arith.divf %541, %542 : vector<1x128xf32>
    %544 = vector.extract_strided_slice %531 {offsets = [0, 256], sizes = [1, 128], strides = [1, 1]} : vector<1x512xf32> to vector<1x128xf32>
    %545 = math.tanh %544 : vector<1x128xf32>
    %546 = vector.extract_strided_slice %531 {offsets = [0, 384], sizes = [1, 128], strides = [1, 1]} : vector<1x512xf32> to vector<1x128xf32>
    %547 = arith.negf %546 : vector<1x128xf32>
    %548 = math.exp %547 : vector<1x128xf32>
    %cst_220 = arith.constant 1.000000e+00 : f32
    %549 = vector.broadcast %cst_220 : f32 to vector<1x128xf32>
    %550 = arith.addf %549, %548 : vector<1x128xf32>
    %551 = arith.divf %549, %550 : vector<1x128xf32>
    %552 = arith.mulf %543, %526 : vector<1x128xf32>
    %553 = arith.mulf %537, %545 : vector<1x128xf32>
    %554 = arith.addf %552, %553 : vector<1x128xf32>
    %555 = math.tanh %554 : vector<1x128xf32>
    %556 = arith.mulf %551, %555 : vector<1x128xf32>
    %557 = vector.extract_strided_slice %414 {offsets = [5, 0], sizes = [1, 512], strides = [1, 1]} : vector<8x512xf32> to vector<1x512xf32>
    %cst_221 = arith.constant dense<0.000000e+00> : vector<1x512xf32>
    %558 = tpu.matmul %556, %403, %cst_221 {dimension_numbers = #tpu.dot_dimension_numbers<[1], [0], [0], [1], [0, 0, 1, 1], [], []>} : vector<1x128xf32>, vector<128x512xf32>, vector<1x512xf32> -> vector<1x512xf32>
    %559 = arith.addf %557, %558 : vector<1x512xf32>
    %560 = vector.extract_strided_slice %559 {offsets = [0, 0], sizes = [1, 128], strides = [1, 1]} : vector<1x512xf32> to vector<1x128xf32>
    %561 = arith.negf %560 : vector<1x128xf32>
    %562 = math.exp %561 : vector<1x128xf32>
    %cst_222 = arith.constant 1.000000e+00 : f32
    %563 = vector.broadcast %cst_222 : f32 to vector<1x128xf32>
    %564 = arith.addf %563, %562 : vector<1x128xf32>
    %565 = arith.divf %563, %564 : vector<1x128xf32>
    %566 = vector.extract_strided_slice %559 {offsets = [0, 128], sizes = [1, 128], strides = [1, 1]} : vector<1x512xf32> to vector<1x128xf32>
    %567 = arith.negf %566 : vector<1x128xf32>
    %568 = math.exp %567 : vector<1x128xf32>
    %cst_223 = arith.constant 1.000000e+00 : f32
    %569 = vector.broadcast %cst_223 : f32 to vector<1x128xf32>
    %570 = arith.addf %569, %568 : vector<1x128xf32>
    %571 = arith.divf %569, %570 : vector<1x128xf32>
    %572 = vector.extract_strided_slice %559 {offsets = [0, 256], sizes = [1, 128], strides = [1, 1]} : vector<1x512xf32> to vector<1x128xf32>
    %573 = math.tanh %572 : vector<1x128xf32>
    %574 = vector.extract_strided_slice %559 {offsets = [0, 384], sizes = [1, 128], strides = [1, 1]} : vector<1x512xf32> to vector<1x128xf32>
    %575 = arith.negf %574 : vector<1x128xf32>
    %576 = math.exp %575 : vector<1x128xf32>
    %cst_224 = arith.constant 1.000000e+00 : f32
    %577 = vector.broadcast %cst_224 : f32 to vector<1x128xf32>
    %578 = arith.addf %577, %576 : vector<1x128xf32>
    %579 = arith.divf %577, %578 : vector<1x128xf32>
    %580 = arith.mulf %571, %554 : vector<1x128xf32>
    %581 = arith.mulf %565, %573 : vector<1x128xf32>
    %582 = arith.addf %580, %581 : vector<1x128xf32>
    %583 = math.tanh %582 : vector<1x128xf32>
    %584 = arith.mulf %579, %583 : vector<1x128xf32>
    %585 = vector.extract_strided_slice %414 {offsets = [6, 0], sizes = [1, 512], strides = [1, 1]} : vector<8x512xf32> to vector<1x512xf32>
    %cst_225 = arith.constant dense<0.000000e+00> : vector<1x512xf32>
    %586 = tpu.matmul %584, %403, %cst_225 {dimension_numbers = #tpu.dot_dimension_numbers<[1], [0], [0], [1], [0, 0, 1, 1], [], []>} : vector<1x128xf32>, vector<128x512xf32>, vector<1x512xf32> -> vector<1x512xf32>
    %587 = arith.addf %585, %586 : vector<1x512xf32>
    %588 = vector.extract_strided_slice %587 {offsets = [0, 0], sizes = [1, 128], strides = [1, 1]} : vector<1x512xf32> to vector<1x128xf32>
    %589 = arith.negf %588 : vector<1x128xf32>
    %590 = math.exp %589 : vector<1x128xf32>
    %cst_226 = arith.constant 1.000000e+00 : f32
    %591 = vector.broadcast %cst_226 : f32 to vector<1x128xf32>
    %592 = arith.addf %591, %590 : vector<1x128xf32>
    %593 = arith.divf %591, %592 : vector<1x128xf32>
    %594 = vector.extract_strided_slice %587 {offsets = [0, 128], sizes = [1, 128], strides = [1, 1]} : vector<1x512xf32> to vector<1x128xf32>
    %595 = arith.negf %594 : vector<1x128xf32>
    %596 = math.exp %595 : vector<1x128xf32>
    %cst_227 = arith.constant 1.000000e+00 : f32
    %597 = vector.broadcast %cst_227 : f32 to vector<1x128xf32>
    %598 = arith.addf %597, %596 : vector<1x128xf32>
    %599 = arith.divf %597, %598 : vector<1x128xf32>
    %600 = vector.extract_strided_slice %587 {offsets = [0, 256], sizes = [1, 128], strides = [1, 1]} : vector<1x512xf32> to vector<1x128xf32>
    %601 = math.tanh %600 : vector<1x128xf32>
    %602 = vector.extract_strided_slice %587 {offsets = [0, 384], sizes = [1, 128], strides = [1, 1]} : vector<1x512xf32> to vector<1x128xf32>
    %603 = arith.negf %602 : vector<1x128xf32>
    %604 = math.exp %603 : vector<1x128xf32>
    %cst_228 = arith.constant 1.000000e+00 : f32
    %605 = vector.broadcast %cst_228 : f32 to vector<1x128xf32>
    %606 = arith.addf %605, %604 : vector<1x128xf32>
    %607 = arith.divf %605, %606 : vector<1x128xf32>
    %608 = arith.mulf %599, %582 : vector<1x128xf32>
    %609 = arith.mulf %593, %601 : vector<1x128xf32>
    %610 = arith.addf %608, %609 : vector<1x128xf32>
    %611 = math.tanh %610 : vector<1x128xf32>
    %612 = arith.mulf %607, %611 : vector<1x128xf32>
    %613 = vector.extract_strided_slice %414 {offsets = [7, 0], sizes = [1, 512], strides = [1, 1]} : vector<8x512xf32> to vector<1x512xf32>
    %cst_229 = arith.constant dense<0.000000e+00> : vector<1x512xf32>
    %614 = tpu.matmul %612, %403, %cst_229 {dimension_numbers = #tpu.dot_dimension_numbers<[1], [0], [0], [1], [0, 0, 1, 1], [], []>} : vector<1x128xf32>, vector<128x512xf32>, vector<1x512xf32> -> vector<1x512xf32>
    %615 = arith.addf %613, %614 : vector<1x512xf32>
    %616 = vector.extract_strided_slice %615 {offsets = [0, 0], sizes = [1, 128], strides = [1, 1]} : vector<1x512xf32> to vector<1x128xf32>
    %617 = arith.negf %616 : vector<1x128xf32>
    %618 = math.exp %617 : vector<1x128xf32>
    %cst_230 = arith.constant 1.000000e+00 : f32
    %619 = vector.broadcast %cst_230 : f32 to vector<1x128xf32>
    %620 = arith.addf %619, %618 : vector<1x128xf32>
    %621 = arith.divf %619, %620 : vector<1x128xf32>
    %622 = vector.extract_strided_slice %615 {offsets = [0, 128], sizes = [1, 128], strides = [1, 1]} : vector<1x512xf32> to vector<1x128xf32>
    %623 = arith.negf %622 : vector<1x128xf32>
    %624 = math.exp %623 : vector<1x128xf32>
    %cst_231 = arith.constant 1.000000e+00 : f32
    %625 = vector.broadcast %cst_231 : f32 to vector<1x128xf32>
    %626 = arith.addf %625, %624 : vector<1x128xf32>
    %627 = arith.divf %625, %626 : vector<1x128xf32>
    %628 = vector.extract_strided_slice %615 {offsets = [0, 256], sizes = [1, 128], strides = [1, 1]} : vector<1x512xf32> to vector<1x128xf32>
    %629 = math.tanh %628 : vector<1x128xf32>
    %630 = vector.extract_strided_slice %615 {offsets = [0, 384], sizes = [1, 128], strides = [1, 1]} : vector<1x512xf32> to vector<1x128xf32>
    %631 = arith.negf %630 : vector<1x128xf32>
    %632 = math.exp %631 : vector<1x128xf32>
    %cst_232 = arith.constant 1.000000e+00 : f32
    %633 = vector.broadcast %cst_232 : f32 to vector<1x128xf32>
    %634 = arith.addf %633, %632 : vector<1x128xf32>
    %635 = arith.divf %633, %634 : vector<1x128xf32>
    %636 = arith.mulf %627, %610 : vector<1x128xf32>
    %637 = arith.mulf %621, %629 : vector<1x128xf32>
    %638 = arith.addf %636, %637 : vector<1x128xf32>
    %639 = math.tanh %638 : vector<1x128xf32>
    %640 = arith.mulf %635, %639 : vector<1x128xf32>
    %c0_233 = arith.constant 0 : index
    %c0_234 = arith.constant 0 : index
    %641 = vector.load %arg30[%c0_233, %c0_234] : memref<128x3xf32, #tpu.memory_space<vmem>>, vector<128x3xf32>
    %cst_235 = arith.constant dense<0.000000e+00> : vector<1x3xf32>
    %642 = tpu.matmul %640, %641, %cst_235 {dimension_numbers = #tpu.dot_dimension_numbers<[1], [0], [0], [1], [0, 0, 1, 1], [], []>} : vector<1x128xf32>, vector<128x3xf32>, vector<1x3xf32> -> vector<1x3xf32>
    %c0_236 = arith.constant 0 : index
    %c0_237 = arith.constant 0 : index
    %643 = vector.load %arg31[%c0_236, %c0_237] : memref<1x3xf32, #tpu.memory_space<vmem>>, vector<1x3xf32>
    %644 = arith.addf %642, %643 : vector<1x3xf32>
    %cst_238 = arith.constant dense<0xFF800000> : vector<1xf32>
    %645 = vector.multi_reduction <maximumf>, %644, %cst_238 [1] : vector<1x3xf32> to vector<1xf32>
    %646 = vector.shape_cast %645 : vector<1xf32> to vector<1x1xf32>
    %647 = vector.broadcast %646 : vector<1x1xf32> to vector<1x3xf32>
    %648 = arith.subf %644, %647 : vector<1x3xf32>
    %649 = math.exp %648 : vector<1x3xf32>
    %cst_239 = arith.constant dense<0.000000e+00> : vector<1xf32>
    %650 = vector.multi_reduction <add>, %649, %cst_239 [1] : vector<1x3xf32> to vector<1xf32>
    %651 = vector.shape_cast %650 : vector<1xf32> to vector<1x1xf32>
    %652 = vector.broadcast %651 : vector<1x1xf32> to vector<1x3xf32>
    %653 = arith.divf %649, %652 : vector<1x3xf32>
    %c0_240 = arith.constant 0 : index
    %c0_241 = arith.constant 0 : index
    %c0_242 = arith.constant 0 : index
    %654 = vector.load %arg32[%c0_240, %c0_241, %c0_242] : memref<1x1x3xf32, #tpu.memory_space<vmem>>, vector<1x1x3xf32>
    %655 = vector.shape_cast %654 : vector<1x1x3xf32> to vector<1x3xf32>
    %656 = vector.shape_cast %653 : vector<1x3xf32> to vector<1x1x3xf32>
    tpu.vector_store %arg32[%c0_240, %c0_241, %c0_242], %656 {strides = array<i32>} : memref<1x1x3xf32, #tpu.memory_space<vmem>>, vector<1x1x3xf32>,
    return
  }
  func.func @transform_0(%arg0: i32) -> (i32, i32, i32) {
    %c0_i32 = arith.constant 0 : i32
    %c0_i32_0 = arith.constant 0 : i32
    %c0_i32_1 = arith.constant 0 : i32
    return %arg0, %c0_i32, %c0_i32_0 : i32, i32, i32
  }
  func.func @transform_1(%arg0: i32) -> (i32, i32) {
    %c0_i32 = arith.constant 0 : i32
    %c0_i32_0 = arith.constant 0 : i32
    %c0_i32_1 = arith.constant 0 : i32
    return %c0_i32, %c0_i32_0 : i32, i32
  }
  func.func @transform_2(%arg0: i32) -> (i32, i32) {
    %c0_i32 = arith.constant 0 : i32
    %c0_i32_0 = arith.constant 0 : i32
    %c0_i32_1 = arith.constant 0 : i32
    return %c0_i32, %c0_i32_0 : i32, i32
  }
  func.func @transform_3(%arg0: i32) -> (i32, i32, i32) {
    %c0_i32 = arith.constant 0 : i32
    %c0_i32_0 = arith.constant 0 : i32
    %c0_i32_1 = arith.constant 0 : i32
    %c0_i32_2 = arith.constant 0 : i32
    return %c0_i32, %c0_i32_0, %c0_i32_1 : i32, i32, i32
  }
  func.func @transform_4(%arg0: i32) -> (i32, i32) {
    %c0_i32 = arith.constant 0 : i32
    %c0_i32_0 = arith.constant 0 : i32
    %c0_i32_1 = arith.constant 0 : i32
    return %c0_i32, %c0_i32_0 : i32, i32
  }
  func.func @transform_5(%arg0: i32) -> (i32, i32, i32) {
    %c0_i32 = arith.constant 0 : i32
    %c0_i32_0 = arith.constant 0 : i32
    %c0_i32_1 = arith.constant 0 : i32
    %c0_i32_2 = arith.constant 0 : i32
    return %c0_i32, %c0_i32_0, %c0_i32_1 : i32, i32, i32
  }
  func.func @transform_6(%arg0: i32) -> (i32, i32) {
    %c0_i32 = arith.constant 0 : i32
    %c0_i32_0 = arith.constant 0 : i32
    %c0_i32_1 = arith.constant 0 : i32
    return %c0_i32, %c0_i32_0 : i32, i32
  }
  func.func @transform_7(%arg0: i32) -> (i32, i32) {
    %c0_i32 = arith.constant 0 : i32
    %c0_i32_0 = arith.constant 0 : i32
    %c0_i32_1 = arith.constant 0 : i32
    return %c0_i32, %c0_i32_0 : i32, i32
  }
  func.func @transform_8(%arg0: i32) -> (i32, i32) {
    %c0_i32 = arith.constant 0 : i32
    %c0_i32_0 = arith.constant 0 : i32
    %c0_i32_1 = arith.constant 0 : i32
    return %c0_i32, %c0_i32_0 : i32, i32
  }
  func.func @transform_9(%arg0: i32) -> (i32, i32, i32) {
    %c0_i32 = arith.constant 0 : i32
    %c0_i32_0 = arith.constant 0 : i32
    %c0_i32_1 = arith.constant 0 : i32
    %c0_i32_2 = arith.constant 0 : i32
    return %c0_i32, %c0_i32_0, %c0_i32_1 : i32, i32, i32
  }
  func.func @transform_10(%arg0: i32) -> (i32, i32) {
    %c0_i32 = arith.constant 0 : i32
    %c0_i32_0 = arith.constant 0 : i32
    %c0_i32_1 = arith.constant 0 : i32
    return %c0_i32, %c0_i32_0 : i32, i32
  }
  func.func @transform_11(%arg0: i32) -> (i32, i32, i32) {
    %c0_i32 = arith.constant 0 : i32
    %c0_i32_0 = arith.constant 0 : i32
    %c0_i32_1 = arith.constant 0 : i32
    %c0_i32_2 = arith.constant 0 : i32
    return %c0_i32, %c0_i32_0, %c0_i32_1 : i32, i32, i32
  }
  func.func @transform_12(%arg0: i32) -> (i32, i32) {
    %c0_i32 = arith.constant 0 : i32
    %c0_i32_0 = arith.constant 0 : i32
    %c0_i32_1 = arith.constant 0 : i32
    return %c0_i32, %c0_i32_0 : i32, i32
  }
  func.func @transform_13(%arg0: i32) -> (i32, i32) {
    %c0_i32 = arith.constant 0 : i32
    %c0_i32_0 = arith.constant 0 : i32
    %c0_i32_1 = arith.constant 0 : i32
    return %c0_i32, %c0_i32_0 : i32, i32
  }
  func.func @transform_14(%arg0: i32) -> (i32, i32) {
    %c0_i32 = arith.constant 0 : i32
    %c0_i32_0 = arith.constant 0 : i32
    %c0_i32_1 = arith.constant 0 : i32
    return %c0_i32, %c0_i32_0 : i32, i32
  }
  func.func @transform_15(%arg0: i32) -> (i32, i32, i32) {
    %c0_i32 = arith.constant 0 : i32
    %c0_i32_0 = arith.constant 0 : i32
    %c0_i32_1 = arith.constant 0 : i32
    %c0_i32_2 = arith.constant 0 : i32
    return %c0_i32, %c0_i32_0, %c0_i32_1 : i32, i32, i32
  }
  func.func @transform_16(%arg0: i32) -> (i32, i32) {
    %c0_i32 = arith.constant 0 : i32
    %c0_i32_0 = arith.constant 0 : i32
    %c0_i32_1 = arith.constant 0 : i32
    return %c0_i32, %c0_i32_0 : i32, i32
  }
  func.func @transform_17(%arg0: i32) -> (i32, i32, i32) {
    %c0_i32 = arith.constant 0 : i32
    %c0_i32_0 = arith.constant 0 : i32
    %c0_i32_1 = arith.constant 0 : i32
    %c0_i32_2 = arith.constant 0 : i32
    return %c0_i32, %c0_i32_0, %c0_i32_1 : i32, i32, i32
  }
  func.func @transform_18(%arg0: i32) -> (i32, i32) {
    %c0_i32 = arith.constant 0 : i32
    %c0_i32_0 = arith.constant 0 : i32
    %c0_i32_1 = arith.constant 0 : i32
    return %c0_i32, %c0_i32_0 : i32, i32
  }
  func.func @transform_19(%arg0: i32) -> (i32, i32) {
    %c0_i32 = arith.constant 0 : i32
    %c0_i32_0 = arith.constant 0 : i32
    %c0_i32_1 = arith.constant 0 : i32
    return %c0_i32, %c0_i32_0 : i32, i32
  }
  func.func @transform_20(%arg0: i32) -> (i32, i32) {
    %c0_i32 = arith.constant 0 : i32
    %c0_i32_0 = arith.constant 0 : i32
    %c0_i32_1 = arith.constant 0 : i32
    return %c0_i32, %c0_i32_0 : i32, i32
  }
  func.func @transform_21(%arg0: i32) -> (i32, i32) {
    %c0_i32 = arith.constant 0 : i32
    %c0_i32_0 = arith.constant 0 : i32
    %c0_i32_1 = arith.constant 0 : i32
    return %c0_i32, %c0_i32_0 : i32, i32
  }
  func.func @transform_22(%arg0: i32) -> (i32, i32, i32) {
    %c0_i32 = arith.constant 0 : i32
    %c0_i32_0 = arith.constant 0 : i32
    %c0_i32_1 = arith.constant 0 : i32
    %c0_i32_2 = arith.constant 0 : i32
    return %c0_i32, %c0_i32_0, %c0_i32_1 : i32, i32, i32
  }
  func.func @transform_23(%arg0: i32) -> (i32, i32) {
    %c0_i32 = arith.constant 0 : i32
    %c0_i32_0 = arith.constant 0 : i32
    %c0_i32_1 = arith.constant 0 : i32
    return %c0_i32, %c0_i32_0 : i32, i32
  }
  func.func @transform_24(%arg0: i32) -> (i32, i32, i32) {
    %c0_i32 = arith.constant 0 : i32
    %c0_i32_0 = arith.constant 0 : i32
    %c0_i32_1 = arith.constant 0 : i32
    %c0_i32_2 = arith.constant 0 : i32
    return %c0_i32, %c0_i32_0, %c0_i32_1 : i32, i32, i32
  }
  func.func @transform_25(%arg0: i32) -> (i32, i32) {
    %c0_i32 = arith.constant 0 : i32
    %c0_i32_0 = arith.constant 0 : i32
    %c0_i32_1 = arith.constant 0 : i32
    return %c0_i32, %c0_i32_0 : i32, i32
  }
  func.func @transform_26(%arg0: i32) -> (i32, i32) {
    %c0_i32 = arith.constant 0 : i32
    %c0_i32_0 = arith.constant 0 : i32
    %c0_i32_1 = arith.constant 0 : i32
    return %c0_i32, %c0_i32_0 : i32, i32
  }
  func.func @transform_27(%arg0: i32) -> (i32, i32) {
    %c0_i32 = arith.constant 0 : i32
    %c0_i32_0 = arith.constant 0 : i32
    %c0_i32_1 = arith.constant 0 : i32
    return %c0_i32, %c0_i32_0 : i32, i32
  }
  func.func @transform_28(%arg0: i32) -> (i32, i32) {
    %c0_i32 = arith.constant 0 : i32
    %c0_i32_0 = arith.constant 0 : i32
    %c0_i32_1 = arith.constant 0 : i32
    return %c0_i32, %c0_i32_0 : i32, i32
  }
  func.func @transform_29(%arg0: i32) -> (i32, i32) {
    %c0_i32 = arith.constant 0 : i32
    %c0_i32_0 = arith.constant 0 : i32
    %c0_i32_1 = arith.constant 0 : i32
    return %c0_i32, %c0_i32_0 : i32, i32
  }
  func.func @transform_30(%arg0: i32) -> (i32, i32) {
    %c0_i32 = arith.constant 0 : i32
    %c0_i32_0 = arith.constant 0 : i32
    %c0_i32_1 = arith.constant 0 : i32
    return %c0_i32, %c0_i32_0 : i32, i32
  }
  func.func @transform_31(%arg0: i32) -> (i32, i32, i32) {
    %c0_i32 = arith.constant 0 : i32
    %c0_i32_0 = arith.constant 0 : i32
    %c0_i32_1 = arith.constant 0 : i32
    return %arg0, %c0_i32, %c0_i32_0 : i32, i32, i32
  }
}

</mosaic_0001>

<bundles_post_ra>
// kernel: tile.128
= control target key start
LH: loop header
LB: loop body
LE: loop exit
PB: predicated region body
PF: predicated region fallthrough
CT: control target
= control target key end

     0   :  { %s6_s6 = smov 3  ;;  %s20_s9 = smov 3  ;;  %vm3_vm0 = vcmask 130048   ;;  %vm10_vm1 = vcmask 1048448   ;;  %vm17_vm2 = vcmask 917248   ;;  %vm24_vm3 = vcmask 786048   ;;  %s139_s0 = inlined_call_operand.vmem [shape: f32[20,16], index: 0, kind: input, shape index: {}]   ;;  %s140_s1 = inlined_call_operand.vmem [shape: f32[1,320], index: 1, kind: output, shape index: {}]  }
   0x1   :  { %v73_v0 = vld [vmem:[%s139_s0 + $0x7] ss:$8 sm:%s6_s6]   ;;  %s89_s10 = smov 112   ;;  %v75_v1 = vld [vmem:[%s139_s0 + $0x5] ss:$8 sm:%s20_s9]   ;;  %s13_s13 = smov 3 }
   0x2   :  { %8 = vrot.lane.b32.xlu0 %v73_v0, %s89_s10  ;;  %s90_s14 = smov 80   ;;  %v74_v2 = vld [vmem:[%s139_s0 + $0x6] ss:$8 sm:%s13_s13]   ;;  %s27_s17 = smov 3  ;;  %vm31_vm4 = vcmask 654848   ;;  %vm37_vm5 = vcmask 523648  }
   0x3   :  { %22 = vrot.lane.b32.xlu1 %v75_v1, %s90_s14  ;;  %v76_v3 = vld [vmem:[%s139_s0 + $0x4] ss:$8 sm:%s27_s17]   ;;  %s91_s20 = smov 96   ;;  %v2_v4 = vld [vmem:[%s139_s0] ss:$8 sm:$0x7]  }
   0x4   :  { %s92_s23 = smov 64   ;;  %v77_v5 = vld [vmem:[%s139_s0 + $0x3] ss:$8 sm:$0x7]   ;;  %s93_s28 = smov 48   ;;  %vm43_vm6 = vcmask 392448  }
   0x5   :  { %4 = vst.msk [vmem:[#allocation0] ss:$8 sm:$0x7] %vm3_vm0, %v2_v4   ;;  %v78_v6 = vld [vmem:[%s139_s0 + $0x2] ss:$8 sm:$0x7]  }
   0x6   :  { %15 = vrot.lane.b32.xlu0 %v74_v2, %s91_s20  ;;  %s94_s29 = smov 32   ;;  %v79_v7 = vld [vmem:[%s139_s0 + $0x1] ss:$8 sm:$0x7]   ;;  %s95_s0 = smov 16   ;;  %vm49_vm7 = vcmask 261248  }
   0x7   :  { %29 = vrot.lane.b32.xlu1 %v76_v3, %s92_s23 }
   0xa   :  { %35 = vrot.lane.b32.xlu0 %v77_v5, %s93_s28 }
   0xb   :  { %41 = vrot.lane.b32.xlu1 %v78_v6, %s94_s29 }
   0xe   :  { %47 = vrot.lane.b32.xlu0 %v79_v7, %s95_s0 }
  0x74   :  { %v9_v8 = vpop.permute.xlu0 %8  }
  0x75   :  { %11 = vst.msk [vmem:[#allocation0] ss:$8 sm:$0x3] %vm10_vm1, %v9_v8   ;;  %v23_v9 = vpop.permute.xlu1 %22  }
  0x78   :  { %v16_v10 = vpop.permute.xlu0 %15  }
  0x79   :  { %18 = vst.msk [vmem:[#allocation0] ss:$8 sm:$0x3] %vm17_vm2, %v16_v10   ;;  %v30_v11 = vpop.permute.xlu1 %29  }
  0x7a   :  { %25 = vst.msk [vmem:[#allocation0] ss:$8 sm:$0x3] %vm24_vm3, %v23_v9  }
  0x7b   :  { %32 = vst.msk [vmem:[#allocation0] ss:$8 sm:$0x3] %vm31_vm4, %v30_v11  }
  0x7c   :  { %v36_v12 = vpop.permute.xlu0 %35  }
  0x7d   :  { %38 = vst.msk [vmem:[#allocation0] ss:$8 sm:$0x7] %vm37_vm5, %v36_v12   ;;  %v42_v13 = vpop.permute.xlu1 %41  }
  0x7e   :  { %44 = vst.msk [vmem:[#allocation0] ss:$8 sm:$0x7] %vm43_vm6, %v42_v13  }
  0x80   :  { %v48_v14 = vpop.permute.xlu0 %47  }
  0x81   :  { %50 = vst.msk [vmem:[#allocation0] ss:$8 sm:$0x7] %vm49_vm7, %v48_v14  }
  0x88   :  { %v55_v15 = vld [vmem:[#allocation0] sm:$0x1]  ;;  %v60_v16 = vld [vmem:[#allocation0 + $0x8] sm:$0x1]  ;;  %v66_v17 = vld [vmem:[#allocation0 + $0x10] sm:$0x1] }
  0x89   :  { %58 = vst [vmem:[%s140_s1] sm:$0x1] %v55_v15  ;;  %80 = vst [vmem:[%s140_s1 + $0x1] sm:$0x1] %v60_v16 }
  0x8a   :  { %81 = vst [vmem:[%s140_s1 + $0x2] sm:$0x1] %v66_v17 }

// kernel: tile.117
= control target key start
LH: loop header
LB: loop body
LE: loop exit
PB: predicated region body
PF: predicated region fallthrough
CT: control target
= control target key end

     0   :  { %2 = vsyncpa [#allocation1], 0  ;;  %s48_s6 = smov [#allocation0]   ;;  %s71_s0 = inlined_call_operand.hbm [shape: f32[16], index: 0, kind: input, shape index: {}]   ;;  %s72_s1 = inlined_call_operand.vmem [shape: f32[20,16], index: 1, kind: output, shape index: {}]  }
   0x1   :  { %s9_s7 = sshll.u32 %s48_s6, 4  ;;  %s10_s7 = int_to_ptr.vmem [resolvable:$true] %s9_s7 }
   0x2   :  { %s34_s8 = scalar_lea.vmem %s10_s7, 16  ;;  %s38_s9 = scalar_lea.vmem %s10_s7, 32 }
   0x3   :  { %p35_p0 = scmp.ne.s32.totalorder %s10_s7, %s34_s8  ;;  %p39_p1 = scmp.lt.s32.totalorder %s10_s7, %s10_s7 }
   0x4   :  { %p40_p2 = scmp.lt.s32.totalorder %s38_s9, %s34_s8 }
   0x6   :  { %p41_p3 = por %p40_p2, %p39_p1 }
   0x8   :  { %p42_p4 = pnand %p41_p3, %p35_p0 }
   0xa   :  { %45 = shalt.err (!%p42_p4)
}
   0xb   :  { %12 = dma.hbm_to_vmem [thread:$0]  %s71_s0, 16, %s10_s7, [#allocation1]  }
   0xc   :  { %46 = dma.done.wait [#allocation1], 16  }
   0xd   :  { %47 = vsyncadd [#allocation1], 4294967280  ;;  %v16_v0 = vld [vmem:[#allocation0] ss:$0 sm:$0xff] }
   0xe   :  { %17 = vst [vmem:[%s72_s1] sm:$0xff] %v16_v0  ;;  %23 = vst [vmem:[%s72_s1 + $0x8] sm:$0xff] %v16_v0 }
   0xf   :  { %24 = vst [vmem:[%s72_s1 + $0x10] sm:$0xff] %v16_v0 }
  0x10   :  { %22 = vsyncpa [#allocation1], 1 }

// kernel: tile.170
= control target key start
LH: loop header
LB: loop body
LE: loop exit
PB: predicated region body
PF: predicated region fallthrough
CT: control target
= control target key end

     0   :  { %s28_s0 = inlined_call_operand.vmem [shape: f32[16], index: 0, kind: input, shape index: {}]   ;;  %s29_s1 = inlined_call_operand.vmem [shape: f32[10,16], index: 1, kind: output, shape index: {}]  }
   0x1   :  { %v4_v0 = vld [vmem:[%s28_s0] ss:$0 sm:$0xff] }
   0x2   :  { %5 = vst [vmem:[%s29_s1] sm:$0xff] %v4_v0  ;;  %8 = vst [vmem:[%s29_s1 + $0x8] sm:$0xff] %v4_v0 }

// kernel: tile.173
= control target key start
LH: loop header
LB: loop body
LE: loop exit
PB: predicated region body
PF: predicated region fallthrough
CT: control target
= control target key end

     0   :  { %s78_s10 = smov 112   ;;  %s79_s11 = smov 80   ;;  %vm4_vm0 = vcmask 130048   ;;  %vm10_vm1 = vcmask 1048448   ;;  %vm16_vm2 = vcmask 917248   ;;  %vm22_vm3 = vcmask 786048   ;;  %s125_s0 = inlined_call_operand.vmem [shape: f32[10,16], index: 0, kind: input, shape index: {}]   ;;  %s126_s1 = inlined_call_operand.vmem [shape: f32[1,160], index: 1, kind: output, shape index: {}]  }
   0x1   :  { %v63_v0 = vld [vmem:[%s125_s0 + $0x7] sm:$0x1]   ;;  %v65_v1 = vld [vmem:[%s125_s0 + $0x5] sm:$0x1]   ;;  %v64_v2 = vld [vmem:[%s125_s0 + $0x6] sm:$0x1]  }
   0x2   :  { %8 = vrot.lane.b32.xlu0 %v63_v0, %s78_s10  ;;  %20 = vrot.lane.b32.xlu1 %v65_v1, %s79_s11  ;;  %v66_v3 = vld [vmem:[%s125_s0 + $0x4] sm:$0x1]   ;;  %s2_s16 = smov 3  ;;  %s80_s17 = smov 96   ;;  %v67_v5 = vld [vmem:[%s125_s0 + $0x3] sm:$0x1]  }
   0x3   :  { %s81_s18 = smov 64   ;;  %v3_v4 = vld [vmem:[%s125_s0] ss:$8 sm:%s2_s16]   ;;  %v68_v6 = vld [vmem:[%s125_s0 + $0x2] sm:$0x1]   ;;  %s43_s25 = smov 3 }
   0x4   :  { %5 = vst.msk [vmem:[#allocation0] ss:$8 sm:$0x3] %vm4_vm0, %v3_v4   ;;  %s82_s26 = smov 48   ;;  %s83_s27 = smov 32   ;;  %vm28_vm4 = vcmask 654848  }
   0x5   :  { %v69_v7 = vld [vmem:[%s125_s0 + $0x1] ss:$8 sm:%s43_s25]   ;;  %s84_s0 = smov 16   ;;  %vm34_vm5 = vcmask 523648   ;;  %vm40_vm6 = vcmask 392448   ;;  %vm47_vm7 = vcmask 261248  }
   0x6   :  { %14 = vrot.lane.b32.xlu0 %v64_v2, %s80_s17  ;;  %26 = vrot.lane.b32.xlu1 %v66_v3, %s81_s18 }
   0xa   :  { %32 = vrot.lane.b32.xlu0 %v67_v5, %s82_s26  ;;  %38 = vrot.lane.b32.xlu1 %v68_v6, %s83_s27 }
   0xe   :  { %45 = vrot.lane.b32.xlu0 %v69_v7, %s84_s0 }
  0x74   :  { %v9_v8 = vpop.permute.xlu0 %8   ;;  %v21_v9 = vpop.permute.xlu1 %20  }
  0x75   :  { %11 = vst.msk [vmem:[#allocation0] sm:$0x1] %vm10_vm1, %v9_v8  }
  0x78   :  { %v15_v10 = vpop.permute.xlu0 %14   ;;  %v27_v11 = vpop.permute.xlu1 %26  }
  0x79   :  { %17 = vst.msk [vmem:[#allocation0] sm:$0x1] %vm16_vm2, %v15_v10  }
  0x7a   :  { %23 = vst.msk [vmem:[#allocation0] sm:$0x1] %vm22_vm3, %v21_v9  }
  0x7b   :  { %29 = vst.msk [vmem:[#allocation0] sm:$0x1] %vm28_vm4, %v27_v11  }
  0x7c   :  { %v33_v12 = vpop.permute.xlu0 %32   ;;  %v39_v13 = vpop.permute.xlu1 %38  }
  0x7d   :  { %35 = vst.msk [vmem:[#allocation0] sm:$0x1] %vm34_vm5, %v33_v12  }
  0x7e   :  { %41 = vst.msk [vmem:[#allocation0] sm:$0x1] %vm40_vm6, %v39_v13  }
  0x80   :  { %v46_v14 = vpop.permute.xlu0 %45  }
  0x81   :  { %48 = vst.msk [vmem:[#allocation0] ss:$8 sm:$0x3] %vm47_vm7, %v46_v14  }
  0x88   :  { %v53_v15 = vld [vmem:[#allocation0] sm:$0x1]  ;;  %v58_v16 = vld [vmem:[#allocation0 + $0x8] sm:$0x1] }
  0x89   :  { %56 = vst [vmem:[%s126_s1] sm:$0x1] %v53_v15  ;;  %70 = vst [vmem:[%s126_s1 + $0x1] sm:$0x1] %v58_v16 }

// kernel: deeplob_forward.1
= control target key start
LH: loop header
LB: loop body
LE: loop exit
PB: predicated region body
PF: predicated region fallthrough
CT: control target
= control target key end

     0   :  { %s16274_s6 = smov 1   ;;  %s16275_s10 = smov 2   ;;  %s19310_s0 = inlined_call_operand.smem [shape: u32[32], index: -1, kind: input, shape index: {}] }
   0x1   :  { %s16319_s5 = sld [smem:[%s19310_s0]]   ;;  %s16276_s14 = smov 3  }
   0x2   :  { %s16324_s9 = sld [smem:[%s19310_s0 + %s16274_s6]]   ;;  %s16277_s18 = smov 4  }
   0x3   :  { %s16329_s13 = sld [smem:[%s19310_s0 + %s16275_s10]]   ;;  %s16278_s22 = smov 5  }
   0x4   :  { %s16334_s17 = sld [smem:[%s19310_s0 + %s16276_s14]]   ;;  %s16279_s26 = smov 6  }
   0x5   :  { %s16339_s21 = sld [smem:[%s19310_s0 + %s16277_s18]]   ;;  %s16280_s30 = smov 7  }
   0x6   :  { %s16344_s25 = sld [smem:[%s19310_s0 + %s16278_s22]]   ;;  %s16281_s4 = smov 8  }
   0x7   :  { %19434 = sst [smem:[#allocation5_spill]] %s16319_s5  ;;  %s16282_s10 = smov 9  }
   0x8   :  { %19435 = sst [smem:[#allocation6_spill]] %s16324_s9  ;;  %s16283_s15 = smov 10  }
   0x9   :  { %s16349_s29 = sld [smem:[%s19310_s0 + %s16279_s26]]   ;;  %s16284_s20 = smov 11  }
   0xa   :  { %s16354_s3 = sld [smem:[%s19310_s0 + %s16280_s30]]   ;;  %s16285_s26 = smov 12  }
   0xb   :  { %s16359_s8 = sld [smem:[%s19310_s0 + %s16281_s4]]   ;;  %s16286_s1 = smov 13  }
   0xc   :  { %s16364_s14 = sld [smem:[%s19310_s0 + %s16282_s10]]   ;;  %s16287_s7 = smov 14  }
   0xd   :  { %s16369_s19 = sld [smem:[%s19310_s0 + %s16283_s15]]   ;;  %s16288_s15 = smov 15  }
   0xe   :  { %s16374_s24 = sld [smem:[%s19310_s0 + %s16284_s20]]   ;;  %s16289_s22 = smov 16  }
   0xf   :  { %s16379_s30 = sld [smem:[%s19310_s0 + %s16285_s26]]   ;;  %s16290_s28 = smov 17  }
  0x10   :  { %19436 = sst [smem:[#allocation7_spill]] %s16354_s3 }
  0x11   :  { %19437 = sst [smem:[#allocation8_spill]] %s16359_s8 }
  0x12   :  { %s16384_s6 = sld [smem:[%s19310_s0 + %s16286_s1]]  }
  0x13   :  { %s16389_s12 = sld [smem:[%s19310_s0 + %s16287_s7]]   ;;  %s16291_s7 = smov 18  }
  0x14   :  { %s16394_s20 = sld [smem:[%s19310_s0 + %s16288_s15]]   ;;  %s16292_s15 = smov 19  }
  0x15   :  { %s16399_s27 = sld [smem:[%s19310_s0 + %s16289_s22]]   ;;  %s16293_s22 = smov 20  }
  0x16   :  { %s16404_s4 = sld [smem:[%s19310_s0 + %s16290_s28]]   ;;  %s16294_s28 = smov 21  }
  0x18   :  { %19438 = sst [smem:[#allocation9_spill]] %s16384_s6 }
  0x19   :  { %19439 = sst [smem:[#allocation10_spill]] %s16389_s12 }
  0x1a   :  { %19440 = sst [smem:[#allocation11_spill]] %s16394_s20 }
  0x1b   :  { %19441 = sst [smem:[#allocation12_spill]] %s16399_s27 }
  0x1c   :  { %19442 = sst [smem:[#allocation13_spill]] %s16404_s4 }
  0x1d   :  { %s16409_s12 = sld [smem:[%s19310_s0 + %s16291_s7]]   ;;  %s16295_s7 = smov 22  }
  0x1e   :  { %s16414_s20 = sld [smem:[%s19310_s0 + %s16292_s15]]   ;;  %s16296_s15 = smov 23  }
  0x1f   :  { %s16419_s27 = sld [smem:[%s19310_s0 + %s16293_s22]]   ;;  %s16297_s22 = smov 24  }
  0x20   :  { %s16424_s4 = sld [smem:[%s19310_s0 + %s16294_s28]]   ;;  %s16298_s28 = smov 25  }
  0x23   :  { %19443 = sst [smem:[#allocation14_spill]] %s16409_s12 }
  0x24   :  { %19444 = sst [smem:[#allocation15_spill]] %s16414_s20 }
  0x25   :  { %19445 = sst [smem:[#allocation16_spill]] %s16419_s27 }
  0x26   :  { %19446 = sst [smem:[#allocation17_spill]] %s16424_s4 }
  0x27   :  { %s16429_s12 = sld [smem:[%s19310_s0 + %s16295_s7]]   ;;  %s16299_s7 = smov 26  }
  0x28   :  { %s16434_s20 = sld [smem:[%s19310_s0 + %s16296_s15]]   ;;  %s16300_s15 = smov 27  }
  0x29   :  { %s16439_s27 = sld [smem:[%s19310_s0 + %s16297_s22]]   ;;  %s16301_s22 = smov 28  }
  0x2a   :  { %s16444_s4 = sld [smem:[%s19310_s0 + %s16298_s28]]   ;;  %s16302_s28 = smov 29  }
  0x2d   :  { %19447 = sst [smem:[#allocation18_spill]] %s16429_s12 }
  0x2e   :  { %19448 = sst [smem:[#allocation19_spill]] %s16434_s20 }
  0x2f   :  { %19449 = sst [smem:[#allocation20_spill]] %s16439_s27 }
  0x30   :  { %19450 = sst [smem:[#allocation21_spill]] %s16444_s4 }
  0x31   :  { %s16449_s12 = sld [smem:[%s19310_s0 + %s16299_s7]]   ;;  %s16303_s7 = smov 30  }
  0x32   :  { %s16454_s20 = sld [smem:[%s19310_s0 + %s16300_s15]]   ;;  %s16304_s15 = smov 31  }
  0x33   :  { %s16459_s27 = sld [smem:[%s19310_s0 + %s16301_s22]]  }
  0x34   :  { %s16464_s4 = sld [smem:[%s19310_s0 + %s16302_s28]]  }
  0x37   :  { %19451 = sst [smem:[#allocation22_spill]] %s16449_s12 }
  0x38   :  { %19452 = sst [smem:[#allocation23_spill]] %s16454_s20 }
  0x39   :  { %s16469_s12 = sld [smem:[%s19310_s0 + %s16303_s7]]  }
  0x3a   :  { %19453 = sst [smem:[#allocation24_spill]] %s16464_s4 }
  0x3b   :  { %s16474_s20 = sld [smem:[%s19310_s0 + %s16304_s15]]  }
  0x3c   :  { %68 = vsyncpa [#allocation3], 0 }
  0x3d   :  { %70 = vsyncpa [#allocation3 + $0x1], 0  ;;  %s16476_s22 = smov 0   ;;  %s16478_s23 = smov 0  }
  0x3e   :  { %s16480_s26 = smov 0   ;;  %s16482_s28 = smov 0  }
  0x3f LB: > { %s19454_s9 = sld [smem:[#allocation6_spill]]  ;;  %s16497_s0 = sadd.s32 4294967295, %s16272_s28   ;;  %s16272_s28 = sphi %s16482_s28, %s19654_s28   ;;  %s16268_s26 = sphi %s16480_s26, %s19653_s26   ;;  %s16264_s23 = sphi %s16478_s23, %s19652_s23   ;;  %s16260_s22 = sphi %s16476_s22, %s19651_s22  }
  0x40   : > { %s19455_s6 = sld [smem:[#allocation9_spill]]  ;;  %s12811_s1 = sadd.s32 4294967294, %s16272_s28  }
  0x41   : > { %s19456_s4 = sld [smem:[#allocation24_spill]]  ;;  %s16501_s2 = sadd.s32 1, %s16272_s28  }
  0x42   : > { %s19457_s3 = sld [smem:[#allocation7_spill]]  ;;  %s739_s7 = sadd.s32 1, %s16268_s26 }
  0x43   : > { %s736_s10 = ssub.s32 %s16272_s28, %s16501_s2  ;;  %p749_p0 = scmp.ne.s32.totalorder %s16268_s26, %s16264_s23 }
  0x44   : > { %p737_p1 = scmp.eq.s32.totalorder %s736_s10, 0  ;;  %p750_p2 = scmp.eq.s32.totalorder %s16497_s0, 1 }
  0x45   : > { %p755_p3 = scmp.ne.s32.totalorder %s16264_s23, %s16260_s22  ;;  %p756_p4 = scmp.eq.s32.totalorder %s12811_s1, 1 }
  0x46   : > { %s16512_s11 = scalar_select %p737_p1, %s16268_s26, %s739_s7  }
  0x47   : > { %p16514_p5 = por %p750_p2, %p749_p0  ;;  %p16518_p6 = por %p756_p4, %p755_p3 }
  0x48   : > { %p12814_p7 = scmp.ge.s32.totalorder %s16272_s28, 1  ;;  %p872_p8 = scmp.lt.s32.totalorder %s16272_s28, 3 }
  0x4a   : > { %p873_p9 = pnand %p12814_p7, %p872_p8 }
  0x4c   : > { %876 = sbr.rel (%p873_p9) target bundleno = 6386 (0x18f2), region = 144 }
  0x51   : > { %v969_v0 = vld [vmem:[%s19454_s9 + $0x30] sm:$0xff]  ;;  %s19460_s5 = sld [smem:[#allocation5_spill]]  ;;  %vm1051_vm0 = vcmask 1043456   ;;  %p951_p10 = scmp.lt.s32.totalorder %s16497_s0, 1  ;;  %v15031_v3 = vld [vmem:[%s19454_s9 + $0x1c] ss:$12 sps:$4 sm:$0xff]   ;;  %v977_v61 = vlaneseq }
  0x52   : > { %v12824_v1 = vcombine.high %v969_v0, %v969_v0  ;;  %v12823_v2 = vcombine.low %v969_v0, %v969_v0  ;;  %v16305_v4 = vmov 0   ;;  %v15033_v6 = vld [vmem:[%s19454_s9 + $0x18] ss:$12 sps:$4 sm:$0xff]   ;;  %v15036_v8 = vld [vmem:[%s19454_s9] ss:$12 sps:$4 sm:$0xff]   ;;  %vm1044_vm1 = vcmask 326656  }
  0x53   : > { %1093 = vmatprep.mubr.bf16.mxu1 %v16305_v4  ;;  %s952_s18 = scalar_select %p951_p10, %s16497_s0, 1  ;;  %v15034_v7 = vld [vmem:[%s19454_s9 + $0x4] ss:$12 sps:$4 sm:$0xff]   ;;  %v15040_v11 = vld [vmem:[%s16334_s17 + $0x28c] ss:$12 sps:$4 sm:$0xff]   ;;  %v16589_v62 = vshrl.u32 %v977_v61, 7 }
  0x54   : > { %12826 = vmatprep.subr.msk.bf16.mxu1 %vm1051_vm0, %v12824_v1  ;;  %v1053_v5 = vsel %vm1051_vm0, %v12823_v2, 0  ;;  %v15042_v12 = vld [vmem:[%s16334_s17 + $0x288] ss:$12 sps:$4 sm:$0xff]   ;;  %v15037_v13 = vld [vmem:[%s19454_s9 + $0x38] ss:$0 sps:$4 sm:$0xff]   ;;  %1797 = vmatprep.subr.bf16.mxu0 %v15040_v11  ;;  %vm1790_vm4 = vcmask 523264  }
  0x55   : > { %1072 = vmatpush1.bf16.msra.mxu1 %v1053_v5  ;;  %s14293_s1 = sshll.u32 %s952_s18, 5  ;;  %v15043_v14 = vld [vmem:[%s16334_s17 + $0x274] ss:$12 sps:$4 sm:$0xff]   ;;  %1798 = vmatpush1.bf16.msra.mxu0 %v15042_v12  ;;  %v15045_v16 = vld [vmem:[%s16334_s17 + $0x270] ss:$12 sps:$4 sm:$0xff]   ;;  %v1059_v17 = vsel %vm1051_vm0, %v15037_v13, 0 }
  0x56   : > { %1073 = vmatprep.subr.bf16.mxu1 %v15031_v3  ;;  %1799 = vmatprep.subr.bf16.mxu0 %v15043_v14  ;;  %v15038_v18 = vld [vmem:[%s19454_s9 + $0x20] ss:$12 sps:$4 sm:$0xff]   ;;  %v15046_v19 = vld [vmem:[%s16334_s17 + $0x25c] ss:$12 sps:$4 sm:$0xff]   ;;  %v15048_v22 = vld [vmem:[%s16334_s17 + $0x258] ss:$12 sps:$4 sm:$0xff]  }
  0x57   : > { %s955_s7 = scalar_lea.vmem %s19460_s5, %s14293_s1  ;;  %v15049_v23 = vld [vmem:[%s16334_s17 + $0x244] ss:$12 sps:$4 sm:$0xff]   ;;  %v15039_v24 = vld [vmem:[%s19454_s9 + $0x8] ss:$12 sps:$4 sm:$0xff]   ;;  %v15051_v26 = vld [vmem:[%s16334_s17 + $0x240] ss:$12 sps:$4 sm:$0xff]  }
  0x58   : > { %v957_v9 = vld [vmem:[%s955_s7] sm:$0xff]  ;;  %v958_v10 = vld [vmem:[%s955_s7 + $0x8] sm:$0xff]  ;;  %v959_v20 = vld [vmem:[%s955_s7 + $0x10] sm:$0xff]  ;;  %19461 = vst [vmem:[#allocation25_spill] sm:$0xff] %v16589_v62  ;;  %v16592_v63 = vsub.s32 0, %v16589_v62  ;;  %v16596_v1 = vsub.s32 4, %v16589_v62 }
  0x59   : > { %1074 = vmatpush1.bf16.msra.mxu1 %v15033_v6  ;;  %v971_v15 = vpack.c.bf16 %v958_v10, %v957_v9  ;;  %v960_v21 = vld [vmem:[%s955_s7 + $0x18] sm:$0x3]  ;;  %1800 = vmatpush1.bf16.msra.mxu0 %v15045_v16  ;;  %v15054_v28 = vld [vmem:[%s16334_s17 + $0x228] ss:$12 sps:$4 sm:$0xff]   ;;  %v15057_v30 = vld [vmem:[%s16334_s17 + $0x210] ss:$12 sps:$4 sm:$0xff]  }
  0x5a   : > { %1075 = vmatprep.subr.bf16.mxu1 %v15034_v7  ;;  %1801 = vmatprep.subr.bf16.mxu0 %v15046_v19  ;;  %v972_v25 = vpack.c.bf16 %v960_v21, %v959_v20  ;;  %v15052_v27 = vld [vmem:[%s16334_s17 + $0x22c] ss:$12 sps:$4 sm:$0xff]   ;;  %v15055_v29 = vld [vmem:[%s16334_s17 + $0x214] ss:$12 sps:$4 sm:$0xff]   ;;  %v15058_v31 = vld [vmem:[%s16334_s17 + $0x1fc] ss:$12 sps:$4 sm:$0xff]  }
  0x5b   : > { %v15060_v32 = vld [vmem:[%s16334_s17 + $0x1f8] ss:$12 sps:$4 sm:$0xff]   ;;  %v15063_v34 = vld [vmem:[%s16334_s17 + $0x1e0] ss:$12 sps:$4 sm:$0xff]   ;;  %v15066_v36 = vld [vmem:[%s16334_s17 + $0x348] ss:$12 sps:$4 sm:$0xff]  }
  0x5c   : > { %v15061_v33 = vld [vmem:[%s16334_s17 + $0x1e4] ss:$12 sps:$4 sm:$0xff]   ;;  %v15064_v35 = vld [vmem:[%s16334_s17 + $0x34c] ss:$12 sps:$4 sm:$0xff]   ;;  %v15067_v37 = vld [vmem:[%s16334_s17 + $0x334] ss:$12 sps:$4 sm:$0xff]  }
  0x5d   : > { %1076 = vmatpush1.bf16.msra.mxu1 %v15036_v8  ;;  %1802 = vmatpush1.bf16.msra.mxu0 %v15048_v22  ;;  %v15069_v38 = vld [vmem:[%s16334_s17 + $0x330] ss:$12 sps:$4 sm:$0xff]   ;;  %v15072_v40 = vld [vmem:[%s16334_s17 + $0x318] ss:$12 sps:$4 sm:$0xff]   ;;  %v15075_v42 = vld [vmem:[%s16334_s17 + $0x300] ss:$12 sps:$4 sm:$0xff]  }
  0x5e   : > { %14953 = vmatprep.subr.msk.bf16.mxu1 %vm1051_vm0, %v15037_v13  ;;  %1803 = vmatprep.subr.bf16.mxu0 %v15049_v23  ;;  %v15070_v39 = vld [vmem:[%s16334_s17 + $0x31c] ss:$12 sps:$4 sm:$0xff]   ;;  %v15073_v41 = vld [vmem:[%s16334_s17 + $0x304] ss:$12 sps:$4 sm:$0xff]   ;;  %v15076_v43 = vld [vmem:[%s16334_s17 + $0x2ec] ss:$12 sps:$4 sm:$0xff]  }
  0x5f   : > { %v15078_v44 = vld [vmem:[%s16334_s17 + $0x2e8] ss:$12 sps:$4 sm:$0xff]   ;;  %v15081_v46 = vld [vmem:[%s16334_s17 + $0x2d0] ss:$12 sps:$4 sm:$0xff]   ;;  %v15084_v48 = vld [vmem:[%s16334_s17 + $0x2b8] ss:$12 sps:$4 sm:$0xff]  }
  0x60   : > { %12827 = vmatmul.mubr.msk.bf16.vlgmr.msra.gmra.mxu1 %vm1044_vm1, %v971_v15  ;;  %v15079_v45 = vld [vmem:[%s16334_s17 + $0x2d4] ss:$12 sps:$4 sm:$0xff]   ;;  %v15082_v47 = vld [vmem:[%s16334_s17 + $0x2bc] ss:$12 sps:$4 sm:$0xff]   ;;  %v15085_v49 = vld [vmem:[%s16334_s17 + $0x2a4] ss:$12 sps:$4 sm:$0xff]  }
  0x61   : > { %14649 = vmatpush3.bf16.msra.mxu1 %v1059_v17  ;;  %1103 = vmatprep.mubr.bf16.mxu1 %v16305_v4  ;;  %v15087_v50 = vld [vmem:[%s16334_s17 + $0x2a0] ss:$12 sps:$4 sm:$0xff]   ;;  %v15088_v52 = vld [vmem:[%s16334_s17 + $0x3a8] ss:$12 sps:$4 sm:$0xff]   ;;  %v15094_v54 = vld [vmem:[%s16334_s17 + $0x390] ss:$12 sps:$4 sm:$0xff]  }
  0x62   : > { %14650 = vmatprep.subr.bf16.mxu1 %v15038_v18  ;;  %1804 = vmatpush1.bf16.msra.mxu0 %v15051_v26  ;;  %v15090_v51 = vld [vmem:[%s16334_s17 + $0x3ac] ss:$12 sps:$4 sm:$0xff]   ;;  %v15096_v55 = vld [vmem:[%s16334_s17 + $0x394] ss:$12 sps:$4 sm:$0xff]   ;;  %v15102_v56 = vld [vmem:[%s16334_s17 + $0x37c] ss:$12 sps:$4 sm:$0xff]  }
  0x63   : > { %1805 = vmatprep.subr.bf16.mxu0 %v15052_v27  ;;  %v15093_v53 = vld [vmem:[%s16334_s17 + $0xac] ss:$12 sps:$4 sm:$0xff]   ;;  %v15108_v58 = vld [vmem:[%s16334_s17 + $0x364] ss:$12 sps:$4 sm:$0xff]   ;;  %19462 = vst [vmem:[#allocation26_spill] sm:$0xff] %v16592_v63  ;;  %v16600_v3 = vsub.s32 1, %v16589_v62 }
  0x64   : > { %v15100_v57 = vld [vmem:[%s16334_s17 + $0x378] ss:$12 sps:$4 sm:$0xff]   ;;  %v15106_v59 = vld [vmem:[%s16334_s17 + $0x360] ss:$12 sps:$4 sm:$0xff]   ;;  %v15112_v60 = vld [vmem:[%s16334_s17 + $0x350] ss:$12 sps:$4 sm:$0xff]  }
  0x65   : > { %14651 = vmatpush3.bf16.msra.mxu1 %v15038_v18  ;;  %v973_v0 = vld [vmem:[%s16329_s13] sm:$0x77]  ;;  %19463 = vst [vmem:[#allocation27_spill] sm:$0xff] %v16600_v3  ;;  %v16604_v6 = vsub.s32 5, %v16589_v62  ;;  %v16609_v9 = vsub.s32 2, %v16589_v62  ;;  %v16614_v13 = vsub.s32 6, %v16589_v62 }
  0x66   : > { %14652 = vmatprep.subr.bf16.mxu1 %v15039_v24  ;;  %1806 = vmatpush1.bf16.msra.mxu0 %v15054_v28  ;;  %v980_v2 = vrot.slane %v973_v0, %v16592_v63  ;;  %v984_v5 = vrot.slane %v973_v0, %v16596_v1  ;;  %v1178_v8 = vrot.slane %v973_v0, %v16600_v3  ;;  %vm1420_vm2 = vsmask.f32 7424  ;;  %s19465_s8 = sld [smem:[#allocation8_spill]] }
  0x67   : > { %1807 = vmatprep.subr.bf16.mxu0 %v15055_v29  ;;  %19464 = vst [vmem:[#allocation28_spill] sm:$0xff] %v16609_v9  ;;  %v1182_v12 = vrot.slane %v973_v0, %v16604_v6  ;;  %v1217_v16 = vrot.slane %v973_v0, %v16609_v9  ;;  %v1221_v21 = vrot.slane %v973_v0, %v16614_v13  ;;  %vm3235_vm3 = vsmask.f32 6400  ;;  %s19466_s10 = sld [smem:[#allocation11_spill]] }
  0x68   : > { %12828 = vmatmul.mubr.msk.bf16.gmra.mxu1 %vm1044_vm1, %v972_v25  ;;  %v995_v7 = vrot.slane %v980_v2, %v16592_v63  ;;  %v999_v10 = vrot.slane %v984_v5, %v16592_v63  ;;  %vm2607_vm5 = vcmask 1046528   ;;  %vm7188_vm6 = vcmask 261120   ;;  %s19467_s18 = sld [smem:[#allocation10_spill]] }
  0x69   : > { %14653 = vmatpush3.bf16.msra.mxu1 %v15039_v24  ;;  %14654 = vmatprep.mubr.msk.bf16.mxu1 %vm1044_vm1, %v971_v15  ;;  %v1193_v15 = vrot.slane %v1178_v8, %v16600_v3  ;;  %v1197_v20 = vrot.slane %v1182_v12, %v16600_v3  ;;  %v1232_v27 = vrot.slane %v1217_v16, %v16609_v9  ;;  %vm16307_vm7 = vmmov 0   ;;  %s19468_s1 = sld [smem:[#allocation13_spill]] }
  0x6a   : > { %1808 = vmatpush1.bf16.msra.mxu0 %v15057_v30  ;;  %1856 = vmatprep.subr.bf16.mxu1 %v15090_v51  ;;  %vm8828_vm8 = vcmask 130048   ;;  %s19469_s7 = sld [smem:[#allocation12_spill]]  ;;  %vm9307_vm10 = vcmask 64512   ;;  %vm9302_vm12 = vcmp.lt.s32.totalorder %v16589_v62, 7  ;;  %vm9382_vm13 = vcmp.gt.s32.totalorder %v16589_v62, 0 }
  0x6b   : > { %1809 = vmatprep.subr.bf16.mxu0 %v15058_v31  ;;  %vm12699_vm0 = vcmask 16384  }
  0x6e   : > { %1810 = vmatpush1.bf16.msra.mxu0 %v15060_v32  ;;  %v1236_v32 = vrot.slane %v1221_v21, %v16609_v9 }
  0x6f   : > { %1811 = vmatprep.subr.bf16.mxu0 %v15061_v33 }
  0x70   : > { %14655 = vmatmul.mubr.msk.bf16.vlgmr.msra.gmra.mxu1 %vm1044_vm1, %v972_v25  ;;  %v974_v25 = vld [vmem:[%s16329_s13 + $0x8] sm:$0x7] }
  0x71   : > { %1880 = vmatprep.mubr.bf16.mxu1 %v16305_v4  ;;  %1857 = vmatpush1.bf16.msra.mxu1 %v15088_v52  ;;  %v1225_v0 = vrot.slane %v974_v25, %v16609_v9 }
  0x72   : > { %1812 = vmatpush1.bf16.msra.mxu0 %v15063_v34  ;;  %1858 = vmatprep.subr.bf16.mxu1 %v15096_v55  ;;  %v988_v34 = vrot.slane %v974_v25, %v16592_v63 }
  0x73   : > { %1813 = vmatprep.subr.bf16.mxu0 %v15064_v35 }
  0x75   : > { %1859 = vmatpush1.bf16.msra.mxu1 %v15094_v54 }
  0x76   : > { %1814 = vmatpush2.bf16.msra.mxu0 %v15066_v36  ;;  %1860 = vmatprep.subr.bf16.mxu1 %v15102_v56 }
  0x77   : > { %1815 = vmatprep.subr.bf16.mxu0 %v15067_v37 }
  0x79   : > { %1861 = vmatpush1.bf16.msra.mxu1 %v15100_v57 }
  0x7a   : > { %1816 = vmatpush2.bf16.msra.mxu0 %v15069_v38  ;;  %1862 = vmatprep.subr.bf16.mxu1 %v15108_v58 }
  0x7b   : > { %1817 = vmatprep.subr.bf16.mxu0 %v15070_v39 }
  0x7d   : > { %1863 = vmatpush1.bf16.msra.mxu1 %v15106_v59 }
  0x7e   : > { %1818 = vmatpush2.bf16.msra.mxu0 %v15072_v40  ;;  %14299 = vmatprep.subr.bf16.mxu1 %v15112_v60 }
  0x7f   : > { %1819 = vmatprep.subr.bf16.mxu0 %v15073_v41 }
  0x82   : > { %1820 = vmatpush2.bf16.msra.mxu0 %v15075_v42 }
  0x83   : > { %1821 = vmatprep.subr.bf16.mxu0 %v15076_v43 }
  0x86   : > { %1822 = vmatpush2.bf16.msra.mxu0 %v15078_v44 }
  0x87   : > { %1823 = vmatprep.subr.bf16.mxu0 %v15079_v45 }
  0x8a   : > { %1824 = vmatpush2.bf16.msra.mxu0 %v15081_v46  ;;  %v1003_v46 = vrot.slane %v988_v34, %v16592_v63 }
  0x8b   : > { %1825 = vmatprep.subr.bf16.mxu0 %v15082_v47  ;;  %v1186_v47 = vrot.slane %v974_v25, %v16600_v3 }
  0x8d   : > { %v1201_v60 = vrot.slane %v1186_v47, %v16600_v3 }
  0x8e   : > { %1826 = vmatpush2.bf16.msra.mxu0 %v15084_v48 }
  0x8f   : > { %1827 = vmatprep.subr.bf16.mxu0 %v15085_v49 }
  0x92   : > { %1828 = vmatpush2.bf16.msra.mxu0 %v15087_v50 }
  0x93   : > { %2319 = vmatprep.subr.bf16.mxu0 %v15093_v53 }
 0x120   : > { %v1095_v11 = vpop.f32.mrf.mxu1 }
 0x121   : > { %v1096_v14 = vadd.f32 %v1095_v11, %v995_v7 }
 0x122   : > { %v1097_v17 = vpop.f32.mrf.mxu1 }
 0x123   : > { %v1163_v18 = vmax.f32 %v1096_v14, 0.0  ;;  %v1098_v19 = vadd.f32 %v1097_v17, %v999_v10 }
 0x124   : > { %v1099_v22 = vpop.f32.mrf.mxu1 }
 0x125   : > { %v1164_v23 = vmax.f32 %v1098_v19, 0.0  ;;  %v1100_v24 = vadd.f32 %v1099_v22, %v995_v7  ;;  %v1202_v26 = vmul.f32 %v1193_v15, %v1163_v18 }
 0x126   : > { %v1101_v28 = vpop.f32.mrf.mxu1 }
 0x127   : > { %v1166_v29 = vmax.f32 %v1100_v24, 0.0  ;;  %v1102_v30 = vadd.f32 %v1101_v28, %v999_v10  ;;  %v1203_v31 = vmul.f32 %v1197_v20, %v1164_v23  ;;  %v1241_v38 = vadd.f32 %v1232_v27, %v1202_v26 }
 0x128   : > { %v1105_v33 = vpop.f32.mrf.mxu1  ;;  %v1240_v24 = vrot.slane %v1225_v0, %v16609_v9 }
 0x129   : > { %v1205_v35 = vmul.f32 %v1193_v15, %v1166_v29  ;;  %v1167_v36 = vmax.f32 %v1102_v30, 0.0  ;;  %v1106_v37 = vadd.f32 %v1105_v33, %v995_v7  ;;  %v1242_v44 = vadd.f32 %v1236_v32, %v1203_v31 }
 0x12a   : > { %v1107_v39 = vpop.f32.mrf.mxu1 }
 0x12b   : > { %v1244_v40 = vadd.f32 %v1232_v27, %v1205_v35  ;;  %v1206_v41 = vmul.f32 %v1197_v20, %v1167_v36  ;;  %v1169_v42 = vmax.f32 %v1106_v37, 0.0  ;;  %v1108_v43 = vadd.f32 %v1107_v39, %v999_v10 }
 0x12c   : > { %v1109_v45 = vpop.f32.mrf.mxu1 }
 0x12d   : > { %v16626_v48 = vpack.c.bf16 %v1244_v40, %v1241_v38  ;;  %v1245_v49 = vadd.f32 %v1236_v32, %v1206_v41  ;;  %v1208_v50 = vmul.f32 %v1193_v15, %v1169_v42  ;;  %v1170_v51 = vmax.f32 %v1108_v43, 0.0  ;;  %v15091_v43 = vld [vmem:[%s16334_s17 + $0xa8] ss:$12 sps:$4 sm:$0xff]  }
 0x12e   : > { %v1110_v52 = vadd.f32 %v1109_v45, %v995_v7  ;;  %v1111_v53 = vpop.f32.mrf.mxu1  ;;  %v15099_v45 = vld [vmem:[%s16334_s17 + $0x94] ss:$12 sps:$4 sm:$0xff]  }
 0x12f   : > { %v16628_v54 = vpack.c.bf16 %v1245_v49, %v1242_v44  ;;  %v1247_v55 = vadd.f32 %v1232_v27, %v1208_v50  ;;  %v1209_v56 = vmul.f32 %v1197_v20, %v1170_v51  ;;  %v1112_v57 = vadd.f32 %v1111_v53, %v999_v10 }
 0x130   : > { %v1172_v58 = vmax.f32 %v1110_v52, 0.0  ;;  %v14656_v59 = vpop.f32.mrf.mxu1  ;;  %v1424_v2 = vshll.u32 %v16626_v48, 16  ;;  %v1422_v17 = vshrl.u32 %v16626_v48, 16 }
 0x131   : > { %v16633_v5 = vpack.c.bf16 %v1247_v55, %v1247_v55  ;;  %v1248_v8 = vadd.f32 %v1236_v32, %v1209_v56  ;;  %v1173_v11 = vmax.f32 %v1112_v57, 0.0  ;;  %v1157_v12 = vadd.f32 %v14656_v59, %v1003_v46  ;;  %v15097_v59 = vld [vmem:[%s16334_s17 + $0x90] ss:$12 sps:$4 sm:$0xff]  }
 0x132   : > { %v1211_v7 = vmul.f32 %v1193_v15, %v1172_v58  ;;  %v1148_v14 = vpop.f32.mrf.mxu1  ;;  %v1436_v16 = vshll.u32 %v16628_v54, 16  ;;  %v1426_v10 = vrot.slane %v1424_v2, 1  ;;  %v1434_v34 = vshrl.u32 %v16628_v54, 16 }
 0x133   : > { %v16639_v18 = vpack.c.bf16 %v1248_v8, %v1248_v8  ;;  %v1212_v19 = vmul.f32 %v1197_v20, %v1173_v11  ;;  %v1171_v21 = vmax.f32 %v1157_v12, 0.0  ;;  %v1149_v22 = vadd.f32 %v1148_v14, %v1003_v46 }
 0x134   : > { %v1250_v23 = vadd.f32 %v1232_v27, %v1211_v7  ;;  %v14657_v25 = vpop.f32.mrf.mxu1  ;;  %v1438_v15 = vrot.slane %v1436_v16, 1  ;;  %v1429_v26 = vshll.u32 %v16633_v5, 16  ;;  %v1427_v44 = vor.u32 %v1426_v10, %v1422_v17  ;;  %v15105_v7 = vld [vmem:[%s16334_s17 + $0x7c] ss:$12 sps:$4 sm:$0xff]   ;;  %v15103_v10 = vld [vmem:[%s16334_s17 + $0x78] ss:$12 sps:$4 sm:$0xff]  }
 0x135   : > { %v1251_v28 = vadd.f32 %v1236_v32, %v1212_v19  ;;  %v1210_v29 = vmul.f32 %v1201_v60, %v1171_v21  ;;  %v1165_v30 = vmax.f32 %v1149_v22, 0.0  ;;  %v1160_v31 = vadd.f32 %v14657_v25, %v1003_v46 }
 0x136   : > { %v16645_v33 = vpack.c.bf16 %v1250_v23, %v1247_v55  ;;  %v1151_v20 = vpop.f32.mrf.mxu1  ;;  %v1441_v27 = vshll.u32 %v16639_v18, 16  ;;  %v1431_v35 = vrot.slane %v1429_v26, 1  ;;  %v1439_v39 = vor.u32 %v1438_v15, %v1434_v34  ;;  %v15111_v26 = vld [vmem:[%s16334_s17 + $0x64] ss:$12 sps:$4 sm:$0xff]  }
 0x137   : > { %v16649_v36 = vpack.c.bf16 %v1251_v28, %v1248_v8  ;;  %v1174_v37 = vmax.f32 %v1160_v31, 0.0  ;;  %v1152_v38 = vadd.f32 %v1151_v20, %v1003_v46  ;;  %v1249_v40 = vadd.f32 %v1240_v24, %v1210_v29 }
 0x138   : > { %v1443_v32 = vrot.slane %v1441_v27, 1  ;;  %v1204_v41 = vmul.f32 %v1201_v60, %v1165_v30  ;;  %v3240_v47 = vshrl.u32 %v16645_v33, 16  ;;  %v3243_v49 = vshll.u32 %v16645_v33, 16 }
 0x139   : > { %v1213_v42 = vmul.f32 %v1201_v60, %v1174_v37  ;;  %v1168_v50 = vmax.f32 %v1152_v38, 0.0  ;;  %v16660_v46 = vsel %vm1420_vm2, %v1427_v44, %v1431_v35  ;;  %v1460_v53 = vshrl.u32 %v16639_v18, 16  ;;  %v15116_v37 = vld [vmem:[%s16334_s17 + $0x4c] ss:$12 sps:$4 sm:$0xff]  }
 0x13a   : > { %v16656_v51 = vsel %vm1420_vm2, %v1439_v39, %v1443_v32  ;;  %v16664_v56 = vpack.c.bf16 %v1249_v40, %v1249_v40  ;;  %v3242_v0 = vrot.slane %v3240_v47, 1  ;;  %v3245_v8 = vrot.slane %v3243_v49, 2  ;;  %v15114_v47 = vld [vmem:[%s16334_s17 + $0x48] ss:$12 sps:$4 sm:$0xff]  }
 0x13b   : > { %v1252_v52 = vadd.f32 %v1240_v24, %v1213_v42  ;;  %1829 = vmatprep.mubr.bf16.mxu0 %v16656_v51  ;;  %v1207_v55 = vmul.f32 %v1201_v60, %v1168_v50  ;;  %v16668_v58 = vor.u32 %v1460_v53, %v1443_v32  ;;  %v1243_v11 = vadd.f32 %v1240_v24, %v1204_v41  ;;  %v15117_v41 = vld [vmem:[%s16334_s17 + $0x338] ss:$12 sps:$4 sm:$0xff]   ;;  %v15122_v53 = vld [vmem:[%s16334_s17 + $0x320] ss:$12 sps:$4 sm:$0xff]  }
 0x13c   : > { %1830 = vmatmul.mubr.bf16.vlgmr.msra.gmra.mxu0 %v16660_v46  ;;  %v1457_v21 = vshrl.u32 %v16633_v5, 16  ;;  %v16679_v22 = vrot.slane %v1434_v34, 1  ;;  %v3236_v23 = vrot.slane %v1422_v17, 1  ;;  %v16684_v25 = vrot.slane %v1436_v16, 2  ;;  %v15109_v34 = vld [vmem:[%s16334_s17 + $0x60] ss:$12 sps:$4 sm:$0xff]  }
 0x13d   : > { %v16666_v57 = vpack.c.bf16 %v1252_v52, %v1249_v40  ;;  %2320 = vmatpush1.bf16.msra.mxu0 %v15091_v43  ;;  %v1246_v12 = vadd.f32 %v1240_v24, %v1207_v55  ;;  %1839 = vmatprep.mubr.bf16.mxu0 %v16668_v58  ;;  %v1453_v24 = vshll.u32 %v16664_v56, 16  ;;  %v16691_v30 = vor.u32 %v3245_v8, %v3242_v0  ;;  %v15118_v50 = vld [vmem:[%s16334_s17 + $0x278] ss:$12 sps:$4 sm:$0xff]   ;;  %v15121_v52 = vld [vmem:[%s16334_s17 + $0x34] ss:$12 sps:$4 sm:$0xff]  }
 0x13e   : > { %2321 = vmatprep.subr.bf16.mxu0 %v15099_v45  ;;  %v16686_v15 = vor.u32 %v1457_v21, %v1431_v35  ;;  %v3250_v20 = vor.u32 %v16684_v25, %v16679_v22  ;;  %v3237_v16 = vrot.slane %v1424_v2, 2  ;;  %v15113_v35 = vld [vmem:[%s16334_s17 + $0x290] ss:$12 sps:$4 sm:$0xff]   ;;  %v15123_v0 = vld [vmem:[%s16334_s17 + $0x260] ss:$12 sps:$4 sm:$0xff]  }
 0x13f   : > { %v3264_v60 = vshrl.u32 %v16666_v57, 16  ;;  %v3267_v14 = vshll.u32 %v16666_v57, 16  ;;  %v16676_v19 = vpack.c.bf16 %v1246_v12, %v1243_v11  ;;  %v1455_v2 = vrot.slane %v1453_v24, 1  ;;  %v15119_v55 = vld [vmem:[%s16334_s17 + $0x30] ss:$12 sps:$4 sm:$0xff]  }
 0x140   : > { %v3238_v38 = vor.u32 %v3237_v16, %v3236_v23  ;;  %v15126_v8 = vld [vmem:[%s16334_s17 + $0x1c] ss:$12 sps:$4 sm:$0xff]   ;;  %v15129_v21 = vld [vmem:[%s16334_s17] ss:$12 sps:$4 sm:$0xff]   ;;  %v15278_v25 = vld [vmem:[%s16334_s17 + $0x458] ss:$12 sps:$4 sm:$0xff]  }
 0x141   : > { %2322 = vmatpush1.bf16.msra.mxu0 %v15097_v59  ;;  %v1446_v28 = vshrl.u32 %v16676_v19, 16  ;;  %v1448_v29 = vshll.u32 %v16676_v19, 16  ;;  %v3266_v17 = vrot.slane %v3264_v60, 1  ;;  %v3269_v31 = vrot.slane %v3267_v14, 2  ;;  %v15127_v11 = vld [vmem:[%s16334_s17 + $0x308] ss:$12 sps:$4 sm:$0xff]  }
 0x142   : > { %2323 = vmatprep.subr.bf16.mxu0 %v15105_v7  ;;  %v16705_v42 = vsel %vm3235_vm3, %v3238_v38, %v16691_v30  ;;  %v1463_v59 = vshrl.u32 %v16664_v56, 16  ;;  %v15124_v7 = vld [vmem:[%s16334_s17 + $0x18] ss:$12 sps:$4 sm:$0xff]   ;;  %v15128_v60 = vld [vmem:[%s16334_s17 + $0x248] ss:$12 sps:$4 sm:$0xff]  }
 0x143   : > { %v1450_v27 = vrot.slane %v1448_v29, 1  ;;  %v3260_v39 = vrot.slane %v1446_v28, 1  ;;  %v3261_v32 = vrot.slane %v1448_v29, 2  ;;  %v16707_v44 = vor.u32 %v3269_v31, %v3266_v17  ;;  %v15131_v14 = vld [vmem:[%s16334_s17 + $0x4] ss:$12 sps:$4 sm:$0xff]  }
 0x144   : > { %1840 = vmatmul.mubr.bf16.gmra.mxu0 %v16686_v15  ;;  %v16728_v12 = vor.u32 %v1463_v59, %v1455_v2  ;;  %v15133_v23 = vld [vmem:[%s16334_s17 + $0x230] ss:$12 sps:$4 sm:$0xff]   ;;  %v15136_v24 = vld [vmem:[%s16334_s17 + $0x16c] ss:$12 sps:$4 sm:$0xff]   ;;  %v15141_v29 = vld [vmem:[%s16334_s17 + $0x154] ss:$12 sps:$4 sm:$0xff]  }
 0x145   : > { %2324 = vmatpush1.bf16.msra.mxu0 %v15103_v10  ;;  %2351 = vmatprep.mubr.bf16.mxu0 %v16628_v54  ;;  %v1451_v40 = vor.u32 %v1450_v27, %v1446_v28  ;;  %v3262_v43 = vor.u32 %v3261_v32, %v3260_v39  ;;  %v15132_v10 = vld [vmem:[%s16334_s17 + $0x2f0] ss:$12 sps:$4 sm:$0xff]   ;;  %v15138_v28 = vld [vmem:[%s16334_s17 + $0x218] ss:$12 sps:$4 sm:$0xff]   ;;  %v15142_v17 = vld [vmem:[%s16334_s17 + $0x2c0] ss:$12 sps:$4 sm:$0xff]  }
 0x146   : > { %2325 = vmatprep.subr.bf16.mxu0 %v15111_v26  ;;  %v15137_v26 = vld [vmem:[%s16334_s17 + $0x2d8] ss:$12 sps:$4 sm:$0xff]   ;;  %v15139_v31 = vld [vmem:[%s16334_s17 + $0x150] ss:$12 sps:$4 sm:$0xff]   ;;  %v15143_v16 = vld [vmem:[%s16334_s17 + $0x200] ss:$12 sps:$4 sm:$0xff]  }
 0x147   : > { %v16710_v45 = vsel %vm1420_vm2, %v1451_v40, %v1455_v2  ;;  %v16717_v49 = vsel %vm3235_vm3, %v3262_v43, %v16707_v44  ;;  %v15147_v27 = vld [vmem:[%s16334_s17 + $0x2a8] ss:$12 sps:$4 sm:$0xff]   ;;  %v15151_v38 = vld [vmem:[%s16334_s17 + $0x124] ss:$12 sps:$4 sm:$0xff]   ;;  %v15149_v32 = vld [vmem:[%s16334_s17 + $0x120] ss:$12 sps:$4 sm:$0xff]  }
 0x148   : > { %12971 = vmatmul.mubr.msk.bf16.vlgmr.msra.gmra.mxu1 %vm1790_vm4, %v16710_v45  ;;  %v15152_v39 = vld [vmem:[%s16334_s17 + $0x3b0] ss:$12 sps:$4 sm:$0xff]   ;;  %v15155_v40 = vld [vmem:[%s16334_s17 + $0x10c] ss:$12 sps:$4 sm:$0xff]   ;;  %v15159_v43 = vld [vmem:[%s16334_s17 + $0xf4] ss:$12 sps:$4 sm:$0xff]  }
 0x149   : > { %2326 = vmatpush1.bf16.msra.mxu0 %v15109_v34  ;;  %14300 = vmatpush3.bf16.msra.mxu1 %v15113_v35  ;;  %v15146_v34 = vld [vmem:[%s16334_s17 + $0x13c] ss:$12 sps:$4 sm:$0xff]   ;;  %v15144_v35 = vld [vmem:[%s16334_s17 + $0x138] ss:$12 sps:$4 sm:$0xff]  }
 0x14a   : > { %2327 = vmatprep.subr.bf16.mxu0 %v15116_v37  ;;  %14301 = vmatprep.subr.bf16.mxu1 %v15117_v41  ;;  %v15148_v37 = vld [vmem:[%s16334_s17 + $0x1e8] ss:$12 sps:$4 sm:$0xff]   ;;  %v15156_v2 = vld [vmem:[%s16334_s17 + $0x398] ss:$12 sps:$4 sm:$0xff]  }
 0x14b   : > { %1890 = vmatprep.mubr.bf16.mxu1 %v16305_v4  ;;  %v15153_v41 = vld [vmem:[%s16334_s17 + $0x108] ss:$12 sps:$4 sm:$0xff]   ;;  %v15170_v59 = vld [vmem:[%s16334_s17 + $0x1cc] ss:$12 sps:$4 sm:$0xff]  }
 0x14c   : > { %v15274_v22 = vld [vmem:[%s16334_s17 + $0x5e8] ss:$12 sps:$4 sm:$0xff]  }
 0x14d   : > { %2328 = vmatpush1.bf16.msra.mxu0 %v15114_v47  ;;  %14302 = vmatpush3.bf16.msra.mxu1 %v15118_v50  ;;  %v15157_v47 = vld [vmem:[%s16334_s17 + $0xf0] ss:$12 sps:$4 sm:$0xff]   ;;  %v15160_v50 = vld [vmem:[%s16334_s17 + $0x380] ss:$12 sps:$4 sm:$0xff]  }
 0x14e   : > { %2329 = vmatprep.subr.bf16.mxu0 %v15121_v52  ;;  %14303 = vmatprep.subr.bf16.mxu1 %v15122_v53  ;;  %v15163_v52 = vld [vmem:[%s16334_s17 + $0xdc] ss:$12 sps:$4 sm:$0xff]   ;;  %v15167_v53 = vld [vmem:[%s16334_s17 + $0xc4] ss:$12 sps:$4 sm:$0xff]  }
 0x150   : > { %12972 = vmatmul.mubr.msk.bf16.gmra.mxu1 %vm1790_vm4, %v16728_v12 }
 0x151   : > { %2330 = vmatpush1.bf16.msra.mxu0 %v15119_v55  ;;  %14304 = vmatpush3.bf16.msra.mxu1 %v15123_v0  ;;  %v15165_v55 = vld [vmem:[%s16334_s17 + $0xc0] ss:$12 sps:$4 sm:$0xff]   ;;  %v15168_v0 = vld [vmem:[%s16334_s17 + $0x1c8] ss:$12 sps:$4 sm:$0xff]  }
 0x152   : > { %1931 = vmatprep.mubr.bf16.mxu1 %v16656_v51  ;;  %2331 = vmatprep.subr.bf16.mxu0 %v15126_v8  ;;  %v15134_v51 = vld [vmem:[%s16334_s17 + $0x168] ss:$12 sps:$4 sm:$0xff]  }
 0x153   : > { %14305 = vmatprep.subr.bf16.mxu1 %v15127_v11  ;;  %v15176_v8 = vld [vmem:[%s16334_s17 + $0x1b4] ss:$12 sps:$4 sm:$0xff]  }
 0x154   : > { %v15171_v11 = vld [vmem:[%s16334_s17 + $0x468] ss:$12 sps:$4 sm:$0xff]  }
 0x155   : > { %2332 = vmatpush1.bf16.msra.mxu0 %v15124_v7  ;;  %14306 = vmatpush3.bf16.msra.mxu1 %v15128_v60  ;;  %v15179_v7 = vld [vmem:[%s16334_s17 + $0x454] ss:$12 sps:$4 sm:$0xff]   ;;  %v15182_v60 = vld [vmem:[%s16334_s17 + $0x19c] ss:$12 sps:$4 sm:$0xff]  }
 0x156   : > { %2333 = vmatprep.subr.bf16.mxu0 %v15131_v14  ;;  %14307 = vmatprep.subr.bf16.mxu1 %v15132_v10  ;;  %v15177_v14 = vld [vmem:[%s16334_s17 + $0x450] ss:$12 sps:$4 sm:$0xff]   ;;  %v15180_v10 = vld [vmem:[%s16334_s17 + $0x198] ss:$12 sps:$4 sm:$0xff]  }
 0x159   : > { %2334 = vmatpush1.bf16.msra.mxu0 %v15129_v21  ;;  %14308 = vmatpush3.bf16.msra.mxu1 %v15133_v23  ;;  %v15188_v21 = vld [vmem:[%s16334_s17 + $0x184] ss:$12 sps:$4 sm:$0xff]  }
 0x15a   : > { %2335 = vmatprep.subr.bf16.mxu0 %v15136_v24  ;;  %14309 = vmatprep.subr.bf16.mxu1 %v15137_v26  ;;  %v15183_v23 = vld [vmem:[%s16334_s17 + $0x438] ss:$12 sps:$4 sm:$0xff]   ;;  %v15186_v24 = vld [vmem:[%s16334_s17 + $0x180] ss:$12 sps:$4 sm:$0xff]   ;;  %v16790_v26 = vrot.slane %v16649_v36, 1 }
 0x15d   : > { %2336 = vmatpush2.bf16.msra.mxu0 %v15134_v51  ;;  %14310 = vmatpush3.bf16.msra.mxu1 %v15138_v28  ;;  %v15191_v51 = vld [vmem:[%s16334_s17 + $0x424] ss:$12 sps:$4 sm:$0xff]  }
 0x15e   : > { %2337 = vmatprep.subr.bf16.mxu0 %v15141_v29  ;;  %14311 = vmatprep.subr.bf16.mxu1 %v15142_v17  ;;  %v15192_v28 = vld [vmem:[%s16334_s17 + $0x170] ss:$12 sps:$4 sm:$0xff]   ;;  %v2611_v29 = vrot.slane %v16628_v54, 1  ;;  %v15189_v17 = vld [vmem:[%s16334_s17 + $0x420] ss:$12 sps:$4 sm:$0xff]  }
 0x161   : > { %2338 = vmatpush2.bf16.msra.mxu0 %v15139_v31  ;;  %14312 = vmatpush3.bf16.msra.mxu1 %v15143_v16  ;;  %v16799_v31 = vsel %vm2607_vm5, %v2611_v29, %v16790_v26  ;;  %v15193_v16 = vld [vmem:[%s16334_s17 + $0xb0] ss:$12 sps:$4 sm:$0xff]   ;;  %v15240_v29 = vld [vmem:[%s16334_s17 + $0x1a0] ss:$12 sps:$4 sm:$0xff]  }
 0x162   : > { %2339 = vmatprep.subr.bf16.mxu0 %v15146_v34  ;;  %14313 = vmatprep.subr.bf16.mxu1 %v15147_v27  ;;  %v15196_v34 = vld [vmem:[%s16334_s17 + $0x40c] ss:$12 sps:$4 sm:$0xff]  }
 0x163   : > { %v15197_v27 = vld [vmem:[%s16334_s17 + $0x158] ss:$12 sps:$4 sm:$0xff]  }
 0x165   : > { %2340 = vmatpush2.bf16.msra.mxu0 %v15144_v35  ;;  %14314 = vmatpush3.bf16.msra.mxu1 %v15148_v37  ;;  %v15194_v35 = vld [vmem:[%s16334_s17 + $0x408] ss:$12 sps:$4 sm:$0xff]   ;;  %v15198_v37 = vld [vmem:[%s16334_s17 + $0x98] ss:$12 sps:$4 sm:$0xff]  }
 0x166   : > { %2341 = vmatprep.subr.bf16.mxu0 %v15151_v38  ;;  %14658 = vmatprep.subr.bf16.mxu1 %v15152_v39  ;;  %v15201_v38 = vld [vmem:[%s16334_s17 + $0x3f4] ss:$12 sps:$4 sm:$0xff]  }
 0x168   : > { %1932 = vmatmul.mubr.bf16.vlgmr.msra.gmra.mxu1 %v16660_v46  ;;  %v15164_v46 = vld [vmem:[%s16334_s17 + $0x368] ss:$12 sps:$4 sm:$0xff]  }
 0x169   : > { %2342 = vmatpush2.bf16.msra.mxu0 %v15149_v32  ;;  %1939 = vmatprep.mubr.bf16.mxu1 %v16668_v58  ;;  %v15161_v58 = vld [vmem:[%s16334_s17 + $0xd8] ss:$12 sps:$4 sm:$0xff]   ;;  %v15199_v32 = vld [vmem:[%s16334_s17 + $0x3f0] ss:$12 sps:$4 sm:$0xff]  }
 0x16a   : > { %14659 = vmatpush3.bf16.msra.mxu1 %v15152_v39  ;;  %2343 = vmatprep.subr.bf16.mxu0 %v15155_v40  ;;  %v15202_v39 = vld [vmem:[%s16334_s17 + $0x140] ss:$12 sps:$4 sm:$0xff]  }
 0x16b   : > { %14660 = vmatprep.subr.bf16.mxu1 %v15156_v2  ;;  %v15203_v40 = vld [vmem:[%s16334_s17 + $0x80] ss:$12 sps:$4 sm:$0xff]  }
 0x16d   : > { %2344 = vmatpush2.bf16.msra.mxu0 %v15153_v41  ;;  %v15207_v41 = vld [vmem:[%s16334_s17 + $0x128] ss:$12 sps:$4 sm:$0xff]  }
 0x16e   : > { %14661 = vmatpush3.bf16.msra.mxu1 %v15156_v2  ;;  %2345 = vmatprep.subr.bf16.mxu0 %v15159_v43  ;;  %v15206_v2 = vld [vmem:[%s16334_s17 + $0x3dc] ss:$12 sps:$4 sm:$0xff]   ;;  %v15204_v43 = vld [vmem:[%s16334_s17 + $0x3d8] ss:$12 sps:$4 sm:$0xff]  }
 0x16f   : > { %14662 = vmatprep.subr.bf16.mxu1 %v15160_v50 }
 0x170   : > { %1940 = vmatmul.mubr.bf16.gmra.mxu1 %v16686_v15  ;;  %v15173_v15 = vld [vmem:[%s16334_s17 + $0x46c] ss:$12 sps:$4 sm:$0xff]  }
 0x171   : > { %2346 = vmatpush2.bf16.msra.mxu0 %v15157_v47  ;;  %14666 = vmatprep.mubr.msk.bf16.mxu1 %vm1790_vm4, %v16710_v45  ;;  %v15174_v45 = vld [vmem:[%s16334_s17 + $0x1b0] ss:$12 sps:$4 sm:$0xff]   ;;  %v15208_v47 = vld [vmem:[%s16334_s17 + $0x68] ss:$12 sps:$4 sm:$0xff]  }
 0x172   : > { %14663 = vmatpush3.bf16.msra.mxu1 %v15160_v50  ;;  %2347 = vmatprep.subr.bf16.mxu0 %v15163_v52  ;;  %v15211_v50 = vld [vmem:[%s16334_s17 + $0x3c4] ss:$12 sps:$4 sm:$0xff]  }
 0x173   : > { %14664 = vmatprep.subr.bf16.mxu1 %v15164_v46  ;;  %v15212_v52 = vld [vmem:[%s16334_s17 + $0x110] ss:$12 sps:$4 sm:$0xff]  }
 0x175   : > { %2348 = vmatpush2.bf16.msra.mxu0 %v15161_v58  ;;  %v15213_v58 = vld [vmem:[%s16334_s17 + $0x50] ss:$12 sps:$4 sm:$0xff]  }
 0x176   : > { %14665 = vmatpush3.bf16.msra.mxu1 %v15164_v46  ;;  %2349 = vmatprep.subr.bf16.mxu0 %v15167_v53  ;;  %v15209_v46 = vld [vmem:[%s16334_s17 + $0x3c0] ss:$12 sps:$4 sm:$0xff]  }
 0x177   : > { %2378 = vmatprep.subr.bf16.mxu1 %v15170_v59  ;;  %v15216_v53 = vld [vmem:[%s16334_s17 + $0x52c] ss:$12 sps:$4 sm:$0xff]  }
 0x178   : > { %v15217_v59 = vld [vmem:[%s16334_s17 + $0xf8] ss:$12 sps:$4 sm:$0xff]  }
 0x179   : > { %14667 = vmatmul.mubr.msk.bf16.vlgmr.msra.gmra.mxu1 %vm1790_vm4, %v16728_v12  ;;  %2350 = vmatpush2.bf16.msra.mxu0 %v15165_v55  ;;  %v15185_v12 = vld [vmem:[%s16334_s17 + $0x43c] ss:$12 sps:$4 sm:$0xff]  }
 0x17a   : > { %2379 = vmatpush1.bf16.msra.mxu1 %v15168_v0  ;;  %2947 = vmatprep.subr.bf16.mxu0 %v15173_v15  ;;  %v15214_v55 = vld [vmem:[%s16334_s17 + $0x528] ss:$12 sps:$4 sm:$0xff]   ;;  %v15219_v15 = vld [vmem:[%s16334_s17 + $0x510] ss:$12 sps:$4 sm:$0xff]  }
 0x17b   : > { %2380 = vmatprep.subr.bf16.mxu1 %v15176_v8  ;;  %2402 = vmatprep.mubr.bf16.mxu1 %v16305_v4  ;;  %v15221_v0 = vld [vmem:[%s16334_s17 + $0x514] ss:$12 sps:$4 sm:$0xff]  }
 0x17c   : > { %2352 = vmatmul.mubr.bf16.vlgmr.msra.gmra.mxu0 %v16626_v48  ;;  %v15222_v8 = vld [vmem:[%s16334_s17 + $0xe0] ss:$12 sps:$4 sm:$0xff]  }
 0x17d   : > { %2361 = vmatprep.mubr.bf16.mxu0 %v16639_v18  ;;  %2948 = vmatpush1.bf16.msra.mxu0 %v15171_v11  ;;  %v15223_v11 = vld [vmem:[%s16334_s17 + $0x20] ss:$12 sps:$4 sm:$0xff]  }
 0x17e   : > { %2381 = vmatpush1.bf16.msra.mxu1 %v15174_v45  ;;  %2949 = vmatprep.subr.bf16.mxu0 %v15179_v7  ;;  %v15226_v45 = vld [vmem:[%s16334_s17 + $0x4fc] ss:$12 sps:$4 sm:$0xff]   ;;  %v15224_v7 = vld [vmem:[%s16334_s17 + $0x4f8] ss:$12 sps:$4 sm:$0xff]  }
 0x17f   : > { %2382 = vmatprep.subr.bf16.mxu1 %v15182_v60  ;;  %v15227_v60 = vld [vmem:[%s16334_s17 + $0xc8] ss:$12 sps:$4 sm:$0xff]  }
 0x181   : > { %2950 = vmatpush1.bf16.msra.mxu0 %v15177_v14  ;;  %v15228_v14 = vld [vmem:[%s16334_s17 + $0x8] ss:$12 sps:$4 sm:$0xff]  }
 0x182   : > { %2383 = vmatpush1.bf16.msra.mxu1 %v15180_v10  ;;  %2951 = vmatprep.subr.bf16.mxu0 %v15185_v12  ;;  %v15231_v10 = vld [vmem:[%s16334_s17 + $0x4e4] ss:$12 sps:$4 sm:$0xff]   ;;  %v15229_v12 = vld [vmem:[%s16334_s17 + $0x4e0] ss:$12 sps:$4 sm:$0xff]  }
 0x183   : > { %2384 = vmatprep.subr.bf16.mxu1 %v15188_v21  ;;  %v15232_v21 = vld [vmem:[%s16334_s17 + $0x1d0] ss:$12 sps:$4 sm:$0xff]  }
 0x184   : > { %2362 = vmatmul.mubr.bf16.gmra.mxu0 %v16633_v5 }
 0x185   : > { %2952 = vmatpush1.bf16.msra.mxu0 %v15183_v23  ;;  %2979 = vmatprep.mubr.bf16.mxu0 %v16799_v31  ;;  %v15235_v23 = vld [vmem:[%s16334_s17 + $0x4cc] ss:$12 sps:$4 sm:$0xff]  }
 0x186   : > { %2385 = vmatpush1.bf16.msra.mxu1 %v15186_v24  ;;  %2953 = vmatprep.subr.bf16.mxu0 %v15191_v51  ;;  %v15236_v24 = vld [vmem:[%s16334_s17 + $0x1b8] ss:$12 sps:$4 sm:$0xff]   ;;  %v15233_v51 = vld [vmem:[%s16334_s17 + $0x4c8] ss:$12 sps:$4 sm:$0xff]  }
 0x187   : > { %14333 = vmatprep.subr.bf16.mxu1 %v15192_v28  ;;  %v15239_v28 = vld [vmem:[%s16334_s17 + $0x4b4] ss:$12 sps:$4 sm:$0xff]  }
 0x189   : > { %13035 = vmatmul.mubr.msk.bf16.vlgmr.msra.gmra.mxu1 %vm1790_vm4, %v16676_v19  ;;  %2954 = vmatpush1.bf16.msra.mxu0 %v15189_v17  ;;  %v15237_v17 = vld [vmem:[%s16334_s17 + $0x4b0] ss:$12 sps:$4 sm:$0xff]  }
 0x18a   : > { %14334 = vmatpush3.bf16.msra.mxu1 %v15193_v16  ;;  %2955 = vmatprep.subr.bf16.mxu0 %v15196_v34  ;;  %v15243_v16 = vld [vmem:[%s16334_s17 + $0x49c] ss:$12 sps:$4 sm:$0xff]  }
 0x18b   : > { %14335 = vmatprep.subr.bf16.mxu1 %v15197_v27  ;;  %2412 = vmatprep.mubr.bf16.mxu1 %v16305_v4  ;;  %v15244_v34 = vld [vmem:[%s16334_s17 + $0x188] ss:$12 sps:$4 sm:$0xff]   ;;  %v15241_v27 = vld [vmem:[%s16334_s17 + $0x498] ss:$12 sps:$4 sm:$0xff]  }
 0x18d   : > { %2956 = vmatpush1.bf16.msra.mxu0 %v15194_v35  ;;  %v15247_v35 = vld [vmem:[%s16334_s17 + $0x484] ss:$12 sps:$4 sm:$0xff]  }
 0x18e   : > { %14336 = vmatpush3.bf16.msra.mxu1 %v15198_v37  ;;  %2957 = vmatprep.subr.bf16.mxu0 %v15201_v38  ;;  %v15245_v37 = vld [vmem:[%s16334_s17 + $0x480] ss:$12 sps:$4 sm:$0xff]   ;;  %v15248_v38 = vld [vmem:[%s16334_s17 + $0x588] ss:$12 sps:$4 sm:$0xff]  }
 0x18f   : > { %14337 = vmatprep.subr.bf16.mxu1 %v15202_v39  ;;  %v15253_v39 = vld [vmem:[%s16334_s17 + $0x64c] ss:$12 sps:$4 sm:$0xff]  }
 0x191   : > { %13036 = vmatmul.mubr.msk.bf16.gmra.mxu1 %vm1790_vm4, %v16664_v56  ;;  %2958 = vmatpush1.bf16.msra.mxu0 %v15199_v32  ;;  %v15256_v32 = vld [vmem:[%s16334_s17 + $0x574] ss:$12 sps:$4 sm:$0xff]  }
 0x192   : > { %14338 = vmatpush3.bf16.msra.mxu1 %v15203_v40  ;;  %2453 = vmatprep.mubr.bf16.mxu1 %v16628_v54  ;;  %v15218_v54 = vld [vmem:[%s16334_s17 + $0x38] ss:$12 sps:$4 sm:$0xff]   ;;  %v15251_v40 = vld [vmem:[%s16334_s17 + $0x648] ss:$12 sps:$4 sm:$0xff]  }
 0x193   : > { %2959 = vmatprep.subr.bf16.mxu0 %v15206_v2  ;;  %14339 = vmatprep.subr.bf16.mxu1 %v15207_v41  ;;  %v15254_v2 = vld [vmem:[%s16334_s17 + $0x570] ss:$12 sps:$4 sm:$0xff]   ;;  %v15259_v41 = vld [vmem:[%s16334_s17 + $0x634] ss:$12 sps:$4 sm:$0xff]  }
 0x195   : > { %2960 = vmatpush1.bf16.msra.mxu0 %v15204_v43  ;;  %v3252_v43 = vshrl.u32 %v16649_v36, 16 }
 0x196   : > { %14340 = vmatpush3.bf16.msra.mxu1 %v15208_v47  ;;  %2961 = vmatprep.subr.bf16.mxu0 %v15211_v50  ;;  %v3255_v47 = vshll.u32 %v16649_v36, 16  ;;  %v2608_v50 = vrot.slane %v16626_v48, 1  ;;  %v15260_v36 = vld [vmem:[%s16334_s17 + $0x558] ss:$12 sps:$4 sm:$0xff]  }
 0x197   : > { %14341 = vmatprep.subr.bf16.mxu1 %v15212_v52  ;;  %v15262_v52 = vld [vmem:[%s16334_s17 + $0x55c] ss:$12 sps:$4 sm:$0xff]  }
 0x199   : > { %2962 = vmatpush1.bf16.msra.mxu0 %v15209_v46  ;;  %v15257_v46 = vld [vmem:[%s16334_s17 + $0x630] ss:$12 sps:$4 sm:$0xff]  }
 0x19a   : > { %14342 = vmatpush3.bf16.msra.mxu1 %v15213_v58  ;;  %2963 = vmatprep.subr.bf16.mxu0 %v15216_v53  ;;  %v3257_v58 = vrot.slane %v3255_v47, 2  ;;  %v15268_v53 = vld [vmem:[%s16334_s17 + $0x544] ss:$12 sps:$4 sm:$0xff]  }
 0x19b   : > { %14343 = vmatprep.subr.bf16.mxu1 %v15217_v59  ;;  %v15266_v59 = vld [vmem:[%s16334_s17 + $0x540] ss:$12 sps:$4 sm:$0xff]   ;;  %v15311_v47 = vld [vmem:[%s16334_s17 + $0x6c4] ss:$12 sps:$4 sm:$0xff]  }
 0x19d   : > { %2964 = vmatpush2.bf16.msra.mxu0 %v15214_v55  ;;  %v15263_v55 = vld [vmem:[%s16334_s17 + $0x618] ss:$12 sps:$4 sm:$0xff]  }
 0x19e   : > { %14344 = vmatpush3.bf16.msra.mxu1 %v15218_v54  ;;  %2965 = vmatprep.subr.bf16.mxu0 %v15221_v0  ;;  %v15271_v0 = vld [vmem:[%s16334_s17 + $0x604] ss:$12 sps:$4 sm:$0xff]  }
 0x19f   : > { %14345 = vmatprep.subr.bf16.mxu1 %v15222_v8  ;;  %v15269_v8 = vld [vmem:[%s16334_s17 + $0x600] ss:$12 sps:$4 sm:$0xff]  }
 0x1a1   : > { %2966 = vmatpush2.bf16.msra.mxu0 %v15219_v15  ;;  %v15272_v15 = vld [vmem:[%s16334_s17 + $0x530] ss:$12 sps:$4 sm:$0xff]  }
 0x1a2   : > { %14346 = vmatpush3.bf16.msra.mxu1 %v15223_v11  ;;  %2967 = vmatprep.subr.bf16.mxu0 %v15226_v45  ;;  %v2614_v45 = vrot.slane %v16676_v19, 1 }
 0x1a3   : > { %14347 = vmatprep.subr.bf16.mxu1 %v15227_v60  ;;  %v15276_v60 = vld [vmem:[%s16334_s17 + $0x5ec] ss:$12 sps:$4 sm:$0xff]  }
 0x1a5   : > { %2968 = vmatpush2.bf16.msra.mxu0 %v15224_v7  ;;  %v15273_v7 = vld [vmem:[%s16334_s17 + $0x470] ss:$12 sps:$4 sm:$0xff]  }
 0x1a6   : > { %14348 = vmatpush3.bf16.msra.mxu1 %v15228_v14  ;;  %2969 = vmatprep.subr.bf16.mxu0 %v15231_v10  ;;  %v15277_v14 = vld [vmem:[%s16334_s17 + $0x518] ss:$12 sps:$4 sm:$0xff]   ;;  %v16904_v10 = vrot.slane %v16666_v57, 1  ;;  %v15279_v57 = vld [vmem:[%s16334_s17 + $0x5d0] ss:$12 sps:$4 sm:$0xff]  }
 0x1a7   : > { %14670 = vmatprep.subr.bf16.mxu1 %v15232_v21 }
 0x1a9   : > { %2454 = vmatmul.mubr.bf16.vlgmr.msra.gmra.mxu1 %v16626_v48  ;;  %2970 = vmatpush2.bf16.msra.mxu0 %v15229_v12  ;;  %v3254_v48 = vrot.slane %v3252_v43, 1  ;;  %v15282_v12 = vld [vmem:[%s16334_s17 + $0x500] ss:$12 sps:$4 sm:$0xff]   ;;  %v15308_v43 = vld [vmem:[%s16334_s17 + $0x3c8] ss:$12 sps:$4 sm:$0xff]  }
 0x1aa   : > { %2461 = vmatprep.mubr.bf16.mxu1 %v16639_v18  ;;  %14671 = vmatpush3.bf16.msra.mxu1 %v15232_v21  ;;  %v15250_v18 = vld [vmem:[%s16334_s17 + $0x58c] ss:$12 sps:$4 sm:$0xff]  }
 0x1ab   : > { %2971 = vmatprep.subr.bf16.mxu0 %v15235_v23  ;;  %14672 = vmatprep.subr.bf16.mxu1 %v15236_v24  ;;  %v16885_v54 = vor.u32 %v3257_v58, %v3254_v48  ;;  %v15283_v21 = vld [vmem:[%s16334_s17 + $0x440] ss:$12 sps:$4 sm:$0xff]   ;;  %v15286_v23 = vld [vmem:[%s16334_s17 + $0x5bc] ss:$12 sps:$4 sm:$0xff]  }
 0x1ac   : > { %v15319_v48 = vld [vmem:[%s16334_s17 + $0x694] ss:$12 sps:$4 sm:$0xff]  }
 0x1ad   : > { %2972 = vmatpush2.bf16.msra.mxu0 %v15233_v51  ;;  %v16896_v11 = vsel %vm3235_vm3, %v3250_v20, %v16885_v54  ;;  %v15281_v20 = vld [vmem:[%s16334_s17 + $0x5d4] ss:$12 sps:$4 sm:$0xff]   ;;  %v15284_v51 = vld [vmem:[%s16334_s17 + $0x5b8] ss:$12 sps:$4 sm:$0xff]  }
 0x1ae   : > { %14673 = vmatpush3.bf16.msra.mxu1 %v15236_v24  ;;  %2973 = vmatprep.subr.bf16.mxu0 %v15239_v28  ;;  %v15287_v24 = vld [vmem:[%s16334_s17 + $0x4e8] ss:$12 sps:$4 sm:$0xff]   ;;  %v15320_v58 = vld [vmem:[%s16334_s17 + $0x560] ss:$12 sps:$4 sm:$0xff]  }
 0x1af   : > { %14674 = vmatprep.subr.bf16.mxu1 %v15240_v29  ;;  %v15288_v28 = vld [vmem:[%s16334_s17 + $0x428] ss:$12 sps:$4 sm:$0xff]  }
 0x1b1   : > { %2462 = vmatmul.mubr.bf16.gmra.mxu1 %v16633_v5  ;;  %2974 = vmatpush2.bf16.msra.mxu0 %v15237_v17  ;;  %v16861_v5 = vrot.slane %v16645_v33, 1  ;;  %v15292_v17 = vld [vmem:[%s16334_s17 + $0x4d0] ss:$12 sps:$4 sm:$0xff]  }
 0x1b2   : > { %14675 = vmatpush3.bf16.msra.mxu1 %v15240_v29  ;;  %14678 = vmatprep.mubr.msk.bf16.mxu1 %vm1790_vm4, %v16676_v19  ;;  %v16909_v19 = vsel %vm2607_vm5, %v2614_v45, %v16904_v10  ;;  %v15291_v29 = vld [vmem:[%s16334_s17 + $0x5a4] ss:$12 sps:$4 sm:$0xff]  }
 0x1b3   : > { %2975 = vmatprep.subr.bf16.mxu0 %v15243_v16  ;;  %14676 = vmatprep.subr.bf16.mxu1 %v15244_v34  ;;  %v16874_v33 = vsel %vm2607_vm5, %v2608_v50, %v16861_v5  ;;  %v15289_v16 = vld [vmem:[%s16334_s17 + $0x5a0] ss:$12 sps:$4 sm:$0xff]   ;;  %v15312_v50 = vld [vmem:[%s16334_s17 + $0x590] ss:$12 sps:$4 sm:$0xff]  }
 0x1b4   : > { %v15331_v45 = vld [vmem:[%s16334_s17 + $0x750] ss:$12 sps:$4 sm:$0xff]  }
 0x1b5   : > { %2976 = vmatpush2.bf16.msra.mxu0 %v15241_v27  ;;  %v15296_v27 = vld [vmem:[%s16334_s17 + $0x70c] ss:$12 sps:$4 sm:$0xff]  }
 0x1b6   : > { %14677 = vmatpush3.bf16.msra.mxu1 %v15244_v34  ;;  %2977 = vmatprep.subr.bf16.mxu0 %v15247_v35  ;;  %v15293_v34 = vld [vmem:[%s16334_s17 + $0x410] ss:$12 sps:$4 sm:$0xff]   ;;  %v15297_v35 = vld [vmem:[%s16334_s17 + $0x4b8] ss:$12 sps:$4 sm:$0xff]  }
 0x1b7   : > { %3006 = vmatprep.subr.bf16.mxu1 %v15250_v18  ;;  %v15294_v18 = vld [vmem:[%s16334_s17 + $0x708] ss:$12 sps:$4 sm:$0xff]  }
 0x1b9   : > { %14679 = vmatmul.mubr.msk.bf16.vlgmr.msra.gmra.mxu1 %vm1790_vm4, %v16664_v56  ;;  %2978 = vmatpush2.bf16.msra.mxu0 %v15245_v37  ;;  %v15265_v56 = vld [vmem:[%s16334_s17 + $0x61c] ss:$12 sps:$4 sm:$0xff]   ;;  %v15298_v37 = vld [vmem:[%s16334_s17 + $0x3f8] ss:$12 sps:$4 sm:$0xff]  }
 0x1ba   : > { %3007 = vmatpush1.bf16.msra.mxu1 %v15248_v38  ;;  %3602 = vmatprep.subr.bf16.mxu0 %v15253_v39  ;;  %v15301_v38 = vld [vmem:[%s16334_s17 + $0x6f4] ss:$12 sps:$4 sm:$0xff]   ;;  %v15299_v39 = vld [vmem:[%s16334_s17 + $0x6f0] ss:$12 sps:$4 sm:$0xff]  }
 0x1bb   : > { %3008 = vmatprep.subr.bf16.mxu1 %v15256_v32  ;;  %3030 = vmatprep.mubr.bf16.mxu1 %v16305_v4  ;;  %v15303_v32 = vld [vmem:[%s16334_s17 + $0x3e0] ss:$12 sps:$4 sm:$0xff]  }
 0x1bc   : > { %2980 = vmatmul.mubr.bf16.vlgmr.msra.gmra.mxu0 %v16874_v33 }
 0x1bd   : > { %2989 = vmatprep.mubr.bf16.mxu0 %v16790_v26  ;;  %3603 = vmatpush1.bf16.msra.mxu0 %v15251_v40  ;;  %v15306_v40 = vld [vmem:[%s16334_s17 + $0x6dc] ss:$12 sps:$4 sm:$0xff]  }
 0x1be   : > { %3009 = vmatpush1.bf16.msra.mxu1 %v15254_v2  ;;  %3604 = vmatprep.subr.bf16.mxu0 %v15259_v41  ;;  %v15307_v2 = vld [vmem:[%s16334_s17 + $0x488] ss:$12 sps:$4 sm:$0xff]   ;;  %v15304_v41 = vld [vmem:[%s16334_s17 + $0x6d8] ss:$12 sps:$4 sm:$0xff]  }
 0x1bf   : > { %3010 = vmatprep.subr.bf16.mxu1 %v15262_v52  ;;  %v15309_v52 = vld [vmem:[%s16334_s17 + $0x6c0] ss:$12 sps:$4 sm:$0xff]  }
 0x1c1   : > { %3605 = vmatpush1.bf16.msra.mxu0 %v15257_v46  ;;  %v15315_v46 = vld [vmem:[%s16334_s17 + $0x6ac] ss:$12 sps:$4 sm:$0xff]  }
 0x1c2   : > { %3011 = vmatpush1.bf16.msra.mxu1 %v15260_v36  ;;  %3606 = vmatprep.subr.bf16.mxu0 %v15265_v56  ;;  %v15316_v36 = vld [vmem:[%s16334_s17 + $0x578] ss:$12 sps:$4 sm:$0xff]   ;;  %v15313_v56 = vld [vmem:[%s16334_s17 + $0x6a8] ss:$12 sps:$4 sm:$0xff]  }
 0x1c3   : > { %3012 = vmatprep.subr.bf16.mxu1 %v15268_v53  ;;  %v15317_v53 = vld [vmem:[%s16334_s17 + $0x690] ss:$12 sps:$4 sm:$0xff]  }
 0x1c4   : > { %2990 = vmatmul.mubr.bf16.gmra.mxu0 %v16861_v5 }
 0x1c5   : > { %3607 = vmatpush1.bf16.msra.mxu0 %v15263_v55  ;;  %3634 = vmatprep.mubr.bf16.mxu0 %v16896_v11  ;;  %v15324_v55 = vld [vmem:[%s16334_s17 + $0x548] ss:$12 sps:$4 sm:$0xff]  }
 0x1c6   : > { %3013 = vmatpush1.bf16.msra.mxu1 %v15266_v59  ;;  %3608 = vmatprep.subr.bf16.mxu0 %v15271_v0  ;;  %v15327_v59 = vld [vmem:[%s16334_s17 + $0x664] ss:$12 sps:$4 sm:$0xff]   ;;  %v15330_v0 = vld [vmem:[%s16334_s17 + $0x76c] ss:$12 sps:$4 sm:$0xff]  }
 0x1c7   : > { %14367 = vmatprep.subr.bf16.mxu1 %v15272_v15  ;;  %v15325_v15 = vld [vmem:[%s16334_s17 + $0x660] ss:$12 sps:$4 sm:$0xff]  }
 0x1c9   : > { %13179 = vmatmul.mubr.msk.bf16.vlgmr.msra.gmra.mxu1 %vm1790_vm4, %v16909_v19  ;;  %3609 = vmatpush1.bf16.msra.mxu0 %v15269_v8  ;;  %v15328_v8 = vld [vmem:[%s16334_s17 + $0x768] ss:$12 sps:$4 sm:$0xff]  }
 0x1ca   : > { %14368 = vmatpush3.bf16.msra.mxu1 %v15273_v7  ;;  %3610 = vmatprep.subr.bf16.mxu0 %v15276_v60  ;;  %v15336_v7 = vld [vmem:[%s16334_s17 + $0x73c] ss:$12 sps:$4 sm:$0xff]  }
 0x1cb   : > { %14369 = vmatprep.subr.bf16.mxu1 %v15277_v14  ;;  %3040 = vmatprep.mubr.bf16.mxu1 %v16305_v4 }
 0x1cd   : > { %3611 = vmatpush1.bf16.msra.mxu0 %v15274_v22  ;;  %v15339_v22 = vld [vmem:[%s16334_s17 + $0x724] ss:$12 sps:$4 sm:$0xff]  }
 0x1ce   : > { %14370 = vmatpush3.bf16.msra.mxu1 %v15278_v25  ;;  %3612 = vmatprep.subr.bf16.mxu0 %v15281_v20  ;;  %v15337_v20 = vld [vmem:[%s16334_s17 + $0x720] ss:$12 sps:$4 sm:$0xff]  }
 0x1cf   : > { %14371 = vmatprep.subr.bf16.mxu1 %v15282_v12  ;;  %v15340_v12 = vld [vmem:[%s16334_s17 + $0x710] ss:$12 sps:$4 sm:$0xff]  }
 0x1d1   : > { %13180 = vmatmul.mubr.msk.bf16.gmra.mxu1 %vm1790_vm4, %v16904_v10  ;;  %3613 = vmatpush1.bf16.msra.mxu0 %v15279_v57 }
 0x1d2   : > { %14372 = vmatpush3.bf16.msra.mxu1 %v15283_v21  ;;  %3081 = vmatprep.mubr.bf16.mxu1 %v16799_v31  ;;  %v15302_v31 = vld [vmem:[%s16334_s17 + $0x4a0] ss:$12 sps:$4 sm:$0xff]  }
 0x1d3   : > { %3614 = vmatprep.subr.bf16.mxu0 %v15286_v23  ;;  %14373 = vmatprep.subr.bf16.mxu1 %v15287_v24  ;;  %v15341_v23 = vld [vmem:[%s16334_s17 + $0x650] ss:$12 sps:$4 sm:$0xff]   ;;  %v15342_v24 = vld [vmem:[%s16334_s17 + $0x6f8] ss:$12 sps:$4 sm:$0xff]  }
 0x1d5   : > { %3615 = vmatpush1.bf16.msra.mxu0 %v15284_v51 }
 0x1d6   : > { %14374 = vmatpush3.bf16.msra.mxu1 %v15288_v28  ;;  %3616 = vmatprep.subr.bf16.mxu0 %v15291_v29 }
 0x1d7   : > { %14375 = vmatprep.subr.bf16.mxu1 %v15292_v17 }
 0x1d9   : > { %3617 = vmatpush1.bf16.msra.mxu0 %v15289_v16  ;;  %v15343_v16 = vld [vmem:[%s16334_s17 + $0x638] ss:$12 sps:$4 sm:$0xff]  }
 0x1da   : > { %14376 = vmatpush3.bf16.msra.mxu1 %v15293_v34  ;;  %3618 = vmatprep.subr.bf16.mxu0 %v15296_v27  ;;  %v15344_v27 = vld [vmem:[%s16334_s17 + $0x6e0] ss:$12 sps:$4 sm:$0xff]  }
 0x1db   : > { %14377 = vmatprep.subr.bf16.mxu1 %v15297_v35 }
 0x1dd   : > { %3619 = vmatpush2.bf16.msra.mxu0 %v15294_v18 }
 0x1de   : > { %14378 = vmatpush3.bf16.msra.mxu1 %v15298_v37  ;;  %3620 = vmatprep.subr.bf16.mxu0 %v15301_v38  ;;  %v15345_v37 = vld [vmem:[%s16334_s17 + $0x620] ss:$12 sps:$4 sm:$0xff]  }
 0x1df   : > { %14379 = vmatprep.subr.bf16.mxu1 %v15302_v31  ;;  %v15346_v31 = vld [vmem:[%s16334_s17 + $0x6c8] ss:$12 sps:$4 sm:$0xff]  }
 0x1e1   : > { %3621 = vmatpush2.bf16.msra.mxu0 %v15299_v39 }
 0x1e2   : > { %14380 = vmatpush3.bf16.msra.mxu1 %v15303_v32  ;;  %3622 = vmatprep.subr.bf16.mxu0 %v15306_v40  ;;  %v15347_v40 = vld [vmem:[%s16334_s17 + $0x608] ss:$12 sps:$4 sm:$0xff]  }
 0x1e3   : > { %14381 = vmatprep.subr.bf16.mxu1 %v15307_v2 }
 0x1e5   : > { %3623 = vmatpush2.bf16.msra.mxu0 %v15304_v41  ;;  %v15348_v41 = vld [vmem:[%s16334_s17 + $0x6b0] ss:$12 sps:$4 sm:$0xff]  }
 0x1e6   : > { %14382 = vmatpush3.bf16.msra.mxu1 %v15308_v43  ;;  %3624 = vmatprep.subr.bf16.mxu0 %v15311_v47  ;;  %v15349_v47 = vld [vmem:[%s16334_s17 + $0x5f0] ss:$12 sps:$4 sm:$0xff]  }
 0x1e7   : > { %14682 = vmatprep.subr.bf16.mxu1 %v15312_v50 }
 0x1e9   : > { %3082 = vmatmul.mubr.bf16.vlgmr.msra.gmra.mxu1 %v16874_v33  ;;  %3625 = vmatpush2.bf16.msra.mxu0 %v15309_v52  ;;  %v15323_v33 = vld [vmem:[%s16334_s17 + $0x67c] ss:$12 sps:$4 sm:$0xff]   ;;  %v15350_v52 = vld [vmem:[%s16334_s17 + $0x698] ss:$12 sps:$4 sm:$0xff]  }
 0x1ea   : > { %3089 = vmatprep.mubr.bf16.mxu1 %v16790_v26  ;;  %14683 = vmatpush3.bf16.msra.mxu1 %v15312_v50  ;;  %v15321_v26 = vld [vmem:[%s16334_s17 + $0x678] ss:$12 sps:$4 sm:$0xff]  }
 0x1eb   : > { %3626 = vmatprep.subr.bf16.mxu0 %v15315_v46  ;;  %14684 = vmatprep.subr.bf16.mxu1 %v15316_v36  ;;  %v15360_v46 = vld [vmem:[%s16344_s25 + $0x288] ss:$12 sps:$4 sm:$0xff]  }
 0x1ed   : > { %3627 = vmatpush2.bf16.msra.mxu0 %v15313_v56  ;;  %v15352_v56 = vld [vmem:[%s16334_s17 + $0x680] ss:$12 sps:$4 sm:$0xff]  }
 0x1ee   : > { %14685 = vmatpush3.bf16.msra.mxu1 %v15316_v36  ;;  %3628 = vmatprep.subr.bf16.mxu0 %v15319_v48  ;;  %v15362_v36 = vld [vmem:[%s16344_s25 + $0x28c] ss:$12 sps:$4 sm:$0xff]  }
 0x1ef   : > { %14686 = vmatprep.subr.bf16.mxu1 %v15320_v58  ;;  %v15353_v48 = vld [vmem:[%s16334_s17 + $0x5c0] ss:$12 sps:$4 sm:$0xff]  }
 0x1f1   : > { %3090 = vmatmul.mubr.bf16.gmra.mxu1 %v16861_v5  ;;  %3629 = vmatpush2.bf16.msra.mxu0 %v15317_v53  ;;  %v15333_v5 = vld [vmem:[%s16334_s17 + $0x754] ss:$12 sps:$4 sm:$0xff]  }
 0x1f2   : > { %14687 = vmatpush3.bf16.msra.mxu1 %v15320_v58  ;;  %14690 = vmatprep.mubr.msk.bf16.mxu1 %vm1790_vm4, %v16909_v19  ;;  %v15354_v58 = vld [vmem:[%s16334_s17 + $0x668] ss:$12 sps:$4 sm:$0xff]  }
 0x1f3   : > { %3630 = vmatprep.subr.bf16.mxu0 %v15323_v33  ;;  %14688 = vmatprep.subr.bf16.mxu1 %v15324_v55  ;;  %v15355_v53 = vld [vmem:[%s16334_s17 + $0x5a8] ss:$12 sps:$4 sm:$0xff]   ;;  %v15356_v33 = vld [vmem:[%s16334_s17 + $0x770] ss:$12 sps:$4 sm:$0xff]  }
 0x1f5   : > { %3631 = vmatpush2.bf16.msra.mxu0 %v15321_v26 }
 0x1f6   : > { %14689 = vmatpush3.bf16.msra.mxu1 %v15324_v55  ;;  %3632 = vmatprep.subr.bf16.mxu0 %v15327_v59  ;;  %v15357_v55 = vld [vmem:[%s16334_s17 + $0x758] ss:$12 sps:$4 sm:$0xff]  }
 0x1f7   : > { %3661 = vmatprep.subr.bf16.mxu1 %v15330_v0  ;;  %v15358_v0 = vld [vmem:[%s16334_s17 + $0x740] ss:$12 sps:$4 sm:$0xff]  }
 0x1f9   : > { %14691 = vmatmul.mubr.msk.bf16.vlgmr.msra.gmra.mxu1 %vm1790_vm4, %v16904_v10  ;;  %3633 = vmatpush2.bf16.msra.mxu0 %v15325_v15  ;;  %v15334_v10 = vld [vmem:[%s16334_s17 + $0x738] ss:$12 sps:$4 sm:$0xff]  }
 0x1fa   : > { %3662 = vmatpush1.bf16.msra.mxu1 %v15328_v8  ;;  %3685 = vmatprep.mubr.bf16.mxu1 %v16305_v4  ;;  %v15363_v8 = vld [vmem:[%s16344_s25 + $0x270] ss:$12 sps:$4 sm:$0xff]  }
 0x1fb   : > { %3663 = vmatprep.subr.bf16.mxu1 %v15333_v5  ;;  %4472 = vmatprep.subr.bf16.mxu0 %v15362_v36  ;;  %v15365_v5 = vld [vmem:[%s16344_s25 + $0x274] ss:$12 sps:$4 sm:$0xff]  }
 0x1fc   : > { %3635 = vmatmul.mubr.bf16.vlgmr.msra.gmra.mxu0 %v16705_v42  ;;  %v1831_v60 = vpop.f32.mrf.mxu0 }
 0x1fd   : > { %3644 = vmatprep.mubr.bf16.mxu0 %v16885_v54  ;;  %4473 = vmatpush1.bf16.msra.mxu0 %v15360_v46 }
 0x1fe   : > { %3664 = vmatpush1.bf16.msra.mxu1 %v15331_v45  ;;  %v16971_v14 = vpop.f32.mrf.mxu0  ;;  %4474 = vmatprep.subr.bf16.mxu0 %v15365_v5 }
 0x1ff   : > { %3665 = vmatprep.subr.bf16.mxu1 %v15336_v7 }
 0x200   : > { %v1835_v19 = vpop.f32.mrf.mxu0 }
 0x201   : > { %4475 = vmatpush1.bf16.msra.mxu0 %v15363_v8 }
 0x202   : > { %3666 = vmatpush1.bf16.msra.mxu1 %v15334_v10  ;;  %v16975_v25 = vpop.f32.mrf.mxu0 }
 0x203   : > { %3667 = vmatprep.subr.bf16.mxu1 %v15339_v22 }
 0x204   : > { %3645 = vmatmul.mubr.bf16.gmra.mxu0 %v16691_v30  ;;  %v1841_v57 = vpop.f32.mrf.mxu0 }
 0x206   : > { %3668 = vmatpush1.bf16.msra.mxu1 %v15337_v20  ;;  %v16980_v21 = vpop.f32.mrf.mxu0  ;;  %v15369_v20 = vld [vmem:[%s16344_s25 + $0x240] ss:$12 sps:$4 sm:$0xff]  }
 0x207   : > { %14401 = vmatprep.subr.bf16.mxu1 %v15340_v12  ;;  %v15371_v12 = vld [vmem:[%s16344_s25 + $0x244] ss:$12 sps:$4 sm:$0xff]  }
 0x208   : > { %v1845_v51 = vpop.f32.mrf.mxu0  ;;  %v1882_v28 = vpop.f32.mrf.mxu1 }
 0x209   : > { %13323 = vmatmul.mubr.msk.bf16.vlgmr.msra.gmra.mxu1 %vm1790_vm4, %v16717_v49  ;;  %v16986_v29 = vadd.f32 %v1882_v28, %v1831_v60  ;;  %v15368_v60 = vld [vmem:[%s16344_s25 + $0x25c] ss:$12 sps:$4 sm:$0xff]  }
 0x20a   : > { %14402 = vmatpush3.bf16.msra.mxu1 %v15341_v23  ;;  %v1846_v17 = vpop.f32.mrf.mxu0  ;;  %3695 = vmatprep.mubr.bf16.mxu1 %v16305_v4  ;;  %v16990_v34 = vpop.f32.mrf.mxu1 }
 0x20b   : > { %14403 = vmatprep.subr.bf16.mxu1 %v15342_v24  ;;  %4476 = vmatprep.subr.bf16.mxu0 %v15368_v60  ;;  %v15374_v24 = vld [vmem:[%s16344_s25 + $0x22c] ss:$12 sps:$4 sm:$0xff]  }
 0x20c   : > { %v1886_v35 = vpop.f32.mrf.mxu1 }
 0x20d   : > { %v16993_v18 = vadd.f32 %v1886_v35, %v1835_v19 }
 0x20e   : > { %14404 = vmatpush3.bf16.msra.mxu1 %v15343_v16  ;;  %v16996_v38 = vpop.f32.mrf.mxu1 }
 0x20f   : > { %14405 = vmatprep.subr.bf16.mxu1 %v15344_v27 }
 0x210   : > { %v1892_v39 = vpop.f32.mrf.mxu1 }
 0x211   : > { %13324 = vmatmul.mubr.msk.bf16.gmra.mxu1 %vm1790_vm4, %v16707_v44  ;;  %v17001_v32 = vadd.f32 %v1892_v39, %v1841_v57 }
 0x212   : > { %14406 = vmatpush3.bf16.msra.mxu1 %v15345_v37  ;;  %3736 = vmatprep.mubr.bf16.mxu1 %v16896_v11  ;;  %v17005_v2 = vpop.f32.mrf.mxu1  ;;  %v15351_v11 = vld [vmem:[%s16334_s17 + $0x5d8] ss:$12 sps:$4 sm:$0xff]  }
 0x213   : > { %14407 = vmatprep.subr.bf16.mxu1 %v15346_v31  ;;  %v15375_v31 = vld [vmem:[%s16344_s25 + $0x210] ss:$12 sps:$4 sm:$0xff]  }
 0x214   : > { %v1896_v43 = vpop.f32.mrf.mxu1 }
 0x216   : > { %14408 = vmatpush3.bf16.msra.mxu1 %v15347_v40  ;;  %v1897_v50 = vpop.f32.mrf.mxu1  ;;  %v1889_v40 = vadd.f32 %v16996_v38, %v16975_v25 }
 0x217   : > { %14409 = vmatprep.subr.bf16.mxu1 %v15348_v41  ;;  %v15380_v50 = vld [vmem:[%s16344_s25 + $0x1fc] ss:$12 sps:$4 sm:$0xff]  }
 0x21a   : > { %14410 = vmatpush3.bf16.msra.mxu1 %v15349_v47  ;;  %v15378_v47 = vld [vmem:[%s16344_s25 + $0x1f8] ss:$12 sps:$4 sm:$0xff]  }
 0x21b   : > { %14411 = vmatprep.subr.bf16.mxu1 %v15350_v52 }
 0x21e   : > { %14412 = vmatpush3.bf16.msra.mxu1 %v15351_v11  ;;  %v15381_v11 = vld [vmem:[%s16344_s25 + $0x1e0] ss:$12 sps:$4 sm:$0xff]  }
 0x21f   : > { %14413 = vmatprep.subr.bf16.mxu1 %v15352_v56 }
 0x222   : > { %14414 = vmatpush3.bf16.msra.mxu1 %v15353_v48  ;;  %v15386_v48 = vld [vmem:[%s16344_s25 + $0x34c] ss:$12 sps:$4 sm:$0xff]  }
 0x223   : > { %14415 = vmatprep.subr.bf16.mxu1 %v15354_v58 }
 0x226   : > { %14416 = vmatpush3.bf16.msra.mxu1 %v15355_v53  ;;  %v15384_v53 = vld [vmem:[%s16344_s25 + $0x348] ss:$12 sps:$4 sm:$0xff]  }
 0x227   : > { %14694 = vmatprep.subr.bf16.mxu1 %v15356_v33 }
 0x228   : > { %v14315_v26 = vpop.f32.mrf.mxu1 }
 0x229   : > { %3737 = vmatmul.mubr.bf16.vlgmr.msra.gmra.mxu1 %v16705_v42  ;;  %v15359_v42 = vld [vmem:[%s16334_s17 + $0x728] ss:$12 sps:$4 sm:$0xff]  }
 0x22a   : > { %3744 = vmatprep.mubr.bf16.mxu1 %v16885_v54  ;;  %14695 = vmatpush3.bf16.msra.mxu1 %v15356_v33  ;;  %v14316_v59 = vpop.f32.mrf.mxu1  ;;  %v15366_v54 = vld [vmem:[%s16344_s25 + $0x258] ss:$12 sps:$4 sm:$0xff]  }
 0x22b   : > { %14696 = vmatprep.subr.bf16.mxu1 %v15357_v55  ;;  %v14317_v15 = vadd.f32 %v14316_v59, %v14315_v26  ;;  %4477 = vmatpush1.bf16.msra.mxu0 %v15366_v54 }
 0x22c   : > { %v17024_v45 = vpop.f32.mrf.mxu1  ;;  %4478 = vmatprep.subr.bf16.mxu0 %v15371_v12  ;;  %v15393_v12 = vld [vmem:[%s16344_s25 + $0x300] ss:$12 sps:$4 sm:$0xff]  }
 0x22e   : > { %14697 = vmatpush3.bf16.msra.mxu1 %v15357_v55  ;;  %v17026_v7 = vpop.f32.mrf.mxu1 }
 0x22f   : > { %14698 = vmatprep.subr.bf16.mxu1 %v15358_v0  ;;  %4479 = vmatpush1.bf16.msra.mxu0 %v15369_v20 }
 0x230   : > { %v14321_v10 = vpop.f32.mrf.mxu1  ;;  %4480 = vmatprep.subr.bf16.mxu0 %v15374_v24  ;;  %v15396_v24 = vld [vmem:[%s16344_s25 + $0x2e8] ss:$12 sps:$4 sm:$0xff]  }
 0x231   : > { %3745 = vmatmul.mubr.bf16.gmra.mxu1 %v16691_v30  ;;  %v15372_v30 = vld [vmem:[%s16344_s25 + $0x228] ss:$12 sps:$4 sm:$0xff]  }
 0x232   : > { %14699 = vmatpush3.bf16.msra.mxu1 %v15358_v0  ;;  %14702 = vmatprep.mubr.msk.bf16.mxu1 %vm1790_vm4, %v16717_v49  ;;  %v14322_v22 = vpop.f32.mrf.mxu1 }
 0x233   : > { %14700 = vmatprep.subr.bf16.mxu1 %v15359_v42  ;;  %v14323_v19 = vadd.f32 %v14322_v22, %v14321_v10  ;;  %4481 = vmatpush1.bf16.msra.mxu0 %v15372_v30  ;;  %v15387_v22 = vld [vmem:[%s16344_s25 + $0x330] ss:$12 sps:$4 sm:$0xff]   ;;  %v15401_v30 = vld [vmem:[%s16344_s25 + $0x2d4] ss:$12 sps:$4 sm:$0xff]  }
 0x234   : > { %v14324_v57 = vpop.f32.mrf.mxu1 }
 0x235   : > { %v15395_v57 = vld [vmem:[%s16344_s25 + $0x304] ss:$12 sps:$4 sm:$0xff]  }
 0x236   : > { %14701 = vmatpush3.bf16.msra.mxu1 %v15359_v42  ;;  %v14325_v23 = vpop.f32.mrf.mxu1 }
 0x237   : > { %v15398_v23 = vld [vmem:[%s16344_s25 + $0x2ec] ss:$12 sps:$4 sm:$0xff]  }
 0x239   : > { %v14668_v51 = vpop.f32.mrf.mxu1  ;;  %14703 = vmatmul.mubr.msk.bf16.vlgmr.msra.gmra.mxu1 %vm1790_vm4, %v16707_v44  ;;  %v15377_v44 = vld [vmem:[%s16344_s25 + $0x214] ss:$12 sps:$4 sm:$0xff]  }
 0x23a   : > { %v17040_v49 = vadd.f32 %v14668_v51, %v14323_v19  ;;  %4555 = vmatprep.mubr.bf16.mxu1 %v16305_v4  ;;  %4482 = vmatprep.subr.bf16.mxu0 %v15377_v44  ;;  %v15389_v19 = vld [vmem:[%s16344_s25 + $0x334] ss:$12 sps:$4 sm:$0xff]   ;;  %v15399_v51 = vld [vmem:[%s16344_s25 + $0x2d0] ss:$12 sps:$4 sm:$0xff]  }
 0x23b   : > { %v1981_v28 = vpop.f32.mrf.mxu1  ;;  %4483 = vmatpush1.bf16.msra.mxu0 %v15375_v31  ;;  %v15407_v44 = vld [vmem:[%s16344_s25 + $0x2a4] ss:$12 sps:$4 sm:$0xff]  }
 0x23c   : > { %v17043_v17 = vadd.f32 %v14317_v15, %v1981_v28  ;;  %v2353_v16 = vpop.f32.mrf.mxu0  ;;  %4484 = vmatprep.subr.bf16.mxu0 %v15380_v50  ;;  %v15405_v50 = vld [vmem:[%s16344_s25 + $0x2a0] ss:$12 sps:$4 sm:$0xff]  }
 0x23d   : > { %v2354_v27 = vadd.f32 %v2353_v16, %v16986_v29  ;;  %v14669_v35 = vpop.f32.mrf.mxu1  ;;  %v15383_v29 = vld [vmem:[%s16344_s25 + $0x1e4] ss:$12 sps:$4 sm:$0xff]   ;;  %v15404_v16 = vld [vmem:[%s16344_s25 + $0x2bc] ss:$12 sps:$4 sm:$0xff]  }
 0x23e   : > { %v2355_v37 = vpop.f32.mrf.mxu0 }
 0x23f   : > { %4485 = vmatpush1.bf16.msra.mxu0 %v15378_v47  ;;  %v1984_v25 = vpop.f32.mrf.mxu1 }
 0x240   : > { %v2357_v39 = vpop.f32.mrf.mxu0  ;;  %4486 = vmatprep.subr.bf16.mxu0 %v15383_v29 }
 0x241   : > { %v2358_v41 = vadd.f32 %v2357_v39, %v16993_v18  ;;  %v1885_v18 = vadd.f32 %v16990_v34, %v16971_v14  ;;  %v1895_v34 = vadd.f32 %v17005_v2, %v16980_v21  ;;  %v15390_v21 = vld [vmem:[%s16344_s25 + $0x318] ss:$12 sps:$4 sm:$0xff]   ;;  %v15392_v2 = vld [vmem:[%s16344_s25 + $0x31c] ss:$12 sps:$4 sm:$0xff]   ;;  %v14320_v39 = vadd.f32 %v17026_v7, %v17024_v45 }
 0x242   : > { %v2359_v43 = vpop.f32.mrf.mxu0 }
 0x243   : > { %v17053_v52 = vadd.f32 %v2359_v43, %v1889_v40  ;;  %4487 = vmatpush1.bf16.msra.mxu0 %v15381_v11  ;;  %v2356_v33 = vadd.f32 %v2355_v37, %v1885_v18  ;;  %v15402_v37 = vld [vmem:[%s16344_s25 + $0x2b8] ss:$12 sps:$4 sm:$0xff]   ;;  %v1985_v43 = vadd.f32 %v14320_v39, %v1984_v25 }
 0x244   : > { %v2363_v46 = vpop.f32.mrf.mxu0  ;;  %4488 = vmatprep.subr.bf16.mxu0 %v15386_v48 }
 0x245   : > { %v2364_v36 = vadd.f32 %v2363_v46, %v17001_v32  ;;  %v15410_v46 = vld [vmem:[%s16344_s25 + $0xac] ss:$12 sps:$4 sm:$0xff]  }
 0x246   : > { %v2365_v56 = vpop.f32.mrf.mxu0 }
 0x247   : > { %4489 = vmatpush2.bf16.msra.mxu0 %v15384_v53  ;;  %v2366_v5 = vadd.f32 %v2365_v56, %v1895_v34 }
 0x248   : > { %v2367_v38 = vpop.f32.mrf.mxu0  ;;  %4490 = vmatprep.subr.bf16.mxu0 %v15389_v19 }
 0x249   : > { %v2404_v58 = vpop.f32.mrf.mxu1 }
 0x24a   : > { %v17062_v55 = vadd.f32 %v2404_v58, %v2354_v27  ;;  %v2368_v26 = vpop.f32.mrf.mxu0 }
 0x24b   : > { %v2406_v32 = vpop.f32.mrf.mxu1  ;;  %4491 = vmatpush2.bf16.msra.mxu0 %v15387_v22 }
 0x24c   : > { %v17064_v59 = vadd.f32 %v2406_v32, %v2356_v33  ;;  %4492 = vmatprep.subr.bf16.mxu0 %v15392_v2  ;;  %v15432_v2 = vld [vmem:[%s16344_s25 + $0x3a8] ss:$12 sps:$4 sm:$0xff]  }
 0x24d   : > { %v2408_v0 = vpop.f32.mrf.mxu1 }
 0x24e   : > { %v17066_v15 = vadd.f32 %v2408_v0, %v2358_v41 }
 0x24f   : > { %v17068_v14 = vpop.f32.mrf.mxu1  ;;  %4493 = vmatpush2.bf16.msra.mxu0 %v15390_v21 }
 0x250   : > { %4494 = vmatprep.subr.bf16.mxu0 %v15395_v57 }
 0x251   : > { %v2414_v8 = vpop.f32.mrf.mxu1 }
 0x252   : > { %v17072_v42 = vadd.f32 %v2414_v8, %v2364_v36 }
 0x253   : > { %v2416_v54 = vpop.f32.mrf.mxu1  ;;  %4495 = vmatpush2.bf16.msra.mxu0 %v15393_v12  ;;  %v15434_v12 = vld [vmem:[%s16344_s25 + $0x3ac] ss:$12 sps:$4 sm:$0xff]  }
 0x254   : > { %v17074_v60 = vadd.f32 %v2416_v54, %v2366_v5  ;;  %4496 = vmatprep.subr.bf16.mxu0 %v15398_v23  ;;  %4531 = vmatprep.subr.bf16.mxu1 %v15434_v12 }
 0x255   : > { %v2418_v10 = vpop.f32.mrf.mxu1  ;;  %4532 = vmatpush1.bf16.msra.mxu1 %v15432_v2  ;;  %v3809_v2 = vld [vmem:[%s16339_s21] sm:$0x77] }
 0x257   : > { %v2419_v20 = vpop.f32.mrf.mxu1  ;;  %4497 = vmatpush2.bf16.msra.mxu0 %v15396_v24 }
 0x258   : > { %4498 = vmatprep.subr.bf16.mxu0 %v15401_v30  ;;  %v15440_v30 = vld [vmem:[%s16344_s25 + $0x394] ss:$12 sps:$4 sm:$0xff]  }
 0x259   : > { %4533 = vmatprep.subr.bf16.mxu1 %v15440_v30  ;;  %v3820_v30 = vrot.slane %v3809_v2, %v16596_v1 }
 0x25b   : > { %4499 = vmatpush2.bf16.msra.mxu0 %v15399_v51  ;;  %v2411_v51 = vadd.f32 %v17068_v14, %v17053_v52  ;;  %v15444_v52 = vld [vmem:[%s16344_s25 + $0x378] ss:$12 sps:$4 sm:$0xff]  }
 0x25c   : > { %4500 = vmatprep.subr.bf16.mxu0 %v15404_v16  ;;  %v15438_v16 = vld [vmem:[%s16344_s25 + $0x390] ss:$12 sps:$4 sm:$0xff]  }
 0x25d   : > { %4534 = vmatpush1.bf16.msra.mxu1 %v15438_v16  ;;  %v15452_v14 = vld [vmem:[%s16344_s25 + $0x364] ss:$12 sps:$4 sm:$0xff]  }
 0x25f   : > { %4501 = vmatpush2.bf16.msra.mxu0 %v15402_v37 }
 0x260   : > { %4502 = vmatprep.subr.bf16.mxu0 %v15407_v44 }
 0x263   : > { %4503 = vmatpush2.bf16.msra.mxu0 %v15405_v50 }
 0x264   : > { %4994 = vmatprep.subr.bf16.mxu0 %v15410_v46 }
 0x269   : > { %v14349_v28 = vpop.f32.mrf.mxu1 }
 0x26b   : > { %v14350_v27 = vpop.f32.mrf.mxu1 }
 0x26c   : > { %v14351_v35 = vadd.f32 %v14350_v27, %v14349_v28 }
 0x26d   : > { %v14352_v31 = vpop.f32.mrf.mxu1 }
 0x26e   : > { %v2456_v40 = vadd.f32 %v14351_v35, %v17043_v17 }
 0x26f   : > { %v14353_v41 = vpop.f32.mrf.mxu1 }
 0x270   : > { %v14354_v47 = vadd.f32 %v14353_v41, %v14352_v31  ;;  %v15456_v41 = vld [vmem:[%s16344_s25 + $0x350] ss:$12 sps:$4 sm:$0xff]  }
 0x271   : > { %v14355_v29 = vpop.f32.mrf.mxu1 }
 0x272   : > { %v17094_v36 = vadd.f32 %v14354_v47, %v1985_v43 }
 0x273   : > { %v14356_v11 = vpop.f32.mrf.mxu1 }
 0x274   : > { %v14357_v56 = vadd.f32 %v14356_v11, %v14355_v29 }
 0x275   : > { %v14358_v48 = vpop.f32.mrf.mxu1 }
 0x276   : > { %v2464_v18 = vadd.f32 %v14357_v56, %v17040_v49 }
 0x277   : > { %v14359_v45 = vpop.f32.mrf.mxu1 }
 0x279   : > { %v14680_v7 = vpop.f32.mrf.mxu1 }
 0x27a   : > { %v17097_v17 = vadd.f32 %v14680_v7, %v2464_v18 }
 0x27b   : > { %v2503_v25 = vpop.f32.mrf.mxu1 }
 0x27c   : > { %v17099_v38 = vadd.f32 %v2503_v25, %v2456_v40  ;;  %v2981_v58 = vpop.f32.mrf.mxu0  ;;  %v15450_v40 = vld [vmem:[%s16344_s25 + $0x360] ss:$12 sps:$4 sm:$0xff]  }
 0x27d   : > { %v14681_v53 = vpop.f32.mrf.mxu1 }
 0x27e   : > { %v2983_v33 = vpop.f32.mrf.mxu0 }
 0x27f   : > { %v2506_v8 = vpop.f32.mrf.mxu1 }
 0x280   : > { %v2985_v26 = vpop.f32.mrf.mxu0 }
 0x282   : > { %v2987_v32 = vpop.f32.mrf.mxu0 }
 0x284   : > { %v2991_v0 = vpop.f32.mrf.mxu0 }
 0x286   : > { %v17101_v34 = vpop.f32.mrf.mxu0 }
 0x288   : > { %v2995_v49 = vpop.f32.mrf.mxu0 }
 0x289   : > { %v3032_v5 = vpop.f32.mrf.mxu1 }
 0x28a   : > { %v3033_v54 = vadd.f32 %v3032_v5, %v2981_v58  ;;  %v2996_v10 = vpop.f32.mrf.mxu0 }
 0x28b   : > { %v3034_v22 = vpop.f32.mrf.mxu1 }
 0x28c   : > { %v17104_v19 = vadd.f32 %v3033_v54, %v17062_v55  ;;  %v3035_v20 = vadd.f32 %v3034_v22, %v2983_v33  ;;  %v2507_v54 = vadd.f32 %v2506_v8, %v17094_v36  ;;  %v3861_v36 = vrot.slane %v3809_v2, %v16600_v3 }
 0x28d   : > { %v3036_v21 = vpop.f32.mrf.mxu1 }
 0x28e   : > { %v17109_v57 = vadd.f32 %v3035_v20, %v17064_v59  ;;  %v3037_v23 = vadd.f32 %v3036_v21, %v2985_v26  ;;  %v15446_v59 = vld [vmem:[%s16344_s25 + $0x37c] ss:$12 sps:$4 sm:$0xff]  }
 0x28f   : > { %v3038_v24 = vpop.f32.mrf.mxu1  ;;  %4535 = vmatprep.subr.bf16.mxu1 %v15446_v59 }
 0x290   : > { %v17115_v55 = vadd.f32 %v3037_v23, %v17066_v15  ;;  %v3039_v28 = vadd.f32 %v3038_v24, %v2987_v32  ;;  %4536 = vmatpush1.bf16.msra.mxu1 %v15444_v52  ;;  %v3816_v23 = vrot.slane %v3809_v2, %v16592_v63 }
 0x291   : > { %v3042_v27 = vpop.f32.mrf.mxu1  ;;  %4537 = vmatprep.subr.bf16.mxu1 %v15452_v14 }
 0x292   : > { %v17119_v35 = vadd.f32 %v3039_v28, %v2411_v51  ;;  %v3043_v37 = vadd.f32 %v3042_v27, %v2991_v0  ;;  %v3831_v28 = vrot.slane %v3816_v23, %v16592_v63 }
 0x293   : > { %v17121_v31 = vpop.f32.mrf.mxu1 }
 0x294   : > { %v17124_v44 = vadd.f32 %v3043_v37, %v17072_v42  ;;  %4538 = vmatpush1.bf16.msra.mxu1 %v15450_v40  ;;  %v3835_v37 = vrot.slane %v3820_v30, %v16592_v63 }
 0x295   : > { %v3046_v15 = vpop.f32.mrf.mxu1  ;;  %14435 = vmatprep.subr.bf16.mxu1 %v15456_v41  ;;  %v3876_v41 = vrot.slane %v3861_v36, %v16600_v3 }
 0x297   : > { %v3047_v39 = vpop.f32.mrf.mxu1 }
 0x298   : > { %v3865_v39 = vrot.slane %v3809_v2, %v16604_v6 }
 0x2a9   : > { %v14383_v43 = vpop.f32.mrf.mxu1 }
 0x2ab   : > { %v14384_v47 = vpop.f32.mrf.mxu1 }
 0x2ac   : > { %v14385_v50 = vadd.f32 %v14384_v47, %v14383_v43  ;;  %v3897_v43 = vrot.slane %v3809_v2, %v16609_v9 }
 0x2ad   : > { %v14386_v29 = vpop.f32.mrf.mxu1 }
 0x2af   : > { %v14387_v46 = vpop.f32.mrf.mxu1 }
 0x2b0   : > { %v14388_v32 = vadd.f32 %v14387_v46, %v14386_v29 }
 0x2b1   : > { %v14389_v11 = vpop.f32.mrf.mxu1 }
 0x2b3   : > { %v14390_v42 = vpop.f32.mrf.mxu1 }
 0x2b4   : > { %v14391_v56 = vadd.f32 %v14390_v42, %v14389_v11  ;;  %v3045_v11 = vadd.f32 %v17121_v31, %v17101_v34  ;;  %v3901_v42 = vrot.slane %v3809_v2, %v16614_v13 }
 0x2b5   : > { %v14392_v48 = vpop.f32.mrf.mxu1 }
 0x2b6   : > { %v3880_v48 = vrot.slane %v3865_v39, %v16600_v3 }
 0x2b7   : > { %v14393_v18 = vpop.f32.mrf.mxu1 }
 0x2b9   : > { %v14692_v45 = vpop.f32.mrf.mxu1 }
 0x2ba   : > { %v3140_v7 = vadd.f32 %v14692_v45, %v14391_v56 }
 0x2bb   : > { %v3131_v25 = vpop.f32.mrf.mxu1 }
 0x2bc   : > { %v17131_v58 = vadd.f32 %v3140_v7, %v17097_v17  ;;  %v3132_v53 = vadd.f32 %v14385_v50, %v3131_v25  ;;  %v3636_v33 = vpop.f32.mrf.mxu0 }
 0x2bd   : > { %v14693_v26 = vpop.f32.mrf.mxu1 }
 0x2be   : > { %v17134_v0 = vadd.f32 %v3132_v53, %v17099_v38  ;;  %v3638_v49 = vpop.f32.mrf.mxu0 }
 0x2bf   : > { %v3134_v5 = vpop.f32.mrf.mxu1 }
 0x2c0   : > { %v3135_v10 = vadd.f32 %v14388_v32, %v3134_v5  ;;  %v3640_v22 = vpop.f32.mrf.mxu0  ;;  %v3152_v32 = vadd.f32 %v3045_v11, %v17074_v60 }
 0x2c2   : > { %v17137_v20 = vadd.f32 %v3135_v10, %v2507_v54  ;;  %v3642_v21 = vpop.f32.mrf.mxu0  ;;  %v3916_v54 = vrot.slane %v3901_v42, %v16609_v9 }
 0x2c4   : > { %v3646_v12 = vpop.f32.mrf.mxu0 }
 0x2c6   : > { %v3648_v17 = vpop.f32.mrf.mxu0 }
 0x2c8   : > { %v3650_v24 = vpop.f32.mrf.mxu0 }
 0x2c9   : > { %v3687_v51 = vpop.f32.mrf.mxu1 }
 0x2ca   : > { %v3688_v38 = vadd.f32 %v3687_v51, %v3636_v33  ;;  %v3651_v16 = vpop.f32.mrf.mxu0  ;;  %v3912_v33 = vrot.slane %v3897_v43, %v16609_v9 }
 0x2cb   : > { %v3689_v8 = vpop.f32.mrf.mxu1 }
 0x2cc   : > { %v3800_v27 = vadd.f32 %v3688_v38, %v17104_v19  ;;  %v3690_v59 = vadd.f32 %v3689_v8, %v3638_v49 }
 0x2cd   : > { %v3691_v52 = vpop.f32.mrf.mxu1 }
 0x2ce   : > { %v3840_v15 = vadd.f32 %v3831_v28, %v3800_v27  ;;  %v3801_v14 = vadd.f32 %v3690_v59, %v17109_v57  ;;  %v3692_v40 = vadd.f32 %v3691_v52, %v3640_v22 }
 0x2cf   : > { %v3693_v47 = vpop.f32.mrf.mxu1 }
 0x2d0   : > { %v3849_v50 = vmax.f32 %v3840_v15, 0.0  ;;  %v3841_v29 = vadd.f32 %v3835_v37, %v3801_v14  ;;  %v3803_v46 = vadd.f32 %v3692_v40, %v17115_v55  ;;  %v3694_v19 = vadd.f32 %v3693_v47, %v3642_v21 }
 0x2d1   : > { %v3697_v56 = vpop.f32.mrf.mxu1 }
 0x2d2   : > { %v3850_v57 = vmax.f32 %v3841_v29, 0.0  ;;  %v3843_v18 = vadd.f32 %v3831_v28, %v3803_v46  ;;  %v3804_v45 = vadd.f32 %v3694_v19, %v17119_v35  ;;  %v3698_v7 = vadd.f32 %v3697_v56, %v3646_v12 }
 0x2d3   : > { %v3699_v25 = vpop.f32.mrf.mxu1  ;;  %v3885_v53 = vmul.f32 %v3876_v41, %v3849_v50 }
 0x2d4   : > { %v3852_v26 = vmax.f32 %v3843_v18, 0.0  ;;  %v3844_v55 = vadd.f32 %v3835_v37, %v3804_v45  ;;  %v3806_v34 = vadd.f32 %v3698_v7, %v17124_v44  ;;  %v3700_v31 = vadd.f32 %v3699_v25, %v3648_v17 }
 0x2d5   : > { %v3701_v49 = vpop.f32.mrf.mxu1  ;;  %v3886_v5 = vmul.f32 %v3880_v48, %v3850_v57  ;;  %v3921_v12 = vadd.f32 %v3912_v33, %v3885_v53 }
 0x2d6   : > { %v3888_v10 = vmul.f32 %v3876_v41, %v3852_v26  ;;  %v3853_v22 = vmax.f32 %v3844_v55, 0.0  ;;  %v3846_v21 = vadd.f32 %v3831_v28, %v3806_v34  ;;  %v3807_v35 = vadd.f32 %v3700_v31, %v3152_v32  ;;  %v15413_v49 = vld [vmem:[%s16344_s25 + $0x94] ss:$12 sps:$4 sm:$0xff]  }
 0x2d7   : > { %v3702_v2 = vpop.f32.mrf.mxu1  ;;  %v3922_v38 = vadd.f32 %v3916_v54, %v3886_v5 }
 0x2d8   : > { %v3924_v23 = vadd.f32 %v3912_v33, %v3888_v10  ;;  %v3889_v24 = vmul.f32 %v3880_v48, %v3853_v22  ;;  %v3855_v30 = vmax.f32 %v3846_v21, 0.0  ;;  %v3847_v51 = vadd.f32 %v3835_v37, %v3807_v35  ;;  %v15411_v22 = vld [vmem:[%s16344_s25 + $0x90] ss:$12 sps:$4 sm:$0xff]  }
 0x2d9   : > { %v15416_v35 = vld [vmem:[%s16344_s25 + $0x7c] ss:$12 sps:$4 sm:$0xff]  }
 0x2da   : > { %v17160_v16 = vpack.c.bf16 %v3924_v23, %v3921_v12  ;;  %v3925_v60 = vadd.f32 %v3916_v54, %v3889_v24  ;;  %v3891_v44 = vmul.f32 %v3876_v41, %v3855_v30  ;;  %v3856_v17 = vmax.f32 %v3847_v51, 0.0  ;;  %v15414_v12 = vld [vmem:[%s16344_s25 + $0x78] ss:$12 sps:$4 sm:$0xff]  }
 0x2db   : > { %v15419_v30 = vld [vmem:[%s16344_s25 + $0x64] ss:$12 sps:$4 sm:$0xff]  }
 0x2dc   : > { %v17162_v36 = vpack.c.bf16 %v3925_v60, %v3922_v38  ;;  %v3927_v8 = vadd.f32 %v3912_v33, %v3891_v44  ;;  %v3892_v27 = vmul.f32 %v3880_v48, %v3856_v17  ;;  %v4098_v52 = vshrl.u32 %v17160_v16, 16  ;;  %v15408_v33 = vld [vmem:[%s16344_s25 + $0xa8] ss:$12 sps:$4 sm:$0xff]   ;;  %v15417_v38 = vld [vmem:[%s16344_s25 + $0x60] ss:$12 sps:$4 sm:$0xff]  }
 0x2dd   : > { %v4100_v15 = vshll.u32 %v17160_v16, 16  ;;  %v15422_v44 = vld [vmem:[%s16344_s25 + $0x4c] ss:$12 sps:$4 sm:$0xff]   ;;  %v3810_v17 = vld [vmem:[%s16339_s21 + $0x8] sm:$0x7] }
 0x2de   : > { %v4110_v59 = vshrl.u32 %v17162_v36, 16  ;;  %v4112_v28 = vshll.u32 %v17162_v36, 16  ;;  %v17168_v14 = vpack.c.bf16 %v3927_v8, %v3927_v8  ;;  %v3928_v37 = vadd.f32 %v3916_v54, %v3892_v27  ;;  %v15420_v27 = vld [vmem:[%s16344_s25 + $0x48] ss:$12 sps:$4 sm:$0xff]  }
 0x2df   : > { %v4102_v29 = vrot.slane %v4100_v15, 1  ;;  %v17180_v19 = vrot.slane %v4098_v52, 1  ;;  %v17182_v11 = vrot.slane %v4100_v15, 2 }
 0x2e0   : > { %v17170_v39 = vrot.slane %v4110_v59, 1  ;;  %v17172_v40 = vrot.slane %v4112_v28, 2  ;;  %v17174_v41 = vpack.c.bf16 %v3928_v37, %v3928_v37  ;;  %v4114_v43 = vrot.slane %v4112_v28, 1 }
 0x2e1   : > { %v4105_v47 = vshll.u32 %v17168_v14, 16  ;;  %v4133_v50 = vshrl.u32 %v17168_v14, 16  ;;  %v5908_v45 = vor.u32 %v17182_v11, %v17180_v19  ;;  %v4103_v26 = vor.u32 %v4102_v29, %v4098_v52  ;;  %v15425_v52 = vld [vmem:[%s16344_s25 + $0x34] ss:$12 sps:$4 sm:$0xff]  }
 0x2e2   : > { %v5915_v46 = vor.u32 %v17172_v40, %v17170_v39  ;;  %v4117_v42 = vshll.u32 %v17174_v41, 16  ;;  %v4136_v56 = vshrl.u32 %v17174_v41, 16  ;;  %v4115_v7 = vor.u32 %v4114_v43, %v4110_v59  ;;  %v15577_v39 = vld [vmem:[%s16344_s25 + $0x5e8] ss:$12 sps:$4 sm:$0xff]  }
 0x2e3   : > { %v5909_v57 = vrot.slane %v4133_v50, 1  ;;  %v4107_v48 = vrot.slane %v4105_v47, 1  ;;  %v5910_v18 = vrot.slane %v4105_v47, 2  ;;  %v3824_v59 = vrot.slane %v3810_v17, %v16592_v63  ;;  %v15583_v40 = vld [vmem:[%s16344_s25 + $0x5d4] ss:$12 sps:$4 sm:$0xff]  }
 0x2e4   : > { %v4119_v25 = vrot.slane %v4117_v42, 1  ;;  %v5916_v53 = vrot.slane %v4136_v56, 1  ;;  %v5917_v32 = vrot.slane %v4117_v42, 2  ;;  %v3869_v29 = vrot.slane %v3810_v17, %v16600_v3  ;;  %v15423_v42 = vld [vmem:[%s16344_s25 + $0x30] ss:$12 sps:$4 sm:$0xff]  }
 0x2e5   : > { %v17189_v55 = vor.u32 %v5910_v18, %v5909_v57  ;;  %v17199_v5 = vsel %vm1420_vm2, %v4103_v26, %v4107_v48  ;;  %v17208_v24 = vor.u32 %v4133_v50, %v4107_v48  ;;  %v3839_v50 = vrot.slane %v3824_v59, %v16592_v63  ;;  %v15428_v57 = vld [vmem:[%s16344_s25 + $0x1c] ss:$12 sps:$4 sm:$0xff]   ;;  %v15443_v59 = vld [vmem:[%s16344_s25 + $0x154] ss:$12 sps:$4 sm:$0xff]  }
 0x2e6   : > { %v17192_v34 = vsel %vm1420_vm2, %v4115_v7, %v4119_v25  ;;  %v17194_v31 = vor.u32 %v4136_v56, %v4119_v25  ;;  %v17201_v54 = vor.u32 %v5917_v32, %v5916_v53  ;;  %v3905_v18 = vrot.slane %v3810_v17, %v16609_v9  ;;  %v15643_v11 = vld [vmem:[%s16344_s25 + $0x3c8] ss:$12 sps:$4 sm:$0xff]  }
 0x2e7   : > { %4504 = vmatprep.mubr.bf16.mxu0 %v17192_v34  ;;  %v3884_v26 = vrot.slane %v3869_v29, %v16600_v3  ;;  %v15449_v29 = vld [vmem:[%s16344_s25 + $0x13c] ss:$12 sps:$4 sm:$0xff]  }
 0x2e8   : > { %4505 = vmatmul.mubr.bf16.vlgmr.msra.gmra.mxu0 %v17199_v5 }
 0x2e9   : > { %v14417_v10 = vpop.f32.mrf.mxu1  ;;  %4995 = vmatpush1.bf16.msra.mxu0 %v15408_v33  ;;  %4514 = vmatprep.mubr.bf16.mxu0 %v17194_v31 }
 0x2ea   : > { %4996 = vmatprep.subr.bf16.mxu0 %v15413_v49  ;;  %v15426_v49 = vld [vmem:[%s16344_s25 + $0x18] ss:$12 sps:$4 sm:$0xff]  }
 0x2eb   : > { %v14418_v21 = vpop.f32.mrf.mxu1 }
 0x2ec   : > { %v14419_v43 = vadd.f32 %v14418_v21, %v14417_v10 }
 0x2ed   : > { %v14420_v2 = vpop.f32.mrf.mxu1  ;;  %4997 = vmatpush1.bf16.msra.mxu0 %v15411_v22  ;;  %v15431_v22 = vld [vmem:[%s16344_s25 + $0x4] ss:$12 sps:$4 sm:$0xff]  }
 0x2ee   : > { %4998 = vmatprep.subr.bf16.mxu0 %v15416_v35 }
 0x2ef   : > { %v14421_v23 = vpop.f32.mrf.mxu1 }
 0x2f0   : > { %4515 = vmatmul.mubr.bf16.gmra.mxu0 %v17208_v24  ;;  %v14422_v53 = vadd.f32 %v14421_v23, %v14420_v2 }
 0x2f1   : > { %v14423_v51 = vpop.f32.mrf.mxu1  ;;  %4999 = vmatpush1.bf16.msra.mxu0 %v15414_v12  ;;  %5026 = vmatprep.mubr.bf16.mxu0 %v17162_v36 }
 0x2f2   : > { %5000 = vmatprep.subr.bf16.mxu0 %v15419_v30 }
 0x2f3   : > { %v14424_v60 = vpop.f32.mrf.mxu1 }
 0x2f4   : > { %v14425_v15 = vadd.f32 %v14424_v60, %v14423_v51  ;;  %v15429_v51 = vld [vmem:[%s16344_s25] ss:$12 sps:$4 sm:$0xff]  }
 0x2f5   : > { %v14426_v8 = vpop.f32.mrf.mxu1  ;;  %5001 = vmatpush1.bf16.msra.mxu0 %v15417_v38 }
 0x2f6   : > { %5002 = vmatprep.subr.bf16.mxu0 %v15422_v44 }
 0x2f7   : > { %v14427_v28 = vpop.f32.mrf.mxu1 }
 0x2f9   : > { %v14704_v37 = vpop.f32.mrf.mxu1  ;;  %5003 = vmatpush1.bf16.msra.mxu0 %v15420_v27  ;;  %v15435_v27 = vld [vmem:[%s16344_s25 + $0x168] ss:$12 sps:$4 sm:$0xff]  }
 0x2fa   : > { %v3795_v47 = vadd.f32 %v14704_v37, %v14425_v15  ;;  %5004 = vmatprep.subr.bf16.mxu0 %v15425_v52 }
 0x2fb   : > { %v3786_v56 = vpop.f32.mrf.mxu1 }
 0x2fc   : > { %v3808_v48 = vadd.f32 %v3795_v47, %v17131_v58  ;;  %v3787_v7 = vadd.f32 %v14419_v43, %v3786_v56  ;;  %v3920_v58 = vrot.slane %v3905_v18, %v16609_v9  ;;  %v15441_v43 = vld [vmem:[%s16344_s25 + $0x150] ss:$12 sps:$4 sm:$0xff]  }
 0x2fd   : > { %v14705_v25 = vpop.f32.mrf.mxu1  ;;  %5005 = vmatpush1.bf16.msra.mxu0 %v15423_v42 }
 0x2fe   : > { %v3848_v33 = vadd.f32 %v3839_v50, %v3808_v48  ;;  %v3802_v32 = vadd.f32 %v3787_v7, %v17134_v0  ;;  %5006 = vmatprep.subr.bf16.mxu0 %v15428_v57  ;;  %v15437_v0 = vld [vmem:[%s16344_s25 + $0x16c] ss:$12 sps:$4 sm:$0xff]   ;;  %v15455_v7 = vld [vmem:[%s16344_s25 + $0x124] ss:$12 sps:$4 sm:$0xff]  }
 0x2ff   : > { %v3789_v10 = vpop.f32.mrf.mxu1  ;;  %v15447_v57 = vld [vmem:[%s16344_s25 + $0x138] ss:$12 sps:$4 sm:$0xff]  }
 0x300   : > { %v3857_v21 = vmax.f32 %v3848_v33, 0.0  ;;  %v3842_v35 = vadd.f32 %v3839_v50, %v3802_v32  ;;  %v3790_v12 = vadd.f32 %v14422_v53, %v3789_v10  ;;  %v15457_v10 = vld [vmem:[%s16344_s25 + $0x290] ss:$12 sps:$4 sm:$0xff]  }
 0x301   : > { %5007 = vmatpush1.bf16.msra.mxu0 %v15426_v49 }
 0x302   : > { %v3893_v2 = vmul.f32 %v3884_v26, %v3857_v21  ;;  %v3851_v23 = vmax.f32 %v3842_v35, 0.0  ;;  %v3805_v30 = vadd.f32 %v3790_v12, %v17137_v20  ;;  %5008 = vmatprep.subr.bf16.mxu0 %v15431_v22  ;;  %v15460_v21 = vld [vmem:[%s16344_s25 + $0x10c] ss:$12 sps:$4 sm:$0xff]  }
 0x304   : > { %v3929_v38 = vadd.f32 %v3920_v58, %v3893_v2  ;;  %v3845_v60 = vadd.f32 %v3839_v50, %v3805_v30  ;;  %v3887_v17 = vmul.f32 %v3884_v26, %v3851_v23  ;;  %v15458_v2 = vld [vmem:[%s16344_s25 + $0x108] ss:$12 sps:$4 sm:$0xff]   ;;  %v15462_v23 = vld [vmem:[%s16344_s25 + $0x278] ss:$12 sps:$4 sm:$0xff]  }
 0x305   : > { %5009 = vmatpush1.bf16.msra.mxu0 %v15429_v51  ;;  %v15465_v30 = vld [vmem:[%s16344_s25 + $0xf4] ss:$12 sps:$4 sm:$0xff]  }
 0x306   : > { %v17233_v44 = vpack.c.bf16 %v3929_v38, %v3929_v38  ;;  %v3854_v8 = vmax.f32 %v3845_v60, 0.0  ;;  %5010 = vmatprep.subr.bf16.mxu0 %v15437_v0  ;;  %v3923_v15 = vadd.f32 %v3920_v58, %v3887_v17  ;;  %v15466_v51 = vld [vmem:[%s16344_s25 + $0x320] ss:$12 sps:$4 sm:$0xff]   ;;  %v15463_v0 = vld [vmem:[%s16344_s25 + $0xf0] ss:$12 sps:$4 sm:$0xff]  }
 0x307   : > { %v15467_v38 = vld [vmem:[%s16344_s25 + $0x260] ss:$12 sps:$4 sm:$0xff]   ;;  %v15470_v17 = vld [vmem:[%s16344_s25 + $0xdc] ss:$12 sps:$4 sm:$0xff]  }
 0x308   : > { %v3890_v28 = vmul.f32 %v3884_v26, %v3854_v8  ;;  %v4129_v20 = vshll.u32 %v17233_v44, 16  ;;  %v4139_v52 = vshrl.u32 %v17233_v44, 16  ;;  %v15453_v26 = vld [vmem:[%s16344_s25 + $0x120] ss:$12 sps:$4 sm:$0xff]   ;;  %v15471_v8 = vld [vmem:[%s16344_s25 + $0x308] ss:$12 sps:$4 sm:$0xff]  }
 0x309   : > { %5011 = vmatpush2.bf16.msra.mxu0 %v15435_v27  ;;  %v15468_v27 = vld [vmem:[%s16344_s25 + $0xd8] ss:$12 sps:$4 sm:$0xff]  }
 0x30a   : > { %v3926_v37 = vadd.f32 %v3920_v58, %v3890_v28  ;;  %v5924_v47 = vrot.slane %v4129_v20, 2  ;;  %v5923_v50 = vrot.slane %v4139_v52, 1  ;;  %5012 = vmatprep.subr.bf16.mxu0 %v15443_v59  ;;  %v4131_v49 = vrot.slane %v4129_v20, 1  ;;  %v15461_v58 = vld [vmem:[%s16344_s25 + $0x338] ss:$12 sps:$4 sm:$0xff]  }
 0x30b   : > { %v15472_v59 = vld [vmem:[%s16344_s25 + $0x248] ss:$12 sps:$4 sm:$0xff]   ;;  %v15475_v28 = vld [vmem:[%s16344_s25 + $0xc4] ss:$12 sps:$4 sm:$0xff]  }
 0x30c   : > { %v17241_v42 = vpack.c.bf16 %v3926_v37, %v3923_v15  ;;  %v17243_v56 = vor.u32 %v5924_v47, %v5923_v50  ;;  %v17269_v60 = vor.u32 %v4139_v52, %v4131_v49  ;;  %v15476_v20 = vld [vmem:[%s16344_s25 + $0x2f0] ss:$12 sps:$4 sm:$0xff]   ;;  %v15473_v52 = vld [vmem:[%s16344_s25 + $0xc0] ss:$12 sps:$4 sm:$0xff]   ;;  %v15482_v47 = vld [vmem:[%s16344_s25 + $0x218] ss:$12 sps:$4 sm:$0xff]  }
 0x30d   : > { %5013 = vmatpush2.bf16.msra.mxu0 %v15441_v43  ;;  %v15477_v15 = vld [vmem:[%s16344_s25 + $0x230] ss:$12 sps:$4 sm:$0xff]   ;;  %v15480_v37 = vld [vmem:[%s16344_s25 + $0x46c] ss:$12 sps:$4 sm:$0xff]   ;;  %v15485_v50 = vld [vmem:[%s16344_s25 + $0x454] ss:$12 sps:$4 sm:$0xff]  }
 0x30e   : > { %v4122_v48 = vshrl.u32 %v17241_v42, 16  ;;  %v4124_v18 = vshll.u32 %v17241_v42, 16  ;;  %5014 = vmatprep.subr.bf16.mxu0 %v15449_v29  ;;  %v15481_v43 = vld [vmem:[%s16344_s25 + $0x2d8] ss:$12 sps:$4 sm:$0xff]   ;;  %v15486_v29 = vld [vmem:[%s16344_s25 + $0x2c0] ss:$12 sps:$4 sm:$0xff]  }
 0x310   : > { %v4126_v25 = vrot.slane %v4124_v18, 1  ;;  %v5920_v53 = vrot.slane %v4122_v48, 1  ;;  %v5921_v33 = vrot.slane %v4124_v18, 2  ;;  %v15490_v18 = vld [vmem:[%s16344_s25 + $0x43c] ss:$12 sps:$4 sm:$0xff]  }
 0x311   : > { %5015 = vmatpush2.bf16.msra.mxu0 %v15447_v57  ;;  %v15483_v57 = vld [vmem:[%s16344_s25 + $0x450] ss:$12 sps:$4 sm:$0xff]  }
 0x312   : > { %v4127_v32 = vor.u32 %v4126_v25, %v4122_v48  ;;  %v5922_v22 = vor.u32 %v5921_v33, %v5920_v53  ;;  %5016 = vmatprep.subr.bf16.mxu0 %v15455_v7  ;;  %v15487_v48 = vld [vmem:[%s16344_s25 + $0x200] ss:$12 sps:$4 sm:$0xff]   ;;  %v15491_v7 = vld [vmem:[%s16344_s25 + $0x2a8] ss:$12 sps:$4 sm:$0xff]   ;;  %v17295_v25 = vrot.slane %v17174_v41, 1  ;;  %v5282_v33 = vrot.slane %v17162_v36, 1 }
 0x313   : > { %v15488_v53 = vld [vmem:[%s16344_s25 + $0x438] ss:$12 sps:$4 sm:$0xff]  }
 0x314   : > { %v17254_v35 = vsel %vm1420_vm2, %v4127_v32, %v4131_v49  ;;  %v17258_v12 = vsel %vm3235_vm3, %v5922_v22, %v17243_v56  ;;  %v15495_v32 = vld [vmem:[%s16344_s25 + $0x424] ss:$12 sps:$4 sm:$0xff]   ;;  %v15493_v22 = vld [vmem:[%s16344_s25 + $0x420] ss:$12 sps:$4 sm:$0xff]  }
 0x315   : > { %13467 = vmatmul.mubr.msk.bf16.vlgmr.msra.gmra.mxu1 %vm1790_vm4, %v17254_v35  ;;  %5017 = vmatpush2.bf16.msra.mxu0 %v15453_v26  ;;  %v15492_v26 = vld [vmem:[%s16344_s25 + $0x1e8] ss:$12 sps:$4 sm:$0xff]   ;;  %v15496_v49 = vld [vmem:[%s16344_s25 + $0x3b0] ss:$12 sps:$4 sm:$0xff]  }
 0x316   : > { %14436 = vmatpush3.bf16.msra.mxu1 %v15457_v10  ;;  %5018 = vmatprep.subr.bf16.mxu0 %v15460_v21  ;;  %v17305_v10 = vsel %vm2607_vm5, %v5282_v33, %v17295_v25  ;;  %v15499_v21 = vld [vmem:[%s16344_s25 + $0x40c] ss:$12 sps:$4 sm:$0xff]  }
 0x317   : > { %14437 = vmatprep.subr.bf16.mxu1 %v15461_v58  ;;  %4565 = vmatprep.mubr.bf16.mxu1 %v16305_v4  ;;  %v15500_v58 = vld [vmem:[%s16344_s25 + $0x398] ss:$12 sps:$4 sm:$0xff]  }
 0x318   : > { %v15542_v33 = vld [vmem:[%s16344_s25 + $0x98] ss:$12 sps:$4 sm:$0xff]  }
 0x319   : > { %5019 = vmatpush2.bf16.msra.mxu0 %v15458_v2  ;;  %v15497_v2 = vld [vmem:[%s16344_s25 + $0x408] ss:$12 sps:$4 sm:$0xff]  }
 0x31a   : > { %14438 = vmatpush3.bf16.msra.mxu1 %v15462_v23  ;;  %5020 = vmatprep.subr.bf16.mxu0 %v15465_v30  ;;  %v15503_v23 = vld [vmem:[%s16344_s25 + $0x3f4] ss:$12 sps:$4 sm:$0xff]  }
 0x31b   : > { %14439 = vmatprep.subr.bf16.mxu1 %v15466_v51  ;;  %v15504_v30 = vld [vmem:[%s16344_s25 + $0x380] ss:$12 sps:$4 sm:$0xff]   ;;  %v15501_v51 = vld [vmem:[%s16344_s25 + $0x3f0] ss:$12 sps:$4 sm:$0xff]  }
 0x31d   : > { %13468 = vmatmul.mubr.msk.bf16.gmra.mxu1 %vm1790_vm4, %v17269_v60  ;;  %5021 = vmatpush2.bf16.msra.mxu0 %v15463_v0  ;;  %v15508_v0 = vld [vmem:[%s16344_s25 + $0x368] ss:$12 sps:$4 sm:$0xff]  }
 0x31e   : > { %14440 = vmatpush3.bf16.msra.mxu1 %v15467_v38  ;;  %4606 = vmatprep.mubr.bf16.mxu1 %v17192_v34  ;;  %v15478_v34 = vld [vmem:[%s16344_s25 + $0x468] ss:$12 sps:$4 sm:$0xff]   ;;  %v15511_v38 = vld [vmem:[%s16344_s25 + $0x3c4] ss:$12 sps:$4 sm:$0xff]  }
 0x31f   : > { %5022 = vmatprep.subr.bf16.mxu0 %v15470_v17  ;;  %14441 = vmatprep.subr.bf16.mxu1 %v15471_v8  ;;  %v15514_v17 = vld [vmem:[%s16344_s25 + $0x1cc] ss:$12 sps:$4 sm:$0xff]  }
 0x320   : > { %v15509_v8 = vld [vmem:[%s16344_s25 + $0x3c0] ss:$12 sps:$4 sm:$0xff]  }
 0x321   : > { %5023 = vmatpush2.bf16.msra.mxu0 %v15468_v27  ;;  %v15517_v27 = vld [vmem:[%s16344_s25 + $0x52c] ss:$12 sps:$4 sm:$0xff]  }
 0x322   : > { %14442 = vmatpush3.bf16.msra.mxu1 %v15472_v59  ;;  %5024 = vmatprep.subr.bf16.mxu0 %v15475_v28  ;;  %v15520_v59 = vld [vmem:[%s16344_s25 + $0x1b4] ss:$12 sps:$4 sm:$0xff]   ;;  %v15518_v28 = vld [vmem:[%s16344_s25 + $0x1b0] ss:$12 sps:$4 sm:$0xff]  }
 0x323   : > { %14443 = vmatprep.subr.bf16.mxu1 %v15476_v20  ;;  %v15523_v20 = vld [vmem:[%s16344_s25 + $0x514] ss:$12 sps:$4 sm:$0xff]  }
 0x325   : > { %5025 = vmatpush2.bf16.msra.mxu0 %v15473_v52  ;;  %v15526_v52 = vld [vmem:[%s16344_s25 + $0x19c] ss:$12 sps:$4 sm:$0xff]  }
 0x326   : > { %14444 = vmatpush3.bf16.msra.mxu1 %v15477_v15  ;;  %5618 = vmatprep.subr.bf16.mxu0 %v15480_v37  ;;  %v15521_v15 = vld [vmem:[%s16344_s25 + $0x510] ss:$12 sps:$4 sm:$0xff]  }
 0x327   : > { %14445 = vmatprep.subr.bf16.mxu1 %v15481_v43  ;;  %v15529_v37 = vld [vmem:[%s16344_s25 + $0x4fc] ss:$12 sps:$4 sm:$0xff]   ;;  %v15532_v43 = vld [vmem:[%s16344_s25 + $0x184] ss:$12 sps:$4 sm:$0xff]  }
 0x328   : > { %5027 = vmatmul.mubr.bf16.vlgmr.msra.gmra.mxu0 %v17160_v16 }
 0x329   : > { %5036 = vmatprep.mubr.bf16.mxu0 %v17174_v41  ;;  %5619 = vmatpush1.bf16.msra.mxu0 %v15478_v34  ;;  %v15527_v34 = vld [vmem:[%s16344_s25 + $0x4f8] ss:$12 sps:$4 sm:$0xff]  }
 0x32a   : > { %14446 = vmatpush3.bf16.msra.mxu1 %v15482_v47  ;;  %5620 = vmatprep.subr.bf16.mxu0 %v15485_v50  ;;  %v15530_v47 = vld [vmem:[%s16344_s25 + $0x180] ss:$12 sps:$4 sm:$0xff]   ;;  %v15535_v50 = vld [vmem:[%s16344_s25 + $0x4e4] ss:$12 sps:$4 sm:$0xff]  }
 0x32b   : > { %14447 = vmatprep.subr.bf16.mxu1 %v15486_v29  ;;  %v15536_v29 = vld [vmem:[%s16344_s25 + $0x170] ss:$12 sps:$4 sm:$0xff]  }
 0x32d   : > { %5621 = vmatpush1.bf16.msra.mxu0 %v15483_v57  ;;  %v15533_v57 = vld [vmem:[%s16344_s25 + $0x4e0] ss:$12 sps:$4 sm:$0xff]  }
 0x32e   : > { %14448 = vmatpush3.bf16.msra.mxu1 %v15487_v48  ;;  %5622 = vmatprep.subr.bf16.mxu0 %v15490_v18  ;;  %v15537_v48 = vld [vmem:[%s16344_s25 + $0xb0] ss:$12 sps:$4 sm:$0xff]   ;;  %v15540_v18 = vld [vmem:[%s16344_s25 + $0x4cc] ss:$12 sps:$4 sm:$0xff]  }
 0x32f   : > { %14449 = vmatprep.subr.bf16.mxu1 %v15491_v7  ;;  %v15541_v7 = vld [vmem:[%s16344_s25 + $0x158] ss:$12 sps:$4 sm:$0xff]  }
 0x330   : > { %5037 = vmatmul.mubr.bf16.gmra.mxu0 %v17168_v14 }
 0x331   : > { %5623 = vmatpush1.bf16.msra.mxu0 %v15488_v53  ;;  %5650 = vmatprep.mubr.bf16.mxu0 %v17305_v10  ;;  %v15538_v53 = vld [vmem:[%s16344_s25 + $0x4c8] ss:$12 sps:$4 sm:$0xff]  }
 0x332   : > { %14450 = vmatpush3.bf16.msra.mxu1 %v15492_v26  ;;  %5624 = vmatprep.subr.bf16.mxu0 %v15495_v32  ;;  %v15545_v26 = vld [vmem:[%s16344_s25 + $0x4b4] ss:$12 sps:$4 sm:$0xff]  }
 0x333   : > { %14706 = vmatprep.subr.bf16.mxu1 %v15496_v49  ;;  %v15546_v32 = vld [vmem:[%s16344_s25 + $0x140] ss:$12 sps:$4 sm:$0xff]  }
 0x335   : > { %4607 = vmatmul.mubr.bf16.vlgmr.msra.gmra.mxu1 %v17199_v5  ;;  %5625 = vmatpush1.bf16.msra.mxu0 %v15493_v22  ;;  %v15507_v5 = vld [vmem:[%s16344_s25 + $0x3dc] ss:$12 sps:$4 sm:$0xff]   ;;  %v15547_v22 = vld [vmem:[%s16344_s25 + $0x80] ss:$12 sps:$4 sm:$0xff]  }
 0x336   : > { %4614 = vmatprep.mubr.bf16.mxu1 %v17194_v31  ;;  %14707 = vmatpush3.bf16.msra.mxu1 %v15496_v49  ;;  %v15505_v31 = vld [vmem:[%s16344_s25 + $0x3d8] ss:$12 sps:$4 sm:$0xff]   ;;  %v15543_v49 = vld [vmem:[%s16344_s25 + $0x4b0] ss:$12 sps:$4 sm:$0xff]  }
 0x337   : > { %5626 = vmatprep.subr.bf16.mxu0 %v15499_v21  ;;  %14708 = vmatprep.subr.bf16.mxu1 %v15500_v58  ;;  %v15550_v21 = vld [vmem:[%s16344_s25 + $0x49c] ss:$12 sps:$4 sm:$0xff]  }
 0x339   : > { %5627 = vmatpush1.bf16.msra.mxu0 %v15497_v2  ;;  %v15548_v2 = vld [vmem:[%s16344_s25 + $0x498] ss:$12 sps:$4 sm:$0xff]  }
 0x33a   : > { %14709 = vmatpush3.bf16.msra.mxu1 %v15500_v58  ;;  %5628 = vmatprep.subr.bf16.mxu0 %v15503_v23  ;;  %v15551_v58 = vld [vmem:[%s16344_s25 + $0x128] ss:$12 sps:$4 sm:$0xff]  }
 0x33b   : > { %14710 = vmatprep.subr.bf16.mxu1 %v15504_v30  ;;  %v15552_v23 = vld [vmem:[%s16344_s25 + $0x68] ss:$12 sps:$4 sm:$0xff]  }
 0x33d   : > { %4615 = vmatmul.mubr.bf16.gmra.mxu1 %v17208_v24  ;;  %5629 = vmatpush1.bf16.msra.mxu0 %v15501_v51  ;;  %v15512_v24 = vld [vmem:[%s16344_s25 + $0x1c8] ss:$12 sps:$4 sm:$0xff]   ;;  %v15556_v51 = vld [vmem:[%s16344_s25 + $0x110] ss:$12 sps:$4 sm:$0xff]  }
 0x33e   : > { %14711 = vmatpush3.bf16.msra.mxu1 %v15504_v30  ;;  %14714 = vmatprep.mubr.msk.bf16.mxu1 %vm1790_vm4, %v17254_v35  ;;  %v15515_v35 = vld [vmem:[%s16344_s25 + $0x528] ss:$12 sps:$4 sm:$0xff]   ;;  %v15555_v30 = vld [vmem:[%s16344_s25 + $0x484] ss:$12 sps:$4 sm:$0xff]  }
 0x33f   : > { %5630 = vmatprep.subr.bf16.mxu0 %v15507_v5  ;;  %14712 = vmatprep.subr.bf16.mxu1 %v15508_v0  ;;  %v15553_v5 = vld [vmem:[%s16344_s25 + $0x480] ss:$12 sps:$4 sm:$0xff]  }
 0x341   : > { %5631 = vmatpush1.bf16.msra.mxu0 %v15505_v31  ;;  %v15560_v31 = vld [vmem:[%s16344_s25 + $0x64c] ss:$12 sps:$4 sm:$0xff]  }
 0x342   : > { %14713 = vmatpush3.bf16.msra.mxu1 %v15508_v0  ;;  %5632 = vmatprep.subr.bf16.mxu0 %v15511_v38  ;;  %v15557_v0 = vld [vmem:[%s16344_s25 + $0x50] ss:$12 sps:$4 sm:$0xff]   ;;  %v17370_v38 = vrot.slane %v17168_v14, 1 }
 0x343   : > { %5053 = vmatprep.subr.bf16.mxu1 %v15514_v17  ;;  %v5279_v17 = vrot.slane %v17160_v16, 1 }
 0x345   : > { %14715 = vmatmul.mubr.msk.bf16.vlgmr.msra.gmra.mxu1 %vm1790_vm4, %v17269_v60  ;;  %5633 = vmatpush1.bf16.msra.mxu0 %v15509_v8  ;;  %v15524_v60 = vld [vmem:[%s16344_s25 + $0x198] ss:$12 sps:$4 sm:$0xff]   ;;  %v15558_v8 = vld [vmem:[%s16344_s25 + $0x648] ss:$12 sps:$4 sm:$0xff]  }
 0x346   : > { %5054 = vmatpush1.bf16.msra.mxu1 %v15512_v24  ;;  %5634 = vmatprep.subr.bf16.mxu0 %v15517_v27  ;;  %v15562_v24 = vld [vmem:[%s16344_s25 + $0x38] ss:$12 sps:$4 sm:$0xff]   ;;  %v15565_v27 = vld [vmem:[%s16344_s25 + $0x634] ss:$12 sps:$4 sm:$0xff]  }
 0x347   : > { %5055 = vmatprep.subr.bf16.mxu1 %v15520_v59  ;;  %5077 = vmatprep.mubr.bf16.mxu1 %v16305_v4  ;;  %v17379_v59 = vsel %vm2607_vm5, %v5279_v17, %v17370_v38  ;;  %v5285_v17 = vrot.slane %v17241_v42, 1 }
 0x349   : > { %5635 = vmatpush2.bf16.msra.mxu0 %v15515_v35  ;;  %v15566_v35 = vld [vmem:[%s16344_s25 + $0xe0] ss:$12 sps:$4 sm:$0xff]  }
 0x34a   : > { %5056 = vmatpush1.bf16.msra.mxu1 %v15518_v28  ;;  %5636 = vmatprep.subr.bf16.mxu0 %v15523_v20  ;;  %v15563_v28 = vld [vmem:[%s16344_s25 + $0x630] ss:$12 sps:$4 sm:$0xff]   ;;  %v15567_v20 = vld [vmem:[%s16344_s25 + $0x20] ss:$12 sps:$4 sm:$0xff]  }
 0x34b   : > { %5057 = vmatprep.subr.bf16.mxu1 %v15526_v52  ;;  %v15570_v52 = vld [vmem:[%s16344_s25 + $0x61c] ss:$12 sps:$4 sm:$0xff]  }
 0x34d   : > { %5637 = vmatpush2.bf16.msra.mxu0 %v15521_v15  ;;  %v15571_v15 = vld [vmem:[%s16344_s25 + $0xc8] ss:$12 sps:$4 sm:$0xff]  }
 0x34e   : > { %5058 = vmatpush1.bf16.msra.mxu1 %v15524_v60  ;;  %5638 = vmatprep.subr.bf16.mxu0 %v15529_v37  ;;  %v15568_v60 = vld [vmem:[%s16344_s25 + $0x618] ss:$12 sps:$4 sm:$0xff]   ;;  %v15572_v37 = vld [vmem:[%s16344_s25 + $0x8] ss:$12 sps:$4 sm:$0xff]  }
 0x34f   : > { %5059 = vmatprep.subr.bf16.mxu1 %v15532_v43  ;;  %v15575_v43 = vld [vmem:[%s16344_s25 + $0x604] ss:$12 sps:$4 sm:$0xff]  }
 0x351   : > { %5639 = vmatpush2.bf16.msra.mxu0 %v15527_v34  ;;  %v15576_v34 = vld [vmem:[%s16344_s25 + $0x1d0] ss:$12 sps:$4 sm:$0xff]  }
 0x352   : > { %5060 = vmatpush1.bf16.msra.mxu1 %v15530_v47  ;;  %5640 = vmatprep.subr.bf16.mxu0 %v15535_v50  ;;  %v17398_v47 = vsel %vm3235_vm3, %v5915_v46, %v17201_v54  ;;  %v15573_v50 = vld [vmem:[%s16344_s25 + $0x600] ss:$12 sps:$4 sm:$0xff]  }
 0x353   : > { %14469 = vmatprep.subr.bf16.mxu1 %v15536_v29  ;;  %v15579_v29 = vld [vmem:[%s16344_s25 + $0x5ec] ss:$12 sps:$4 sm:$0xff]  }
 0x354   : > { %v15584_v46 = vld [vmem:[%s16344_s25 + $0x1a0] ss:$12 sps:$4 sm:$0xff]  }
 0x355   : > { %13531 = vmatmul.mubr.msk.bf16.vlgmr.msra.gmra.mxu1 %vm1790_vm4, %v17241_v42  ;;  %5641 = vmatpush2.bf16.msra.mxu0 %v15533_v57  ;;  %v15580_v57 = vld [vmem:[%s16344_s25 + $0x1b8] ss:$12 sps:$4 sm:$0xff]  }
 0x356   : > { %14470 = vmatpush3.bf16.msra.mxu1 %v15537_v48  ;;  %5642 = vmatprep.subr.bf16.mxu0 %v15540_v18  ;;  %v15581_v48 = vld [vmem:[%s16344_s25 + $0x5d0] ss:$12 sps:$4 sm:$0xff]   ;;  %v15588_v18 = vld [vmem:[%s16344_s25 + $0x188] ss:$12 sps:$4 sm:$0xff]  }
 0x357   : > { %14471 = vmatprep.subr.bf16.mxu1 %v15541_v7  ;;  %5087 = vmatprep.mubr.bf16.mxu1 %v16305_v4  ;;  %v15591_v7 = vld [vmem:[%s16344_s25 + $0x5a4] ss:$12 sps:$4 sm:$0xff]  }
 0x359   : > { %5643 = vmatpush2.bf16.msra.mxu0 %v15538_v53  ;;  %v15594_v53 = vld [vmem:[%s16344_s25 + $0x58c] ss:$12 sps:$4 sm:$0xff]  }
 0x35a   : > { %14472 = vmatpush3.bf16.msra.mxu1 %v15542_v33  ;;  %5644 = vmatprep.subr.bf16.mxu0 %v15545_v26  ;;  %v15589_v33 = vld [vmem:[%s16344_s25 + $0x5a0] ss:$12 sps:$4 sm:$0xff]  }
 0x35b   : > { %14473 = vmatprep.subr.bf16.mxu1 %v15546_v32  ;;  %v15597_v26 = vld [vmem:[%s16344_s25 + $0x70c] ss:$12 sps:$4 sm:$0xff]   ;;  %v15600_v32 = vld [vmem:[%s16344_s25 + $0x574] ss:$12 sps:$4 sm:$0xff]  }
 0x35d   : > { %13532 = vmatmul.mubr.msk.bf16.gmra.mxu1 %vm1790_vm4, %v17233_v44  ;;  %5645 = vmatpush2.bf16.msra.mxu0 %v15543_v49  ;;  %v15595_v49 = vld [vmem:[%s16344_s25 + $0x708] ss:$12 sps:$4 sm:$0xff]  }
 0x35e   : > { %14474 = vmatpush3.bf16.msra.mxu1 %v15547_v22  ;;  %5128 = vmatprep.mubr.bf16.mxu1 %v17162_v36  ;;  %v15561_v36 = vld [vmem:[%s16344_s25 + $0xf8] ss:$12 sps:$4 sm:$0xff]   ;;  %v15598_v22 = vld [vmem:[%s16344_s25 + $0x570] ss:$12 sps:$4 sm:$0xff]  }
 0x35f   : > { %5646 = vmatprep.subr.bf16.mxu0 %v15550_v21  ;;  %14475 = vmatprep.subr.bf16.mxu1 %v15551_v58  ;;  %v15603_v21 = vld [vmem:[%s16344_s25 + $0x6f4] ss:$12 sps:$4 sm:$0xff]   ;;  %v15606_v58 = vld [vmem:[%s16344_s25 + $0x55c] ss:$12 sps:$4 sm:$0xff]  }
 0x361   : > { %5647 = vmatpush2.bf16.msra.mxu0 %v15548_v2  ;;  %v15601_v2 = vld [vmem:[%s16344_s25 + $0x6f0] ss:$12 sps:$4 sm:$0xff]  }
 0x362   : > { %14476 = vmatpush3.bf16.msra.mxu1 %v15552_v23  ;;  %5648 = vmatprep.subr.bf16.mxu0 %v15555_v30  ;;  %v15604_v23 = vld [vmem:[%s16344_s25 + $0x558] ss:$12 sps:$4 sm:$0xff]   ;;  %v15609_v30 = vld [vmem:[%s16344_s25 + $0x6dc] ss:$12 sps:$4 sm:$0xff]  }
 0x363   : > { %14477 = vmatprep.subr.bf16.mxu1 %v15556_v51  ;;  %v15612_v51 = vld [vmem:[%s16344_s25 + $0x544] ss:$12 sps:$4 sm:$0xff]  }
 0x365   : > { %5649 = vmatpush2.bf16.msra.mxu0 %v15553_v5  ;;  %v15607_v5 = vld [vmem:[%s16344_s25 + $0x6d8] ss:$12 sps:$4 sm:$0xff]  }
 0x366   : > { %14478 = vmatpush3.bf16.msra.mxu1 %v15557_v0  ;;  %6257 = vmatprep.subr.bf16.mxu0 %v15560_v31  ;;  %v15610_v0 = vld [vmem:[%s16344_s25 + $0x540] ss:$12 sps:$4 sm:$0xff]   ;;  %v15615_v31 = vld [vmem:[%s16344_s25 + $0x6c4] ss:$12 sps:$4 sm:$0xff]  }
 0x367   : > { %14479 = vmatprep.subr.bf16.mxu1 %v15561_v36  ;;  %v15616_v36 = vld [vmem:[%s16344_s25 + $0x530] ss:$12 sps:$4 sm:$0xff]  }
 0x368   : > { %5651 = vmatmul.mubr.bf16.vlgmr.msra.gmra.mxu0 %v17379_v59 }
 0x369   : > { %5660 = vmatprep.mubr.bf16.mxu0 %v17295_v25  ;;  %6258 = vmatpush1.bf16.msra.mxu0 %v15558_v8  ;;  %v15613_v8 = vld [vmem:[%s16344_s25 + $0x6c0] ss:$12 sps:$4 sm:$0xff]  }
 0x36a   : > { %14480 = vmatpush3.bf16.msra.mxu1 %v15562_v24  ;;  %6259 = vmatprep.subr.bf16.mxu0 %v15565_v27  ;;  %v17440_v24 = vrot.slane %v17233_v44, 1  ;;  %v15617_v27 = vld [vmem:[%s16344_s25 + $0x470] ss:$12 sps:$4 sm:$0xff]  }
 0x36b   : > { %14481 = vmatprep.subr.bf16.mxu1 %v15566_v35  ;;  %v15620_v35 = vld [vmem:[%s16344_s25 + $0x6ac] ss:$12 sps:$4 sm:$0xff]  }
 0x36d   : > { %6260 = vmatpush1.bf16.msra.mxu0 %v15563_v28  ;;  %v15621_v28 = vld [vmem:[%s16344_s25 + $0x518] ss:$12 sps:$4 sm:$0xff]  }
 0x36e   : > { %14482 = vmatpush3.bf16.msra.mxu1 %v15567_v20  ;;  %6261 = vmatprep.subr.bf16.mxu0 %v15570_v52  ;;  %v17447_v20 = vsel %vm2607_vm5, %v5285_v17, %v17440_v24  ;;  %v15625_v52 = vld [vmem:[%s16344_s25 + $0x694] ss:$12 sps:$4 sm:$0xff]   ;;  %v15662_v17 = vld [vmem:[%s16344_s25 + $0x6f8] ss:$12 sps:$4 sm:$0xff]  }
 0x36f   : > { %14483 = vmatprep.subr.bf16.mxu1 %v15571_v15  ;;  %v15626_v15 = vld [vmem:[%s16344_s25 + $0x500] ss:$12 sps:$4 sm:$0xff]  }
 0x370   : > { %5661 = vmatmul.mubr.bf16.gmra.mxu0 %v17370_v38 }
 0x371   : > { %6262 = vmatpush1.bf16.msra.mxu0 %v15568_v60  ;;  %6289 = vmatprep.mubr.bf16.mxu0 %v17398_v47  ;;  %v15623_v60 = vld [vmem:[%s16344_s25 + $0x690] ss:$12 sps:$4 sm:$0xff]  }
 0x372   : > { %14484 = vmatpush3.bf16.msra.mxu1 %v15572_v37  ;;  %6263 = vmatprep.subr.bf16.mxu0 %v15575_v43  ;;  %v15627_v37 = vld [vmem:[%s16344_s25 + $0x440] ss:$12 sps:$4 sm:$0xff]   ;;  %v15630_v43 = vld [vmem:[%s16344_s25 + $0x67c] ss:$12 sps:$4 sm:$0xff]  }
 0x373   : > { %14718 = vmatprep.subr.bf16.mxu1 %v15576_v34 }
 0x375   : > { %5129 = vmatmul.mubr.bf16.vlgmr.msra.gmra.mxu1 %v17160_v16  ;;  %6264 = vmatpush1.bf16.msra.mxu0 %v15573_v50  ;;  %v15587_v16 = vld [vmem:[%s16344_s25 + $0x5bc] ss:$12 sps:$4 sm:$0xff]   ;;  %v15628_v50 = vld [vmem:[%s16344_s25 + $0x678] ss:$12 sps:$4 sm:$0xff]  }
 0x376   : > { %5136 = vmatprep.mubr.bf16.mxu1 %v17174_v41  ;;  %14719 = vmatpush3.bf16.msra.mxu1 %v15576_v34  ;;  %v15585_v41 = vld [vmem:[%s16344_s25 + $0x5b8] ss:$12 sps:$4 sm:$0xff]   ;;  %v15631_v34 = vld [vmem:[%s16344_s25 + $0x4e8] ss:$12 sps:$4 sm:$0xff]  }
 0x377   : > { %6265 = vmatprep.subr.bf16.mxu0 %v15579_v29  ;;  %14720 = vmatprep.subr.bf16.mxu1 %v15580_v57  ;;  %v15632_v29 = vld [vmem:[%s16344_s25 + $0x428] ss:$12 sps:$4 sm:$0xff]  }
 0x379   : > { %6266 = vmatpush1.bf16.msra.mxu0 %v15577_v39  ;;  %v15636_v39 = vld [vmem:[%s16344_s25 + $0x4d0] ss:$12 sps:$4 sm:$0xff]  }
 0x37a   : > { %14721 = vmatpush3.bf16.msra.mxu1 %v15580_v57  ;;  %6267 = vmatprep.subr.bf16.mxu0 %v15583_v40  ;;  %v15635_v57 = vld [vmem:[%s16344_s25 + $0x664] ss:$12 sps:$4 sm:$0xff]   ;;  %v15633_v40 = vld [vmem:[%s16344_s25 + $0x660] ss:$12 sps:$4 sm:$0xff]  }
 0x37b   : > { %14722 = vmatprep.subr.bf16.mxu1 %v15584_v46 }
 0x37d   : > { %5137 = vmatmul.mubr.bf16.gmra.mxu1 %v17168_v14  ;;  %6268 = vmatpush1.bf16.msra.mxu0 %v15581_v48  ;;  %v15592_v14 = vld [vmem:[%s16344_s25 + $0x588] ss:$12 sps:$4 sm:$0xff]   ;;  %v15638_v48 = vld [vmem:[%s16344_s25 + $0x4b8] ss:$12 sps:$4 sm:$0xff]  }
 0x37e   : > { %14723 = vmatpush3.bf16.msra.mxu1 %v15584_v46  ;;  %14726 = vmatprep.mubr.msk.bf16.mxu1 %vm1790_vm4, %v17241_v42  ;;  %v15618_v42 = vld [vmem:[%s16344_s25 + $0x6a8] ss:$12 sps:$4 sm:$0xff]   ;;  %v15637_v46 = vld [vmem:[%s16344_s25 + $0x410] ss:$12 sps:$4 sm:$0xff]  }
 0x37f   : > { %6269 = vmatprep.subr.bf16.mxu0 %v15587_v16  ;;  %14724 = vmatprep.subr.bf16.mxu1 %v15588_v18  ;;  %v15639_v16 = vld [vmem:[%s16344_s25 + $0x3f8] ss:$12 sps:$4 sm:$0xff]  }
 0x381   : > { %6270 = vmatpush1.bf16.msra.mxu0 %v15585_v41 }
 0x382   : > { %14725 = vmatpush3.bf16.msra.mxu1 %v15588_v18  ;;  %6271 = vmatprep.subr.bf16.mxu0 %v15591_v7  ;;  %v15640_v18 = vld [vmem:[%s16344_s25 + $0x4a0] ss:$12 sps:$4 sm:$0xff]  }
 0x383   : > { %5677 = vmatprep.subr.bf16.mxu1 %v15594_v53  ;;  %v15641_v53 = vld [vmem:[%s16344_s25 + $0x3e0] ss:$12 sps:$4 sm:$0xff]  }
 0x385   : > { %14727 = vmatmul.mubr.msk.bf16.vlgmr.msra.gmra.mxu1 %vm1790_vm4, %v17233_v44  ;;  %6272 = vmatpush1.bf16.msra.mxu0 %v15589_v33  ;;  %v15622_v44 = vld [vmem:[%s16344_s25 + $0x458] ss:$12 sps:$4 sm:$0xff]   ;;  %v15642_v33 = vld [vmem:[%s16344_s25 + $0x488] ss:$12 sps:$4 sm:$0xff]  }
 0x386   : > { %5678 = vmatpush1.bf16.msra.mxu1 %v15592_v14  ;;  %6273 = vmatprep.subr.bf16.mxu0 %v15597_v26 }
 0x387   : > { %5679 = vmatprep.subr.bf16.mxu1 %v15600_v32  ;;  %5701 = vmatprep.mubr.bf16.mxu1 %v16305_v4 }
 0x389   : > { %6274 = vmatpush2.bf16.msra.mxu0 %v15595_v49  ;;  %v15645_v49 = vld [vmem:[%s16344_s25 + $0x578] ss:$12 sps:$4 sm:$0xff]  }
 0x38a   : > { %5680 = vmatpush1.bf16.msra.mxu1 %v15598_v22  ;;  %6275 = vmatprep.subr.bf16.mxu0 %v15603_v21 }
 0x38b   : > { %5681 = vmatprep.subr.bf16.mxu1 %v15606_v58  ;;  %v15646_v58 = vld [vmem:[%s16344_s25 + $0x560] ss:$12 sps:$4 sm:$0xff]  }
 0x38d   : > { %6276 = vmatpush2.bf16.msra.mxu0 %v15601_v2  ;;  %v15647_v2 = vld [vmem:[%s16344_s25 + $0x548] ss:$12 sps:$4 sm:$0xff]  }
 0x38e   : > { %5682 = vmatpush1.bf16.msra.mxu1 %v15604_v23  ;;  %6277 = vmatprep.subr.bf16.mxu0 %v15609_v30  ;;  %v15653_v23 = vld [vmem:[%s16344_s25 + $0x754] ss:$12 sps:$4 sm:$0xff]   ;;  %v15656_v30 = vld [vmem:[%s16344_s25 + $0x73c] ss:$12 sps:$4 sm:$0xff]  }
 0x38f   : > { %5683 = vmatprep.subr.bf16.mxu1 %v15612_v51  ;;  %v15654_v51 = vld [vmem:[%s16344_s25 + $0x738] ss:$12 sps:$4 sm:$0xff]  }
 0x391   : > { %6278 = vmatpush2.bf16.msra.mxu0 %v15607_v5  ;;  %v15659_v5 = vld [vmem:[%s16344_s25 + $0x724] ss:$12 sps:$4 sm:$0xff]  }
 0x392   : > { %5684 = vmatpush1.bf16.msra.mxu1 %v15610_v0  ;;  %6279 = vmatprep.subr.bf16.mxu0 %v15615_v31  ;;  %v15657_v0 = vld [vmem:[%s16344_s25 + $0x720] ss:$12 sps:$4 sm:$0xff]   ;;  %v15660_v31 = vld [vmem:[%s16344_s25 + $0x710] ss:$12 sps:$4 sm:$0xff]  }
 0x393   : > { %14503 = vmatprep.subr.bf16.mxu1 %v15616_v36  ;;  %v15661_v36 = vld [vmem:[%s16344_s25 + $0x650] ss:$12 sps:$4 sm:$0xff]  }
 0x395   : > { %13675 = vmatmul.mubr.msk.bf16.vlgmr.msra.gmra.mxu1 %vm1790_vm4, %v17447_v20  ;;  %6280 = vmatpush2.bf16.msra.mxu0 %v15613_v8 }
 0x396   : > { %14504 = vmatpush3.bf16.msra.mxu1 %v15617_v27  ;;  %6281 = vmatprep.subr.bf16.mxu0 %v15620_v35  ;;  %v15663_v35 = vld [vmem:[%s16344_s25 + $0x638] ss:$12 sps:$4 sm:$0xff]  }
 0x397   : > { %14505 = vmatprep.subr.bf16.mxu1 %v15621_v28  ;;  %5711 = vmatprep.mubr.bf16.mxu1 %v16305_v4  ;;  %v15664_v28 = vld [vmem:[%s16344_s25 + $0x6e0] ss:$12 sps:$4 sm:$0xff]  }
 0x399   : > { %6282 = vmatpush2.bf16.msra.mxu0 %v15618_v42 }
 0x39a   : > { %14506 = vmatpush3.bf16.msra.mxu1 %v15622_v44  ;;  %6283 = vmatprep.subr.bf16.mxu0 %v15625_v52  ;;  %v15665_v52 = vld [vmem:[%s16344_s25 + $0x620] ss:$12 sps:$4 sm:$0xff]  }
 0x39b   : > { %14507 = vmatprep.subr.bf16.mxu1 %v15626_v15  ;;  %v15666_v15 = vld [vmem:[%s16344_s25 + $0x6c8] ss:$12 sps:$4 sm:$0xff]  }
 0x39d   : > { %13676 = vmatmul.mubr.msk.bf16.gmra.mxu1 %vm1790_vm4, %v17440_v24  ;;  %6284 = vmatpush2.bf16.msra.mxu0 %v15623_v60 }
 0x39e   : > { %14508 = vmatpush3.bf16.msra.mxu1 %v15627_v37  ;;  %5752 = vmatprep.mubr.bf16.mxu1 %v17305_v10  ;;  %v17476_v10 = vsel %vm3235_vm3, %v5908_v45, %v17189_v55  ;;  %v15644_v45 = vld [vmem:[%s16344_s25 + $0x590] ss:$12 sps:$4 sm:$0xff]  }
 0x39f   : > { %6285 = vmatprep.subr.bf16.mxu0 %v15630_v43  ;;  %14509 = vmatprep.subr.bf16.mxu1 %v15631_v34  ;;  %v15667_v34 = vld [vmem:[%s16344_s25 + $0x608] ss:$12 sps:$4 sm:$0xff]  }
 0x3a1   : > { %6286 = vmatpush2.bf16.msra.mxu0 %v15628_v50  ;;  %v15668_v50 = vld [vmem:[%s16344_s25 + $0x6b0] ss:$12 sps:$4 sm:$0xff]  }
 0x3a2   : > { %14510 = vmatpush3.bf16.msra.mxu1 %v15632_v29  ;;  %6287 = vmatprep.subr.bf16.mxu0 %v15635_v57 }
 0x3a3   : > { %14511 = vmatprep.subr.bf16.mxu1 %v15636_v39  ;;  %v15669_v39 = vld [vmem:[%s16344_s25 + $0x5f0] ss:$12 sps:$4 sm:$0xff]  }
 0x3a5   : > { %6288 = vmatpush2.bf16.msra.mxu0 %v15633_v40  ;;  %v15670_v40 = vld [vmem:[%s16344_s25 + $0x698] ss:$12 sps:$4 sm:$0xff]  }
 0x3a6   : > { %14512 = vmatpush3.bf16.msra.mxu1 %v15637_v46  ;;  %v15671_v46 = vld [vmem:[%s16344_s25 + $0x5d8] ss:$12 sps:$4 sm:$0xff]  }
 0x3a7   : > { %14513 = vmatprep.subr.bf16.mxu1 %v15638_v48  ;;  %v15672_v48 = vld [vmem:[%s16344_s25 + $0x680] ss:$12 sps:$4 sm:$0xff]  }
 0x3a8   : > { %6290 = vmatmul.mubr.bf16.vlgmr.msra.gmra.mxu0 %v17476_v10  ;;  %v4506_v41 = vpop.f32.mrf.mxu0 }
 0x3a9   : > { %6299 = vmatprep.mubr.bf16.mxu0 %v17201_v54 }
 0x3aa   : > { %14514 = vmatpush3.bf16.msra.mxu1 %v15639_v16  ;;  %v17481_v7 = vpop.f32.mrf.mxu0 }
 0x3ab   : > { %14515 = vmatprep.subr.bf16.mxu1 %v15640_v18 }
 0x3ac   : > { %v4510_v14 = vpop.f32.mrf.mxu0 }
 0x3ae   : > { %14516 = vmatpush3.bf16.msra.mxu1 %v15641_v53  ;;  %v17485_v19 = vpop.f32.mrf.mxu0  ;;  %v15680_v53 = vld [vmem:[%s19457_s3 + $0x70] ss:$8 sps:$4 sm:$0xff]  }
 0x3af   : > { %14517 = vmatprep.subr.bf16.mxu1 %v15642_v33  ;;  %v15682_v33 = vld [vmem:[%s19457_s3 + $0x74] ss:$8 sps:$4 sm:$0xff]  }
 0x3b0   : > { %6300 = vmatmul.mubr.bf16.gmra.mxu0 %v17189_v55  ;;  %v4516_v26 = vpop.f32.mrf.mxu0  ;;  %6857 = vmatprep.subr.bf16.mxu0 %v15682_v33  ;;  %v15707_v33 = vld [vmem:[%s19457_s3 + $0xe0] ss:$8 sps:$4 sm:$0xff]  }
 0x3b1   : > { %6858 = vmatpush1.bf16.msra.mxu0 %v15680_v53  ;;  %v15706_v53 = vld [vmem:[%s19457_s3 + $0xf4] ss:$8 sps:$4 sm:$0xff]  }
 0x3b2   : > { %14518 = vmatpush3.bf16.msra.mxu1 %v15643_v11  ;;  %v17490_v32 = vpop.f32.mrf.mxu0 }
 0x3b3   : > { %14730 = vmatprep.subr.bf16.mxu1 %v15644_v45 }
 0x3b4   : > { %v4520_v22 = vpop.f32.mrf.mxu0 }
 0x3b5   : > { %5753 = vmatmul.mubr.bf16.vlgmr.msra.gmra.mxu1 %v17379_v59  ;;  %v15648_v59 = vld [vmem:[%s16344_s25 + $0x768] ss:$12 sps:$4 sm:$0xff]  }
 0x3b6   : > { %5760 = vmatprep.mubr.bf16.mxu1 %v17295_v25  ;;  %14731 = vmatpush3.bf16.msra.mxu1 %v15644_v45  ;;  %v4521_v21 = vpop.f32.mrf.mxu0  ;;  %v15650_v25 = vld [vmem:[%s16344_s25 + $0x76c] ss:$12 sps:$4 sm:$0xff]   ;;  %v15683_v22 = vld [vmem:[%s19457_s3 + $0x60] ss:$8 sps:$4 sm:$0xff]  }
 0x3b7   : > { %14732 = vmatprep.subr.bf16.mxu1 %v15645_v49  ;;  %v15685_v21 = vld [vmem:[%s19457_s3 + $0x64] ss:$8 sps:$4 sm:$0xff]  }
 0x3b8   : > { %6859 = vmatprep.subr.bf16.mxu0 %v15685_v21  ;;  %v15710_v21 = vld [vmem:[%s19457_s3 + $0xd0] ss:$8 sps:$4 sm:$0xff]  }
 0x3b9   : > { %6860 = vmatpush1.bf16.msra.mxu0 %v15683_v22 }
 0x3ba   : > { %14733 = vmatpush3.bf16.msra.mxu1 %v15645_v49  ;;  %v15675_v49 = vld [vmem:[%s16344_s25 + $0x5a8] ss:$12 sps:$4 sm:$0xff]  }
 0x3bb   : > { %14734 = vmatprep.subr.bf16.mxu1 %v15646_v58 }
 0x3bd   : > { %5761 = vmatmul.mubr.bf16.gmra.mxu1 %v17370_v38  ;;  %v15651_v38 = vld [vmem:[%s16344_s25 + $0x750] ss:$12 sps:$4 sm:$0xff]  }
 0x3be   : > { %14735 = vmatpush3.bf16.msra.mxu1 %v15646_v58  ;;  %14738 = vmatprep.mubr.msk.bf16.mxu1 %vm1790_vm4, %v17447_v20  ;;  %v15676_v58 = vld [vmem:[%s16344_s25 + $0x770] ss:$12 sps:$4 sm:$0xff]  }
 0x3bf   : > { %14736 = vmatprep.subr.bf16.mxu1 %v15647_v2 }
 0x3c2   : > { %14737 = vmatpush3.bf16.msra.mxu1 %v15647_v2 }
 0x3c3   : > { %6316 = vmatprep.subr.bf16.mxu1 %v15650_v25 }
 0x3c5   : > { %14739 = vmatmul.mubr.msk.bf16.vlgmr.msra.gmra.mxu1 %vm1790_vm4, %v17440_v24 }
 0x3c6   : > { %6317 = vmatpush1.bf16.msra.mxu1 %v15648_v59  ;;  %6340 = vmatprep.mubr.bf16.mxu1 %v16305_v4 }
 0x3c7   : > { %6318 = vmatprep.subr.bf16.mxu1 %v15653_v23  ;;  %v15686_v23 = vld [vmem:[%s19457_s3 + $0x50] ss:$8 sps:$4 sm:$0xff]  }
 0x3ca   : > { %6319 = vmatpush1.bf16.msra.mxu1 %v15651_v38  ;;  %v15688_v38 = vld [vmem:[%s19457_s3 + $0x54] ss:$8 sps:$4 sm:$0xff]  }
 0x3cb   : > { %6320 = vmatprep.subr.bf16.mxu1 %v15656_v30  ;;  %v15677_v30 = vld [vmem:[%s16344_s25 + $0x758] ss:$12 sps:$4 sm:$0xff]   ;;  %6861 = vmatprep.subr.bf16.mxu0 %v15688_v38 }
 0x3cc   : > { %6862 = vmatpush1.bf16.msra.mxu0 %v15686_v23 }
 0x3ce   : > { %6321 = vmatpush1.bf16.msra.mxu1 %v15654_v51 }
 0x3cf   : > { %6322 = vmatprep.subr.bf16.mxu1 %v15659_v5 }
 0x3d2   : > { %6323 = vmatpush1.bf16.msra.mxu1 %v15657_v0 }
 0x3d3   : > { %14537 = vmatprep.subr.bf16.mxu1 %v15660_v31 }
 0x3d5   : > { %v4557_v8 = vpop.f32.mrf.mxu1  ;;  %13819 = vmatmul.mubr.msk.bf16.vlgmr.msra.gmra.mxu1 %vm1790_vm4, %v17258_v12 }
 0x3d6   : > { %v4558_v24 = vadd.f32 %v4557_v8, %v4506_v41  ;;  %14538 = vmatpush3.bf16.msra.mxu1 %v15661_v36  ;;  %6350 = vmatprep.mubr.bf16.mxu1 %v16305_v4  ;;  %v15673_v41 = vld [vmem:[%s16344_s25 + $0x5c0] ss:$12 sps:$4 sm:$0xff]  }
 0x3d7   : > { %v17516_v27 = vpop.f32.mrf.mxu1  ;;  %14539 = vmatprep.subr.bf16.mxu1 %v15662_v17  ;;  %v15678_v36 = vld [vmem:[%s16344_s25 + $0x740] ss:$12 sps:$4 sm:$0xff]  }
 0x3d8   : > { %v15689_v8 = vld [vmem:[%s19457_s3 + $0x40] ss:$8 sps:$4 sm:$0xff]  }
 0x3d9   : > { %v4561_v20 = vpop.f32.mrf.mxu1 }
 0x3da   : > { %v4562_v42 = vadd.f32 %v4561_v20, %v4510_v14  ;;  %14540 = vmatpush3.bf16.msra.mxu1 %v15663_v35  ;;  %v15674_v14 = vld [vmem:[%s16344_s25 + $0x668] ss:$12 sps:$4 sm:$0xff]  }
 0x3db   : > { %v17521_v44 = vpop.f32.mrf.mxu1  ;;  %14541 = vmatprep.subr.bf16.mxu1 %v15664_v28  ;;  %v15679_v28 = vld [vmem:[%s16344_s25 + $0x728] ss:$12 sps:$4 sm:$0xff]  }
 0x3dc   : > { %v15694_v20 = vld [vmem:[%s19457_s3 + $0x34] ss:$8 sps:$4 sm:$0xff]  }
 0x3dd   : > { %v4567_v60 = vpop.f32.mrf.mxu1  ;;  %13820 = vmatmul.mubr.msk.bf16.gmra.mxu1 %vm1790_vm4, %v17243_v56 }
 0x3de   : > { %v4568_v37 = vadd.f32 %v4567_v60, %v4516_v26  ;;  %14542 = vmatpush3.bf16.msra.mxu1 %v15665_v52  ;;  %6391 = vmatprep.mubr.bf16.mxu1 %v17398_v47  ;;  %v15695_v60 = vld [vmem:[%s19457_s3 + $0x20] ss:$8 sps:$4 sm:$0xff]  }
 0x3df   : > { %v17528_v43 = vpop.f32.mrf.mxu1  ;;  %14543 = vmatprep.subr.bf16.mxu1 %v15666_v15 }
 0x3e1   : > { %v4571_v29 = vpop.f32.mrf.mxu1 }
 0x3e2   : > { %14544 = vmatpush3.bf16.msra.mxu1 %v15667_v34  ;;  %v15700_v29 = vld [vmem:[%s19457_s3 + $0x14] ss:$8 sps:$4 sm:$0xff]  }
 0x3e3   : > { %v4572_v57 = vpop.f32.mrf.mxu1  ;;  %14545 = vmatprep.subr.bf16.mxu1 %v15668_v50 }
 0x3e6   : > { %14546 = vmatpush3.bf16.msra.mxu1 %v15669_v39 }
 0x3e7   : > { %14547 = vmatprep.subr.bf16.mxu1 %v15670_v40 }
 0x3e8   : > { %v5028_v47 = vpop.f32.mrf.mxu0 }
 0x3e9   : > { %v17536_v16 = vadd.f32 %v5028_v47, %v4558_v24  ;;  %v15691_v24 = vld [vmem:[%s19457_s3 + $0x44] ss:$8 sps:$4 sm:$0xff]  }
 0x3ea   : > { %v17538_v18 = vpop.f32.mrf.mxu0  ;;  %14548 = vmatpush3.bf16.msra.mxu1 %v15671_v46  ;;  %6863 = vmatprep.subr.bf16.mxu0 %v15691_v24  ;;  %v15703_v47 = vld [vmem:[%s19457_s3 + $0x4] ss:$8 sps:$4 sm:$0xff]  }
 0x3eb   : > { %14549 = vmatprep.subr.bf16.mxu1 %v15672_v48  ;;  %6864 = vmatpush1.bf16.msra.mxu0 %v15689_v8  ;;  %v15701_v48 = vld [vmem:[%s19457_s3] ss:$8 sps:$4 sm:$0xff]   ;;  %v15721_v8 = vld [vmem:[%s19457_s3 + $0xa4] ss:$8 sps:$4 sm:$0xff]  }
 0x3ec   : > { %v5032_v11 = vpop.f32.mrf.mxu0  ;;  %6865 = vmatprep.subr.bf16.mxu0 %v15694_v20 }
 0x3ed   : > { %v17544_v45 = vadd.f32 %v5032_v11, %v4562_v42 }
 0x3ee   : > { %v17546_v26 = vpop.f32.mrf.mxu0  ;;  %14550 = vmatpush3.bf16.msra.mxu1 %v15673_v41  ;;  %v15704_v41 = vld [vmem:[%s19457_s3 + $0xf0] ss:$8 sps:$4 sm:$0xff]  }
 0x3ef   : > { %14551 = vmatprep.subr.bf16.mxu1 %v15674_v14  ;;  %v15712_v14 = vld [vmem:[%s19457_s3 + $0xd4] ss:$8 sps:$4 sm:$0xff]  }
 0x3f0   : > { %v5038_v2 = vpop.f32.mrf.mxu0 }
 0x3f1   : > { %v17552_v25 = vadd.f32 %v5038_v2, %v4568_v37  ;;  %v15697_v37 = vld [vmem:[%s19457_s3 + $0x24] ss:$8 sps:$4 sm:$0xff]  }
 0x3f2   : > { %v17554_v59 = vpop.f32.mrf.mxu0  ;;  %14552 = vmatpush3.bf16.msra.mxu1 %v15675_v49  ;;  %v4560_v49 = vadd.f32 %v17516_v27, %v17481_v7 }
 0x3f3   : > { %14742 = vmatprep.subr.bf16.mxu1 %v15676_v58 }
 0x3f4   : > { %v5042_v51 = vpop.f32.mrf.mxu0 }
 0x3f5   : > { %v14451_v5 = vpop.f32.mrf.mxu1  ;;  %6392 = vmatmul.mubr.bf16.vlgmr.msra.gmra.mxu1 %v17476_v10 }
 0x3f6   : > { %v5043_v0 = vpop.f32.mrf.mxu0  ;;  %6399 = vmatprep.mubr.bf16.mxu1 %v17201_v54  ;;  %14743 = vmatpush3.bf16.msra.mxu1 %v15676_v58  ;;  %v15692_v54 = vld [vmem:[%s19457_s3 + $0x30] ss:$8 sps:$4 sm:$0xff]   ;;  %v5031_v58 = vadd.f32 %v17538_v18, %v4560_v49 }
 0x3f7   : > { %v14452_v31 = vpop.f32.mrf.mxu1  ;;  %14744 = vmatprep.subr.bf16.mxu1 %v15677_v30  ;;  %6866 = vmatpush1.bf16.msra.mxu0 %v15692_v54  ;;  %v15715_v0 = vld [vmem:[%s19457_s3 + $0xc4] ss:$8 sps:$4 sm:$0xff]   ;;  %v15724_v54 = vld [vmem:[%s19457_s3 + $0x94] ss:$8 sps:$4 sm:$0xff]  }
 0x3f8   : > { %v14453_v17 = vadd.f32 %v14452_v31, %v14451_v5  ;;  %6867 = vmatprep.subr.bf16.mxu0 %v15697_v37  ;;  %v15713_v5 = vld [vmem:[%s19457_s3 + $0xc0] ss:$8 sps:$4 sm:$0xff]  }
 0x3f9   : > { %v17564_v35 = vpop.f32.mrf.mxu1  ;;  %v15725_v37 = vld [vmem:[%s19457_s3 + $0x80] ss:$8 sps:$4 sm:$0xff]  }
 0x3fa   : > { %14745 = vmatpush3.bf16.msra.mxu1 %v15677_v30 }
 0x3fb   : > { %v17566_v10 = vpop.f32.mrf.mxu1  ;;  %14746 = vmatprep.subr.bf16.mxu1 %v15678_v36  ;;  %6868 = vmatpush1.bf16.msra.mxu0 %v15695_v60 }
 0x3fc   : > { %6869 = vmatprep.subr.bf16.mxu0 %v15700_v29 }
 0x3fd   : > { %v14457_v42 = vpop.f32.mrf.mxu1  ;;  %6400 = vmatmul.mubr.bf16.gmra.mxu1 %v17189_v55  ;;  %v15698_v55 = vld [vmem:[%s19457_s3 + $0x10] ss:$8 sps:$4 sm:$0xff]  }
 0x3fe   : > { %14747 = vmatpush3.bf16.msra.mxu1 %v15678_v36  ;;  %14750 = vmatprep.mubr.msk.bf16.mxu1 %vm1790_vm4, %v17258_v12 }
 0x3ff   : > { %v14458_v52 = vpop.f32.mrf.mxu1  ;;  %14748 = vmatprep.subr.bf16.mxu1 %v15679_v28  ;;  %6870 = vmatpush1.bf16.msra.mxu0 %v15698_v55 }
 0x400   : > { %v14459_v15 = vadd.f32 %v14458_v52, %v14457_v42  ;;  %6871 = vmatprep.subr.bf16.mxu0 %v15703_v47  ;;  %v15722_v42 = vld [vmem:[%s19457_s3 + $0x90] ss:$8 sps:$4 sm:$0xff]  }
 0x401   : > { %v14460_v34 = vpop.f32.mrf.mxu1 }
 0x402   : > { %14749 = vmatpush3.bf16.msra.mxu1 %v15679_v28 }
 0x403   : > { %v14461_v50 = vpop.f32.mrf.mxu1  ;;  %6872 = vmatpush1.bf16.msra.mxu0 %v15701_v48  ;;  %v14456_v48 = vadd.f32 %v17566_v10, %v17564_v35 }
 0x404   : > { %6873 = vmatprep.subr.bf16.mxu0 %v15706_v53 }
 0x405   : > { %v14716_v12 = vpop.f32.mrf.mxu1  ;;  %14751 = vmatmul.mubr.msk.bf16.vlgmr.msra.gmra.mxu1 %vm1790_vm4, %v17243_v56  ;;  %v15709_v56 = vld [vmem:[%s19457_s3 + $0xe4] ss:$8 sps:$4 sm:$0xff]  }
 0x406   : > { %v17580_v57 = vadd.f32 %v14716_v12, %v14459_v15  ;;  %6940 = vmatprep.mubr.bf16.mxu1 %v16305_v4  ;;  %v15727_v15 = vld [vmem:[%s19457_s3 + $0x84] ss:$8 sps:$4 sm:$0xff]  }
 0x407   : > { %v4656_v39 = vpop.f32.mrf.mxu1  ;;  %6874 = vmatpush2.bf16.msra.mxu0 %v15704_v41 }
 0x408   : > { %v17583_v40 = vadd.f32 %v14453_v17, %v4656_v39  ;;  %6875 = vmatprep.subr.bf16.mxu0 %v15709_v56  ;;  %v15718_v17 = vld [vmem:[%s19457_s3 + $0xb4] ss:$8 sps:$4 sm:$0xff]  }
 0x409   : > { %v14717_v46 = vpop.f32.mrf.mxu1 }
 0x40b   : > { %v4659_v11 = vpop.f32.mrf.mxu1  ;;  %6876 = vmatpush2.bf16.msra.mxu0 %v15707_v33 }
 0x40c   : > { %6877 = vmatprep.subr.bf16.mxu0 %v15712_v14  ;;  %v4660_v53 = vadd.f32 %v14456_v48, %v4659_v11  ;;  %v15730_v11 = vld [vmem:[%s19457_s3 + $0x134] ss:$8 sps:$4 sm:$0xff]  }
 0x40d   : > { %6916 = vmatprep.subr.bf16.mxu1 %v15730_v11 }
 0x40f   : > { %6878 = vmatpush2.bf16.msra.mxu0 %v15710_v21 }
 0x410   : > { %6879 = vmatprep.subr.bf16.mxu0 %v15715_v0 }
 0x413   : > { %6880 = vmatpush2.bf16.msra.mxu0 %v15713_v5 }
 0x414   : > { %6881 = vmatprep.subr.bf16.mxu0 %v15718_v17  ;;  %v15731_v17 = vld [vmem:[%s19457_s3 + $0x120] ss:$8 sps:$4 sm:$0xff]  }
 0x415   : > { %v5079_v22 = vpop.f32.mrf.mxu1 }
 0x416   : > { %v17597_v2 = vadd.f32 %v5079_v22, %v17536_v16 }
 0x417   : > { %v5081_v23 = vpop.f32.mrf.mxu1 }
 0x418   : > { %v17599_v38 = vadd.f32 %v5081_v23, %v5031_v58 }
 0x419   : > { %v5083_v30 = vpop.f32.mrf.mxu1 }
 0x41a   : > { %v17602_v7 = vadd.f32 %v5083_v30, %v17544_v45  ;;  %v15716_v45 = vld [vmem:[%s19457_s3 + $0xb0] ss:$8 sps:$4 sm:$0xff]  }
 0x41b   : > { %v17604_v27 = vpop.f32.mrf.mxu1  ;;  %6882 = vmatpush2.bf16.msra.mxu0 %v15716_v45 }
 0x41c   : > { %6883 = vmatprep.subr.bf16.mxu0 %v15721_v8  ;;  %v15733_v8 = vld [vmem:[%s19457_s3 + $0x124] ss:$8 sps:$4 sm:$0xff]  }
 0x41d   : > { %v5089_v51 = vpop.f32.mrf.mxu1 }
 0x41e   : > { %v17607_v18 = vadd.f32 %v5089_v51, %v17552_v25  ;;  %v15719_v25 = vld [vmem:[%s19457_s3 + $0xa0] ss:$8 sps:$4 sm:$0xff]   ;;  %v15728_v51 = vld [vmem:[%s19457_s3 + $0x130] ss:$8 sps:$4 sm:$0xff]  }
 0x41f   : > { %v17609_v16 = vpop.f32.mrf.mxu1  ;;  %6884 = vmatpush2.bf16.msra.mxu0 %v15719_v25  ;;  %6917 = vmatpush1.bf16.msra.mxu1 %v15728_v51 }
 0x420   : > { %6885 = vmatprep.subr.bf16.mxu0 %v15724_v54  ;;  %v15736_v54 = vld [vmem:[%s19457_s3 + $0x114] ss:$8 sps:$4 sm:$0xff]   ;;  %6918 = vmatprep.subr.bf16.mxu1 %v15733_v8 }
 0x421   : > { %v5093_v31 = vpop.f32.mrf.mxu1 }
 0x423   : > { %v5094_v36 = vpop.f32.mrf.mxu1  ;;  %6886 = vmatpush2.bf16.msra.mxu0 %v15722_v42  ;;  %6919 = vmatpush1.bf16.msra.mxu1 %v15731_v17 }
 0x424   : > { %6887 = vmatprep.subr.bf16.mxu0 %v15727_v15  ;;  %6920 = vmatprep.subr.bf16.mxu1 %v15736_v54 }
 0x427   : > { %6888 = vmatpush2.bf16.msra.mxu0 %v15725_v37 }
 0x428   : > { %v5652_v24 = vpop.f32.mrf.mxu0 }
 0x42a   : > { %v5654_v28 = vpop.f32.mrf.mxu0 }
 0x42c   : > { %v5656_v20 = vpop.f32.mrf.mxu0 }
 0x42e   : > { %v17619_v52 = vpop.f32.mrf.mxu0 }
 0x430   : > { %v5662_v60 = vpop.f32.mrf.mxu0 }
 0x432   : > { %v5664_v34 = vpop.f32.mrf.mxu0 }
 0x434   : > { %v5666_v50 = vpop.f32.mrf.mxu0 }
 0x435   : > { %v14485_v29 = vpop.f32.mrf.mxu1  ;;  %v15734_v50 = vld [vmem:[%s19457_s3 + $0x110] ss:$8 sps:$4 sm:$0xff]  }
 0x436   : > { %v5667_v55 = vpop.f32.mrf.mxu0  ;;  %6921 = vmatpush1.bf16.msra.mxu1 %v15734_v50 }
 0x437   : > { %v14486_v12 = vpop.f32.mrf.mxu1 }
 0x438   : > { %v14487_v39 = vadd.f32 %v14486_v12, %v14485_v29 }
 0x439   : > { %v14488_v46 = vpop.f32.mrf.mxu1 }
 0x43a   : > { %v17626_v47 = vadd.f32 %v14487_v39, %v17583_v40 }
 0x43b   : > { %v14489_v41 = vpop.f32.mrf.mxu1 }
 0x43c   : > { %v14490_v56 = vadd.f32 %v14489_v41, %v14488_v46 }
 0x43d   : > { %v14491_v33 = vpop.f32.mrf.mxu1 }
 0x43e   : > { %v17628_v14 = vadd.f32 %v14490_v56, %v4660_v53 }
 0x43f   : > { %v14492_v49 = vpop.f32.mrf.mxu1 }
 0x440   : > { %v14493_v22 = vadd.f32 %v14492_v49, %v14491_v33 }
 0x441   : > { %v14494_v21 = vpop.f32.mrf.mxu1 }
 0x442   : > { %v5139_v58 = vadd.f32 %v14493_v22, %v17580_v57 }
 0x443   : > { %v14495_v23 = vpop.f32.mrf.mxu1 }
 0x445   : > { %v14728_v35 = vpop.f32.mrf.mxu1 }
 0x446   : > { %v17631_v10 = vadd.f32 %v14728_v35, %v5139_v58 }
 0x447   : > { %v5178_v40 = vpop.f32.mrf.mxu1 }
 0x448   : > { %v5179_v17 = vadd.f32 %v5178_v40, %v17626_v47  ;;  %v4564_v47 = vadd.f32 %v17521_v44, %v17485_v19 }
 0x449   : > { %v14729_v30 = vpop.f32.mrf.mxu1 }
 0x44b   : > { %v17635_v5 = vpop.f32.mrf.mxu1 }
 0x455   : > { %v5703_v0 = vpop.f32.mrf.mxu1 }
 0x456   : > { %v5704_v31 = vadd.f32 %v5703_v0, %v5652_v24  ;;  %v4570_v24 = vadd.f32 %v17528_v43, %v17490_v32 }
 0x457   : > { %v5705_v36 = vpop.f32.mrf.mxu1 }
 0x458   : > { %v17638_v57 = vadd.f32 %v5704_v31, %v17597_v2  ;;  %v5706_v45 = vadd.f32 %v5705_v36, %v5654_v28  ;;  %v15739_v28 = vld [vmem:[%s19457_s3 + $0x104] ss:$8 sps:$4 sm:$0xff]   ;;  %v5041_v55 = vadd.f32 %v17554_v59, %v4570_v24  ;;  %v5182_v24 = vadd.f32 %v17635_v5, %v17628_v14 }
 0x459   : > { %v5707_v25 = vpop.f32.mrf.mxu1  ;;  %6922 = vmatprep.subr.bf16.mxu1 %v15739_v28 }
 0x45a   : > { %v17644_v42 = vadd.f32 %v5706_v45, %v17599_v38  ;;  %v5708_v15 = vadd.f32 %v5707_v25, %v5656_v20  ;;  %v15737_v38 = vld [vmem:[%s19457_s3 + $0x100] ss:$8 sps:$4 sm:$0xff]   ;;  %v5092_v20 = vadd.f32 %v17609_v16, %v5041_v55  ;;  %s16309_s3 = smov 96  }
 0x45b   : > { %v5709_v37 = vpop.f32.mrf.mxu1  ;;  %6923 = vmatpush1.bf16.msra.mxu1 %v15737_v38  ;;  %v6464_v55 = vld [vmem:[%s16349_s29] sm:$0x77] }
 0x45c   : > { %v17650_v2 = vadd.f32 %v5708_v15, %v17602_v7  ;;  %v6516_v14 = vrot.slane %v6464_v55, %v16600_v3 }
 0x45d   : > { %v5713_v29 = vpop.f32.mrf.mxu1 }
 0x45e   : > { %v5714_v12 = vadd.f32 %v5713_v29, %v5662_v60 }
 0x45f   : > { %v5715_v39 = vpop.f32.mrf.mxu1 }
 0x460   : > { %v17657_v46 = vadd.f32 %v5714_v12, %v17607_v18  ;;  %v5716_v48 = vadd.f32 %v5715_v39, %v5664_v34  ;;  %v6471_v12 = vrot.slane %v6464_v55, %v16592_v63  ;;  %v6475_v39 = vrot.slane %v6464_v55, %v16596_v1 }
 0x461   : > { %v5717_v32 = vpop.f32.mrf.mxu1 }
 0x462   : > { %v17659_v43 = vadd.f32 %v5716_v48, %v5092_v20  ;;  %v6486_v38 = vrot.slane %v6471_v12, %v16592_v63  ;;  %v5035_v20 = vadd.f32 %v17546_v26, %v4564_v47  ;;  %v5710_v48 = vadd.f32 %v5709_v37, %v17619_v52 }
 0x463   : > { %v5718_v7 = vpop.f32.mrf.mxu1  ;;  %v6531_v52 = vrot.slane %v6516_v14, %v16600_v3  ;;  %v6552_v37 = vrot.slane %v6464_v55, %v16609_v9 }
 0x468   : > { %v6291_v41 = vpop.f32.mrf.mxu0 }
 0x46a   : > { %v6293_v53 = vpop.f32.mrf.mxu0 }
 0x46c   : > { %v6295_v56 = vpop.f32.mrf.mxu0 }
 0x46e   : > { %v6297_v59 = vpop.f32.mrf.mxu0 }
 0x470   : > { %v6301_v60 = vpop.f32.mrf.mxu0 }
 0x472   : > { %v17661_v33 = vpop.f32.mrf.mxu0 }
 0x474   : > { %v6305_v49 = vpop.f32.mrf.mxu0 }
 0x475   : > { %v14519_v22 = vpop.f32.mrf.mxu1  ;;  %v6490_v49 = vrot.slane %v6475_v39, %v16592_v63 }
 0x476   : > { %v6306_v16 = vpop.f32.mrf.mxu0 }
 0x477   : > { %v14520_v21 = vpop.f32.mrf.mxu1 }
 0x478   : > { %v14521_v31 = vadd.f32 %v14520_v21, %v14519_v22  ;;  %v5086_v22 = vadd.f32 %v17604_v27, %v5035_v20  ;;  %v6520_v21 = vrot.slane %v6464_v55, %v16604_v6  ;;  %v6556_v27 = vrot.slane %v6464_v55, %v16614_v13 }
 0x479   : > { %v14522_v18 = vpop.f32.mrf.mxu1 }
 0x47a   : > { %v5820_v26 = vadd.f32 %v5710_v48, %v5086_v22 }
 0x47b   : > { %v14523_v58 = vpop.f32.mrf.mxu1 }
 0x47c   : > { %v14524_v34 = vadd.f32 %v14523_v58, %v14522_v18 }
 0x47d   : > { %v14525_v23 = vpop.f32.mrf.mxu1 }
 0x47f   : > { %v14526_v35 = vpop.f32.mrf.mxu1 }
 0x480   : > { %v14527_v11 = vadd.f32 %v14526_v35, %v14525_v23 }
 0x481   : > { %v14528_v30 = vpop.f32.mrf.mxu1 }
 0x483   : > { %v14529_v51 = vpop.f32.mrf.mxu1 }
 0x484   : > { %v6567_v51 = vrot.slane %v6552_v37, %v16609_v9 }
 0x485   : > { %v14740_v0 = vpop.f32.mrf.mxu1 }
 0x486   : > { %v5811_v36 = vadd.f32 %v14740_v0, %v14527_v11 }
 0x487   : > { %v5802_v45 = vpop.f32.mrf.mxu1 }
 0x488   : > { %v17665_v8 = vadd.f32 %v5811_v36, %v17631_v10  ;;  %v5803_v25 = vadd.f32 %v14521_v31, %v5802_v45 }
 0x489   : > { %v14741_v54 = vpop.f32.mrf.mxu1 }
 0x48a   : > { %v17667_v15 = vadd.f32 %v5803_v25, %v5179_v17  ;;  %v6571_v25 = vrot.slane %v6556_v27, %v16609_v9 }
 0x48b   : > { %v5805_v50 = vpop.f32.mrf.mxu1 }
 0x48c   : > { %v5806_v28 = vadd.f32 %v14524_v34, %v5805_v50 }
 0x48e   : > { %v17671_v29 = vadd.f32 %v5806_v28, %v5182_v24 }
 0x495   : > { %v6342_v10 = vpop.f32.mrf.mxu1 }
 0x496   : > { %v6343_v40 = vadd.f32 %v6342_v10, %v6291_v41 }
 0x497   : > { %v6344_v5 = vpop.f32.mrf.mxu1 }
 0x498   : > { %v6455_v32 = vadd.f32 %v6343_v40, %v17638_v57  ;;  %v6345_v7 = vadd.f32 %v6344_v5, %v6293_v53 }
 0x499   : > { %v6346_v16 = vpop.f32.mrf.mxu1 }
 0x49a   : > { %v6495_v19 = vadd.f32 %v6486_v38, %v6455_v32  ;;  %v6456_v44 = vadd.f32 %v6345_v7, %v17644_v42  ;;  %v6347_v41 = vadd.f32 %v6346_v16, %v6295_v56  ;;  %v6535_v56 = vrot.slane %v6520_v21, %v16600_v3 }
 0x49b   : > { %v6348_v18 = vpop.f32.mrf.mxu1 }
 0x49c   : > { %v6504_v58 = vmax.f32 %v6495_v19, 0.0  ;;  %v6496_v57 = vadd.f32 %v6490_v49, %v6456_v44  ;;  %v6458_v53 = vadd.f32 %v6347_v41, %v17650_v2  ;;  %v6349_v34 = vadd.f32 %v6348_v18, %v6297_v59  ;;  %v6465_v18 = vld [vmem:[%s16349_s29 + $0x8] sm:$0x7] }
 0x49d   : > { %v6352_v23 = vpop.f32.mrf.mxu1 }
 0x49e   : > { %v6505_v35 = vmax.f32 %v6496_v57, 0.0  ;;  %v6498_v30 = vadd.f32 %v6486_v38, %v6458_v53  ;;  %v6459_v42 = vadd.f32 %v6349_v34, %v5820_v26  ;;  %v6353_v11 = vadd.f32 %v6352_v23, %v6301_v60 }
 0x49f   : > { %v6354_v0 = vpop.f32.mrf.mxu1  ;;  %v6540_v31 = vmul.f32 %v6531_v52, %v6504_v58  ;;  %v6479_v53 = vrot.slane %v6465_v18, %v16592_v63 }
 0x4a0   : > { %v6507_v36 = vmax.f32 %v6498_v30, 0.0  ;;  %v6499_v45 = vadd.f32 %v6490_v49, %v6459_v42  ;;  %v6355_v17 = vadd.f32 %v6354_v0, %v17661_v33  ;;  %v6461_v2 = vadd.f32 %v6353_v11, %v17657_v46 }
 0x4a1   : > { %v6356_v59 = vpop.f32.mrf.mxu1  ;;  %v6541_v28 = vmul.f32 %v6535_v56, %v6505_v35  ;;  %v6576_v39 = vadd.f32 %v6567_v51, %v6540_v31  ;;  %v6494_v42 = vrot.slane %v6479_v53, %v16592_v63  ;;  %v6524_v0 = vrot.slane %v6465_v18, %v16600_v3  ;;  %v15778_v53 = vld [vmem:[%s16364_s14 + $0x154] ss:$8 sps:$4 sm:$0xff]  }
 0x4a2   : > { %v6543_v54 = vmul.f32 %v6531_v52, %v6507_v36  ;;  %v6508_v50 = vmax.f32 %v6499_v45, 0.0  ;;  %v6462_v24 = vadd.f32 %v6355_v17, %v17659_v43  ;;  %v6501_v55 = vadd.f32 %v6486_v38, %v6461_v2 }
 0x4a3   : > { %v6357_v12 = vpop.f32.mrf.mxu1  ;;  %v6577_v33 = vadd.f32 %v6571_v25, %v6541_v28  ;;  %v6539_v59 = vrot.slane %v6524_v0, %v16600_v3  ;;  %v15791_v0 = vld [vmem:[%s16364_s14 + $0x130] ss:$8 sps:$4 sm:$0xff]  }
 0x4a4   : > { %v6579_v60 = vadd.f32 %v6567_v51, %v6543_v54  ;;  %v6502_v47 = vadd.f32 %v6490_v49, %v6462_v24  ;;  %v6544_v10 = vmul.f32 %v6535_v56, %v6508_v50  ;;  %v6510_v40 = vmax.f32 %v6501_v55, 0.0 }
 0x4a6   : > { %v6625_v20 = vpack.c.bf16 %v6579_v60, %v6576_v39  ;;  %v6511_v48 = vmax.f32 %v6502_v47, 0.0  ;;  %v6580_v14 = vadd.f32 %v6571_v25, %v6544_v10  ;;  %v6546_v32 = vmul.f32 %v6531_v52, %v6510_v40  ;;  %v15740_v10 = vld [vmem:[%s16364_s14 + $0x1b0] ss:$8 sps:$4 sm:$0xff]   ;;  %v15742_v40 = vld [vmem:[%s16364_s14 + $0x1b4] ss:$8 sps:$4 sm:$0xff]  }
 0x4a7   : > { %7540 = vmatprep.subr.bf16.mxu0 %v15742_v40 }
 0x4a8   : > { %v6626_v46 = vpack.c.bf16 %v6580_v14, %v6577_v33  ;;  %v6547_v5 = vmul.f32 %v6535_v56, %v6511_v48  ;;  %v6582_v22 = vadd.f32 %v6567_v51, %v6546_v32  ;;  %v15745_v48 = vld [vmem:[%s16364_s14 + $0x114] ss:$8 sps:$4 sm:$0xff]   ;;  %v15748_v33 = vld [vmem:[%s16364_s14 + $0x1a4] ss:$8 sps:$4 sm:$0xff]  }
 0x4a9   : > { %v15751_v14 = vld [vmem:[%s16364_s14 + $0x104] ss:$8 sps:$4 sm:$0xff]   ;;  %7195 = vmatprep.subr.bf16.mxu1 %v15745_v48  ;;  %v15754_v32 = vld [vmem:[%s16364_s14 + $0x194] ss:$8 sps:$4 sm:$0xff]  }
 0x4aa   : > { %6889 = vmatprep.mubr.bf16.mxu0 %v6626_v46  ;;  %v6583_v7 = vadd.f32 %v6571_v25, %v6547_v5  ;;  %v6628_v38 = vpack.c.bf16 %v6582_v22, %v6582_v22  ;;  %v6560_v25 = vrot.slane %v6465_v18, %v16609_v9  ;;  %v15746_v46 = vld [vmem:[%s16364_s14 + $0x1a0] ss:$8 sps:$4 sm:$0xff]   ;;  %v15755_v22 = vld [vmem:[%s16364_s14 + $0xf0] ss:$8 sps:$4 sm:$0xff]   ;;  %v15772_v18 = vld [vmem:[%s16364_s14 + $0x164] ss:$8 sps:$4 sm:$0xff]  }
 0x4ab   : > { %6890 = vmatmul.mubr.bf16.vlgmr.msra.gmra.mxu0 %v6625_v20  ;;  %v15743_v20 = vld [vmem:[%s16364_s14 + $0x110] ss:$8 sps:$4 sm:$0xff]   ;;  %v15749_v5 = vld [vmem:[%s16364_s14 + $0x100] ss:$8 sps:$4 sm:$0xff]  }
 0x4ac   : > { %v6629_v43 = vpack.c.bf16 %v6583_v7, %v6583_v7  ;;  %v6575_v24 = vrot.slane %v6560_v25, %v16609_v9  ;;  %7541 = vmatpush1.bf16.msra.mxu0 %v15740_v10  ;;  %v15757_v7 = vld [vmem:[%s16364_s14 + $0xf4] ss:$8 sps:$4 sm:$0xff]  }
 0x4ad   : > { %7542 = vmatprep.subr.bf16.mxu0 %v15748_v33 }
 0x4ae   : > { %6899 = vmatprep.mubr.bf16.mxu0 %v6629_v43  ;;  %v15752_v43 = vld [vmem:[%s16364_s14 + $0x190] ss:$8 sps:$4 sm:$0xff]  }
 0x4b0   : > { %7543 = vmatpush1.bf16.msra.mxu0 %v15746_v46 }
 0x4b1   : > { %7544 = vmatprep.subr.bf16.mxu0 %v15754_v32 }
 0x4b3   : > { %6900 = vmatmul.mubr.bf16.gmra.mxu0 %v6628_v38  ;;  %v15760_v38 = vld [vmem:[%s16364_s14 + $0x184] ss:$8 sps:$4 sm:$0xff]  }
 0x4b4   : > { %7545 = vmatpush1.bf16.msra.mxu0 %v15752_v43 }
 0x4b5   : > { %v14553_v16 = vpop.f32.mrf.mxu1  ;;  %7546 = vmatprep.subr.bf16.mxu0 %v15760_v38 }
 0x4b7   : > { %v14554_v49 = vpop.f32.mrf.mxu1 }
 0x4b8   : > { %v14555_v52 = vadd.f32 %v14554_v49, %v14553_v16  ;;  %v15763_v16 = vld [vmem:[%s16364_s14 + $0xe4] ss:$8 sps:$4 sm:$0xff]   ;;  %v15758_v49 = vld [vmem:[%s16364_s14 + $0x180] ss:$8 sps:$4 sm:$0xff]  }
 0x4b9   : > { %v14556_v19 = vpop.f32.mrf.mxu1  ;;  %7547 = vmatpush1.bf16.msra.mxu0 %v15758_v49 }
 0x4bb   : > { %v14557_v44 = vpop.f32.mrf.mxu1 }
 0x4bc   : > { %v14558_v30 = vadd.f32 %v14557_v44, %v14556_v19  ;;  %v15761_v19 = vld [vmem:[%s16364_s14 + $0xe0] ss:$8 sps:$4 sm:$0xff]   ;;  %v15764_v44 = vld [vmem:[%s16364_s14 + $0x170] ss:$8 sps:$4 sm:$0xff]  }
 0x4bd   : > { %v14559_v41 = vpop.f32.mrf.mxu1 }
 0x4bf   : > { %v14560_v21 = vpop.f32.mrf.mxu1 }
 0x4c0   : > { %v14561_v57 = vadd.f32 %v14560_v21, %v14559_v41  ;;  %v15766_v41 = vld [vmem:[%s16364_s14 + $0x174] ss:$8 sps:$4 sm:$0xff]   ;;  %v15767_v21 = vld [vmem:[%s16364_s14 + $0xd0] ss:$8 sps:$4 sm:$0xff]  }
 0x4c1   : > { %v14562_v26 = vpop.f32.mrf.mxu1  ;;  %7548 = vmatprep.subr.bf16.mxu0 %v15766_v41 }
 0x4c2   : > { %v15769_v26 = vld [vmem:[%s16364_s14 + $0xd4] ss:$8 sps:$4 sm:$0xff]   ;;  %7549 = vmatpush1.bf16.msra.mxu0 %v15764_v44 }
 0x4c3   : > { %v14563_v37 = vpop.f32.mrf.mxu1  ;;  %7550 = vmatprep.subr.bf16.mxu0 %v15772_v18 }
 0x4c4   : > { %v15770_v37 = vld [vmem:[%s16364_s14 + $0x160] ss:$8 sps:$4 sm:$0xff]  }
 0x4c5   : > { %v14752_v58 = vpop.f32.mrf.mxu1 }
 0x4c6   : > { %v6450_v23 = vadd.f32 %v14752_v58, %v14561_v57  ;;  %v15773_v58 = vld [vmem:[%s16364_s14 + $0xc0] ss:$8 sps:$4 sm:$0xff]   ;;  %7551 = vmatpush1.bf16.msra.mxu0 %v15770_v37  ;;  %v15776_v57 = vld [vmem:[%s16364_s14 + $0x150] ss:$8 sps:$4 sm:$0xff]  }
 0x4c7   : > { %v6441_v34 = vpop.f32.mrf.mxu1  ;;  %7552 = vmatprep.subr.bf16.mxu0 %v15778_v53 }
 0x4c8   : > { %v6442_v27 = vadd.f32 %v14555_v52, %v6441_v34  ;;  %v6463_v11 = vadd.f32 %v6450_v23, %v17665_v8  ;;  %v15775_v52 = vld [vmem:[%s16364_s14 + $0xc4] ss:$8 sps:$4 sm:$0xff]   ;;  %v15779_v34 = vld [vmem:[%s16364_s14 + $0xb0] ss:$8 sps:$4 sm:$0xff]   ;;  %v15781_v23 = vld [vmem:[%s16364_s14 + $0xb4] ss:$8 sps:$4 sm:$0xff]  }
 0x4c9   : > { %v14753_v35 = vpop.f32.mrf.mxu1 }
 0x4ca   : > { %v6457_v56 = vadd.f32 %v6442_v27, %v17667_v15  ;;  %v6503_v2 = vadd.f32 %v6494_v42, %v6463_v11  ;;  %v15784_v27 = vld [vmem:[%s16364_s14 + $0x144] ss:$8 sps:$4 sm:$0xff]   ;;  %7553 = vmatpush1.bf16.msra.mxu0 %v15776_v57  ;;  %v15788_v11 = vld [vmem:[%s16364_s14 + $0x1d0] ss:$8 sps:$4 sm:$0xff]  }
 0x4cb   : > { %v6444_v51 = vpop.f32.mrf.mxu1  ;;  %v15787_v35 = vld [vmem:[%s16364_s14 + $0xa4] ss:$8 sps:$4 sm:$0xff]   ;;  %7554 = vmatprep.subr.bf16.mxu0 %v15784_v27 }
 0x4cc   : > { %v6497_v31 = vadd.f32 %v6494_v42, %v6457_v56  ;;  %v6445_v36 = vadd.f32 %v14558_v30, %v6444_v51  ;;  %v6512_v8 = vmax.f32 %v6503_v2, 0.0  ;;  %v15782_v30 = vld [vmem:[%s16364_s14 + $0x140] ss:$8 sps:$4 sm:$0xff]   ;;  %v15790_v56 = vld [vmem:[%s16364_s14 + $0x1d4] ss:$8 sps:$4 sm:$0xff]  }
 0x4cd   : > { %v15793_v51 = vld [vmem:[%s16364_s14 + $0x134] ss:$8 sps:$4 sm:$0xff]  }
 0x4ce   : > { %v6506_v45 = vmax.f32 %v6497_v31, 0.0  ;;  %v6460_v17 = vadd.f32 %v6445_v36, %v17671_v29  ;;  %v6548_v12 = vmul.f32 %v6539_v59, %v6512_v8  ;;  %7555 = vmatpush1.bf16.msra.mxu0 %v15782_v30  ;;  %v15796_v31 = vld [vmem:[%s16364_s14 + $0x1c4] ss:$8 sps:$4 sm:$0xff]   ;;  %v15802_v2 = vld [vmem:[%s16364_s14 + $0x74] ss:$8 sps:$4 sm:$0xff]  }
 0x4cf   : > { %7568 = vmatprep.subr.bf16.mxu0 %v15790_v56  ;;  %v15799_v36 = vld [vmem:[%s16364_s14 + $0x124] ss:$8 sps:$4 sm:$0xff]  }
 0x4d0   : > { %v6500_v54 = vadd.f32 %v6494_v42, %v6460_v17  ;;  %v6542_v50 = vmul.f32 %v6539_v59, %v6506_v45  ;;  %v6584_v60 = vadd.f32 %v6575_v24, %v6548_v12  ;;  %v15785_v42 = vld [vmem:[%s16364_s14 + $0xa0] ss:$8 sps:$4 sm:$0xff]  }
 0x4d1   : > { %v15794_v45 = vld [vmem:[%s16364_s14 + $0x1c0] ss:$8 sps:$4 sm:$0xff]  }
 0x4d2   : > { %v6509_v15 = vmax.f32 %v6500_v54, 0.0  ;;  %v6578_v55 = vadd.f32 %v6575_v24, %v6542_v50  ;;  %v6630_v47 = vpack.c.bf16 %v6584_v60, %v6584_v60  ;;  %7569 = vmatpush2.bf16.msra.mxu0 %v15788_v11  ;;  %v15797_v17 = vld [vmem:[%s16364_s14 + $0x120] ss:$8 sps:$4 sm:$0xff]  }
 0x4d3   : > { %7570 = vmatprep.subr.bf16.mxu0 %v15796_v31 }
 0x4d4   : > { %v6545_v28 = vmul.f32 %v6539_v59, %v6509_v15 }
 0x4d6   : > { %v6581_v29 = vadd.f32 %v6575_v24, %v6545_v28  ;;  %7571 = vmatpush2.bf16.msra.mxu0 %v15794_v45 }
 0x4d8   : > { %v6627_v39 = vpack.c.bf16 %v6581_v29, %v6578_v55  ;;  %v6631_v55 = vld [vmem:[%s19465_s8] sm:$0x77]  ;;  %s16310_s8 = smov [#allocation2]  }
 0x4d9   : > { %v6636_v29 = vrot.slane %v6631_v55, %v16592_v63  ;;  %v6640_v12 = vrot.slane %v6631_v55, %v16596_v1  ;;  %v6992_v46 = vrot.slane %v6631_v55, %v16609_v9  ;;  %v6996_v38 = vrot.slane %v6631_v55, %v16614_v13  ;;  %s16216_s9 = sshll.u32 %s16310_s8, 4  ;;  %s16217_s9 = int_to_ptr.vmem [resolvable:$false] %s16216_s9 }
 0x4da   : > { %13863 = vmatmul.mubr.msk.bf16.vlgmr.msra.gmra.mxu1 %vm1790_vm4, %v6627_v39 }
 0x4db   : > { %6950 = vmatprep.mubr.bf16.mxu1 %v16305_v4  ;;  %7196 = vmatpush1.bf16.msra.mxu1 %v15743_v20  ;;  %v6646_v39 = vrot.slane %v6636_v29, %v16592_v63  ;;  %v6650_v60 = vrot.slane %v6640_v12, %v16592_v63  ;;  %v6972_v20 = vrot.slane %v6631_v55, %v16604_v6 }
 0x4dc   : > { %7197 = vmatprep.subr.bf16.mxu1 %v15751_v14  ;;  %v7006_v57 = vrot.slane %v6996_v38, %v16609_v9 }
 0x4df   : > { %7198 = vmatpush1.bf16.msra.mxu1 %v15749_v5 }
 0x4e0   : > { %7199 = vmatprep.subr.bf16.mxu1 %v15757_v7 }
 0x4e2   : > { %13864 = vmatmul.mubr.msk.bf16.gmra.mxu1 %vm1790_vm4, %v6630_v47  ;;  %v6968_v47 = vrot.slane %v6631_v55, %v16600_v3 }
 0x4e3   : > { %7200 = vmatpush1.bf16.msra.mxu1 %v15755_v22  ;;  %v6982_v22 = vrot.slane %v6972_v20, %v16600_v3 }
 0x4e4   : > { %7201 = vmatprep.subr.bf16.mxu1 %v15763_v16  ;;  %v6978_v14 = vrot.slane %v6968_v47, %v16600_v3 }
 0x4e7   : > { %7202 = vmatpush1.bf16.msra.mxu1 %v15761_v19 }
 0x4e8   : > { %7203 = vmatprep.subr.bf16.mxu1 %v15769_v26 }
 0x4eb   : > { %7204 = vmatpush1.bf16.msra.mxu1 %v15767_v21  ;;  %v7002_v21 = vrot.slane %v6992_v46, %v16609_v9 }
 0x4ec   : > { %7205 = vmatprep.subr.bf16.mxu1 %v15775_v52 }
 0x4ef   : > { %7206 = vmatpush1.bf16.msra.mxu1 %v15773_v58 }
 0x4f0   : > { %7207 = vmatprep.subr.bf16.mxu1 %v15781_v23 }
 0x4f3   : > { %7208 = vmatpush1.bf16.msra.mxu1 %v15779_v34 }
 0x4f4   : > { %7209 = vmatprep.subr.bf16.mxu1 %v15787_v35 }
 0x4f7   : > { %7210 = vmatpush1.bf16.msra.mxu1 %v15785_v42 }
 0x4f8   : > { %7223 = vmatprep.subr.bf16.mxu1 %v15793_v51 }
 0x4fb   : > { %7224 = vmatpush2.bf16.msra.mxu1 %v15791_v0 }
 0x4fc   : > { %7225 = vmatprep.subr.bf16.mxu1 %v15799_v36 }
 0x4ff   : > { %7226 = vmatpush2.bf16.msra.mxu1 %v15797_v17 }
 0x500   : > { %7350 = vmatprep.subr.bf16.mxu1 %v15802_v2 }
 0x56b   : > { %v6891_v59 = vpop.f32.mrf.mxu0 }
 0x56c   : > { %v6892_v10 = vadd.f32 %v6891_v59, %v6646_v39 }
 0x56d   : > { %v6893_v25 = vpop.f32.mrf.mxu0 }
 0x56e   : > { %v6894_v48 = vadd.f32 %v6893_v25, %v6650_v60 }
 0x56f   : > { %v6895_v54 = vpop.f32.mrf.mxu0 }
 0x570   : > { %v6896_v32 = vadd.f32 %v6895_v54, %v6646_v39 }
 0x571   : > { %v6897_v50 = vpop.f32.mrf.mxu0 }
 0x572   : > { %v6898_v49 = vadd.f32 %v6897_v50, %v6650_v60 }
 0x573   : > { %v6901_v15 = vpop.f32.mrf.mxu0 }
 0x574   : > { %v6902_v37 = vadd.f32 %v6901_v15, %v6646_v39 }
 0x575   : > { %v6903_v8 = vpop.f32.mrf.mxu0 }
 0x576   : > { %v6904_v34 = vadd.f32 %v6903_v8, %v6650_v60 }
 0x577   : > { %v6905_v24 = vpop.f32.mrf.mxu0 }
 0x579   : > { %v6906_v28 = vpop.f32.mrf.mxu0 }
 0x59a   : > { %v6942_v40 = vpop.f32.mrf.mxu1 }
 0x59b   : > { %v6943_v33 = vadd.f32 %v6942_v40, %v6892_v10 }
 0x59c   : > { %v6944_v5 = vpop.f32.mrf.mxu1 }
 0x59d   : > { %v6959_v7 = vmax.f32 %v6943_v33, 0.0  ;;  %v6945_v43 = vadd.f32 %v6944_v5, %v6894_v48 }
 0x59e   : > { %v6946_v16 = vpop.f32.mrf.mxu1 }
 0x59f   : > { %v6960_v19 = vmax.f32 %v6945_v43, 0.0  ;;  %v6947_v44 = vadd.f32 %v6946_v16, %v6896_v32  ;;  %v6983_v41 = vmul.f32 %v6978_v14, %v6959_v7 }
 0x5a0   : > { %v6948_v26 = vpop.f32.mrf.mxu1 }
 0x5a1   : > { %v6961_v18 = vmax.f32 %v6947_v44, 0.0  ;;  %v6949_v58 = vadd.f32 %v6948_v26, %v6898_v49  ;;  %v6984_v52 = vmul.f32 %v6982_v22, %v6960_v19  ;;  %v7007_v30 = vadd.f32 %v7002_v21, %v6983_v41  ;;  %v15800_v44 = vld [vmem:[%s16364_s14 + $0x70] ss:$8 sps:$4 sm:$0xff]  }
 0x5a2   : > { %v6952_v53 = vpop.f32.mrf.mxu1 }
 0x5a3   : > { %v6985_v23 = vmul.f32 %v6978_v14, %v6961_v18  ;;  %v6962_v27 = vmax.f32 %v6949_v58, 0.0  ;;  %v6953_v35 = vadd.f32 %v6952_v53, %v6902_v37  ;;  %v7008_v31 = vadd.f32 %v7006_v57, %v6984_v52  ;;  %v15805_v18 = vld [vmem:[%s16364_s14 + $0x64] ss:$8 sps:$4 sm:$0xff]   ;;  %v15803_v53 = vld [vmem:[%s16364_s14 + $0x60] ss:$8 sps:$4 sm:$0xff]  }
 0x5a4   : > { %v6954_v42 = vpop.f32.mrf.mxu1 }
 0x5a5   : > { %v7009_v56 = vadd.f32 %v7002_v21, %v6985_v23  ;;  %v6986_v51 = vmul.f32 %v6982_v22, %v6962_v27  ;;  %v6963_v11 = vmax.f32 %v6953_v35, 0.0  ;;  %v6955_v0 = vadd.f32 %v6954_v42, %v6904_v34  ;;  %v15808_v34 = vld [vmem:[%s16364_s14 + $0x54] ss:$8 sps:$4 sm:$0xff]   ;;  %v15806_v23 = vld [vmem:[%s16364_s14 + $0x50] ss:$8 sps:$4 sm:$0xff]  }
 0x5a6   : > { %v6956_v36 = vpop.f32.mrf.mxu1  ;;  %v15811_v27 = vld [vmem:[%s16364_s14 + $0x44] ss:$8 sps:$4 sm:$0xff]   ;;  %v15809_v35 = vld [vmem:[%s16364_s14 + $0x40] ss:$8 sps:$4 sm:$0xff]   ;;  %v15812_v42 = vld [vmem:[%s16364_s14 + $0x30] ss:$8 sps:$4 sm:$0xff]  }
 0x5a7   : > { %v17764_v45 = vpack.c.bf16 %v7009_v56, %v7007_v30  ;;  %v7010_v17 = vadd.f32 %v7006_v57, %v6986_v51  ;;  %v6987_v2 = vmul.f32 %v6978_v14, %v6963_v11  ;;  %v6964_v59 = vmax.f32 %v6955_v0, 0.0  ;;  %v15814_v30 = vld [vmem:[%s16364_s14 + $0x34] ss:$8 sps:$4 sm:$0xff]   ;;  %v15817_v56 = vld [vmem:[%s16364_s14 + $0x24] ss:$8 sps:$4 sm:$0xff]  }
 0x5a8   : > { %v6957_v25 = vpop.f32.mrf.mxu1  ;;  %v15815_v51 = vld [vmem:[%s16364_s14 + $0x20] ss:$8 sps:$4 sm:$0xff]   ;;  %v15820_v11 = vld [vmem:[%s16364_s14 + $0x14] ss:$8 sps:$4 sm:$0xff]   ;;  %v15818_v0 = vld [vmem:[%s16364_s14 + $0x10] ss:$8 sps:$4 sm:$0xff]  }
 0x5a9   : > { %v7061_v54 = vshll.u32 %v17764_v45, 16  ;;  %v17767_v50 = vpack.c.bf16 %v7010_v17, %v7008_v31  ;;  %v7011_v15 = vadd.f32 %v7002_v21, %v6987_v2  ;;  %v6988_v8 = vmul.f32 %v6982_v22, %v6964_v59  ;;  %v15823_v31 = vld [vmem:[%s16364_s14 + $0x4] ss:$8 sps:$4 sm:$0xff]   ;;  %v15821_v36 = vld [vmem:[%s16364_s14] ss:$8 sps:$4 sm:$0xff]  }
 0x5aa   : > { %v7059_v24 = vshrl.u32 %v17764_v45, 16  ;;  %v7426_v32 = vrot.slane %v17764_v45, 1  ;;  %v15826_v17 = vld [vmem:[%s16364_s14 + $0x94] ss:$8 sps:$4 sm:$0xff]   ;;  %v15824_v2 = vld [vmem:[%s16364_s14 + $0x90] ss:$8 sps:$4 sm:$0xff]  }
 0x5ab   : > { %v17770_v28 = vpack.c.bf16 %v7011_v15, %v7011_v15  ;;  %v7012_v55 = vadd.f32 %v7006_v57, %v6988_v8  ;;  %v7073_v29 = vshll.u32 %v17767_v50, 16  ;;  %v7063_v60 = vrot.slane %v7061_v54, 1  ;;  %v15829_v59 = vld [vmem:[%s16364_s14 + $0x84] ss:$8 sps:$4 sm:$0xff]   ;;  %v15827_v25 = vld [vmem:[%s16364_s14 + $0x80] ss:$8 sps:$4 sm:$0xff]  }
 0x5ac   : > { %v7618_v20 = vrot.slane %v7059_v24, 1  ;;  %v7619_v48 = vrot.slane %v7061_v54, 2  ;;  %v7429_v33 = vrot.slane %v17767_v50, 1  ;;  %v7071_v46 = vshrl.u32 %v17767_v50, 16  ;;  %v15832_v54 = vld [vmem:[%s16364_s14 + $0x254] ss:$8 sps:$4 sm:$0xff]  }
 0x5ad   : > { %v7066_v12 = vshll.u32 %v17770_v28, 16  ;;  %v17774_v39 = vpack.c.bf16 %v7012_v55, %v7012_v55  ;;  %v7082_v47 = vshrl.u32 %v17770_v28, 16  ;;  %v7427_v10 = vrot.slane %v17770_v28, 1  ;;  %v15830_v15 = vld [vmem:[%s16364_s14 + $0x250] ss:$8 sps:$4 sm:$0xff]  }
 0x5ae   : > { %v7075_v40 = vrot.slane %v7073_v29, 1  ;;  %v7064_v41 = vor.u32 %v7063_v60, %v7059_v24  ;;  %v7620_v26 = vor.u32 %v7619_v48, %v7618_v20  ;;  %v15835_v8 = vld [vmem:[%s16364_s14 + $0x244] ss:$8 sps:$4 sm:$0xff]   ;;  %v15838_v60 = vld [vmem:[%s16364_s14 + $0x234] ss:$8 sps:$4 sm:$0xff]  }
 0x5af   : > { %v7430_v14 = vrot.slane %v17774_v39, 1  ;;  %v7078_v5 = vshll.u32 %v17774_v39, 16  ;;  %v7068_v7 = vrot.slane %v7066_v12, 1  ;;  %v17785_v43 = vrot.slane %v7082_v47, 1  ;;  %v15841_v20 = vld [vmem:[%s16364_s14 + $0x224] ss:$8 sps:$4 sm:$0xff]  }
 0x5b0   : > { %v7622_v22 = vrot.slane %v7066_v12, 2  ;;  %v7076_v16 = vor.u32 %v7075_v40, %v7071_v46  ;;  %v7428_v19 = vsel %vm2607_vm5, %v7426_v32, %v7427_v10  ;;  %v7084_v52 = vshrl.u32 %v17774_v39, 16  ;;  %v15833_v12 = vld [vmem:[%s16364_s14 + $0x240] ss:$8 sps:$4 sm:$0xff]   ;;  %v15836_v40 = vld [vmem:[%s16364_s14 + $0x230] ss:$8 sps:$4 sm:$0xff]  }
 0x5b1   : > { %v7431_v38 = vsel %vm2607_vm5, %v7429_v33, %v7430_v14  ;;  %v7080_v49 = vrot.slane %v7078_v5, 1  ;;  %v7069_v58 = vsel %vm1420_vm2, %v7064_v41, %v7068_v7  ;;  %v7629_v55 = vrot.slane %v7078_v5, 2  ;;  %v15842_v33 = vld [vmem:[%s16364_s14 + $0x210] ss:$8 sps:$4 sm:$0xff]   ;;  %v15853_v32 = vld [vmem:[%s16364_s14 + $0x1e4] ss:$8 sps:$4 sm:$0xff]  }
 0x5b2   : > { %13969 = vmatprep.mubr.msk.bf16.mxu0 %vm7188_vm6, %v7431_v38  ;;  %v7623_v21 = vor.u32 %v7622_v22, %v17785_v43  ;;  %v7628_v24 = vrot.slane %v7084_v52, 1  ;;  %v15848_v5 = vld [vmem:[%s16364_s14 + $0x1f0] ss:$8 sps:$4 sm:$0xff]   ;;  %v15851_v7 = vld [vmem:[%s16364_s14 + $0x1e0] ss:$8 sps:$4 sm:$0xff]  }
 0x5b3   : > { %7573 = vmatmul.mubr.bf16.vlgmr.msra.gmra.mxu0 %v7428_v19  ;;  %v7081_v37 = vsel %vm1420_vm2, %v7076_v16, %v7080_v49  ;;  %v15856_v22 = vld [vmem:[%s16364_s14 + $0x274] ss:$8 sps:$4 sm:$0xff]   ;;  %v15854_v38 = vld [vmem:[%s16364_s14 + $0x270] ss:$8 sps:$4 sm:$0xff]   ;;  %v15859_v16 = vld [vmem:[%s16364_s14 + $0x264] ss:$8 sps:$4 sm:$0xff]  }
 0x5b4   : > { %13905 = vmatprep.mubr.msk.bf16.mxu1 %vm7188_vm6, %v7081_v37  ;;  %13970 = vmatprep.mubr.msk.bf16.mxu0 %vm7188_vm6, %v7430_v14  ;;  %v17803_v57 = vsel %vm3235_vm3, %v7620_v26, %v7623_v21  ;;  %v15847_v14 = vld [vmem:[%s16364_s14 + $0x204] ss:$8 sps:$4 sm:$0xff]   ;;  %v15857_v49 = vld [vmem:[%s16364_s14 + $0x260] ss:$8 sps:$4 sm:$0xff]   ;;  %v15860_v19 = vld [vmem:[%s16374_s24 + $0x70] ss:$8 sps:$4 sm:$0xff]  }
 0x5b5   : > { %7228 = vmatmul.mubr.bf16.vlgmr.msra.gmra.mxu1 %v7069_v58  ;;  %v15865_v41 = vld [vmem:[%s16374_s24 + $0x64] ss:$8 sps:$4 sm:$0xff]   ;;  %v15866_v21 = vld [vmem:[%s16374_s24 + $0x110] ss:$8 sps:$4 sm:$0xff]   ;;  %v15868_v26 = vld [vmem:[%s16374_s24 + $0x114] ss:$8 sps:$4 sm:$0xff]  }
 0x5b6   : > { %7351 = vmatpush1.bf16.msra.mxu1 %v15800_v44  ;;  %13906 = vmatprep.mubr.msk.bf16.mxu1 %vm7188_vm6, %v7084_v52  ;;  %v15862_v44 = vld [vmem:[%s16374_s24 + $0x74] ss:$8 sps:$4 sm:$0xff]   ;;  %v15863_v37 = vld [vmem:[%s16374_s24 + $0x60] ss:$8 sps:$4 sm:$0xff]  }
 0x5b7   : > { %7352 = vmatprep.subr.bf16.mxu1 %v15805_v18  ;;  %8038 = vmatprep.subr.bf16.mxu0 %v15868_v26  ;;  %v15874_v18 = vld [vmem:[%s16374_s24 + $0x104] ss:$8 sps:$4 sm:$0xff]   ;;  %v15871_v58 = vld [vmem:[%s16374_s24 + $0x54] ss:$8 sps:$4 sm:$0xff]  }
 0x5b8   : > { %8039 = vmatpush1.bf16.msra.mxu0 %v15866_v21  ;;  %v15880_v52 = vld [vmem:[%s16374_s24 + $0xf4] ss:$8 sps:$4 sm:$0xff]  }
 0x5b9   : > { %8040 = vmatprep.subr.bf16.mxu0 %v15874_v18 }
 0x5ba   : > { %7353 = vmatpush1.bf16.msra.mxu1 %v15803_v53  ;;  %v15877_v53 = vld [vmem:[%s16374_s24 + $0x44] ss:$8 sps:$4 sm:$0xff]  }
 0x5bb   : > { %7583 = vmatmul.mubr.bf16.gmra.mxu0 %v7427_v10  ;;  %7354 = vmatprep.subr.bf16.mxu1 %v15808_v34  ;;  %v7626_v10 = vrot.slane %v7073_v29, 2  ;;  %v15844_v29 = vld [vmem:[%s16364_s14 + $0x214] ss:$8 sps:$4 sm:$0xff]   ;;  %v15878_v34 = vld [vmem:[%s16374_s24 + $0xf0] ss:$8 sps:$4 sm:$0xff]  }
 0x5bd   : > { %7238 = vmatmul.mubr.bf16.gmra.mxu1 %v7082_v47  ;;  %v7625_v47 = vrot.slane %v7071_v46, 1  ;;  %v15850_v46 = vld [vmem:[%s16364_s14 + $0x1f4] ss:$8 sps:$4 sm:$0xff]  }
 0x5be   : > { %7355 = vmatpush1.bf16.msra.mxu1 %v15806_v23  ;;  %13927 = vmatprep.mubr.msk.bf16.mxu1 %vm7188_vm6, %v17767_v50  ;;  %v15839_v50 = vld [vmem:[%s16364_s14 + $0x220] ss:$8 sps:$4 sm:$0xff]   ;;  %v15886_v23 = vld [vmem:[%s16374_s24 + $0xe4] ss:$8 sps:$4 sm:$0xff]  }
 0x5bf   : > { %7356 = vmatprep.subr.bf16.mxu1 %v15811_v27  ;;  %v15875_v27 = vld [vmem:[%s16374_s24 + $0x40] ss:$8 sps:$4 sm:$0xff]  }
 0x5c2   : > { %7357 = vmatpush1.bf16.msra.mxu1 %v15809_v35  ;;  %v15883_v35 = vld [vmem:[%s16374_s24 + $0x34] ss:$8 sps:$4 sm:$0xff]  }
 0x5c3   : > { %7358 = vmatprep.subr.bf16.mxu1 %v15814_v30  ;;  %v15884_v30 = vld [vmem:[%s16374_s24 + $0xe0] ss:$8 sps:$4 sm:$0xff]  }
 0x5c6   : > { %7359 = vmatpush1.bf16.msra.mxu1 %v15812_v42  ;;  %v15881_v42 = vld [vmem:[%s16374_s24 + $0x30] ss:$8 sps:$4 sm:$0xff]  }
 0x5c7   : > { %7360 = vmatprep.subr.bf16.mxu1 %v15817_v56  ;;  %v15889_v56 = vld [vmem:[%s16374_s24 + $0x24] ss:$8 sps:$4 sm:$0xff]  }
 0x5ca   : > { %7361 = vmatpush1.bf16.msra.mxu1 %v15815_v51  ;;  %v15887_v51 = vld [vmem:[%s16374_s24 + $0x20] ss:$8 sps:$4 sm:$0xff]  }
 0x5cb   : > { %7362 = vmatprep.subr.bf16.mxu1 %v15820_v11  ;;  %v15890_v11 = vld [vmem:[%s16374_s24 + $0xd0] ss:$8 sps:$4 sm:$0xff]  }
 0x5ce   : > { %7363 = vmatpush1.bf16.msra.mxu1 %v15818_v0  ;;  %v15892_v0 = vld [vmem:[%s16374_s24 + $0xd4] ss:$8 sps:$4 sm:$0xff]  }
 0x5cf   : > { %7364 = vmatprep.subr.bf16.mxu1 %v15823_v31  ;;  %v15893_v31 = vld [vmem:[%s16374_s24 + $0x10] ss:$8 sps:$4 sm:$0xff]  }
 0x5d2   : > { %7365 = vmatpush1.bf16.msra.mxu1 %v15821_v36  ;;  %v15895_v36 = vld [vmem:[%s16374_s24 + $0x14] ss:$8 sps:$4 sm:$0xff]  }
 0x5d3   : > { %7378 = vmatprep.subr.bf16.mxu1 %v15826_v17  ;;  %v15896_v17 = vld [vmem:[%s16374_s24 + $0xc0] ss:$8 sps:$4 sm:$0xff]  }
 0x5d6   : > { %7379 = vmatpush2.bf16.msra.mxu1 %v15824_v2  ;;  %v15898_v2 = vld [vmem:[%s16374_s24 + $0xc4] ss:$8 sps:$4 sm:$0xff]  }
 0x5d7   : > { %7380 = vmatprep.subr.bf16.mxu1 %v15829_v59  ;;  %v15899_v59 = vld [vmem:[%s16374_s24] ss:$8 sps:$4 sm:$0xff]  }
 0x5da   : > { %7381 = vmatpush2.bf16.msra.mxu1 %v15827_v25  ;;  %v15901_v25 = vld [vmem:[%s16374_s24 + $0x4] ss:$8 sps:$4 sm:$0xff]  }
 0x5db   : > { %7740 = vmatprep.subr.bf16.mxu1 %v15832_v54  ;;  %v15904_v54 = vld [vmem:[%s16374_s24 + $0xb4] ss:$8 sps:$4 sm:$0xff]  }
 0x5dd   : > { %7383 = vmatmul.mubr.bf16.vlgmr.msra.gmra.mxu1 %v17764_v45  ;;  %v7630_v45 = vor.u32 %v7629_v55, %v7628_v24  ;;  %v15908_v55 = vld [vmem:[%s16374_s24 + $0xa0] ss:$8 sps:$4 sm:$0xff]  }
 0x5de   : > { %13928 = vmatprep.mubr.msk.bf16.mxu1 %vm7188_vm6, %v17774_v39  ;;  %7741 = vmatpush1.bf16.msra.mxu1 %v15830_v15  ;;  %v7627_v39 = vor.u32 %v7626_v10, %v7625_v47  ;;  %v15902_v15 = vld [vmem:[%s16374_s24 + $0xb0] ss:$8 sps:$4 sm:$0xff]   ;;  %v15913_v47 = vld [vmem:[%s16374_s24 + $0x84] ss:$8 sps:$4 sm:$0xff]   ;;  %v15916_v10 = vld [vmem:[%s16374_s24 + $0x134] ss:$8 sps:$4 sm:$0xff]  }
 0x5df   : > { %7742 = vmatprep.subr.bf16.mxu1 %v15835_v8  ;;  %v15907_v8 = vld [vmem:[%s16374_s24 + $0x94] ss:$8 sps:$4 sm:$0xff]  }
 0x5e0   : > { %v7631_v48 = vsel %vm3235_vm3, %v7627_v39, %v7630_v45  ;;  %v15919_v45 = vld [vmem:[%s16374_s24 + $0x254] ss:$8 sps:$4 sm:$0xff]   ;;  %v15922_v39 = vld [vmem:[%s16374_s24 + $0x124] ss:$8 sps:$4 sm:$0xff]  }
 0x5e2   : > { %7743 = vmatpush1.bf16.msra.mxu1 %v15833_v12  ;;  %v15910_v12 = vld [vmem:[%s16374_s24 + $0xa4] ss:$8 sps:$4 sm:$0xff]  }
 0x5e3   : > { %7744 = vmatprep.subr.bf16.mxu1 %v15838_v60  ;;  %v15911_v60 = vld [vmem:[%s16374_s24 + $0x80] ss:$8 sps:$4 sm:$0xff]  }
 0x5e5   : > { %7393 = vmatmul.mubr.bf16.gmra.mxu1 %v17770_v28  ;;  %v15845_v28 = vld [vmem:[%s16364_s14 + $0x200] ss:$8 sps:$4 sm:$0xff]  }
 0x5e6   : > { %7745 = vmatpush1.bf16.msra.mxu1 %v15836_v40  ;;  %14011 = vmatprep.mubr.msk.bf16.mxu1 %vm7188_vm6, %v7631_v48  ;;  %v15914_v40 = vld [vmem:[%s16374_s24 + $0x130] ss:$8 sps:$4 sm:$0xff]   ;;  %v15928_v48 = vld [vmem:[%s16374_s24 + $0x1b4] ss:$8 sps:$4 sm:$0xff]  }
 0x5e7   : > { %7746 = vmatprep.subr.bf16.mxu1 %v15841_v20  ;;  %v15920_v20 = vld [vmem:[%s16374_s24 + $0x120] ss:$8 sps:$4 sm:$0xff]  }
 0x5ea   : > { %7747 = vmatpush1.bf16.msra.mxu1 %v15839_v50 }
 0x5eb   : > { %7748 = vmatprep.subr.bf16.mxu1 %v15844_v29 }
 0x5ee   : > { %7749 = vmatpush1.bf16.msra.mxu1 %v15842_v33 }
 0x5ef   : > { %7750 = vmatprep.subr.bf16.mxu1 %v15847_v14 }
 0x5f2   : > { %7751 = vmatpush1.bf16.msra.mxu1 %v15845_v28 }
 0x5f3   : > { %7752 = vmatprep.subr.bf16.mxu1 %v15850_v46 }
 0x5f6   : > { %7753 = vmatpush1.bf16.msra.mxu1 %v15848_v5 }
 0x5f7   : > { %7754 = vmatprep.subr.bf16.mxu1 %v15853_v32 }
 0x5fa   : > { %7755 = vmatpush1.bf16.msra.mxu1 %v15851_v7 }
 0x5fb   : > { %7768 = vmatprep.subr.bf16.mxu1 %v15856_v22 }
 0x5fe   : > { %7769 = vmatpush2.bf16.msra.mxu1 %v15854_v38 }
 0x5ff   : > { %7770 = vmatprep.subr.bf16.mxu1 %v15859_v16 }
 0x602   : > { %7771 = vmatpush2.bf16.msra.mxu1 %v15857_v49 }
 0x603   : > { %8183 = vmatprep.subr.bf16.mxu1 %v15862_v44 }
 0x605   : > { %7773 = vmatmul.mubr.bf16.vlgmr.msra.gmra.mxu1 %v17803_v57  ;;  %v15869_v57 = vld [vmem:[%s16374_s24 + $0x50] ss:$8 sps:$4 sm:$0xff]  }
 0x606   : > { %14012 = vmatprep.mubr.msk.bf16.mxu1 %vm7188_vm6, %v7628_v24  ;;  %8184 = vmatpush1.bf16.msra.mxu1 %v15860_v19  ;;  %v15905_v24 = vld [vmem:[%s16374_s24 + $0x90] ss:$8 sps:$4 sm:$0xff]  }
 0x607   : > { %8185 = vmatprep.subr.bf16.mxu1 %v15865_v41 }
 0x60a   : > { %8186 = vmatpush1.bf16.msra.mxu1 %v15863_v37 }
 0x60b   : > { %8187 = vmatprep.subr.bf16.mxu1 %v15871_v58 }
 0x60d   : > { %7783 = vmatmul.mubr.bf16.gmra.mxu1 %v17785_v43  ;;  %v15872_v43 = vld [vmem:[%s16374_s24 + $0x100] ss:$8 sps:$4 sm:$0xff]  }
 0x60e   : > { %8041 = vmatpush1.bf16.msra.mxu0 %v15872_v43  ;;  %8188 = vmatpush1.bf16.msra.mxu1 %v15869_v57 }
 0x60f   : > { %8042 = vmatprep.subr.bf16.mxu0 %v15880_v52  ;;  %8189 = vmatprep.subr.bf16.mxu1 %v15877_v53 }
 0x612   : > { %8043 = vmatpush1.bf16.msra.mxu0 %v15878_v34  ;;  %8190 = vmatpush1.bf16.msra.mxu1 %v15875_v27 }
 0x613   : > { %8044 = vmatprep.subr.bf16.mxu0 %v15886_v23  ;;  %8191 = vmatprep.subr.bf16.mxu1 %v15883_v35 }
 0x616   : > { %8045 = vmatpush1.bf16.msra.mxu0 %v15884_v30  ;;  %8192 = vmatpush1.bf16.msra.mxu1 %v15881_v42 }
 0x617   : > { %8193 = vmatprep.subr.bf16.mxu1 %v15889_v56  ;;  %8046 = vmatprep.subr.bf16.mxu0 %v15892_v0 }
 0x61a   : > { %8194 = vmatpush1.bf16.msra.mxu1 %v15887_v51  ;;  %8047 = vmatpush1.bf16.msra.mxu0 %v15890_v11 }
 0x61b   : > { %8195 = vmatprep.subr.bf16.mxu1 %v15895_v36  ;;  %8048 = vmatprep.subr.bf16.mxu0 %v15898_v2  ;;  %v7797_v36 = vld [vmem:[%s16369_s19] sm:$0x77] }
 0x61c   : > { %v7806_v2 = vrot.slane %v7797_v36, %v16596_v1 }
 0x61e   : > { %8196 = vmatpush1.bf16.msra.mxu1 %v15893_v31  ;;  %8049 = vmatpush1.bf16.msra.mxu0 %v15896_v17  ;;  %v7802_v17 = vrot.slane %v7797_v36, %v16592_v63 }
 0x61f   : > { %8197 = vmatprep.subr.bf16.mxu1 %v15901_v25  ;;  %8050 = vmatprep.subr.bf16.mxu0 %v15904_v54  ;;  %v7832_v54 = vrot.slane %v7797_v36, %v16600_v3 }
 0x622   : > { %8198 = vmatpush1.bf16.msra.mxu1 %v15899_v59  ;;  %8051 = vmatpush1.bf16.msra.mxu0 %v15902_v15  ;;  %v7812_v59 = vrot.slane %v7802_v17, %v16592_v63 }
 0x623   : > { %8211 = vmatprep.subr.bf16.mxu1 %v15907_v8  ;;  %8052 = vmatprep.subr.bf16.mxu0 %v15910_v12  ;;  %v7816_v8 = vrot.slane %v7806_v2, %v16592_v63 }
 0x626   : > { %8212 = vmatpush2.bf16.msra.mxu1 %v15905_v24  ;;  %8053 = vmatpush1.bf16.msra.mxu0 %v15908_v55 }
 0x627   : > { %8213 = vmatprep.subr.bf16.mxu1 %v15913_v47  ;;  %8066 = vmatprep.subr.bf16.mxu0 %v15916_v10  ;;  %v7842_v47 = vrot.slane %v7832_v54, %v16600_v3 }
 0x62a   : > { %8214 = vmatpush2.bf16.msra.mxu1 %v15911_v60  ;;  %8067 = vmatpush2.bf16.msra.mxu0 %v15914_v40  ;;  %v7836_v60 = vrot.slane %v7797_v36, %v16604_v6  ;;  %v7856_v40 = vrot.slane %v7797_v36, %v16609_v9 }
 0x62b   : > { %8545 = vmatprep.subr.bf16.mxu1 %v15919_v45  ;;  %8068 = vmatprep.subr.bf16.mxu0 %v15922_v39 }
 0x62e   : > { %8069 = vmatpush2.bf16.msra.mxu0 %v15920_v20 }
 0x62f   : > { %8355 = vmatprep.subr.bf16.mxu0 %v15928_v48  ;;  %v7860_v48 = vrot.slane %v7797_v36, %v16614_v13  ;;  %v15925_v36 = vld [vmem:[%s16374_s24 + $0x244] ss:$8 sps:$4 sm:$0xff]  }
 0x673   : > { %v7574_v50 = vpop.f32.mrf.mxu0 }
 0x675   : > { %v7229_v29 = vpop.f32.mrf.mxu1  ;;  %v7576_v33 = vpop.f32.mrf.mxu0 }
 0x677   : > { %v7231_v14 = vpop.f32.mrf.mxu1  ;;  %v7578_v28 = vpop.f32.mrf.mxu0 }
 0x679   : > { %v7233_v46 = vpop.f32.mrf.mxu1  ;;  %v7580_v5 = vpop.f32.mrf.mxu0 }
 0x67b   : > { %v7235_v32 = vpop.f32.mrf.mxu1  ;;  %v7584_v7 = vpop.f32.mrf.mxu0 }
 0x67d   : > { %v7239_v22 = vpop.f32.mrf.mxu1  ;;  %v7586_v38 = vpop.f32.mrf.mxu0 }
 0x67f   : > { %v7241_v16 = vpop.f32.mrf.mxu1  ;;  %v7588_v49 = vpop.f32.mrf.mxu0 }
 0x681   : > { %v7243_v19 = vpop.f32.mrf.mxu1  ;;  %v7589_v44 = vpop.f32.mrf.mxu0 }
 0x683   : > { %v7244_v41 = vpop.f32.mrf.mxu1 }
 0x69d   : > { %v7384_v21 = vpop.f32.mrf.mxu1 }
 0x69e   : > { %v7385_v26 = vadd.f32 %v7384_v21, %v7229_v29 }
 0x69f   : > { %v7386_v37 = vpop.f32.mrf.mxu1 }
 0x6a0   : > { %v7387_v18 = vadd.f32 %v7386_v37, %v7231_v14  ;;  %v7591_v58 = vadd.f32 %v7574_v50, %v7385_v26 }
 0x6a1   : > { %v7388_v43 = vpop.f32.mrf.mxu1 }
 0x6a2   : > { %v7389_v52 = vadd.f32 %v7388_v43, %v7233_v46  ;;  %v7592_v57 = vadd.f32 %v7576_v33, %v7387_v18  ;;  %v7846_v33 = vrot.slane %v7836_v60, %v16600_v3 }
 0x6a3   : > { %v7390_v53 = vpop.f32.mrf.mxu1 }
 0x6a4   : > { %v7391_v34 = vadd.f32 %v7390_v53, %v7235_v32  ;;  %v7593_v23 = vadd.f32 %v7578_v28, %v7389_v52  ;;  %v7866_v32 = vrot.slane %v7856_v40, %v16609_v9 }
 0x6a5   : > { %v7394_v27 = vpop.f32.mrf.mxu1 }
 0x6a6   : > { %v7395_v35 = vadd.f32 %v7394_v27, %v7239_v22  ;;  %v7594_v30 = vadd.f32 %v7580_v5, %v7391_v34 }
 0x6a7   : > { %v7396_v42 = vpop.f32.mrf.mxu1 }
 0x6a8   : > { %v7397_v56 = vadd.f32 %v7396_v42, %v7241_v16  ;;  %v7595_v51 = vadd.f32 %v7584_v7, %v7395_v35 }
 0x6a9   : > { %v7398_v11 = vpop.f32.mrf.mxu1 }
 0x6aa   : > { %v7596_v0 = vadd.f32 %v7586_v38, %v7397_v56  ;;  %v7870_v38 = vrot.slane %v7860_v48, %v16609_v9 }
 0x6ab   : > { %v7399_v31 = vpop.f32.mrf.mxu1 }
 0x6c5   : > { %v7774_v25 = vpop.f32.mrf.mxu1 }
 0x6c6   : > { %v7791_v15 = vadd.f32 %v7774_v25, %v7591_v58 }
 0x6c7   : > { %v7776_v24 = vpop.f32.mrf.mxu1 }
 0x6c8   : > { %v7817_v55 = vadd.f32 %v7812_v59, %v7791_v15  ;;  %v7792_v12 = vadd.f32 %v7776_v24, %v7592_v57 }
 0x6c9   : > { %v7778_v10 = vpop.f32.mrf.mxu1 }
 0x6ca   : > { %v7823_v45 = vmax.f32 %v7817_v55, 0.0  ;;  %v7818_v39 = vadd.f32 %v7816_v8, %v7792_v12  ;;  %v7793_v20 = vadd.f32 %v7778_v10, %v7593_v23  ;;  %v15923_v55 = vld [vmem:[%s16374_s24 + $0x240] ss:$8 sps:$4 sm:$0xff]   ;;  %v15931_v10 = vld [vmem:[%s16374_s24 + $0x234] ss:$8 sps:$4 sm:$0xff]  }
 0x6cb   : > { %v7780_v50 = vpop.f32.mrf.mxu1 }
 0x6cc   : > { %v7824_v29 = vmax.f32 %v7818_v39, 0.0  ;;  %v7819_v14 = vadd.f32 %v7812_v59, %v7793_v20  ;;  %v7794_v28 = vadd.f32 %v7780_v50, %v7594_v30  ;;  %v7847_v5 = vmul.f32 %v7842_v47, %v7823_v45  ;;  %v15926_v20 = vld [vmem:[%s16374_s24 + $0x1b0] ss:$8 sps:$4 sm:$0xff]  }
 0x6cd   : > { %v7784_v46 = vpop.f32.mrf.mxu1 }
 0x6ce   : > { %v7825_v7 = vmax.f32 %v7819_v14, 0.0  ;;  %v7820_v22 = vadd.f32 %v7816_v8, %v7794_v28  ;;  %v7795_v16 = vadd.f32 %v7784_v46, %v7595_v51  ;;  %v7848_v19 = vmul.f32 %v7846_v33, %v7824_v29  ;;  %v15917_v51 = vld [vmem:[%s16374_s24 + $0x250] ss:$8 sps:$4 sm:$0xff]   ;;  %v15934_v29 = vld [vmem:[%s16374_s24 + $0x1a4] ss:$8 sps:$4 sm:$0xff]  }
 0x6cf   : > { %v7786_v49 = vpop.f32.mrf.mxu1  ;;  %v7871_v18 = vadd.f32 %v7866_v32, %v7847_v5  ;;  %v15929_v28 = vld [vmem:[%s16374_s24 + $0x230] ss:$8 sps:$4 sm:$0xff]  }
 0x6d0   : > { %v7849_v44 = vmul.f32 %v7842_v47, %v7825_v7  ;;  %v7826_v41 = vmax.f32 %v7820_v22, 0.0  ;;  %v7796_v21 = vadd.f32 %v7786_v49, %v7596_v0  ;;  %v7821_v26 = vadd.f32 %v7812_v59, %v7795_v16  ;;  %v15940_v16 = vld [vmem:[%s16374_s24 + $0x194] ss:$8 sps:$4 sm:$0xff]   ;;  %v15935_v49 = vld [vmem:[%s16374_s24 + $0x220] ss:$8 sps:$4 sm:$0xff]  }
 0x6d1   : > { %v7788_v37 = vpop.f32.mrf.mxu1  ;;  %v7872_v34 = vadd.f32 %v7870_v38, %v7848_v19  ;;  %v15943_v19 = vld [vmem:[%s16374_s24 + $0x214] ss:$8 sps:$4 sm:$0xff]  }
 0x6d2   : > { %v7873_v58 = vadd.f32 %v7866_v32, %v7849_v44  ;;  %v7850_v43 = vmul.f32 %v7846_v33, %v7826_v41  ;;  %v7822_v52 = vadd.f32 %v7816_v8, %v7796_v21  ;;  %v7827_v57 = vmax.f32 %v7821_v26, 0.0  ;;  %v15938_v44 = vld [vmem:[%s16374_s24 + $0x190] ss:$8 sps:$4 sm:$0xff]   ;;  %v15946_v41 = vld [vmem:[%s16374_s24 + $0x184] ss:$8 sps:$4 sm:$0xff]  }
 0x6d3   : > { %v7789_v53 = vpop.f32.mrf.mxu1  ;;  %v15941_v21 = vld [vmem:[%s16374_s24 + $0x210] ss:$8 sps:$4 sm:$0xff]   ;;  %v15949_v26 = vld [vmem:[%s16374_s24 + $0x204] ss:$8 sps:$4 sm:$0xff]   ;;  %v15944_v37 = vld [vmem:[%s16374_s24 + $0x180] ss:$8 sps:$4 sm:$0xff]  }
 0x6d4   : > { %v17915_v23 = vpack.c.bf16 %v7873_v58, %v7871_v18  ;;  %v7874_v27 = vadd.f32 %v7870_v38, %v7850_v43  ;;  %v7828_v35 = vmax.f32 %v7822_v52, 0.0  ;;  %v7851_v30 = vmul.f32 %v7842_v47, %v7827_v57  ;;  %v15952_v18 = vld [vmem:[%s16374_s24 + $0x174] ss:$8 sps:$4 sm:$0xff]   ;;  %v15947_v58 = vld [vmem:[%s16374_s24 + $0x200] ss:$8 sps:$4 sm:$0xff]  }
 0x6d5   : > { %v15955_v43 = vld [vmem:[%s16374_s24 + $0x1f4] ss:$8 sps:$4 sm:$0xff]   ;;  %v15950_v52 = vld [vmem:[%s16374_s24 + $0x170] ss:$8 sps:$4 sm:$0xff]   ;;  %v15958_v57 = vld [vmem:[%s16374_s24 + $0x164] ss:$8 sps:$4 sm:$0xff]  }
 0x6d6   : > { %v7852_v42 = vmul.f32 %v7846_v33, %v7828_v35  ;;  %v7898_v56 = vpack.c.bf16 %v7874_v27, %v7872_v34  ;;  %v7921_v11 = vshrl.u32 %v17915_v23, 16  ;;  %v7923_v0 = vshll.u32 %v17915_v23, 16  ;;  %v15953_v53 = vld [vmem:[%s16374_s24 + $0x1f0] ss:$8 sps:$4 sm:$0xff]   ;;  %v15961_v34 = vld [vmem:[%s16374_s24 + $0x1e4] ss:$8 sps:$4 sm:$0xff]  }
 0x6d7   : > { %v7875_v31 = vadd.f32 %v7866_v32, %v7851_v30  ;;  %v15937_v32 = vld [vmem:[%s16374_s24 + $0x224] ss:$8 sps:$4 sm:$0xff]   ;;  %v15956_v27 = vld [vmem:[%s16374_s24 + $0x160] ss:$8 sps:$4 sm:$0xff]   ;;  %v15964_v35 = vld [vmem:[%s16374_s24 + $0x154] ss:$8 sps:$4 sm:$0xff]  }
 0x6d8   : > { %v7876_v17 = vadd.f32 %v7870_v38, %v7852_v42  ;;  %14074 = vmatprep.mubr.msk.bf16.mxu1 %vm7188_vm6, %v7898_v56  ;;  %v7928_v2 = vshrl.u32 %v7898_v56, 16  ;;  %v7930_v59 = vshll.u32 %v7898_v56, 16  ;;  %v7925_v54 = vrot.slane %v7923_v0, 1  ;;  %v15932_v38 = vld [vmem:[%s16374_s24 + $0x1a0] ss:$8 sps:$4 sm:$0xff]  }
 0x6d9   : > { %v8423_v25 = vpack.c.bf16 %v7875_v31, %v7875_v31  ;;  %8216 = vmatmul.mubr.bf16.vlgmr.msra.gmra.mxu1 %v17915_v23  ;;  %v8425_v15 = vrot.slane %v7921_v11, 1  ;;  %v8426_v8 = vrot.slane %v7923_v0, 2  ;;  %v8250_v14 = vrot.slane %v7898_v56, 1  ;;  %v15959_v30 = vld [vmem:[%s16374_s24 + $0x1e0] ss:$8 sps:$4 sm:$0xff]  }
 0x6da   : > { %v8424_v24 = vpack.c.bf16 %v7876_v17, %v7876_v17  ;;  %8546 = vmatpush1.bf16.msra.mxu1 %v15917_v51  ;;  %v7932_v12 = vrot.slane %v7930_v59, 1  ;;  %v8433_v60 = vrot.slane %v7928_v2, 1  ;;  %v8434_v45 = vrot.slane %v7930_v59, 2  ;;  %v15967_v42 = vld [vmem:[%s16374_s24 + $0x274] ss:$8 sps:$4 sm:$0xff]  }
 0x6db   : > { %v8429_v47 = vshll.u32 %v8423_v25, 16  ;;  %8547 = vmatprep.subr.bf16.mxu1 %v15925_v36  ;;  %v7926_v50 = vor.u32 %v7925_v54, %v7921_v11  ;;  %v8427_v33 = vor.u32 %v8426_v8, %v8425_v15  ;;  %v15962_v56 = vld [vmem:[%s16374_s24 + $0x150] ss:$8 sps:$4 sm:$0xff]   ;;  %v15970_v51 = vld [vmem:[%s16374_s24 + $0x144] ss:$8 sps:$4 sm:$0xff]   ;;  %v8249_v54 = vrot.slane %v17915_v23, 1 }
 0x6dc   : > { %v8437_v40 = vshll.u32 %v8424_v24, 16  ;;  %v7933_v39 = vor.u32 %v7932_v12, %v7928_v2  ;;  %v8435_v46 = vor.u32 %v8434_v45, %v8433_v60  ;;  %v15965_v11 = vld [vmem:[%s16374_s24 + $0x270] ss:$8 sps:$4 sm:$0xff]   ;;  %v15973_v0 = vld [vmem:[%s16374_s24 + $0x264] ss:$8 sps:$4 sm:$0xff]  }
 0x6dd   : > { %v8431_v48 = vrot.slane %v8429_v47, 2  ;;  %v15968_v31 = vld [vmem:[%s16374_s24 + $0x140] ss:$8 sps:$4 sm:$0xff]   ;;  %v15976_v36 = vld [vmem:[%s16374_s24 + $0x1d4] ss:$8 sps:$4 sm:$0xff]  }
 0x6de   : > { %8548 = vmatpush1.bf16.msra.mxu1 %v15923_v55  ;;  %14053 = vmatprep.mubr.msk.bf16.mxu0 %vm7188_vm6, %v7933_v39  ;;  %v8439_v5 = vrot.slane %v8437_v40, 2  ;;  %v15971_v17 = vld [vmem:[%s16374_s24 + $0x260] ss:$8 sps:$4 sm:$0xff]   ;;  %v15974_v2 = vld [vmem:[%s16374_s24 + $0x1d0] ss:$8 sps:$4 sm:$0xff]  }
 0x6df   : > { %8071 = vmatmul.mubr.bf16.vlgmr.msra.gmra.mxu0 %v7926_v50  ;;  %8549 = vmatprep.subr.bf16.mxu1 %v15931_v10  ;;  %v17931_v7 = vsel %vm3235_vm3, %v8427_v33, %v8431_v48  ;;  %v15979_v59 = vld [vmem:[%s16374_s24 + $0x1c4] ss:$8 sps:$4 sm:$0xff]   ;;  %v15977_v25 = vld [vmem:[%s16374_s24 + $0x1c0] ss:$8 sps:$4 sm:$0xff]   ;;  %v15980_v15 = vld [vmem:[%s19455_s6 + $0x38] sm:$0xff]  }
 0x6e0   : > { %8356 = vmatpush1.bf16.msra.mxu0 %v15926_v20  ;;  %14115 = vmatprep.mubr.msk.bf16.mxu0 %vm7188_vm6, %v8250_v14  ;;  %v8440_v22 = vsel %vm3235_vm3, %v8435_v46, %v8439_v5  ;;  %v15981_v8 = vld [vmem:[%s19455_s6 + $0x30] sm:$0xff]   ;;  %v15982_v24 = vld [vmem:[%s19455_s6 + $0x28] sm:$0xff]   ;;  %v15983_v23 = vld [vmem:[%s19455_s6 + $0x20] sm:$0xff]  }
 0x6e1   : > { %14156 = vmatprep.mubr.msk.bf16.mxu1 %vm7188_vm6, %v8440_v22  ;;  %8357 = vmatprep.subr.bf16.mxu0 %v15934_v29  ;;  %v15984_v55 = vld [vmem:[%s19455_s6 + $0x18] sm:$0xff]   ;;  %v15985_v12 = vld [vmem:[%s19455_s6 + $0x10] sm:$0xff]   ;;  %v15986_v60 = vld [vmem:[%s19455_s6 + $0x8] sm:$0xff]  }
 0x6e2   : > { %8550 = vmatpush1.bf16.msra.mxu1 %v15929_v28  ;;  %v15987_v47 = vld [vmem:[%s19455_s6] sm:$0xff]   ;;  %v15988_v10 = vld [vmem:[%s19455_s6 + $0x48] sm:$0xff]  }
 0x6e3   : > { %8551 = vmatprep.subr.bf16.mxu1 %v15937_v32  ;;  %v15989_v45 = vld [vmem:[%s19455_s6 + $0x40] sm:$0xff]  }
 0x6e4   : > { %8358 = vmatpush1.bf16.msra.mxu0 %v15932_v38  ;;  %v8592_v14 = vld [vmem:[%s16379_s30] sm:$0x77] }
 0x6e5   : > { %8359 = vmatprep.subr.bf16.mxu0 %v15940_v16  ;;  %v8597_v5 = vrot.slane %v8592_v14, %v16592_v63 }
 0x6e6   : > { %8552 = vmatpush1.bf16.msra.mxu1 %v15935_v49 }
 0x6e7   : > { %8553 = vmatprep.subr.bf16.mxu1 %v15943_v19  ;;  %v8607_v49 = vrot.slane %v8597_v5, %v16592_v63 }
 0x6e8   : > { %8360 = vmatpush1.bf16.msra.mxu0 %v15938_v44 }
 0x6e9   : > { %8361 = vmatprep.subr.bf16.mxu0 %v15946_v41 }
 0x6ea   : > { %8554 = vmatpush1.bf16.msra.mxu1 %v15941_v21 }
 0x6eb   : > { %8555 = vmatprep.subr.bf16.mxu1 %v15949_v26 }
 0x6ec   : > { %8362 = vmatpush1.bf16.msra.mxu0 %v15944_v37 }
 0x6ed   : > { %8363 = vmatprep.subr.bf16.mxu0 %v15952_v18 }
 0x6ee   : > { %8556 = vmatpush1.bf16.msra.mxu1 %v15947_v58 }
 0x6ef   : > { %8557 = vmatprep.subr.bf16.mxu1 %v15955_v43 }
 0x6f0   : > { %8364 = vmatpush1.bf16.msra.mxu0 %v15950_v52  ;;  %v8627_v52 = vrot.slane %v8592_v14, %v16604_v6  ;;  %v8645_v6 = vrot.slane %v8592_v14, %v16609_v9 }
 0x6f1   : > { %8365 = vmatprep.subr.bf16.mxu0 %v15958_v57 }
 0x6f2   : > { %8558 = vmatpush1.bf16.msra.mxu1 %v15953_v53  ;;  %v8623_v53 = vrot.slane %v8592_v14, %v16600_v3 }
 0x6f3   : > { %8559 = vmatprep.subr.bf16.mxu1 %v15961_v34 }
 0x6f4   : > { %8366 = vmatpush1.bf16.msra.mxu0 %v15956_v27 }
 0x6f5   : > { %8367 = vmatprep.subr.bf16.mxu0 %v15964_v35 }
 0x6f6   : > { %8560 = vmatpush1.bf16.msra.mxu1 %v15959_v30 }
 0x6f7   : > { %8573 = vmatprep.subr.bf16.mxu1 %v15967_v42 }
 0x6f8   : > { %8368 = vmatpush1.bf16.msra.mxu0 %v15962_v56  ;;  %v8649_v56 = vrot.slane %v8592_v14, %v16614_v13 }
 0x6f9   : > { %8369 = vmatprep.subr.bf16.mxu0 %v15970_v51 }
 0x6fa   : > { %8574 = vmatpush2.bf16.msra.mxu1 %v15965_v11  ;;  %v8637_v11 = vrot.slane %v8627_v52, %v16600_v3 }
 0x6fb   : > { %8575 = vmatprep.subr.bf16.mxu1 %v15973_v0 }
 0x6fc   : > { %8370 = vmatpush1.bf16.msra.mxu0 %v15968_v31 }
 0x6fd   : > { %8383 = vmatprep.subr.bf16.mxu0 %v15976_v36 }
 0x6fe   : > { %8576 = vmatpush2.bf16.msra.mxu1 %v15971_v17  ;;  %v8633_v17 = vrot.slane %v8623_v53, %v16600_v3  ;;  %v15994_v53 = vld [vmem:[%s19468_s1] sm:$0xff]  }
 0x700   : > { %8384 = vmatpush2.bf16.msra.mxu0 %v15974_v2 }
 0x701   : > { %8578 = vmatmul.mubr.bf16.vlgmr.msra.gmra.mxu1 %v17931_v7  ;;  %8385 = vmatprep.subr.bf16.mxu0 %v15979_v59  ;;  %v8601_v7 = vrot.slane %v8592_v14, %v16596_v1 }
 0x703   : > { %v8611_v26 = vrot.slane %v8601_v7, %v16592_v63 }
 0x704   : > { %8386 = vmatpush2.bf16.msra.mxu0 %v15977_v25 }
 0x705   : > { %8754 = vmatprep.subr.bf16.mxu0 %v16305_v4 }
 0x707   : > { %8388 = vmatmul.mubr.bf16.vlgmr.msra.gmra.mxu0 %v8249_v54  ;;  %v8659_v54 = vrot.slane %v8649_v56, %v16609_v9 }
 0x708   : > { %8755 = vmatpush1.bf16.msra.mxu0 %v15980_v15 }
 0x709   : > { %8756 = vmatprep.subr.bf16.mxu0 %v16305_v4 }
 0x70c   : > { %8757 = vmatpush1.bf16.msra.mxu0 %v15981_v8 }
 0x70d   : > { %8758 = vmatprep.subr.bf16.mxu0 %v16305_v4 }
 0x710   : > { %8759 = vmatpush1.bf16.msra.mxu0 %v15982_v24  ;;  %v8655_v24 = vrot.slane %v8645_v6, %v16609_v9  ;;  %v9037_v6 = vld [vmem:[%s19469_s7] sm:$0x7]  ;;  %s19471_s7 = sld [smem:[#allocation15_spill]] }
 0x711   : > { %8760 = vmatprep.subr.bf16.mxu0 %v16305_v4 }
 0x714   : > { %8761 = vmatpush1.bf16.msra.mxu0 %v15983_v23 }
 0x715   : > { %8762 = vmatprep.subr.bf16.mxu0 %v16305_v4 }
 0x718   : > { %8763 = vmatpush1.bf16.msra.mxu0 %v15984_v55 }
 0x719   : > { %8764 = vmatprep.subr.bf16.mxu0 %v16305_v4 }
 0x71c   : > { %8765 = vmatpush1.bf16.msra.mxu0 %v15985_v12 }
 0x71d   : > { %8766 = vmatprep.subr.bf16.mxu0 %v16305_v4 }
 0x720   : > { %8767 = vmatpush1.bf16.msra.mxu0 %v15986_v60 }
 0x721   : > { %8768 = vmatprep.subr.bf16.mxu0 %v16305_v4 }
 0x724   : > { %8769 = vmatpush1.bf16.msra.mxu0 %v15987_v47 }
 0x725   : > { %8782 = vmatprep.subr.bf16.mxu0 %v16305_v4 }
 0x728   : > { %8783 = vmatpush2.bf16.msra.mxu0 %v15988_v10 }
 0x729   : > { %8784 = vmatprep.subr.bf16.mxu0 %v16305_v4 }
 0x72c   : > { %8785 = vmatpush2.bf16.msra.mxu0 %v15989_v45 }
 0x799   : > { %v8217_v40 = vpop.f32.mrf.mxu1 }
 0x79b   : > { %v8219_v39 = vpop.f32.mrf.mxu1 }
 0x79d   : > { %v8221_v48 = vpop.f32.mrf.mxu1 }
 0x79f   : > { %v8072_v20 = vpop.f32.mrf.mxu0  ;;  %v8223_v29 = vpop.f32.mrf.mxu1 }
 0x7a0   : > { %v8218_v32 = vadd.f32 %v8217_v40, %v8072_v20  ;;  %v15990_v40 = vld [vmem:[%s19466_s10] sm:$0xff]   ;;  %v19320_v20 = vmov 0.0  }
 0x7a1   : > { %v8074_v50 = vpop.f32.mrf.mxu0  ;;  %14760 = vmatprep.subr.bf16.mxu0 %v19320_v20  ;;  %14754 = vmatprep.subr.bf16.mxu1 %v19320_v20 }
 0x7a2   : > { %v8220_v16 = vadd.f32 %v8219_v39, %v8074_v50  ;;  %v15991_v39 = vld [vmem:[%s19466_s10 + $0x8] sm:$0xff]   ;;  %14756 = vmatprep.mubr.msk.bf16.mxu1 %vm16307_vm7, %v19320_v20 }
 0x7a3   : > { %v8076_v33 = vpop.f32.mrf.mxu0  ;;  %14755 = vmatpush3.bf16.msra.mxu1 %v15991_v39 }
 0x7a4   : > { %v8222_v44 = vadd.f32 %v8221_v48, %v8076_v33  ;;  %14766 = vmatprep.subr.bf16.mxu1 %v19320_v20  ;;  %v8686_v48 = vld [vmem:[%s19467_s18] sm:$0x7]  ;;  %s19470_s18 = sld [smem:[#allocation14_spill]] }
 0x7a5   : > { %v8078_v46 = vpop.f32.mrf.mxu0  ;;  %v8690_v50 = vrot.slane %v8686_v48, %v16592_v63 }
 0x7a6   : > { %v8224_v58 = vadd.f32 %v8223_v29, %v8078_v46  ;;  %v8800_v46 = vrot.slane %v8686_v48, %v16600_v3 }
 0x7c1   : > { %v8579_v28 = vpop.f32.mrf.mxu1 }
 0x7c3   : > { %v8581_v22 = vpop.f32.mrf.mxu1 }
 0x7c5   : > { %v8583_v37 = vpop.f32.mrf.mxu1 }
 0x7c7   : > { %v8389_v38 = vpop.f32.mrf.mxu0  ;;  %v8585_v42 = vpop.f32.mrf.mxu1 }
 0x7c8   : > { %v8398_v4 = vadd.f32 %v8389_v38, %v8218_v32  ;;  %v8806_v38 = vrot.slane %v8686_v48, %v16609_v9 }
 0x7c9   : > { %v8391_v19 = vpop.f32.mrf.mxu0 }
 0x7ca   : > { %v8588_v41 = vadd.f32 %v8579_v28, %v8398_v4  ;;  %v8399_v21 = vadd.f32 %v8391_v19, %v8220_v16 }
 0x7cb   : > { %v8393_v18 = vpop.f32.mrf.mxu0 }
 0x7cc   : > { %v8589_v43 = vadd.f32 %v8581_v22, %v8399_v21  ;;  %v8400_v57 = vadd.f32 %v8393_v18, %v8222_v44  ;;  %v8612_v1 = vadd.f32 %v8607_v49, %v8588_v41  ;;  %v15992_v44 = vld [vmem:[%s19466_s10 + $0x18] sm:$0xff]  }
 0x7cd   : > { %v8395_v34 = vpop.f32.mrf.mxu0 }
 0x7ce   : > { %v8613_v27 = vadd.f32 %v8611_v26, %v8589_v43  ;;  %v8590_v35 = vadd.f32 %v8583_v37, %v8400_v57  ;;  %v8401_v30 = vadd.f32 %v8395_v34, %v8224_v58  ;;  %v8616_v36 = vmax.f32 %v8612_v1, 0.0  ;;  %v15993_v43 = vld [vmem:[%s19466_s10 + $0x10] sm:$0xff]   ;;  %v15995_v34 = vld [vmem:[%s19468_s1 + $0x8] sm:$0xff]   ;;  %s16218_s10 = scalar_lea.vmem %s16217_s9, 32 }
 0x7d0   : > { %v8617_v51 = vmax.f32 %v8613_v27, 0.0  ;;  %v8614_v0 = vadd.f32 %v8607_v49, %v8590_v35  ;;  %v8591_v31 = vadd.f32 %v8585_v42, %v8401_v30  ;;  %v8638_v13 = vmul.f32 %v8633_v17, %v8616_v36 }
 0x7d2   : > { %v8618_v2 = vmax.f32 %v8614_v0, 0.0  ;;  %v8615_v59 = vadd.f32 %v8611_v26, %v8591_v31  ;;  %v8639_v25 = vmul.f32 %v8637_v11, %v8617_v51  ;;  %v8660_v47 = vadd.f32 %v8655_v24, %v8638_v13 }
 0x7d4   : > { %v8640_v15 = vmul.f32 %v8633_v17, %v8618_v2  ;;  %v8619_v8 = vmax.f32 %v8615_v59, 0.0  ;;  %v8661_v12 = vadd.f32 %v8659_v54, %v8639_v25 }
 0x7d6   : > { %v8641_v23 = vmul.f32 %v8637_v11, %v8619_v8  ;;  %v8662_v55 = vadd.f32 %v8655_v24, %v8640_v15  ;;  %v9041_v15 = vrot.slane %v9037_v6, %v16592_v63 }
 0x7d8   : > { %v8663_v60 = vadd.f32 %v8659_v54, %v8641_v23  ;;  %v8684_v45 = vpack.c.bf16 %v8662_v55, %v8660_v47 }
 0x7da   : > { %v8685_v10 = vpack.c.bf16 %v8663_v60, %v8661_v12  ;;  %v9049_v12 = vrot.slane %v9037_v6, %v16600_v3 }
 0x7dc   : > { %14167 = vmatprep.mubr.msk.bf16.mxu0 %vm7188_vm6, %v8685_v10 }
 0x7dd   : > { %8787 = vmatmul.mubr.bf16.vlgmr.msra.gmra.mxu0 %v8684_v45  ;;  %v9055_v45 = vrot.slane %v9037_v6, %v16609_v9 }
 0x7de   : > { %14762 = vmatprep.mubr.msk.bf16.mxu0 %vm16307_vm7, %v19320_v20  ;;  %14761 = vmatpush3.bf16.msra.mxu0 %v15990_v40 }
 0x7df   : > { %14772 = vmatprep.subr.bf16.mxu0 %v19320_v20 }
 0x89d   : > { %v8788_v29 = vpop.f32.mrf.mxu0 }
 0x89e   : > { %v8789_v33 = vadd.f32 %v8788_v29, %v8690_v50 }
 0x89f   : > { %v8790_v14 = vpop.f32.mrf.mxu0 }
 0x8a0   : > { %v8795_v28 = vmax.f32 %v8789_v33, 0.0  ;;  %v15996_v33 = vld [vmem:[%s19468_s1 + $0x18] sm:$0xff]  }
 0x8a1   : > { %v8791_v5 = vpop.f32.mrf.mxu0 }
 0x8a2   : > { %v8792_v32 = vadd.f32 %v8791_v5, %v8690_v50  ;;  %v8801_v22 = vmul.f32 %v8800_v46, %v8795_v28 }
 0x8a3   : > { %v8793_v7 = vpop.f32.mrf.mxu0 }
 0x8a4   : > { %v8796_v16 = vmax.f32 %v8792_v32, 0.0  ;;  %v8807_v49 = vadd.f32 %v8806_v38, %v8801_v22 }
 0x8a6   : > { %v8802_v4 = vmul.f32 %v8800_v46, %v8796_v16 }
 0x8a8   : > { %v8808_v19 = vadd.f32 %v8806_v38, %v8802_v4  ;;  %v15997_v4 = vld [vmem:[%s19468_s1 + $0x10] sm:$0xff]   ;;  %s19474_s1 = sld [smem:[#allocation17_spill]] }
 0x8aa   : > { %v8811_v41 = vpack.c.bf16 %v8808_v19, %v8807_v49 }
 0x8ac   : > { %v8816_v21 = vshrl.u32 %v8811_v41, 16  ;;  %v8818_v26 = vshll.u32 %v8811_v41, 16  ;;  %14763 = vmatmul.mubr.msk.bf16.vlgmr.msra.gmra.mxu0 %vm8828_vm8, %v8811_v41  ;;  %v8926_v1 = vrot.slane %v8811_v41, 1 }
 0x8ad   : > { %14773 = vmatpush3.bf16.msra.mxu0 %v15992_v44  ;;  %14774 = vmatprep.mubr.msk.bf16.mxu0 %vm16307_vm7, %v19320_v20 }
 0x8ae   : > { %v8820_v37 = vrot.slane %v8818_v26, 1  ;;  %v8982_v18 = vrot.slane %v8816_v21, 1  ;;  %v8983_v58 = vrot.slane %v8818_v26, 2  ;;  %14784 = vmatprep.subr.bf16.mxu0 %v19320_v20 }
 0x8b0   : > { %v8821_v52 = vor.u32 %v8820_v37, %v8816_v21  ;;  %v8984_v57 = vor.u32 %v8983_v58, %v8982_v18 }
 0x8b2   : > { %14757 = vmatmul.mubr.msk.bf16.vlgmr.msra.gmra.mxu1 %vm8828_vm8, %v8821_v52 }
 0x8b3   : > { %14767 = vmatpush3.bf16.msra.mxu1 %v15993_v43  ;;  %14768 = vmatprep.mubr.msk.bf16.mxu1 %vm16307_vm7, %v19320_v20 }
 0x8b4   : > { %14775 = vmatmul.mubr.msk.bf16.vlgmr.msra.gmra.mxu0 %vm8828_vm8, %v8984_v57  ;;  %14778 = vmatprep.subr.bf16.mxu1 %v19320_v20 }
 0x8b5   : > { %14786 = vmatprep.mubr.msk.bf16.mxu0 %vm16307_vm7, %v19320_v20  ;;  %14785 = vmatpush3.bf16.msra.mxu0 %v15994_v53 }
 0x8b6   : > { %14796 = vmatprep.subr.bf16.mxu0 %v19320_v20 }
 0x8ba   : > { %14769 = vmatmul.mubr.msk.bf16.vlgmr.msra.gmra.mxu1 %vm8828_vm8, %v8926_v1 }
 0x8bb   : > { %14780 = vmatprep.mubr.msk.bf16.mxu1 %vm16307_vm7, %v19320_v20  ;;  %14779 = vmatpush3.bf16.msra.mxu1 %v15995_v34 }
 0x8bc   : > { %14790 = vmatprep.subr.bf16.mxu1 %v19320_v20 }
 0x96c   : > { %v8915_v27 = vpop.f32.mrf.mxu0 }
 0x96e   : > { %v14764_v35 = vpop.f32.mrf.mxu0 }
 0x970   : > { %v8918_v30 = vpop.f32.mrf.mxu0 }
 0x972   : > { %v8866_v42 = vpop.f32.mrf.mxu1  ;;  %v14765_v56 = vpop.f32.mrf.mxu0 }
 0x973   : > { %v8916_v2 = vadd.f32 %v8915_v27, %v8866_v42  ;;  %v9281_v27 = vld [vmem:[%s19470_s18] sm:$0x7]  ;;  %s19472_s18 = sld [smem:[#allocation16_spill]] }
 0x974   : > { %v14758_v51 = vpop.f32.mrf.mxu1  ;;  %v9028_v11 = vpop.f32.mrf.mxu0  ;;  %v9285_v56 = vrot.slane %v9281_v27, %v16592_v63  ;;  %v9291_v6 = vrot.slane %v9281_v27, %v16600_v3 }
 0x976   : > { %v8869_v0 = vpop.f32.mrf.mxu1  ;;  %v14776_v31 = vpop.f32.mrf.mxu0 }
 0x977   : > { %v8919_v13 = vadd.f32 %v8918_v30, %v8869_v0  ;;  %v18059_v31 = vand.u32 127, %v977_v61 }
 0x978   : > { %v14759_v36 = vpop.f32.mrf.mxu1  ;;  %v9031_v17 = vpop.f32.mrf.mxu0 }
 0x979   : > { %v9303_v36 = vadd.s32 1, %v16589_v62 }
 0x97a   : > { %v8970_v59 = vpop.f32.mrf.mxu1  ;;  %v14777_v25 = vpop.f32.mrf.mxu0 }
 0x97b   : > { %v8977_v54 = vadd.f32 %v8970_v59, %v8916_v2  ;;  %v9296_v25 = vrot.slane %v9281_v27, %v16609_v9  ;;  %vm9304_vm9 = vcmp.eq.s32.totalorder %v18059_v31, %v9303_v36 }
 0x97c   : > { %v14770_v8 = vpop.f32.mrf.mxu1 }
 0x97d   : > { %v9035_v24 = vadd.f32 %v9028_v11, %v8977_v54  ;;  %v9383_v54 = vadd.s32 4294967295, %v16589_v62 }
 0x97e   : > { %v8973_v23 = vpop.f32.mrf.mxu1 }
 0x97f   : > { %v9042_v55 = vadd.f32 %v9041_v15, %v9035_v24  ;;  %v8978_v60 = vadd.f32 %v8973_v23, %v8919_v13  ;;  %v18067_v13 = vsel %vm9304_vm9, 1.0, %v19320_v20  ;;  %vm9384_vm11 = vcmp.eq.s32.totalorder %v18059_v31, %v9383_v54  ;;  %v15998_v24 = vld [vmem:[%s19471_s7] sm:$0xff]   ;;  %s19473_s7 = sld [smem:[#allocation18_spill]] }
 0x980   : > { %v14771_v47 = vpop.f32.mrf.mxu1  ;;  %v18076_v61 = vsel %vm9384_vm11, 1.0, %v19320_v20 }
 0x981   : > { %v9044_v10 = vmax.f32 %v9042_v55, 0.0  ;;  %v9036_v40 = vadd.f32 %v9031_v17, %v8978_v60  ;;  %v15999_v55 = vld [vmem:[%s19472_s18] sm:$0xff]   ;;  %s16308_s18 = smov 64  }
 0x983   : > { %v9050_v39 = vmul.f32 %v9049_v12, %v9044_v10  ;;  %v9043_v48 = vadd.f32 %v9041_v15, %v9036_v40 }
 0x985   : > { %v9056_v50 = vadd.f32 %v9055_v45, %v9050_v39  ;;  %v9045_v29 = vmax.f32 %v9043_v48, 0.0 }
 0x987   : > { %v9060_v14 = vpack.c.bf16 %v9056_v50, %v9056_v50  ;;  %v9051_v28 = vmul.f32 %v9049_v12, %v9045_v29 }
 0x989   : > { %v9057_v46 = vadd.f32 %v9055_v45, %v9051_v28  ;;  %14787 = vmatmul.mubr.msk.bf16.vlgmr.msra.gmra.mxu0 %vm8828_vm8, %v9060_v14 }
 0x98a   : > { %14797 = vmatpush3.bf16.msra.mxu0 %v15996_v33  ;;  %14798 = vmatprep.mubr.msk.bf16.mxu0 %vm16307_vm7, %v19320_v20 }
 0x98b   : > { %v9064_v5 = vpack.c.bf16 %v9057_v46, %v9056_v50  ;;  %14812 = vmatprep.subr.bf16.mxu0 %v19320_v20  ;;  %v16000_v46 = vld [vmem:[%s19473_s7 + $0x18] sm:$0xff]  }
 0x98d   : > { %v9066_v32 = vshrl.u32 %v9064_v5, 16  ;;  %v9068_v7 = vshll.u32 %v9064_v5, 16  ;;  %v9174_v44 = vrot.slane %v9064_v5, 1  ;;  %v16001_v5 = vld [vmem:[%s19473_s7 + $0x10] sm:$0xff]  }
 0x98f   : > { %v9070_v22 = vrot.slane %v9068_v7, 1  ;;  %v9228_v38 = vrot.slane %v9066_v32, 1  ;;  %v9229_v16 = vrot.slane %v9068_v7, 2 }
 0x991   : > { %v9071_v49 = vor.u32 %v9070_v22, %v9066_v32  ;;  %v9230_v19 = vor.u32 %v9229_v16, %v9228_v38  ;;  %v9567_v32 = vld [vmem:[%s19474_s1] sm:$0x7]  ;;  %s19475_s1 = sld [smem:[#allocation20_spill]] }
 0x992   : > { %v9571_v7 = vrot.slane %v9567_v32, %v16592_v63 }
 0x993   : > { %14781 = vmatmul.mubr.msk.bf16.vlgmr.msra.gmra.mxu1 %vm8828_vm8, %v9071_v49  ;;  %14799 = vmatmul.mubr.msk.bf16.vlgmr.msra.gmra.mxu0 %vm8828_vm8, %v9230_v19  ;;  %v9577_v49 = vrot.slane %v9567_v32, %v16600_v3 }
 0x994   : > { %14791 = vmatpush3.bf16.msra.mxu1 %v15997_v4  ;;  %14792 = vmatprep.mubr.msk.bf16.mxu1 %vm16307_vm7, %v19320_v20 }
 0x995   : > { %14802 = vmatprep.subr.mxu1 %v19320_v20  ;;  %14814 = vmatprep.mubr.msk.bf16.mxu0 %vm16307_vm7, %v19320_v20 }
 0x996   : > { %14813 = vmatpush3.bf16.msra.mxu0 %v15999_v55  ;;  %v10392_v55 = vadd.s32 2, %v16589_v62 }
 0x997   : > { %14824 = vmatprep.subr.mxu0 %v19320_v20 }
 0x998   : > { %vm10393_vm15 = vcmp.eq.s32.totalorder %v18059_v31, %v10392_v55 }
 0x99b   : > { %14793 = vmatmul.mubr.msk.bf16.vlgmr.msra.gmra.mxu1 %vm8828_vm8, %v9174_v44 }
 0x99c   : > { %14804 = vmatprep.mubr.msk.f32.mxu1 %vm16307_vm7, %v19320_v20 }
 0xa49   : > { %v9164_v41 = vpop.f32.mrf.mxu0 }
 0xa4b   : > { %v14788_v21 = vpop.f32.mrf.mxu0 }
 0xa4d   : > { %v9167_v26 = vpop.f32.mrf.mxu0 }
 0xa4f   : > { %v14789_v37 = vpop.f32.mrf.mxu0 }
 0xa53   : > { %v9115_v18 = vpop.f32.mrf.mxu1  ;;  %v9274_v58 = vpop.f32.mrf.mxu0 }
 0xa54   : > { %v9165_v35 = vadd.f32 %v9164_v41, %v9115_v18  ;;  %v9582_v41 = vrot.slane %v9567_v32, %v16609_v9 }
 0xa55   : > { %v14782_v43 = vpop.f32.mrf.mxu1  ;;  %v14800_v52 = vpop.f32.mrf.mxu0 }
 0xa56   : > { %v16003_v43 = vld [vmem:[%s19473_s7] sm:$0xff]   ;;  %v9924_v52 = vadd.s32 4294967294, %v16589_v62 }
 0xa57   : > { %v9118_v57 = vpop.f32.mrf.mxu1  ;;  %v9277_v1 = vpop.f32.mrf.mxu0 }
 0xa58   : > { %vm9925_vm14 = vcmp.eq.s32.totalorder %v18059_v31, %v9924_v52  ;;  %v16012_v31 = vld [vmem:[%s19475_s1 + $0x38] sm:$0xff]  }
 0xa59   : > { %v14783_v53 = vpop.f32.mrf.mxu1  ;;  %v14801_v34 = vpop.f32.mrf.mxu0  ;;  %v14223_v57 = vsel %vm9925_vm14, 1.0, %v19320_v20 }
 0xa5a   : > { %v16006_v53 = vld [vmem:[%s19475_s1 + $0x8] sm:$0xff]   ;;  %v16007_v34 = vld [vmem:[%s19475_s1] sm:$0xff]  }
 0xa5b   : > { %v9218_v30 = vpop.f32.mrf.mxu1 }
 0xa5c   : > { %v9224_v42 = vadd.f32 %v9218_v30, %v9165_v35  ;;  %v16004_v30 = vld [vmem:[%s19473_s7 + $0x28] sm:$0xff]  }
 0xa5d   : > { %v14794_v51 = vpop.f32.mrf.mxu1 }
 0xa5e   : > { %v9280_v11 = vadd.f32 %v9274_v58, %v9224_v42  ;;  %v16002_v58 = vld [vmem:[%s19473_s7 + $0x8] sm:$0xff]  }
 0xa5f   : > { %v9221_v0 = vpop.f32.mrf.mxu1 }
 0xa60   : > { %v9286_v17 = vadd.f32 %v9285_v56, %v9280_v11  ;;  %v16005_v0 = vld [vmem:[%s19473_s7 + $0x20] sm:$0xff]  }
 0xa61   : > { %v14795_v2 = vpop.f32.mrf.mxu1 }
 0xa62   : > { %v9287_v59 = vmax.f32 %v9286_v17, 0.0 }
 0xa64   : > { %v9292_v15 = vmul.f32 %v9291_v6, %v9287_v59  ;;  %v16008_v6 = vld [vmem:[%s19475_s1 + $0x18] sm:$0xff]  }
 0xa66   : > { %v9297_v8 = vadd.f32 %v9296_v25, %v9292_v15  ;;  %v16009_v25 = vld [vmem:[%s19475_s1 + $0x10] sm:$0xff]  }
 0xa68   : > { %14803 = vmatpush3.msra.mxu1 %v9297_v8  ;;  %v9465_v23 = vpack.c.bf16 %v9297_v8, %v9297_v8 }
 0xa69   : > { %14805 = vmatmul.mubr.msk.f32.vlgmr.msra.gmra.mxu1 %vm9307_vm10, %v18067_v13  ;;  %14807 = vmatprep.subr.mxu1 %v19320_v20 }
 0xa6a   : > { %14808 = vmatpush3.msra.mxu1 %v9297_v8  ;;  %14809 = vmatprep.mubr.msk.f32.mxu1 %vm16307_vm7, %v19320_v20 }
 0xa6b   : > { %14818 = vmatprep.subr.bf16.mxu1 %v19320_v20 }
 0xa6d   : > { %14810 = vmatmul.mubr.msk.f32.vlgmr.msra.gmra.mxu1 %vm9307_vm10, %v18076_v61 }
 0xa6e   : > { %14819 = vmatpush3.bf16.msra.mxu1 %v15998_v24  ;;  %14820 = vmatprep.mubr.msk.bf16.mxu1 %vm16307_vm7, %v19320_v20  ;;  %v16010_v24 = vld [vmem:[%s19475_s1 + $0x28] sm:$0xff]  }
 0xa6f   : > { %14829 = vmatprep.subr.bf16.mxu1 %v19320_v20 }
 0xa71   : > { %14821 = vmatmul.mubr.msk.bf16.vlgmr.msra.gmra.mxu1 %vm8828_vm8, %v9465_v23 }
 0xa72   : > { %14833 = vmatprep.mubr.msk.bf16.mxu1 %vm16307_vm7, %v19320_v20  ;;  %14830 = vmatpush3.bf16.msra.mxu1 %v16000_v46 }
 0xa73   : > { %14831 = vmatprep.subr.bf16.mxu1 %v19320_v20 }
 0xa76   : > { %14832 = vmatpush3.bf16.msra.mxu1 %v16001_v5 }
 0xa77   : > { %14845 = vmatprep.subr.mxu1 %v19320_v20 }
 0xb29   : > { %v9377_v12 = vpop.f32.mrf.mxu1 }
 0xb2a   : > { %v9381_v10 = vsel %vm9302_vm12, %v9377_v12, -1e+30 }
 0xb2b   : > { %v14806_v60 = vpop.f32.mrf.mxu1 }
 0xb2c   : > { %v16011_v60 = vld [vmem:[%s19475_s1 + $0x20] sm:$0xff]  }
 0xb2d   : > { %v9456_v47 = vpop.f32.mrf.mxu1 }
 0xb2e   : > { %v9460_v45 = vsel %vm9382_vm13, %v9456_v47, -1e+30  ;;  %v14251_v47 = vsel %vm10393_vm15, 1.0, %v19320_v20 }
 0xb2f   : > { %v9461_v40 = vmax.f32 %v9381_v10, %v9460_v45  ;;  %v14811_v39 = vpop.f32.mrf.mxu1  ;;  %v16014_v45 = vld [vmem:[%s19475_s1 + $0x48] sm:$0xff]  }
 0xb31   : > { %v9462_v48 = vmax.f32 %v9297_v8, %v9461_v40  ;;  %v9561_v50 = vpop.f32.mrf.mxu1  ;;  %v16015_v40 = vld [vmem:[%s19475_s1 + $0x40] sm:$0xff]  }
 0xb33   : > { %v9468_v29 = vpack.c.bf16 %v9462_v48, %v9462_v48  ;;  %v14822_v33 = vpop.f32.mrf.mxu1 }
 0xb35   : > { %14815 = vmatmul.mubr.msk.bf16.vlgmr.msra.gmra.mxu0 %vm8828_vm8, %v9468_v29  ;;  %v9564_v14 = vpop.f32.mrf.mxu1 }
 0xb36   : > { %14826 = vmatprep.mubr.msk.f32.mxu0 %vm16307_vm7, %v19320_v20 }
 0xb37   : > { %v14823_v28 = vpop.f32.mrf.mxu1 }
 0xbf5   : > { %v9512_v22 = vpop.f32.mrf.mxu0 }
 0xbf6   : > { %v9562_v38 = vadd.f32 %v9561_v50, %v9512_v22 }
 0xbf7   : > { %v14816_v16 = vpop.f32.mrf.mxu0 }
 0xbf8   : > { %v9572_v4 = vadd.f32 %v9571_v7, %v9562_v38 }
 0xbf9   : > { %v9515_v19 = vpop.f32.mrf.mxu0 }
 0xbfa   : > { %v9573_v44 = vmax.f32 %v9572_v4, 0.0 }
 0xbfb   : > { %v14817_v21 = vpop.f32.mrf.mxu0 }
 0xbfc   : > { %v9578_v26 = vmul.f32 %v9577_v49, %v9573_v44 }
 0xbfe   : > { %v9583_v37 = vadd.f32 %v9582_v41, %v9578_v26 }
 0xc00   : > { %10950 = vrot.lane.b32.xlu1 %v9583_v37, %s16308_s18  ;;  %9929 = vrot.lane.b32.xlu0 %v9583_v37, %s16309_s3  ;;  %v9664_v18 = vpack.c.bf16 %v9583_v37, %v9583_v37  ;;  %s19477_s18 = sld [smem:[#allocation21_spill]] }
 0xc01   : > { %14825 = vmatpush3.msra.mxu0 %v9583_v37 }
 0xc02   : > { %14827 = vmatmul.mubr.msk.f32.vlgmr.msra.gmra.mxu0 %vm9307_vm10, %v18076_v61  ;;  %14834 = vmatmul.mubr.msk.bf16.vlgmr.msra.gmra.mxu1 %vm7188_vm6, %v9664_v18 }
 0xc03   : > { %14846 = vmatpush3.msra.mxu1 %v9583_v37  ;;  %14847 = vmatprep.mubr.msk.f32.mxu1 %vm16307_vm7, %v19320_v20 }
 0xc04   : > { %10202 = vrot.lane.b32.xlu0 %v9664_v18, %s16309_s3  ;;  %14858 = vmatprep.subr.mxu1 %v19320_v20  ;;  %s19476_s3 = sld [smem:[#allocation22_spill]] }
 0xc05   : > { %14837 = vmatprep.subr.bf16.mxu0 %v19320_v20  ;;  %14841 = vmatprep.mubr.msk.bf16.mxu0 %vm16307_vm7, %v19320_v20 }
 0xc06   : > { %14838 = vmatpush3.bf16.msra.mxu0 %v16002_v58 }
 0xc07   : > { %14839 = vmatprep.subr.bf16.mxu0 %v19320_v20 }
 0xc0a   : > { %14848 = vmatmul.mubr.msk.f32.vlgmr.msra.gmra.mxu1 %vm9307_vm10, %v18067_v13  ;;  %14840 = vmatpush3.bf16.msra.mxu0 %v16003_v43 }
 0xc0b   : > { %14860 = vmatprep.mubr.msk.f32.mxu1 %vm16307_vm7, %v19320_v20  ;;  %14850 = vmatprep.subr.bf16.mxu0 %v19320_v20 }
 0xc72   : > { %v9930_v1 = vpop.permute.xlu0 %9929 }
 0xc73   : > { %14859 = vmatpush3.msra.mxu1 %v9930_v1 }
 0xc74   : > { %14861 = vmatmul.mubr.msk.f32.vlgmr.msra.gmra.mxu1 %vm9307_vm10, %v14223_v57  ;;  %14863 = vmatprep.subr.mxu1 %v19320_v20 }
 0xc75   : > { %14864 = vmatpush3.msra.mxu1 %v9930_v1  ;;  %14865 = vmatprep.mubr.msk.f32.mxu1 %vm16307_vm7, %v19320_v20 }
 0xc76   : > { %14876 = vmatprep.subr.bf16.mxu1 %v19320_v20  ;;  %v10203_v10 = vpop.permute.xlu0 %10202 }
 0xc78   : > { %14866 = vmatmul.mubr.msk.f32.vlgmr.msra.gmra.mxu1 %vm9307_vm10, %v18076_v61 }
 0xc79   : > { %14877 = vmatpush3.bf16.msra.mxu1 %v16006_v53  ;;  %14880 = vmatprep.mubr.msk.bf16.mxu1 %vm16307_vm7, %v19320_v20 }
 0xc7a   : > { %14878 = vmatprep.subr.bf16.mxu1 %v19320_v20 }
 0xc7d   : > { %14879 = vmatpush3.bf16.msra.mxu1 %v16007_v34 }
 0xc7e   : > { %14892 = vmatprep.subr.mxu1 %v19320_v20 }
 0xcc2   : > { %v9650_v27 = vpop.f32.mrf.mxu0  ;;  %v18136_v35 = vpop.f32.mrf.mxu1 }
 0xcc3   : > { %v9658_v42 = vpack.c.bf16 %v9650_v27, %v9650_v27  ;;  %v10577_v27 = vld [vmem:[%s19476_s3 + $0xe8] sm:$0xff] }
 0xcc4   : > { %v14835_v56 = vpop.f32.mrf.mxu1  ;;  %v14828_v51 = vpop.f32.mrf.mxu0 }
 0xcc5   : > { %14842 = vmatmul.mubr.msk.bf16.vlgmr.msra.gmra.mxu0 %vm7188_vm6, %v9658_v42  ;;  %v10578_v42 = vld [vmem:[%s19476_s3 + $0xf0] sm:$0xff]  ;;  %v10573_v56 = vld [vmem:[%s19476_s3 + $0xc8] sm:$0xff]  ;;  %v10575_v51 = vld [vmem:[%s19476_s3 + $0xd8] sm:$0xff] }
 0xcc6   : > { %v9717_v11 = vpop.f32.mrf.mxu1  ;;  %14851 = vmatpush3.bf16.msra.mxu0 %v16004_v30  ;;  %14854 = vmatprep.mubr.msk.bf16.mxu0 %vm16307_vm7, %v19320_v20  ;;  %v10576_v30 = vld [vmem:[%s19476_s3 + $0xe0] sm:$0xff] }
 0xcc7   : > { %14852 = vmatprep.subr.bf16.mxu0 %v19320_v20  ;;  %v10572_v11 = vld [vmem:[%s19476_s3 + $0xc0] sm:$0xff] }
 0xcc8   : > { %v14836_v36 = vpop.f32.mrf.mxu1 }
 0xcc9   : > { %v10569_v36 = vld [vmem:[%s19476_s3 + $0xa8] sm:$0xff] }
 0xcca   : > { %v9841_v17 = vpop.f32.mrf.mxu1  ;;  %14853 = vmatpush3.bf16.msra.mxu0 %v16005_v0  ;;  %v10574_v0 = vld [vmem:[%s19476_s3 + $0xd0] sm:$0xff] }
 0xccb   : > { %v9850_v2 = vpack.c.bf16 %v9841_v17, %v9841_v17  ;;  %14868 = vmatprep.subr.bf16.mxu0 %v19320_v20  ;;  %v10571_v17 = vld [vmem:[%s19476_s3 + $0xb8] sm:$0xff] }
 0xccc   : > { %v14849_v59 = vpop.f32.mrf.mxu1 }
 0xccd   : > { %14855 = vmatmul.mubr.msk.bf16.vlgmr.msra.gmra.mxu0 %vm7188_vm6, %v9850_v2  ;;  %v10570_v2 = vld [vmem:[%s19476_s3 + $0xb0] sm:$0xff]  ;;  %v10565_v59 = vld [vmem:[%s19476_s3 + $0x88] sm:$0xff] }
 0xcce   : > { %14869 = vmatpush3.bf16.msra.mxu0 %v16008_v6  ;;  %14872 = vmatprep.mubr.msk.bf16.mxu0 %vm16307_vm7, %v19320_v20  ;;  %v10568_v6 = vld [vmem:[%s19476_s3 + $0xa0] sm:$0xff] }
 0xccf   : > { %14870 = vmatprep.subr.bf16.mxu0 %v19320_v20 }
 0xcd2   : > { %14871 = vmatpush3.bf16.msra.mxu0 %v16009_v25  ;;  %v10567_v25 = vld [vmem:[%s19476_s3 + $0x98] sm:$0xff] }
 0xcd3   : > { %14884 = vmatprep.subr.bf16.mxu0 %v19320_v20 }
 0xd34   : > { %v10001_v54 = vpop.f32.mrf.mxu1 }
 0xd35   : > { %v10009_v15 = vpack.c.bf16 %v10001_v54, %v10001_v54  ;;  %v10564_v54 = vld [vmem:[%s19476_s3 + $0x80] sm:$0xff] }
 0xd36   : > { %v14862_v8 = vpop.f32.mrf.mxu1 }
 0xd37   : > { %14881 = vmatmul.mubr.msk.bf16.vlgmr.msra.gmra.mxu1 %vm7188_vm6, %v10009_v15  ;;  %v10566_v15 = vld [vmem:[%s19476_s3 + $0x90] sm:$0xff]  ;;  %v10561_v8 = vld [vmem:[%s19476_s3 + $0x68] sm:$0xff] }
 0xd38   : > { %14893 = vmatpush3.msra.mxu1 %v9930_v1  ;;  %v10076_v61 = vpop.f32.mrf.mxu1  ;;  %14894 = vmatprep.mubr.msk.f32.mxu1 %vm16307_vm7, %v19320_v20 }
 0xd39   : > { %v10085_v23 = vpack.c.bf16 %v10076_v61, %v10076_v61  ;;  %14905 = vmatprep.subr.mxu1 %v19320_v20  ;;  %v10563_v61 = vld [vmem:[%s19476_s3 + $0x78] sm:$0xff] }
 0xd3a   : > { %v14867_v12 = vpop.f32.mrf.mxu1 }
 0xd3b   : > { %14873 = vmatmul.mubr.msk.bf16.vlgmr.msra.gmra.mxu0 %vm7188_vm6, %v10085_v23  ;;  %v10531_v23 = vld [vmem:[%s19477_s18] sm:$0x7]  ;;  %s949_s18 = sand.u32 1, %s16264_s23  }
 0xd3c   : > { %14885 = vmatpush3.bf16.msra.mxu0 %v16010_v24  ;;  %14888 = vmatprep.mubr.msk.bf16.mxu0 %vm16307_vm7, %v19320_v20  ;;  %s12713_s6 = scalar_lea.sflag [#allocation3], %s949_s18 }
 0xd3d   : > { %14886 = vmatprep.subr.bf16.mxu0 %v19320_v20 }
 0xd3f   : > { %14895 = vmatmul.mubr.msk.f32.vlgmr.msra.gmra.mxu1 %vm9307_vm10, %v18067_v13  ;;  %v16013_v13 = vld [vmem:[%s19475_s1 + $0x30] sm:$0xff]   ;;  %s19478_s1 = sld [smem:[#allocation19_spill]] }
 0xd40   : > { %14906 = vmatpush3.msra.mxu1 %v9930_v1  ;;  %14887 = vmatpush3.bf16.msra.mxu0 %v16011_v60 }
 0xd41   : > { %14907 = vmatprep.mubr.msk.f32.mxu1 %vm16307_vm7, %v19320_v20  ;;  %14897 = vmatprep.subr.bf16.mxu0 %v19320_v20 }
 0xd42   : > { %14910 = vmatprep.subr.bf16.mxu1 %v19320_v20 }
 0xd43   : > { %14889 = vmatmul.mubr.msk.bf16.vlgmr.msra.gmra.mxu0 %vm7188_vm6, %v10203_v10  ;;  %14908 = vmatmul.mubr.msk.f32.vlgmr.msra.gmra.mxu1 %vm9307_vm10, %v14251_v47  ;;  %v10535_v47 = vrot.slane %v10531_v23, %v16592_v63 }
 0xd44   : > { %14901 = vmatprep.mubr.msk.bf16.mxu0 %vm16307_vm7, %v19320_v20  ;;  %14914 = vmatprep.mubr.msk.bf16.mxu1 %vm16307_vm7, %v19320_v20 }
 0xd45   : > { %14898 = vmatpush3.bf16.msra.mxu0 %v16012_v31  ;;  %14911 = vmatpush3.bf16.msra.mxu1 %v16014_v45  ;;  %v9907_v12 = vld [vmem:[%s19478_s1] sm:$0x7]  ;;  %s19479_s1 = sld [smem:[#allocation23_spill]] }
 0xd46   : > { %14899 = vmatprep.subr.bf16.mxu0 %v19320_v20  ;;  %14912 = vmatprep.subr.bf16.mxu1 %v19320_v20  ;;  %v9911_v45 = vrot.slane %v9907_v12, %v16592_v63 }
 0xd49   : > { %14900 = vmatpush3.bf16.msra.mxu0 %v16013_v13  ;;  %14913 = vmatpush3.bf16.msra.mxu1 %v16015_v40 }
 0xd4a   : > { %10687 = vmatprep.subr.mxu0 %v10577_v27  ;;  %v10595_v27 = vld [vmem:[%s19476_s3 + $0x178] sm:$0xff] }
 0xd4b   : > { %v18497_v62 = vld [vmem:[%s19479_s1 + $0x18] sm:$0xff]  ;;  %v18507_v63 = vld [vmem:[%s19479_s1 + $0x10] sm:$0xff] }
 0xd4c   : > { %19503 = vst [vmem:[#allocation52_spill] sm:$0xff] %v18497_v62  ;;  %19505 = vst [vmem:[#allocation54_spill] sm:$0xff] %v18507_v63 }
 0xd85   : > { %v9769_v39 = vpop.f32.mrf.mxu0 }
 0xd86   : > { %v9770_v33 = vadd.f32 %v9769_v39, %v18136_v35  ;;  %v10579_v35 = vld [vmem:[%s19476_s3 + $0xf8] sm:$0xff] }
 0xd87   : > { %v14843_v48 = vpop.f32.mrf.mxu0  ;;  %10758 = vmatprep.subr.mxu1 %v10579_v35  ;;  %v10592_v35 = vld [vmem:[%s19476_s3 + $0x160] sm:$0xff] }
 0xd89   : > { %v9772_v50 = vpop.f32.mrf.mxu0 }
 0xd8a   : > { %v10541_v50 = vrot.slane %v10531_v23, %v16600_v3 }
 0xd8b   : > { %v14844_v29 = vpop.f32.mrf.mxu0 }
 0xd8d   : > { %v9900_v14 = vpop.f32.mrf.mxu0 }
 0xd8e   : > { %v18184_v28 = vadd.f32 %v9900_v14, %v9770_v33  ;;  %v10546_v14 = vrot.slane %v10531_v23, %v16609_v9  ;;  %v18265_v23 = vld [vmem:[%s19479_s1 + $0x1f0] sm:$0xff] }
 0xd8f   : > { %v14856_v46 = vpop.f32.mrf.mxu0 }
 0xd90   : > { %v9912_v46 = vadd.f32 %v9911_v45, %v18184_v28  ;;  %v10556_v28 = vld [vmem:[%s19476_s3 + $0x40] sm:$0xff]  ;;  %v18297_v45 = vld [vmem:[%s19479_s1 + $0x1b0] sm:$0xff] }
 0xd91   : > { %v9903_v5 = vpop.f32.mrf.mxu0 }
 0xd93   : > { %v14857_v32 = vpop.f32.mrf.mxu0 }
 0xdf7   : > { %v10190_v7 = vpop.f32.mrf.mxu1 }
 0xdf9   : > { %v14882_v22 = vpop.f32.mrf.mxu1 }
 0xdfa   : > { %v10560_v22 = vld [vmem:[%s19476_s3 + $0x60] sm:$0xff] }
 0xdfb   : > { %v10135_v38 = vpop.f32.mrf.mxu0  ;;  %v10193_v16 = vpop.f32.mrf.mxu1 }
 0xdfc   : > { %v10191_v4 = vadd.f32 %v10190_v7, %v10135_v38  ;;  %v10562_v38 = vld [vmem:[%s19476_s3 + $0x70] sm:$0xff]  ;;  %v9913_v16 = vmax.f32 %v9912_v46, 0.0 }
 0xdfd   : > { %v14874_v49 = vpop.f32.mrf.mxu0  ;;  %v14883_v19 = vpop.f32.mrf.mxu1  ;;  %v18329_v46 = vld [vmem:[%s19479_s1 + $0x170] sm:$0xff] }
 0xdfe   : > { %v10557_v49 = vld [vmem:[%s19476_s3 + $0x48] sm:$0xff]  ;;  %v10559_v19 = vld [vmem:[%s19476_s3 + $0x58] sm:$0xff] }
 0xdff   : > { %v10138_v44 = vpop.f32.mrf.mxu0  ;;  %v10326_v41 = vpop.f32.mrf.mxu1 }
 0xe00   : > { %v10335_v21 = vpack.c.bf16 %v10326_v41, %v10326_v41  ;;  %v10558_v44 = vld [vmem:[%s19476_s3 + $0x50] sm:$0xff]  ;;  %v10553_v41 = vld [vmem:[%s19476_s3 + $0x28] sm:$0xff] }
 0xe01   : > { %v14875_v26 = vpop.f32.mrf.mxu0  ;;  %v14896_v37 = vpop.f32.mrf.mxu1 }
 0xe02   : > { %14902 = vmatmul.mubr.msk.bf16.vlgmr.msra.gmra.mxu0 %vm7188_vm6, %v10335_v21  ;;  %v10555_v21 = vld [vmem:[%s19476_s3 + $0x38] sm:$0xff]  ;;  %v10552_v26 = vld [vmem:[%s19476_s3 + $0x20] sm:$0xff]  ;;  %v10554_v37 = vld [vmem:[%s19476_s3 + $0x30] sm:$0xff] }
 0xe03   : > { %v10253_v18 = vpop.f32.mrf.mxu0  ;;  %v10465_v58 = vpop.f32.mrf.mxu1  ;;  %10727 = vmatprep.mubr.f32.mxu0 %v19320_v20  ;;  %10688 = vmatpush1.msra.mxu0 %v10576_v30  ;;  %v10594_v30 = vld [vmem:[%s19476_s3 + $0x170] sm:$0xff] }
 0xe04   : > { %v10259_v43 = vadd.f32 %v10253_v18, %v10191_v4  ;;  %v10474_v52 = vpack.c.bf16 %v10465_v58, %v10465_v58  ;;  %10689 = vmatprep.subr.mxu0 %v10573_v56  ;;  %v9917_v4 = vrot.slane %v9907_v12, %v16600_v3  ;;  %v9922_v58 = vrot.slane %v9907_v12, %v16609_v9  ;;  %v10591_v56 = vld [vmem:[%s19476_s3 + $0x158] sm:$0xff]  ;;  %v18494_v9 = vld [vmem:[%s19479_s1 + $0x8] sm:$0xff]  ;;  %v18502_v3 = vld [vmem:[%s19479_s1] sm:$0xff] }
 0xe05   : > { %v14890_v57 = vpop.f32.mrf.mxu0  ;;  %v14909_v1 = vpop.f32.mrf.mxu1  ;;  %10690 = vmatpush1.msra.mxu0 %v10572_v11  ;;  %v10590_v11 = vld [vmem:[%s19476_s3 + $0x150] sm:$0xff]  ;;  %v18273_v12 = vld [vmem:[%s19479_s1 + $0x1d8] sm:$0xff]  ;;  %19502 = vst [vmem:[#allocation51_spill] sm:$0xff] %v18494_v9  ;;  %19504 = vst [vmem:[#allocation53_spill] sm:$0xff] %v18502_v3 }
 0xe06   : > { %14915 = vmatmul.mubr.msk.bf16.vlgmr.msra.gmra.mxu1 %vm7188_vm6, %v10474_v52  ;;  %10691 = vmatprep.subr.mxu0 %v10569_v36  ;;  %v9918_v18 = vmul.f32 %v9917_v4, %v9913_v16  ;;  %v10551_v52 = vld [vmem:[%s19476_s3 + $0x18] sm:$0xff]  ;;  %v10548_v57 = vld [vmem:[%s19476_s3] sm:$0xff]  ;;  %v10550_v1 = vld [vmem:[%s19476_s3 + $0x10] sm:$0xff] }
 0xe07   : > { %v10256_v53 = vpop.f32.mrf.mxu0  ;;  %10798 = vmatprep.mubr.f32.mxu1 %v19320_v20  ;;  %10759 = vmatpush1.msra.mxu1 %v10578_v42  ;;  %v10589_v42 = vld [vmem:[%s19476_s3 + $0x148] sm:$0xff]  ;;  %v10587_v36 = vld [vmem:[%s19476_s3 + $0x138] sm:$0xff]  ;;  %v18358_v4 = vld [vmem:[%s19479_s1 + $0x120] sm:$0xff] }
 0xe08   : > { %10760 = vmatprep.subr.mxu1 %v10575_v51  ;;  %10692 = vmatpush1.msra.mxu0 %v10568_v6  ;;  %v9923_v53 = vadd.f32 %v9922_v58, %v9918_v18  ;;  %v10588_v51 = vld [vmem:[%s19476_s3 + $0x140] sm:$0xff]  ;;  %v10586_v6 = vld [vmem:[%s19476_s3 + $0x130] sm:$0xff]  ;;  %v18353_v16 = vld [vmem:[%s19479_s1 + $0x138] sm:$0xff] }
 0xe09   : > { %v14891_v34 = vpop.f32.mrf.mxu0  ;;  %10761 = vmatpush1.msra.mxu1 %v10574_v0  ;;  %10693 = vmatprep.subr.mxu0 %v10565_v59  ;;  %v10585_v0 = vld [vmem:[%s19476_s3 + $0x128] sm:$0xff]  ;;  %v10583_v59 = vld [vmem:[%s19476_s3 + $0x118] sm:$0xff]  ;;  %v18393_v18 = vld [vmem:[%s19479_s1 + $0xf0] sm:$0xff] }
 0xe0a   : > { %10762 = vmatprep.subr.mxu1 %v10571_v17  ;;  %10694 = vmatpush1.msra.mxu0 %v10564_v54  ;;  %v10593_v34 = vld [vmem:[%s19476_s3 + $0x168] sm:$0xff]  ;;  %v10584_v17 = vld [vmem:[%s19476_s3 + $0x120] sm:$0xff]  ;;  %v10582_v54 = vld [vmem:[%s19476_s3 + $0x110] sm:$0xff] }
 0xe0b   : > { %10763 = vmatpush1.msra.mxu1 %v10570_v2  ;;  %10832 = vmatprep.subr.mxu0 %v10561_v8  ;;  %v10581_v2 = vld [vmem:[%s19476_s3 + $0x108] sm:$0xff]  ;;  %v18258_v8 = vld [vmem:[%s19479_s1 + $0x1f8] sm:$0xff] }
 0xe0c   : > { %10764 = vmatprep.subr.mxu1 %v10567_v25  ;;  %v10580_v25 = vld [vmem:[%s19476_s3 + $0x100] sm:$0xff]  ;;  %19481 = vst [vmem:[#allocation30_spill] sm:$0xff] %v18258_v8  ;;  %v18398_v58 = vld [vmem:[%s19479_s1 + $0xc8] sm:$0xff] }
 0xe0d   : > { %10765 = vmatpush1.msra.mxu1 %v10566_v15  ;;  %v18255_v15 = vld [vmem:[%s19479_s1 + $0x1e8] sm:$0xff] }
 0xe0e   : > { %10903 = vmatprep.subr.mxu1 %v10563_v61  ;;  %19480 = vst [vmem:[#allocation29_spill] sm:$0xff] %v18255_v15  ;;  %v10951_v61 = vpop.permute.xlu1 %10950 }
 0xec2   : > { %v10385_v24 = vpop.f32.mrf.mxu0 }
 0xec3   : > { %v10391_v60 = vadd.f32 %v10385_v24, %v10259_v43  ;;  %v10549_v43 = vld [vmem:[%s19476_s3 + $0x8] sm:$0xff]  ;;  %v18262_v24 = vld [vmem:[%s19479_s1 + $0x1e0] sm:$0xff]  ;;  %s950_s3 = scalar_lea.vmem [#allocation2], %s949_s18 }
 0xec4   : > { %v14903_v55 = vpop.f32.mrf.mxu0 }
 0xec5   : > { %v18270_v55 = vld [vmem:[%s19479_s1 + $0x1c8] sm:$0xff] }
 0xec6   : > { %v10524_v10 = vpop.f32.mrf.mxu1  ;;  %v10388_v31 = vpop.f32.mrf.mxu0 }
 0xec7   : > { %v10530_v13 = vadd.f32 %v10524_v10, %v10391_v60  ;;  %v18278_v60 = vld [vmem:[%s19479_s1 + $0x1c0] sm:$0xff]  ;;  %v18286_v10 = vld [vmem:[%s19479_s1 + $0x1a8] sm:$0xff]  ;;  %v18289_v31 = vld [vmem:[%s19479_s1 + $0x1b8] sm:$0xff] }
 0xec8   : > { %v14904_v40 = vpop.f32.mrf.mxu0  ;;  %v14916_v39 = vpop.f32.mrf.mxu1 }
 0xec9   : > { %v10536_v48 = vadd.f32 %v10535_v47, %v10530_v13  ;;  %v18281_v47 = vld [vmem:[%s19479_s1 + $0x1d0] sm:$0xff]  ;;  %v18294_v13 = vld [vmem:[%s19479_s1 + $0x1a0] sm:$0xff]  ;;  %v18302_v40 = vld [vmem:[%s19479_s1 + $0x188] sm:$0xff] }
 0xeca   : > { %v10527_v29 = vpop.f32.mrf.mxu1  ;;  %v18305_v39 = vld [vmem:[%s19479_s1 + $0x198] sm:$0xff] }
 0xecb   : > { %v10537_v33 = vmax.f32 %v10536_v48, 0.0  ;;  %v18310_v48 = vld [vmem:[%s19479_s1 + $0x180] sm:$0xff]  ;;  %v18318_v29 = vld [vmem:[%s19479_s1 + $0x168] sm:$0xff] }
 0xecc   : > { %v14917_v5 = vpop.f32.mrf.mxu1 }
 0xecd   : > { %v10542_v32 = vmul.f32 %v10541_v50, %v10537_v33  ;;  %v18313_v50 = vld [vmem:[%s19479_s1 + $0x190] sm:$0xff]  ;;  %v18321_v33 = vld [vmem:[%s19479_s1 + $0x178] sm:$0xff]  ;;  %v18334_v5 = vld [vmem:[%s19479_s1 + $0x148] sm:$0xff] }
 0xecf   : > { %v10547_v7 = vadd.f32 %v10546_v14, %v10542_v32  ;;  %v18326_v14 = vld [vmem:[%s19479_s1 + $0x160] sm:$0xff]  ;;  %v18337_v32 = vld [vmem:[%s19479_s1 + $0x158] sm:$0xff] }
 0xed1   : > { %14260 = vmatmul.mubr.msk.f32.vlgmr.msra.gmra.mxu0 %vm7188_vm6, %v10547_v7  ;;  %14261 = vmatmul.mubr.msk.f32.vlgmr.msra.gmra.mxu1 %vm7188_vm6, %v10547_v7  ;;  %v18342_v7 = vld [vmem:[%s19479_s1 + $0x140] sm:$0xff] }
 0xed2   : > { %10833 = vmatpush1.msra.mxu0 %v10560_v22  ;;  %10904 = vmatpush1.msra.mxu1 %v10562_v38  ;;  %v18345_v22 = vld [vmem:[%s19479_s1 + $0x150] sm:$0xff]  ;;  %v18350_v38 = vld [vmem:[%s19479_s1 + $0x128] sm:$0xff] }
 0xed3   : > { %10834 = vmatprep.subr.mxu0 %v10557_v49  ;;  %10905 = vmatprep.subr.mxu1 %v10559_v19  ;;  %v18361_v49 = vld [vmem:[%s19479_s1 + $0x130] sm:$0xff]  ;;  %v18366_v19 = vld [vmem:[%s19479_s1 + $0x108] sm:$0xff] }
 0xed4   : > { %10835 = vmatpush1.msra.mxu0 %v10556_v28  ;;  %10906 = vmatpush1.msra.mxu1 %v10558_v44  ;;  %v18369_v28 = vld [vmem:[%s19479_s1 + $0x118] sm:$0xff]  ;;  %v18374_v44 = vld [vmem:[%s19479_s1 + $0x100] sm:$0xff] }
 0xed5   : > { %10836 = vmatprep.subr.mxu0 %v10553_v41  ;;  %10907 = vmatprep.subr.mxu1 %v10555_v21  ;;  %v18377_v41 = vld [vmem:[%s19479_s1 + $0x110] sm:$0xff]  ;;  %v18382_v21 = vld [vmem:[%s19479_s1 + $0xe8] sm:$0xff] }
 0xed6   : > { %10837 = vmatpush1.msra.mxu0 %v10552_v26  ;;  %10908 = vmatpush1.msra.mxu1 %v10554_v37  ;;  %v18385_v26 = vld [vmem:[%s19479_s1 + $0xf8] sm:$0xff]  ;;  %v18390_v37 = vld [vmem:[%s19479_s1 + $0xe0] sm:$0xff] }
 0xed7   : > { %10838 = vmatprep.subr.mxu0 %v10549_v43  ;;  %10909 = vmatprep.subr.mxu1 %v10551_v52  ;;  %v18401_v43 = vld [vmem:[%s19479_s1 + $0xd8] sm:$0xff]  ;;  %v18406_v52 = vld [vmem:[%s19479_s1 + $0xc0] sm:$0xff] }
 0xed8   : > { %10839 = vmatpush1.msra.mxu0 %v10548_v57  ;;  %10872 = vmatprep.mubr.f32.mxu0 %v19320_v20  ;;  %v18409_v57 = vld [vmem:[%s19479_s1 + $0xd0] sm:$0xff] }
 0xed9   : > { %10910 = vmatpush1.msra.mxu1 %v10550_v1  ;;  %10943 = vmatprep.mubr.f32.mxu1 %v19320_v20  ;;  %v18414_v1 = vld [vmem:[%s19479_s1 + $0xa8] sm:$0xff] }
 0xeda   : > { %14262 = vmatmul.mubr.msk.f32.vlgmr.msra.gmra.mxu0 %vm7188_vm6, %v9923_v53  ;;  %14263 = vmatmul.mubr.msk.f32.vlgmr.msra.gmra.mxu1 %vm7188_vm6, %v9923_v53  ;;  %19482 = vst [vmem:[#allocation31_spill] sm:$0xff] %v18414_v1  ;;  %v18417_v53 = vld [vmem:[%s19479_s1 + $0xb8] sm:$0xff] }
 0xedb   : > { %10978 = vmatprep.subr.mxu0 %v10593_v34  ;;  %11049 = vmatprep.subr.mxu1 %v10595_v27  ;;  %19483 = vst [vmem:[#allocation32_spill] sm:$0xff] %v18417_v53  ;;  %v18422_v34 = vld [vmem:[%s19479_s1 + $0xa0] sm:$0xff]  ;;  %v18425_v27 = vld [vmem:[%s19479_s1 + $0xb0] sm:$0xff] }
 0xedc   : > { %10979 = vmatpush1.msra.mxu0 %v10592_v35  ;;  %11050 = vmatpush1.msra.mxu1 %v10594_v30  ;;  %19484 = vst [vmem:[#allocation33_spill] sm:$0xff] %v18422_v34  ;;  %19485 = vst [vmem:[#allocation34_spill] sm:$0xff] %v18425_v27  ;;  %v18430_v35 = vld [vmem:[%s19479_s1 + $0x88] sm:$0xff]  ;;  %v18433_v30 = vld [vmem:[%s19479_s1 + $0x98] sm:$0xff] }
 0xedd   : > { %10980 = vmatprep.subr.mxu0 %v10589_v42  ;;  %11051 = vmatprep.subr.mxu1 %v10591_v56  ;;  %19486 = vst [vmem:[#allocation35_spill] sm:$0xff] %v18430_v35  ;;  %19487 = vst [vmem:[#allocation36_spill] sm:$0xff] %v18433_v30  ;;  %v18438_v42 = vld [vmem:[%s19479_s1 + $0x80] sm:$0xff]  ;;  %v18441_v56 = vld [vmem:[%s19479_s1 + $0x90] sm:$0xff] }
 0xede   : > { %10981 = vmatpush1.msra.mxu0 %v10588_v51  ;;  %11052 = vmatpush1.msra.mxu1 %v10590_v11  ;;  %19488 = vst [vmem:[#allocation37_spill] sm:$0xff] %v18438_v42  ;;  %19489 = vst [vmem:[#allocation38_spill] sm:$0xff] %v18441_v56  ;;  %v18446_v51 = vld [vmem:[%s19479_s1 + $0x68] sm:$0xff]  ;;  %v18449_v11 = vld [vmem:[%s19479_s1 + $0x78] sm:$0xff] }
 0xedf   : > { %10982 = vmatprep.subr.mxu0 %v10585_v0  ;;  %11053 = vmatprep.subr.mxu1 %v10587_v36  ;;  %19490 = vst [vmem:[#allocation39_spill] sm:$0xff] %v18446_v51  ;;  %19491 = vst [vmem:[#allocation40_spill] sm:$0xff] %v18449_v11  ;;  %v18454_v0 = vld [vmem:[%s19479_s1 + $0x60] sm:$0xff]  ;;  %v18457_v36 = vld [vmem:[%s19479_s1 + $0x70] sm:$0xff] }
 0xee0   : > { %10983 = vmatpush1.msra.mxu0 %v10584_v17  ;;  %11054 = vmatpush1.msra.mxu1 %v10586_v6  ;;  %19492 = vst [vmem:[#allocation41_spill] sm:$0xff] %v18454_v0  ;;  %19493 = vst [vmem:[#allocation42_spill] sm:$0xff] %v18457_v36  ;;  %v18462_v17 = vld [vmem:[%s19479_s1 + $0x48] sm:$0xff]  ;;  %v18465_v6 = vld [vmem:[%s19479_s1 + $0x58] sm:$0xff] }
 0xee1   : > { %10984 = vmatprep.subr.mxu0 %v10581_v2  ;;  %11055 = vmatprep.subr.mxu1 %v10583_v59  ;;  %19494 = vst [vmem:[#allocation43_spill] sm:$0xff] %v18462_v17  ;;  %19495 = vst [vmem:[#allocation44_spill] sm:$0xff] %v18465_v6  ;;  %v18470_v2 = vld [vmem:[%s19479_s1 + $0x40] sm:$0xff]  ;;  %v18473_v59 = vld [vmem:[%s19479_s1 + $0x50] sm:$0xff] }
 0xee2   : > { %10985 = vmatpush1.msra.mxu0 %v10580_v25  ;;  %11018 = vmatprep.mubr.f32.mxu0 %v19320_v20  ;;  %19496 = vst [vmem:[#allocation45_spill] sm:$0xff] %v18470_v2  ;;  %19497 = vst [vmem:[#allocation46_spill] sm:$0xff] %v18473_v59  ;;  %v18478_v25 = vld [vmem:[%s19479_s1 + $0x28] sm:$0xff] }
 0xee3   : > { %11056 = vmatpush1.msra.mxu1 %v10582_v54  ;;  %11089 = vmatprep.mubr.f32.mxu1 %v19320_v20  ;;  %19498 = vst [vmem:[#allocation47_spill] sm:$0xff] %v18478_v25  ;;  %v18481_v54 = vld [vmem:[%s19479_s1 + $0x38] sm:$0xff]  ;;  %v18489_v20 = vld [vmem:[%s19479_s1 + $0x30] sm:$0xff] }
 0xee4   : > { %14264 = vmatmul.mubr.msk.f32.vlgmr.msra.gmra.mxu0 %vm7188_vm6, %v10951_v61  ;;  %14265 = vmatmul.mubr.msk.f32.vlgmr.msra.gmra.mxu1 %vm7188_vm6, %v10951_v61  ;;  %19499 = vst [vmem:[#allocation48_spill] sm:$0xff] %v18481_v54  ;;  %v18486_v61 = vld [vmem:[%s19479_s1 + $0x20] sm:$0xff]  ;;  %19501 = vst [vmem:[#allocation50_spill] sm:$0xff] %v18489_v20 }
 0xee5   : > { %11126 = vmatprep.subr.mxu0 %v18255_v15  ;;  %11197 = vmatprep.subr.mxu1 %v18258_v8  ;;  %19500 = vst [vmem:[#allocation49_spill] sm:$0xff] %v18486_v61 }
 0xee6   : > { %11127 = vmatpush1.msra.mxu0 %v18262_v24  ;;  %11198 = vmatpush1.msra.mxu1 %v18265_v23 }
 0xee7   : > { %11128 = vmatprep.subr.mxu0 %v18270_v55  ;;  %11199 = vmatprep.subr.mxu1 %v18273_v12 }
 0xee8   : > { %11129 = vmatpush1.msra.mxu0 %v18278_v60  ;;  %11200 = vmatpush1.msra.mxu1 %v18281_v47 }
 0xee9   : > { %11130 = vmatprep.subr.mxu0 %v18286_v10  ;;  %11201 = vmatprep.subr.mxu1 %v18289_v31 }
 0xeea   : > { %11131 = vmatpush1.msra.mxu0 %v18294_v13  ;;  %11202 = vmatpush1.msra.mxu1 %v18297_v45 }
 0xeeb   : > { %11132 = vmatprep.subr.mxu0 %v18302_v40  ;;  %11203 = vmatprep.subr.mxu1 %v18305_v39 }
 0xeec   : > { %11133 = vmatpush1.msra.mxu0 %v18310_v48  ;;  %11204 = vmatpush1.msra.mxu1 %v18313_v50 }
 0xeed   : > { %11134 = vmatprep.subr.mxu0 %v18318_v29  ;;  %11205 = vmatprep.subr.mxu1 %v18321_v33 }
 0xeee   : > { %11135 = vmatpush1.msra.mxu0 %v18326_v14  ;;  %11206 = vmatpush1.msra.mxu1 %v18329_v46 }
 0xeef   : > { %11136 = vmatprep.subr.mxu0 %v18334_v5  ;;  %11207 = vmatprep.subr.mxu1 %v18337_v32 }
 0xef0   : > { %11137 = vmatpush1.msra.mxu0 %v18342_v7  ;;  %11208 = vmatpush1.msra.mxu1 %v18345_v22 }
 0xef1   : > { %11138 = vmatprep.subr.mxu0 %v18350_v38  ;;  %11209 = vmatprep.subr.mxu1 %v18353_v16 }
 0xef2   : > { %11139 = vmatpush1.msra.mxu0 %v18358_v4  ;;  %11210 = vmatpush1.msra.mxu1 %v18361_v49 }
 0xef3   : > { %11140 = vmatprep.subr.mxu0 %v18366_v19  ;;  %11211 = vmatprep.subr.mxu1 %v18369_v28 }
 0xef4   : > { %11141 = vmatpush1.msra.mxu0 %v18374_v44  ;;  %11212 = vmatpush1.msra.mxu1 %v18377_v41 }
 0xef5   : > { %11142 = vmatprep.subr.mxu0 %v18382_v21  ;;  %11213 = vmatprep.subr.mxu1 %v18385_v26 }
 0xef6   : > { %11143 = vmatpush1.msra.mxu0 %v18390_v37  ;;  %11214 = vmatpush1.msra.mxu1 %v18393_v18 }
 0xef7   : > { %11144 = vmatprep.subr.mxu0 %v18398_v58  ;;  %11215 = vmatprep.subr.mxu1 %v18401_v43 }
 0xef8   : > { %11145 = vmatpush1.msra.mxu0 %v18406_v52  ;;  %11216 = vmatpush1.msra.mxu1 %v18409_v57 }
 0xef9   : > { %11146 = vmatprep.subr.mxu0 %v18414_v1  ;;  %11217 = vmatprep.subr.mxu1 %v18417_v53 }
 0xefa   : > { %11147 = vmatpush1.msra.mxu0 %v18422_v34  ;;  %11218 = vmatpush1.msra.mxu1 %v18425_v27 }
 0xefb   : > { %11148 = vmatprep.subr.mxu0 %v18430_v35  ;;  %11219 = vmatprep.subr.mxu1 %v18433_v30 }
 0xefc   : > { %11149 = vmatpush1.msra.mxu0 %v18438_v42  ;;  %11220 = vmatpush1.msra.mxu1 %v18441_v56 }
 0xefd   : > { %11150 = vmatprep.subr.mxu0 %v18446_v51  ;;  %11221 = vmatprep.subr.mxu1 %v18449_v11 }
 0xefe   : > { %11151 = vmatpush1.msra.mxu0 %v18454_v0  ;;  %11222 = vmatpush1.msra.mxu1 %v18457_v36 }
 0xeff   : > { %11152 = vmatprep.subr.mxu0 %v18462_v17  ;;  %11223 = vmatprep.subr.mxu1 %v18465_v6 }
 0xf00   : > { %11153 = vmatpush1.msra.mxu0 %v18470_v2  ;;  %11224 = vmatpush1.msra.mxu1 %v18473_v59  ;;  %v19506_v59 = vmov 0.0  }
 0xf01   : > { %11154 = vmatprep.subr.mxu0 %v18478_v25  ;;  %11225 = vmatprep.subr.mxu1 %v18481_v54 }
 0xf02   : > { %11155 = vmatpush1.msra.mxu0 %v18486_v61  ;;  %11226 = vmatpush1.msra.mxu1 %v18489_v20 }
 0xf03   : > { %11156 = vmatprep.subr.mxu0 %v18494_v9  ;;  %11227 = vmatprep.subr.mxu1 %v18497_v62 }
 0xf04   : > { %11157 = vmatpush1.msra.mxu0 %v18502_v3  ;;  %11190 = vmatprep.mubr.f32.mxu0 %v19506_v59 }
 0xf05   : > { %11228 = vmatpush1.msra.mxu1 %v18507_v63  ;;  %11261 = vmatprep.mubr.f32.mxu1 %v19506_v59 }
 0xf06   : > { %11191 = vmatmul.mubr.f32.vlgmr.msra.gmra.mxu0 %v19506_v59  ;;  %11262 = vmatmul.mubr.f32.vlgmr.msra.gmra.mxu1 %v19506_v59 }
 0xf07   : > { %11296 = vmatprep.subr.mxu0 %v18255_v15  ;;  %11367 = vmatprep.subr.mxu1 %v18258_v8 }
 0xf08   : > { %11297 = vmatpush1.msra.mxu0 %v18262_v24  ;;  %11368 = vmatpush1.msra.mxu1 %v18265_v23 }
 0xf09   : > { %11298 = vmatprep.subr.mxu0 %v18270_v55  ;;  %11369 = vmatprep.subr.mxu1 %v18273_v12 }
 0xf0a   : > { %11299 = vmatpush1.msra.mxu0 %v18278_v60  ;;  %11370 = vmatpush1.msra.mxu1 %v18281_v47 }
 0xf0b   : > { %11300 = vmatprep.subr.mxu0 %v18286_v10  ;;  %11371 = vmatprep.subr.mxu1 %v18289_v31 }
 0xf0c   : > { %11301 = vmatpush1.msra.mxu0 %v18294_v13  ;;  %11372 = vmatpush1.msra.mxu1 %v18297_v45 }
 0xf0d   : > { %11302 = vmatprep.subr.mxu0 %v18302_v40  ;;  %11373 = vmatprep.subr.mxu1 %v18305_v39 }
 0xf0e   : > { %11303 = vmatpush1.msra.mxu0 %v18310_v48  ;;  %11374 = vmatpush1.msra.mxu1 %v18313_v50 }
 0xf0f   : > { %11304 = vmatprep.subr.mxu0 %v18318_v29  ;;  %11375 = vmatprep.subr.mxu1 %v18321_v33 }
 0xf10   : > { %11305 = vmatpush1.msra.mxu0 %v18326_v14  ;;  %11376 = vmatpush1.msra.mxu1 %v18329_v46 }
 0xf11   : > { %11306 = vmatprep.subr.mxu0 %v18334_v5  ;;  %11377 = vmatprep.subr.mxu1 %v18337_v32 }
 0xf12   : > { %11307 = vmatpush1.msra.mxu0 %v18342_v7  ;;  %11378 = vmatpush1.msra.mxu1 %v18345_v22 }
 0xf13   : > { %11308 = vmatprep.subr.mxu0 %v18350_v38  ;;  %11379 = vmatprep.subr.mxu1 %v18353_v16 }
 0xf14   : > { %11309 = vmatpush1.msra.mxu0 %v18358_v4  ;;  %11380 = vmatpush1.msra.mxu1 %v18361_v49 }
 0xf15   : > { %11310 = vmatprep.subr.mxu0 %v18366_v19  ;;  %11381 = vmatprep.subr.mxu1 %v18369_v28 }
 0xf16   : > { %11311 = vmatpush1.msra.mxu0 %v18374_v44  ;;  %11382 = vmatpush1.msra.mxu1 %v18377_v41 }
 0xf17   : > { %11312 = vmatprep.subr.mxu0 %v18382_v21  ;;  %11383 = vmatprep.subr.mxu1 %v18385_v26 }
 0xf18   : > { %11313 = vmatpush1.msra.mxu0 %v18390_v37  ;;  %11384 = vmatpush1.msra.mxu1 %v18393_v18 }
 0xf19   : > { %11314 = vmatprep.subr.mxu0 %v18398_v58  ;;  %11385 = vmatprep.subr.mxu1 %v18401_v43 }
 0xf1a   : > { %11315 = vmatpush1.msra.mxu0 %v18406_v52  ;;  %11386 = vmatpush1.msra.mxu1 %v18409_v57 }
 0xf1b   : > { %11316 = vmatprep.subr.mxu0 %v18414_v1  ;;  %11387 = vmatprep.subr.mxu1 %v18417_v53  ;;  %v19511_v53 = vld [vmem:[#allocation25_spill] sm:$0xff] }
 0xf1c   : > { %11317 = vmatpush1.msra.mxu0 %v18422_v34  ;;  %11388 = vmatpush1.msra.mxu1 %v18425_v27 }
 0xf1d   : > { %11318 = vmatprep.subr.mxu0 %v18430_v35  ;;  %11389 = vmatprep.subr.mxu1 %v18433_v30  ;;  %v19507_v35 = vld [vmem:[#allocation46_spill] sm:$0xff] }
 0xf1e   : > { %11319 = vmatpush1.msra.mxu0 %v18438_v42  ;;  %11390 = vmatpush1.msra.mxu1 %v18441_v56 }
 0xf1f   : > { %11320 = vmatprep.subr.mxu0 %v18446_v51  ;;  %11391 = vmatprep.subr.mxu1 %v18449_v11 }
 0xf20   : > { %11321 = vmatpush1.msra.mxu0 %v18454_v0  ;;  %11392 = vmatpush1.msra.mxu1 %v18457_v36 }
 0xf21   : > { %11322 = vmatprep.subr.mxu0 %v18462_v17  ;;  %11393 = vmatprep.subr.mxu1 %v18465_v6 }
 0xf22   : > { %11323 = vmatpush1.msra.mxu0 %v18470_v2  ;;  %11394 = vmatpush1.msra.mxu1 %v19507_v35 }
 0xf23   : > { %11324 = vmatprep.subr.mxu0 %v18478_v25  ;;  %11395 = vmatprep.subr.mxu1 %v18481_v54 }
 0xf24   : > { %11325 = vmatpush1.msra.mxu0 %v18486_v61  ;;  %11396 = vmatpush1.msra.mxu1 %v18489_v20 }
 0xf25   : > { %11326 = vmatprep.subr.mxu0 %v18494_v9  ;;  %11397 = vmatprep.subr.mxu1 %v18497_v62  ;;  %v11100_v62 = vld [vmem:[%s16459_s27] sm:$0xf] }
 0xf26   : > { %11327 = vmatpush1.msra.mxu0 %v18502_v3  ;;  %11360 = vmatprep.mubr.f32.mxu0 %v19506_v59 }
 0xf27   : > { %11398 = vmatpush1.msra.mxu1 %v18507_v63  ;;  %11431 = vmatprep.mubr.f32.mxu1 %v19506_v59  ;;  %v19508_v63 = vld [vmem:[#allocation26_spill] sm:$0xff] }
 0xf28   : > { %11484 = vmatprep.subr.mxu0 %v18255_v15  ;;  %11555 = vmatprep.subr.mxu1 %v18258_v8  ;;  %v11105_v11 = vrot.slane %v11100_v62, %v19508_v63  ;;  %v19509_v15 = vld [vmem:[#allocation27_spill] sm:$0xff] }
 0xf29   : > { %v11109_v56 = vrot.slane %v11100_v62, %v19509_v15 }
 0xf91   : > { %v10729_v61 = vpop.f32.mrf.mxu0  ;;  %v10800_v25 = vpop.f32.mrf.mxu1 }
 0xf93   : > { %v10731_v54 = vpop.f32.mrf.mxu0  ;;  %v10802_v2 = vpop.f32.mrf.mxu1 }
 0xf9a   : > { %v10874_v20 = vpop.f32.mrf.mxu0  ;;  %v10945_v3 = vpop.f32.mrf.mxu1 }
 0xf9b   : > { %v10875_v6 = vadd.f32 %v10874_v20, %v10729_v61  ;;  %v11116_v20 = vsub.s32 3, %v19511_v53 }
 0xf9c   : > { %v10876_v35 = vpop.f32.mrf.mxu0  ;;  %v10947_v59 = vpop.f32.mrf.mxu1 }
 0xf9d   : > { %v10877_v36 = vadd.f32 %v10876_v35, %v10731_v54  ;;  %v10948_v63 = vadd.f32 %v10947_v59, %v10802_v2 }
 0xfa4   : > { %v11020_v9 = vpop.f32.mrf.mxu0  ;;  %v11091_v42 = vpop.f32.mrf.mxu1 }
 0xfa5   : > { %v11096_v0 = vadd.f32 %v11020_v9, %v10875_v6  ;;  %v10946_v6 = vadd.f32 %v10945_v3, %v10800_v25 }
 0xfa6   : > { %v11022_v17 = vpop.f32.mrf.mxu0  ;;  %v11093_v1 = vpop.f32.mrf.mxu1 }
 0xfa7   : > { %v11097_v51 = vadd.f32 %v11022_v17, %v10877_v36  ;;  %v18588_v8 = vadd.f32 %v11105_v11, %v11096_v0  ;;  %v11099_v15 = vadd.f32 %v11093_v1, %v10948_v63  ;;  %v11117_v11 = vrot.slane %v11100_v62, %v11116_v20 }
 0xfa9   : > { %19510 = vst [vmem:[#allocation26_spill] sm:$0xff] %v18588_v8  ;;  %v18590_v27 = vadd.f32 %v11109_v56, %v11097_v51  ;;  %v18595_v56 = vadd.f32 %v11117_v11, %v11099_v15  ;;  %v11098_v51 = vadd.f32 %v11091_v42, %v10946_v6  ;;  %v19514_v6 = vld [vmem:[#allocation32_spill] sm:$0xff] }
 0xfc6   : > { %v11192_v30 = vpop.f32.mrf.mxu0  ;;  %v11263_v36 = vpop.f32.mrf.mxu1 }
 0xfc7   : > { %v11268_v34 = vadd.f32 %v11192_v30, %v18588_v8  ;;  %v19512_v30 = vld [vmem:[#allocation28_spill] sm:$0xff] }
 0xfc8   : > { %v11194_v61 = vpop.f32.mrf.mxu0  ;;  %v11265_v0 = vpop.f32.mrf.mxu1  ;;  %v11113_v54 = vrot.slane %v11100_v62, %v19512_v30  ;;  %v19516_v30 = vld [vmem:[#allocation34_spill] sm:$0xff] }
 0xfc9   : > { %v14266_v35 = vmul.f32 -1.442695, %v11268_v34  ;;  %v11269_v9 = vadd.f32 %v11194_v61, %v18590_v27  ;;  %v11271_v53 = vadd.f32 %v11265_v0, %v18595_v56  ;;  %v19513_v0 = vld [vmem:[#allocation31_spill] sm:$0xff] }
 0xfca   : > { %v18599_v8 = vadd.f32 %v11113_v54, %v11098_v51  ;;  %v19515_v51 = vld [vmem:[#allocation33_spill] sm:$0xff]  ;;  %v19517_v54 = vld [vmem:[#allocation35_spill] sm:$0xff] }
 0xfcb   : > { %16016 = vpow2.f32 %v14266_v35  ;;  %v14267_v17 = vmul.f32 -1.442695, %v11269_v9  ;;  %v14268_v34 = vmul.f32 -1.442695, %v11271_v53  ;;  %v19518_v53 = vld [vmem:[#allocation36_spill] sm:$0xff] }
 0xfcc   : > { %v11270_v2 = vadd.f32 %v11263_v36, %v18599_v8 }
 0xfcd   : > { %16018 = vpow2.f32 %v14267_v17 }
 0xfce   : > { %16020 = vpow2.f32 %v14268_v34  ;;  %v19519_v34 = vld [vmem:[#allocation37_spill] sm:$0xff] }
 0xfd8   : > { %v16017_v61 = vpop.eup %16016 }
 0xfd9   : > { %v11275_v59 = vadd.f32 1.0, %v16017_v61  ;;  %v19520_v61 = vld [vmem:[#allocation38_spill] sm:$0xff] }
 0xfda   : > { %v16019_v35 = vpop.eup %16018 }
 0xfdb   : > { %16022 = vrcp.f32 %v11275_v59  ;;  %v11281_v1 = vadd.f32 1.0, %v16019_v35  ;;  %v16021_v3 = vpop.eup %16020  ;;  %v19522_v59 = vld [vmem:[#allocation40_spill] sm:$0xff]  ;;  %v19523_v35 = vld [vmem:[#allocation41_spill] sm:$0xff] }
 0xfdc   : > { %16024 = vtanh.f32 %v11270_v2  ;;  %v11288_v62 = vadd.f32 1.0, %v16021_v3  ;;  %v19521_v2 = vld [vmem:[#allocation39_spill] sm:$0xff] }
 0xfdd   : > { %16026 = vrcp.f32 %v11281_v1  ;;  %v19524_v1 = vld [vmem:[#allocation42_spill] sm:$0xff]  ;;  %v19525_v3 = vld [vmem:[#allocation43_spill] sm:$0xff] }
 0xfde   : > { %16028 = vrcp.f32 %v11288_v62  ;;  %v19529_v62 = vld [vmem:[#allocation47_spill] sm:$0xff] }
 0xfe8   : > { %v16023_v25 = vpop.eup %16022 }
 0xfe9   : > { %v16025_v42 = vpop.eup %16024 }
 0xfea   : > { %v16027_v20 = vpop.eup %16026  ;;  %v11292_v63 = vmul.f32 %v16025_v42, %v16023_v25  ;;  %v19526_v25 = vld [vmem:[#allocation44_spill] sm:$0xff]  ;;  %v19527_v42 = vld [vmem:[#allocation45_spill] sm:$0xff] }
 0xfeb   : > { %v11291_v9 = vmul.f32 0.0, %v16027_v20  ;;  %v16029_v36 = vpop.eup %16028  ;;  %v19528_v20 = vld [vmem:[#allocation46_spill] sm:$0xff] }
 0xfed   : > { %v18602_v17 = vadd.f32 %v11292_v63, %v11291_v9  ;;  %v19530_v9 = vld [vmem:[#allocation48_spill] sm:$0xff]  ;;  %v19531_v63 = vld [vmem:[#allocation49_spill] sm:$0xff] }
 0xfef   : > { %16030 = vtanh.f32 %v18602_v17 }
 0xffc   : > { %v16031_v15 = vpop.eup %16030 }
 0xffd   : > { %v11295_v11 = vmul.f32 %v16031_v15, %v16029_v36  ;;  %v19532_v36 = vld [vmem:[#allocation50_spill] sm:$0xff]  ;;  %v19533_v15 = vld [vmem:[#allocation51_spill] sm:$0xff] }
 0xfff   : > { %11361 = vmatmul.mubr.f32.vlgmr.msra.gmra.mxu0 %v11295_v11  ;;  %11432 = vmatmul.mubr.f32.vlgmr.msra.gmra.mxu1 %v11295_v11  ;;  %v19534_v11 = vld [vmem:[#allocation52_spill] sm:$0xff] }
0x1000   : > { %11485 = vmatpush1.msra.mxu0 %v18262_v24  ;;  %11556 = vmatpush1.msra.mxu1 %v18265_v23 }
0x1001   : > { %11486 = vmatprep.subr.mxu0 %v18270_v55  ;;  %11557 = vmatprep.subr.mxu1 %v18273_v12 }
0x1002   : > { %11487 = vmatpush1.msra.mxu0 %v18278_v60  ;;  %11558 = vmatpush1.msra.mxu1 %v18281_v47 }
0x1003   : > { %11488 = vmatprep.subr.mxu0 %v18286_v10  ;;  %11559 = vmatprep.subr.mxu1 %v18289_v31 }
0x1004   : > { %11489 = vmatpush1.msra.mxu0 %v18294_v13  ;;  %11560 = vmatpush1.msra.mxu1 %v18297_v45 }
0x1005   : > { %11490 = vmatprep.subr.mxu0 %v18302_v40  ;;  %11561 = vmatprep.subr.mxu1 %v18305_v39 }
0x1006   : > { %11491 = vmatpush1.msra.mxu0 %v18310_v48  ;;  %11562 = vmatpush1.msra.mxu1 %v18313_v50 }
0x1007   : > { %11492 = vmatprep.subr.mxu0 %v18318_v29  ;;  %11563 = vmatprep.subr.mxu1 %v18321_v33 }
0x1008   : > { %11493 = vmatpush1.msra.mxu0 %v18326_v14  ;;  %11564 = vmatpush1.msra.mxu1 %v18329_v46 }
0x1009   : > { %11494 = vmatprep.subr.mxu0 %v18334_v5  ;;  %11565 = vmatprep.subr.mxu1 %v18337_v32 }
0x100a   : > { %11495 = vmatpush1.msra.mxu0 %v18342_v7  ;;  %11566 = vmatpush1.msra.mxu1 %v18345_v22 }
0x100b   : > { %11496 = vmatprep.subr.mxu0 %v18350_v38  ;;  %11567 = vmatprep.subr.mxu1 %v18353_v16 }
0x100c   : > { %11497 = vmatpush1.msra.mxu0 %v18358_v4  ;;  %11568 = vmatpush1.msra.mxu1 %v18361_v49 }
0x100d   : > { %11498 = vmatprep.subr.mxu0 %v18366_v19  ;;  %11569 = vmatprep.subr.mxu1 %v18369_v28 }
0x100e   : > { %11499 = vmatpush1.msra.mxu0 %v18374_v44  ;;  %11570 = vmatpush1.msra.mxu1 %v18377_v41 }
0x100f   : > { %11500 = vmatprep.subr.mxu0 %v18382_v21  ;;  %11571 = vmatprep.subr.mxu1 %v18385_v26 }
0x1010   : > { %11501 = vmatpush1.msra.mxu0 %v18390_v37  ;;  %11572 = vmatpush1.msra.mxu1 %v18393_v18 }
0x1011   : > { %11502 = vmatprep.subr.mxu0 %v18398_v58  ;;  %11573 = vmatprep.subr.mxu1 %v18401_v43 }
0x1012   : > { %11503 = vmatpush1.msra.mxu0 %v18406_v52  ;;  %11574 = vmatpush1.msra.mxu1 %v18409_v57 }
0x1013   : > { %11504 = vmatprep.subr.mxu0 %v19513_v0  ;;  %11575 = vmatprep.subr.mxu1 %v19514_v6 }
0x1014   : > { %11505 = vmatpush1.msra.mxu0 %v19515_v51  ;;  %11576 = vmatpush1.msra.mxu1 %v19516_v30 }
0x1015   : > { %11506 = vmatprep.subr.mxu0 %v19517_v54  ;;  %11577 = vmatprep.subr.mxu1 %v19518_v53 }
0x1016   : > { %11507 = vmatpush1.msra.mxu0 %v19519_v34  ;;  %11578 = vmatpush1.msra.mxu1 %v19520_v61 }
0x1017   : > { %11508 = vmatprep.subr.mxu0 %v19521_v2  ;;  %11579 = vmatprep.subr.mxu1 %v19522_v59 }
0x1018   : > { %11509 = vmatpush1.msra.mxu0 %v19523_v35  ;;  %11580 = vmatpush1.msra.mxu1 %v19524_v1  ;;  %v19535_v1 = vld [vmem:[#allocation53_spill] sm:$0xff] }
0x1019   : > { %11510 = vmatprep.subr.mxu0 %v19525_v3  ;;  %11581 = vmatprep.subr.mxu1 %v19526_v25  ;;  %v19536_v3 = vmov 0.0   ;;  %v19537_v25 = vld [vmem:[#allocation54_spill] sm:$0xff] }
0x101a   : > { %11511 = vmatpush1.msra.mxu0 %v19527_v42  ;;  %11582 = vmatpush1.msra.mxu1 %v19528_v20  ;;  %v19538_v20 = vld [vmem:[#allocation29_spill] sm:$0xff] }
0x101b   : > { %11512 = vmatprep.subr.mxu0 %v19529_v62  ;;  %11583 = vmatprep.subr.mxu1 %v19530_v9  ;;  %v19539_v62 = vld [vmem:[#allocation30_spill] sm:$0xff] }
0x101c   : > { %11513 = vmatpush1.msra.mxu0 %v19531_v63  ;;  %11584 = vmatpush1.msra.mxu1 %v19532_v36  ;;  %v19540_v36 = vld [vmem:[#allocation26_spill] sm:$0xff] }
0x101d   : > { %11514 = vmatprep.subr.mxu0 %v19533_v15  ;;  %11585 = vmatprep.subr.mxu1 %v19534_v11 }
0x101e   : > { %11515 = vmatpush1.msra.mxu0 %v19535_v1  ;;  %11548 = vmatprep.mubr.f32.mxu0 %v19536_v3 }
0x101f   : > { %11586 = vmatpush1.msra.mxu1 %v19537_v25  ;;  %11619 = vmatprep.mubr.f32.mxu1 %v19536_v3 }
0x1020   : > { %11672 = vmatprep.subr.mxu0 %v19538_v20  ;;  %11743 = vmatprep.subr.mxu1 %v19539_v62 }
0x10bf   : > { %v11362_v9 = vpop.f32.mrf.mxu0  ;;  %v11433_v15 = vpop.f32.mrf.mxu1 }
0x10c0   : > { %v11442_v63 = vrot.slane %v11362_v9, 7  ;;  %v11444_v20 = vrot.slane %v11433_v15, 7 }
0x10c1   : > { %v11364_v42 = vpop.f32.mrf.mxu0  ;;  %v11435_v61 = vpop.f32.mrf.mxu1 }
0x10c2   : > { %v11450_v35 = vadd.f32 %v11442_v63, %v19540_v36  ;;  %v11443_v59 = vrot.slane %v11364_v42, 7  ;;  %v11445_v25 = vrot.slane %v11435_v61, 7  ;;  %v11452_v9 = vadd.f32 %v11444_v20, %v18599_v8 }
0x10c4   : > { %v14269_v11 = vmul.f32 -1.442695, %v11450_v35  ;;  %v11451_v1 = vadd.f32 %v11443_v59, %v18590_v27  ;;  %v11453_v3 = vadd.f32 %v11445_v25, %v18595_v56 }
0x10c6   : > { %16032 = vpow2.f32 %v14269_v11  ;;  %v14270_v2 = vmul.f32 -1.442695, %v11451_v1  ;;  %v14271_v34 = vmul.f32 -1.442695, %v11453_v3  ;;  %v19543_v11 = vld [vmem:[#allocation37_spill] sm:$0xff] }
0x10c8   : > { %16034 = vpow2.f32 %v14270_v2  ;;  %v11474_v2 = vrot.slane %v18602_v17, 7  ;;  %v19541_v17 = vld [vmem:[#allocation35_spill] sm:$0xff] }
0x10c9   : > { %16036 = vpow2.f32 %v14271_v34 }
0x10d3   : > { %v16033_v62 = vpop.eup %16032 }
0x10d4   : > { %v11457_v53 = vadd.f32 1.0, %v16033_v62  ;;  %v19542_v62 = vld [vmem:[#allocation36_spill] sm:$0xff] }
0x10d5   : > { %v16035_v54 = vpop.eup %16034 }
0x10d6   : > { %16038 = vrcp.f32 %v11457_v53  ;;  %v11463_v42 = vadd.f32 1.0, %v16035_v54  ;;  %v16037_v59 = vpop.eup %16036 }
0x10d7   : > { %16040 = vtanh.f32 %v11452_v9  ;;  %v11470_v63 = vadd.f32 1.0, %v16037_v59  ;;  %v19544_v9 = vld [vmem:[#allocation38_spill] sm:$0xff]  ;;  %v19546_v59 = vld [vmem:[#allocation40_spill] sm:$0xff] }
0x10d8   : > { %16042 = vrcp.f32 %v11463_v42  ;;  %v19545_v42 = vld [vmem:[#allocation39_spill] sm:$0xff] }
0x10d9   : > { %16044 = vrcp.f32 %v11470_v63  ;;  %v19551_v63 = vld [vmem:[#allocation45_spill] sm:$0xff] }
0x10e3   : > { %v16039_v35 = vpop.eup %16038 }
0x10e4   : > { %v16041_v1 = vpop.eup %16040 }
0x10e5   : > { %v16043_v61 = vpop.eup %16042  ;;  %v11477_v25 = vmul.f32 %v16041_v1, %v16039_v35  ;;  %v19547_v35 = vld [vmem:[#allocation41_spill] sm:$0xff]  ;;  %v19548_v1 = vld [vmem:[#allocation42_spill] sm:$0xff] }
0x10e6   : > { %v11476_v15 = vmul.f32 %v16043_v61, %v11474_v2  ;;  %v16045_v20 = vpop.eup %16044  ;;  %v19549_v2 = vld [vmem:[#allocation43_spill] sm:$0xff]  ;;  %v19550_v61 = vld [vmem:[#allocation44_spill] sm:$0xff] }
0x10e8   : > { %v18676_v3 = vadd.f32 %v11477_v25, %v11476_v15  ;;  %v19552_v25 = vld [vmem:[#allocation46_spill] sm:$0xff]  ;;  %v19553_v15 = vld [vmem:[#allocation47_spill] sm:$0xff] }
0x10ea   : > { %16046 = vtanh.f32 %v18676_v3 }
0x10f7   : > { %v16047_v34 = vpop.eup %16046 }
0x10f8   : > { %v11480_v53 = vmul.f32 %v16047_v34, %v16045_v20  ;;  %v19554_v20 = vld [vmem:[#allocation48_spill] sm:$0xff]  ;;  %v19555_v34 = vld [vmem:[#allocation49_spill] sm:$0xff] }
0x10fa   : > { %v11482_v54 = vrot.slane %v11480_v53, 1  ;;  %v19556_v53 = vld [vmem:[#allocation50_spill] sm:$0xff] }
0x10fc   : > { %11549 = vmatmul.mubr.f32.vlgmr.msra.gmra.mxu0 %v11482_v54  ;;  %11620 = vmatmul.mubr.f32.vlgmr.msra.gmra.mxu1 %v11482_v54  ;;  %v19557_v54 = vld [vmem:[#allocation51_spill] sm:$0xff] }
0x10fd   : > { %11673 = vmatpush1.msra.mxu0 %v18262_v24  ;;  %11744 = vmatpush1.msra.mxu1 %v18265_v23 }
0x10fe   : > { %11674 = vmatprep.subr.mxu0 %v18270_v55  ;;  %11745 = vmatprep.subr.mxu1 %v18273_v12 }
0x10ff   : > { %11675 = vmatpush1.msra.mxu0 %v18278_v60  ;;  %11746 = vmatpush1.msra.mxu1 %v18281_v47 }
0x1100   : > { %11676 = vmatprep.subr.mxu0 %v18286_v10  ;;  %11747 = vmatprep.subr.mxu1 %v18289_v31 }
0x1101   : > { %11677 = vmatpush1.msra.mxu0 %v18294_v13  ;;  %11748 = vmatpush1.msra.mxu1 %v18297_v45 }
0x1102   : > { %11678 = vmatprep.subr.mxu0 %v18302_v40  ;;  %11749 = vmatprep.subr.mxu1 %v18305_v39 }
0x1103   : > { %11679 = vmatpush1.msra.mxu0 %v18310_v48  ;;  %11750 = vmatpush1.msra.mxu1 %v18313_v50 }
0x1104   : > { %11680 = vmatprep.subr.mxu0 %v18318_v29  ;;  %11751 = vmatprep.subr.mxu1 %v18321_v33 }
0x1105   : > { %11681 = vmatpush1.msra.mxu0 %v18326_v14  ;;  %11752 = vmatpush1.msra.mxu1 %v18329_v46 }
0x1106   : > { %11682 = vmatprep.subr.mxu0 %v18334_v5  ;;  %11753 = vmatprep.subr.mxu1 %v18337_v32 }
0x1107   : > { %11683 = vmatpush1.msra.mxu0 %v18342_v7  ;;  %11754 = vmatpush1.msra.mxu1 %v18345_v22 }
0x1108   : > { %11684 = vmatprep.subr.mxu0 %v18350_v38  ;;  %11755 = vmatprep.subr.mxu1 %v18353_v16 }
0x1109   : > { %11685 = vmatpush1.msra.mxu0 %v18358_v4  ;;  %11756 = vmatpush1.msra.mxu1 %v18361_v49 }
0x110a   : > { %11686 = vmatprep.subr.mxu0 %v18366_v19  ;;  %11757 = vmatprep.subr.mxu1 %v18369_v28 }
0x110b   : > { %11687 = vmatpush1.msra.mxu0 %v18374_v44  ;;  %11758 = vmatpush1.msra.mxu1 %v18377_v41 }
0x110c   : > { %11688 = vmatprep.subr.mxu0 %v18382_v21  ;;  %11759 = vmatprep.subr.mxu1 %v18385_v26 }
0x110d   : > { %11689 = vmatpush1.msra.mxu0 %v18390_v37  ;;  %11760 = vmatpush1.msra.mxu1 %v18393_v18 }
0x110e   : > { %11690 = vmatprep.subr.mxu0 %v18398_v58  ;;  %11761 = vmatprep.subr.mxu1 %v18401_v43 }
0x110f   : > { %11691 = vmatpush1.msra.mxu0 %v18406_v52  ;;  %11762 = vmatpush1.msra.mxu1 %v18409_v57 }
0x1110   : > { %11692 = vmatprep.subr.mxu0 %v19513_v0  ;;  %11763 = vmatprep.subr.mxu1 %v19514_v6 }
0x1111   : > { %11693 = vmatpush1.msra.mxu0 %v19515_v51  ;;  %11764 = vmatpush1.msra.mxu1 %v19516_v30 }
0x1112   : > { %11694 = vmatprep.subr.mxu0 %v19541_v17  ;;  %11765 = vmatprep.subr.mxu1 %v19542_v62 }
0x1113   : > { %11695 = vmatpush1.msra.mxu0 %v19543_v11  ;;  %11766 = vmatpush1.msra.mxu1 %v19544_v9 }
0x1114   : > { %11696 = vmatprep.subr.mxu0 %v19545_v42  ;;  %11767 = vmatprep.subr.mxu1 %v19546_v59 }
0x1115   : > { %11697 = vmatpush1.msra.mxu0 %v19547_v35  ;;  %11768 = vmatpush1.msra.mxu1 %v19548_v1  ;;  %v19558_v35 = vld [vmem:[#allocation52_spill] sm:$0xff]  ;;  %v19559_v1 = vld [vmem:[#allocation53_spill] sm:$0xff] }
0x1116   : > { %11698 = vmatprep.subr.mxu0 %v19549_v2  ;;  %11769 = vmatprep.subr.mxu1 %v19550_v61  ;;  %v19560_v2 = vmov 0.0   ;;  %v19561_v61 = vld [vmem:[#allocation54_spill] sm:$0xff] }
0x1117   : > { %11699 = vmatpush1.msra.mxu0 %v19551_v63  ;;  %11770 = vmatpush1.msra.mxu1 %v19552_v25  ;;  %v19562_v25 = vld [vmem:[#allocation29_spill] sm:$0xff] }
0x1118   : > { %11700 = vmatprep.subr.mxu0 %v19553_v15  ;;  %11771 = vmatprep.subr.mxu1 %v19554_v20  ;;  %v19563_v15 = vld [vmem:[#allocation30_spill] sm:$0xff] }
0x1119   : > { %11701 = vmatpush1.msra.mxu0 %v19555_v34  ;;  %11772 = vmatpush1.msra.mxu1 %v19556_v53 }
0x111a   : > { %11702 = vmatprep.subr.mxu0 %v19557_v54  ;;  %11773 = vmatprep.subr.mxu1 %v19558_v35 }
0x111b   : > { %11703 = vmatpush1.msra.mxu0 %v19559_v1  ;;  %11736 = vmatprep.mubr.f32.mxu0 %v19560_v2 }
0x111c   : > { %11774 = vmatpush1.msra.mxu1 %v19561_v61  ;;  %11807 = vmatprep.mubr.f32.mxu1 %v19560_v2 }
0x111d   : > { %11860 = vmatprep.subr.mxu0 %v19562_v25  ;;  %11931 = vmatprep.subr.mxu1 %v19563_v15 }
0x11bc   : > { %v11550_v20 = vpop.f32.mrf.mxu0  ;;  %v11621_v54 = vpop.f32.mrf.mxu1 }
0x11bd   : > { %v11630_v34 = vrot.slane %v11550_v20, 6  ;;  %v11632_v25 = vrot.slane %v11621_v54, 6 }
0x11be   : > { %v11552_v63 = vpop.f32.mrf.mxu0  ;;  %v11623_v9 = vpop.f32.mrf.mxu1 }
0x11bf   : > { %v11638_v53 = vadd.f32 %v11630_v34, %v19540_v36  ;;  %v11631_v59 = vrot.slane %v11552_v63, 6  ;;  %v11633_v61 = vrot.slane %v11623_v9, 6  ;;  %v11640_v20 = vadd.f32 %v11632_v25, %v18599_v8 }
0x11c1   : > { %v14272_v35 = vmul.f32 -1.442695, %v11638_v53  ;;  %v11639_v1 = vadd.f32 %v11631_v59, %v18590_v27  ;;  %v11641_v2 = vadd.f32 %v11633_v61, %v18595_v56 }
0x11c3   : > { %16048 = vpow2.f32 %v14272_v35  ;;  %v14273_v42 = vmul.f32 -1.442695, %v11639_v1  ;;  %v14274_v11 = vmul.f32 -1.442695, %v11641_v2 }
0x11c5   : > { %16050 = vpow2.f32 %v14273_v42  ;;  %v11662_v42 = vrot.slane %v18676_v3, 7 }
0x11c6   : > { %16052 = vpow2.f32 %v14274_v11 }
0x11d0   : > { %v16049_v15 = vpop.eup %16048 }
0x11d1   : > { %v11645_v62 = vadd.f32 1.0, %v16049_v15 }
0x11d2   : > { %v16051_v17 = vpop.eup %16050 }
0x11d3   : > { %16054 = vrcp.f32 %v11645_v62  ;;  %v11651_v63 = vadd.f32 1.0, %v16051_v17  ;;  %v16053_v59 = vpop.eup %16052 }
0x11d4   : > { %16056 = vtanh.f32 %v11640_v20  ;;  %v11658_v34 = vadd.f32 1.0, %v16053_v59 }
0x11d5   : > { %16058 = vrcp.f32 %v11651_v63 }
0x11d6   : > { %16060 = vrcp.f32 %v11658_v34 }
0x11e0   : > { %v16055_v35 = vpop.eup %16054 }
0x11e1   : > { %v16057_v1 = vpop.eup %16056 }
0x11e2   : > { %v16059_v9 = vpop.eup %16058  ;;  %v11665_v61 = vmul.f32 %v16057_v1, %v16055_v35 }
0x11e3   : > { %v11664_v53 = vmul.f32 %v16059_v9, %v11662_v42  ;;  %v16061_v54 = vpop.eup %16060 }
0x11e5   : > { %v18750_v2 = vadd.f32 %v11665_v61, %v11664_v53 }
0x11e7   : > { %16062 = vtanh.f32 %v18750_v2  ;;  %v11850_v20 = vrot.slane %v18750_v2, 7  ;;  %v18834_v2 = vld [vmem:[%s19479_s1 + $0x1e0] sm:$0xff] }
0x11f4   : > { %v16063_v11 = vpop.eup %16062 }
0x11f5   : > { %v11668_v62 = vmul.f32 %v16063_v11, %v16061_v54  ;;  %v18838_v54 = vld [vmem:[%s19479_s1 + $0x1f0] sm:$0xff]  ;;  %v18842_v11 = vld [vmem:[%s19479_s1 + $0x1c8] sm:$0xff] }
0x11f7   : > { %v11670_v17 = vrot.slane %v11668_v62, 2  ;;  %v18846_v62 = vld [vmem:[%s19479_s1 + $0x1d8] sm:$0xff] }
0x11f9   : > { %11737 = vmatmul.mubr.f32.vlgmr.msra.gmra.mxu0 %v11670_v17  ;;  %11808 = vmatmul.mubr.f32.vlgmr.msra.gmra.mxu1 %v11670_v17  ;;  %v18850_v17 = vld [vmem:[%s19479_s1 + $0x1c0] sm:$0xff] }
0x11fa   : > { %11861 = vmatpush1.msra.mxu0 %v18262_v24  ;;  %11932 = vmatpush1.msra.mxu1 %v18265_v23  ;;  %v19564_v24 = vld [vmem:[#allocation35_spill] sm:$0xff]  ;;  %v19565_v23 = vld [vmem:[#allocation36_spill] sm:$0xff] }
0x11fb   : > { %11862 = vmatprep.subr.mxu0 %v18270_v55  ;;  %11933 = vmatprep.subr.mxu1 %v18273_v12  ;;  %v19566_v55 = vld [vmem:[#allocation37_spill] sm:$0xff]  ;;  %v19567_v12 = vld [vmem:[#allocation38_spill] sm:$0xff] }
0x11fc   : > { %11863 = vmatpush1.msra.mxu0 %v18278_v60  ;;  %11934 = vmatpush1.msra.mxu1 %v18281_v47  ;;  %v19568_v60 = vld [vmem:[#allocation39_spill] sm:$0xff]  ;;  %v19569_v47 = vld [vmem:[#allocation40_spill] sm:$0xff] }
0x11fd   : > { %11864 = vmatprep.subr.mxu0 %v18286_v10  ;;  %11935 = vmatprep.subr.mxu1 %v18289_v31  ;;  %v19570_v10 = vld [vmem:[#allocation41_spill] sm:$0xff]  ;;  %v19571_v31 = vld [vmem:[#allocation42_spill] sm:$0xff] }
0x11fe   : > { %11865 = vmatpush1.msra.mxu0 %v18294_v13  ;;  %11936 = vmatpush1.msra.mxu1 %v18297_v45  ;;  %v19572_v13 = vld [vmem:[#allocation43_spill] sm:$0xff]  ;;  %v19573_v45 = vld [vmem:[#allocation44_spill] sm:$0xff] }
0x11ff   : > { %11866 = vmatprep.subr.mxu0 %v18302_v40  ;;  %11937 = vmatprep.subr.mxu1 %v18305_v39  ;;  %v19574_v40 = vld [vmem:[#allocation45_spill] sm:$0xff]  ;;  %v19575_v39 = vld [vmem:[#allocation46_spill] sm:$0xff] }
0x1200   : > { %11867 = vmatpush1.msra.mxu0 %v18310_v48  ;;  %11938 = vmatpush1.msra.mxu1 %v18313_v50  ;;  %v19576_v48 = vld [vmem:[#allocation47_spill] sm:$0xff]  ;;  %v19577_v50 = vld [vmem:[#allocation48_spill] sm:$0xff] }
0x1201   : > { %11868 = vmatprep.subr.mxu0 %v18318_v29  ;;  %11939 = vmatprep.subr.mxu1 %v18321_v33  ;;  %v19578_v29 = vld [vmem:[#allocation49_spill] sm:$0xff]  ;;  %v19579_v33 = vld [vmem:[#allocation50_spill] sm:$0xff] }
0x1202   : > { %11869 = vmatpush1.msra.mxu0 %v18326_v14  ;;  %11940 = vmatpush1.msra.mxu1 %v18329_v46  ;;  %v19580_v14 = vld [vmem:[#allocation51_spill] sm:$0xff]  ;;  %v19581_v46 = vld [vmem:[#allocation52_spill] sm:$0xff] }
0x1203   : > { %11870 = vmatprep.subr.mxu0 %v18334_v5  ;;  %11941 = vmatprep.subr.mxu1 %v18337_v32  ;;  %v19582_v5 = vld [vmem:[#allocation53_spill] sm:$0xff]  ;;  %v19583_v32 = vmov 0.0  }
0x1204   : > { %11871 = vmatpush1.msra.mxu0 %v18342_v7  ;;  %11942 = vmatpush1.msra.mxu1 %v18345_v22  ;;  %v19584_v7 = vld [vmem:[#allocation54_spill] sm:$0xff] }
0x1205   : > { %11872 = vmatprep.subr.mxu0 %v18350_v38  ;;  %11943 = vmatprep.subr.mxu1 %v18353_v16  ;;  %v18818_v22 = vld [vmem:[%s19479_s1 + $0x1e8] sm:$0xff]  ;;  %v18822_v38 = vld [vmem:[%s19479_s1 + $0x1f8] sm:$0xff] }
0x1206   : > { %11873 = vmatpush1.msra.mxu0 %v18358_v4  ;;  %11944 = vmatpush1.msra.mxu1 %v18361_v49  ;;  %19585 = vst [vmem:[#allocation27_spill] sm:$0xff] %v18818_v22  ;;  %19586 = vst [vmem:[#allocation25_spill] sm:$0xff] %v18822_v38 }
0x1207   : > { %11874 = vmatprep.subr.mxu0 %v18366_v19  ;;  %11945 = vmatprep.subr.mxu1 %v18369_v28 }
0x1208   : > { %11875 = vmatpush1.msra.mxu0 %v18374_v44  ;;  %11946 = vmatpush1.msra.mxu1 %v18377_v41 }
0x1209   : > { %11876 = vmatprep.subr.mxu0 %v18382_v21  ;;  %11947 = vmatprep.subr.mxu1 %v18385_v26 }
0x120a   : > { %11877 = vmatpush1.msra.mxu0 %v18390_v37  ;;  %11948 = vmatpush1.msra.mxu1 %v18393_v18 }
0x120b   : > { %11878 = vmatprep.subr.mxu0 %v18398_v58  ;;  %11949 = vmatprep.subr.mxu1 %v18401_v43 }
0x120c   : > { %11879 = vmatpush1.msra.mxu0 %v18406_v52  ;;  %11950 = vmatpush1.msra.mxu1 %v18409_v57 }
0x120d   : > { %11880 = vmatprep.subr.mxu0 %v19513_v0  ;;  %11951 = vmatprep.subr.mxu1 %v19514_v6 }
0x120e   : > { %11881 = vmatpush1.msra.mxu0 %v19515_v51  ;;  %11952 = vmatpush1.msra.mxu1 %v19516_v30 }
0x120f   : > { %11882 = vmatprep.subr.mxu0 %v19564_v24  ;;  %11953 = vmatprep.subr.mxu1 %v19565_v23  ;;  %v18854_v24 = vld [vmem:[%s19479_s1 + $0x1d0] sm:$0xff]  ;;  %v18858_v23 = vld [vmem:[%s19479_s1 + $0x1a8] sm:$0xff] }
0x1210   : > { %11883 = vmatpush1.msra.mxu0 %v19566_v55  ;;  %11954 = vmatpush1.msra.mxu1 %v19567_v12  ;;  %v18862_v55 = vld [vmem:[%s19479_s1 + $0x1b8] sm:$0xff]  ;;  %v18866_v12 = vld [vmem:[%s19479_s1 + $0x1a0] sm:$0xff] }
0x1211   : > { %11884 = vmatprep.subr.mxu0 %v19568_v60  ;;  %11955 = vmatprep.subr.mxu1 %v19569_v47  ;;  %v18870_v60 = vld [vmem:[%s19479_s1 + $0x1b0] sm:$0xff]  ;;  %v18874_v47 = vld [vmem:[%s19479_s1 + $0x188] sm:$0xff] }
0x1212   : > { %11885 = vmatpush1.msra.mxu0 %v19570_v10  ;;  %11956 = vmatpush1.msra.mxu1 %v19571_v31  ;;  %v18878_v10 = vld [vmem:[%s19479_s1 + $0x198] sm:$0xff]  ;;  %v18882_v31 = vld [vmem:[%s19479_s1 + $0x180] sm:$0xff] }
0x1213   : > { %11886 = vmatprep.subr.mxu0 %v19572_v13  ;;  %11957 = vmatprep.subr.mxu1 %v19573_v45  ;;  %v18886_v13 = vld [vmem:[%s19479_s1 + $0x190] sm:$0xff]  ;;  %v18890_v45 = vld [vmem:[%s19479_s1 + $0x168] sm:$0xff] }
0x1214   : > { %11887 = vmatpush1.msra.mxu0 %v19574_v40  ;;  %11958 = vmatpush1.msra.mxu1 %v19575_v39  ;;  %v18894_v40 = vld [vmem:[%s19479_s1 + $0x178] sm:$0xff]  ;;  %v18898_v39 = vld [vmem:[%s19479_s1 + $0x160] sm:$0xff] }
0x1215   : > { %11888 = vmatprep.subr.mxu0 %v19576_v48  ;;  %11959 = vmatprep.subr.mxu1 %v19577_v50  ;;  %v18902_v48 = vld [vmem:[%s19479_s1 + $0x170] sm:$0xff]  ;;  %v18906_v50 = vld [vmem:[%s19479_s1 + $0x148] sm:$0xff] }
0x1216   : > { %11889 = vmatpush1.msra.mxu0 %v19578_v29  ;;  %11960 = vmatpush1.msra.mxu1 %v19579_v33  ;;  %v18910_v29 = vld [vmem:[%s19479_s1 + $0x158] sm:$0xff]  ;;  %v18914_v33 = vld [vmem:[%s19479_s1 + $0x140] sm:$0xff] }
0x1217   : > { %11890 = vmatprep.subr.mxu0 %v19580_v14  ;;  %11961 = vmatprep.subr.mxu1 %v19581_v46  ;;  %v18918_v14 = vld [vmem:[%s19479_s1 + $0x150] sm:$0xff]  ;;  %v18922_v46 = vld [vmem:[%s19479_s1 + $0x128] sm:$0xff] }
0x1218   : > { %11891 = vmatpush1.msra.mxu0 %v19582_v5  ;;  %11924 = vmatprep.mubr.f32.mxu0 %v19583_v32  ;;  %v18926_v5 = vld [vmem:[%s19479_s1 + $0x138] sm:$0xff] }
0x1219   : > { %11962 = vmatpush1.msra.mxu1 %v19584_v7  ;;  %11995 = vmatprep.mubr.f32.mxu1 %v19583_v32  ;;  %v18930_v7 = vld [vmem:[%s19479_s1 + $0x120] sm:$0xff] }
0x121a   : > { %12048 = vmatprep.subr.mxu0 %v18818_v22  ;;  %12119 = vmatprep.subr.mxu1 %v18822_v38 }
0x12b9   : > { %v11738_v16 = vpop.f32.mrf.mxu0  ;;  %v11809_v28 = vpop.f32.mrf.mxu1 }
0x12ba   : > { %v11818_v4 = vrot.slane %v11738_v16, 5  ;;  %v11820_v43 = vrot.slane %v11809_v28, 5  ;;  %v18934_v16 = vld [vmem:[%s19479_s1 + $0x130] sm:$0xff] }
0x12bb   : > { %v11740_v49 = vpop.f32.mrf.mxu0  ;;  %v11811_v37 = vpop.f32.mrf.mxu1  ;;  %v18950_v28 = vld [vmem:[%s19479_s1 + $0x110] sm:$0xff] }
0x12bc   : > { %v11826_v19 = vadd.f32 %v11818_v4, %v19540_v36  ;;  %v11819_v44 = vrot.slane %v11740_v49, 5  ;;  %v11821_v18 = vrot.slane %v11811_v37, 5  ;;  %v11828_v0 = vadd.f32 %v11820_v43, %v18599_v8  ;;  %v18938_v4 = vld [vmem:[%s19479_s1 + $0x108] sm:$0xff]  ;;  %v18942_v49 = vld [vmem:[%s19479_s1 + $0x118] sm:$0xff]  ;;  %v18982_v43 = vld [vmem:[%s19479_s1 + $0xd0] sm:$0xff] }
0x12bd   : > { %v18970_v37 = vld [vmem:[%s19479_s1 + $0xc8] sm:$0xff] }
0x12be   : > { %v14275_v41 = vmul.f32 -1.442695, %v11826_v19  ;;  %v11827_v21 = vadd.f32 %v11819_v44, %v18590_v27  ;;  %v11829_v58 = vadd.f32 %v11821_v18, %v18595_v56  ;;  %v18946_v19 = vld [vmem:[%s19479_s1 + $0x100] sm:$0xff]  ;;  %v18954_v44 = vld [vmem:[%s19479_s1 + $0xe8] sm:$0xff]  ;;  %v18974_v18 = vld [vmem:[%s19479_s1 + $0xd8] sm:$0xff] }
0x12c0   : > { %16064 = vpow2.f32 %v14275_v41  ;;  %v14276_v26 = vmul.f32 -1.442695, %v11827_v21  ;;  %v14277_v52 = vmul.f32 -1.442695, %v11829_v58  ;;  %v18958_v41 = vld [vmem:[%s19479_s1 + $0xf8] sm:$0xff]  ;;  %v18962_v21 = vld [vmem:[%s19479_s1 + $0xe0] sm:$0xff] }
0x12c1   : > { %v18978_v58 = vld [vmem:[%s19479_s1 + $0xc0] sm:$0xff] }
0x12c2   : > { %16066 = vpow2.f32 %v14276_v26  ;;  %v18966_v26 = vld [vmem:[%s19479_s1 + $0xf0] sm:$0xff] }
0x12c3   : > { %16068 = vpow2.f32 %v14277_v52  ;;  %v18986_v52 = vld [vmem:[%s19479_s1 + $0xa8] sm:$0xff] }
0x12cd   : > { %v16065_v57 = vpop.eup %16064 }
0x12ce   : > { %v11833_v6 = vadd.f32 1.0, %v16065_v57  ;;  %v18990_v57 = vld [vmem:[%s19479_s1 + $0xb8] sm:$0xff] }
0x12cf   : > { %v16067_v51 = vpop.eup %16066 }
0x12d0   : > { %16070 = vrcp.f32 %v11833_v6  ;;  %v11839_v30 = vadd.f32 1.0, %v16067_v51  ;;  %v16069_v3 = vpop.eup %16068  ;;  %v18998_v6 = vld [vmem:[%s19479_s1 + $0xb0] sm:$0xff]  ;;  %v19002_v51 = vld [vmem:[%s19479_s1 + $0x88] sm:$0xff] }
0x12d1   : > { %16072 = vtanh.f32 %v11828_v0  ;;  %v11846_v59 = vadd.f32 1.0, %v16069_v3  ;;  %v18994_v0 = vld [vmem:[%s19479_s1 + $0xa0] sm:$0xff]  ;;  %19587 = vst [vmem:[#allocation28_spill] sm:$0xff] %v19002_v51 }
0x12d2   : > { %16074 = vrcp.f32 %v11839_v30  ;;  %v19006_v30 = vld [vmem:[%s19479_s1 + $0x98] sm:$0xff]  ;;  %v19010_v3 = vld [vmem:[%s19479_s1 + $0x80] sm:$0xff] }
0x12d3   : > { %16076 = vrcp.f32 %v11846_v59  ;;  %19588 = vst [vmem:[#allocation31_spill] sm:$0xff] %v19006_v30  ;;  %19589 = vst [vmem:[#allocation32_spill] sm:$0xff] %v19010_v3  ;;  %v19030_v59 = vld [vmem:[%s19479_s1 + $0x70] sm:$0xff] }
0x12d4   : > { %19594 = vst [vmem:[#allocation30_spill] sm:$0xff] %v19030_v59 }
0x12dd   : > { %v16071_v25 = vpop.eup %16070 }
0x12de   : > { %v16073_v15 = vpop.eup %16072 }
0x12df   : > { %v16075_v63 = vpop.eup %16074  ;;  %v11853_v35 = vmul.f32 %v16073_v15, %v16071_v25  ;;  %v19014_v25 = vld [vmem:[%s19479_s1 + $0x90] sm:$0xff]  ;;  %v19018_v15 = vld [vmem:[%s19479_s1 + $0x68] sm:$0xff] }
0x12e0   : > { %v11852_v1 = vmul.f32 %v16075_v63, %v11850_v20  ;;  %v16077_v9 = vpop.eup %16076  ;;  %19590 = vst [vmem:[#allocation33_spill] sm:$0xff] %v19014_v25  ;;  %19591 = vst [vmem:[#allocation34_spill] sm:$0xff] %v19018_v15  ;;  %v19022_v20 = vld [vmem:[%s19479_s1 + $0x78] sm:$0xff]  ;;  %v19026_v63 = vld [vmem:[%s19479_s1 + $0x60] sm:$0xff] }
0x12e1   : > { %19592 = vst [vmem:[#allocation26_spill] sm:$0xff] %v19022_v20  ;;  %19593 = vst [vmem:[#allocation29_spill] sm:$0xff] %v19026_v63 }
0x12e2   : > { %v18830_v42 = vadd.f32 %v11853_v35, %v11852_v1  ;;  %v19034_v35 = vld [vmem:[%s19479_s1 + $0x48] sm:$0xff]  ;;  %v19038_v1 = vld [vmem:[%s19479_s1 + $0x58] sm:$0xff] }
0x12e3   : > { %19595 = vst [vmem:[#allocation35_spill] sm:$0xff] %v19034_v35  ;;  %19596 = vst [vmem:[#allocation36_spill] sm:$0xff] %v19038_v1 }
0x12e4   : > { %16078 = vtanh.f32 %v18830_v42 }
0x12f1   : > { %v16079_v34 = vpop.eup %16078 }
0x12f2   : > { %v11856_v61 = vmul.f32 %v16079_v34, %v16077_v9  ;;  %v19042_v9 = vld [vmem:[%s19479_s1 + $0x40] sm:$0xff]  ;;  %v19046_v34 = vld [vmem:[%s19479_s1 + $0x50] sm:$0xff] }
0x12f3   : > { %19597 = vst [vmem:[#allocation37_spill] sm:$0xff] %v19042_v9  ;;  %19598 = vst [vmem:[#allocation38_spill] sm:$0xff] %v19046_v34 }
0x12f4   : > { %v11858_v53 = vrot.slane %v11856_v61, 3  ;;  %v19050_v61 = vld [vmem:[%s19479_s1 + $0x28] sm:$0xff] }
0x12f5   : > { %19599 = vst [vmem:[#allocation39_spill] sm:$0xff] %v19050_v61 }
0x12f6   : > { %11925 = vmatmul.mubr.f32.vlgmr.msra.gmra.mxu0 %v11858_v53  ;;  %11996 = vmatmul.mubr.f32.vlgmr.msra.gmra.mxu1 %v11858_v53  ;;  %v19054_v53 = vld [vmem:[%s19479_s1 + $0x38] sm:$0xff] }
0x12f7   : > { %12049 = vmatpush1.msra.mxu0 %v18834_v2  ;;  %12120 = vmatpush1.msra.mxu1 %v18838_v54  ;;  %19600 = vst [vmem:[#allocation40_spill] sm:$0xff] %v19054_v53 }
0x12f8   : > { %12050 = vmatprep.subr.mxu0 %v18842_v11  ;;  %12121 = vmatprep.subr.mxu1 %v18846_v62 }
0x12f9   : > { %12051 = vmatpush1.msra.mxu0 %v18850_v17  ;;  %12122 = vmatpush1.msra.mxu1 %v18854_v24 }
0x12fa   : > { %12052 = vmatprep.subr.mxu0 %v18858_v23  ;;  %12123 = vmatprep.subr.mxu1 %v18862_v55 }
0x12fb   : > { %12053 = vmatpush1.msra.mxu0 %v18866_v12  ;;  %12124 = vmatpush1.msra.mxu1 %v18870_v60 }
0x12fc   : > { %12054 = vmatprep.subr.mxu0 %v18874_v47  ;;  %12125 = vmatprep.subr.mxu1 %v18878_v10 }
0x12fd   : > { %12055 = vmatpush1.msra.mxu0 %v18882_v31  ;;  %12126 = vmatpush1.msra.mxu1 %v18886_v13 }
0x12fe   : > { %12056 = vmatprep.subr.mxu0 %v18890_v45  ;;  %12127 = vmatprep.subr.mxu1 %v18894_v40 }
0x12ff   : > { %12057 = vmatpush1.msra.mxu0 %v18898_v39  ;;  %12128 = vmatpush1.msra.mxu1 %v18902_v48 }
0x1300   : > { %12058 = vmatprep.subr.mxu0 %v18906_v50  ;;  %12129 = vmatprep.subr.mxu1 %v18910_v29 }
0x1301   : > { %12059 = vmatpush1.msra.mxu0 %v18914_v33  ;;  %12130 = vmatpush1.msra.mxu1 %v18918_v14 }
0x1302   : > { %12060 = vmatprep.subr.mxu0 %v18922_v46  ;;  %12131 = vmatprep.subr.mxu1 %v18926_v5 }
0x1303   : > { %12061 = vmatpush1.msra.mxu0 %v18930_v7  ;;  %12132 = vmatpush1.msra.mxu1 %v18934_v16 }
0x1304   : > { %12062 = vmatprep.subr.mxu0 %v18938_v4  ;;  %12133 = vmatprep.subr.mxu1 %v18942_v49 }
0x1305   : > { %12063 = vmatpush1.msra.mxu0 %v18946_v19  ;;  %12134 = vmatpush1.msra.mxu1 %v18950_v28 }
0x1306   : > { %12064 = vmatprep.subr.mxu0 %v18954_v44  ;;  %12135 = vmatprep.subr.mxu1 %v18958_v41 }
0x1307   : > { %12065 = vmatpush1.msra.mxu0 %v18962_v21  ;;  %12136 = vmatpush1.msra.mxu1 %v18966_v26 }
0x1308   : > { %12066 = vmatprep.subr.mxu0 %v18970_v37  ;;  %12137 = vmatprep.subr.mxu1 %v18974_v18 }
0x1309   : > { %12067 = vmatpush1.msra.mxu0 %v18978_v58  ;;  %12138 = vmatpush1.msra.mxu1 %v18982_v43 }
0x130a   : > { %12068 = vmatprep.subr.mxu0 %v18986_v52  ;;  %12139 = vmatprep.subr.mxu1 %v18990_v57 }
0x130b   : > { %12069 = vmatpush1.msra.mxu0 %v18994_v0  ;;  %12140 = vmatpush1.msra.mxu1 %v18998_v6 }
0x130c   : > { %12070 = vmatprep.subr.mxu0 %v19002_v51  ;;  %12141 = vmatprep.subr.mxu1 %v19006_v30 }
0x130d   : > { %12071 = vmatpush1.msra.mxu0 %v19010_v3  ;;  %12142 = vmatpush1.msra.mxu1 %v19014_v25 }
0x130e   : > { %12072 = vmatprep.subr.mxu0 %v19018_v15  ;;  %12143 = vmatprep.subr.mxu1 %v19022_v20 }
0x130f   : > { %12073 = vmatpush1.msra.mxu0 %v19026_v63  ;;  %12144 = vmatpush1.msra.mxu1 %v19030_v59 }
0x1310   : > { %12074 = vmatprep.subr.mxu0 %v19034_v35  ;;  %12145 = vmatprep.subr.mxu1 %v19038_v1  ;;  %v19058_v35 = vld [vmem:[%s19479_s1 + $0x20] sm:$0xff]  ;;  %v19062_v1 = vld [vmem:[%s19479_s1 + $0x30] sm:$0xff] }
0x1311   : > { %12075 = vmatpush1.msra.mxu0 %v19042_v9  ;;  %12146 = vmatpush1.msra.mxu1 %v19046_v34  ;;  %19601 = vst [vmem:[#allocation41_spill] sm:$0xff] %v19058_v35  ;;  %19602 = vst [vmem:[#allocation42_spill] sm:$0xff] %v19062_v1  ;;  %v19066_v9 = vld [vmem:[%s19479_s1 + $0x8] sm:$0xff]  ;;  %v19070_v34 = vld [vmem:[%s19479_s1 + $0x18] sm:$0xff] }
0x1312   : > { %12076 = vmatprep.subr.mxu0 %v19050_v61  ;;  %12147 = vmatprep.subr.mxu1 %v19054_v53  ;;  %19603 = vst [vmem:[#allocation43_spill] sm:$0xff] %v19066_v9  ;;  %19604 = vst [vmem:[#allocation44_spill] sm:$0xff] %v19070_v34  ;;  %v19074_v61 = vld [vmem:[%s19479_s1] sm:$0xff]  ;;  %v19079_v53 = vld [vmem:[%s19479_s1 + $0x10] sm:$0xff]  ;;  %s14290_s1 = sshll.u32 %s16497_s0, 4 }
0x1313   : > { %12077 = vmatpush1.msra.mxu0 %v19058_v35  ;;  %12148 = vmatpush1.msra.mxu1 %v19062_v1  ;;  %19605 = vst [vmem:[#allocation45_spill] sm:$0xff] %v19074_v61  ;;  %19606 = vst [vmem:[#allocation46_spill] sm:$0xff] %v19079_v53  ;;  %s12723_s5 = scalar_lea.hbm %s16474_s20, %s14290_s1 }
0x1314   : > { %12078 = vmatprep.subr.mxu0 %v19066_v9  ;;  %12149 = vmatprep.subr.mxu1 %v19070_v34 }
0x1315   : > { %12079 = vmatpush1.msra.mxu0 %v19074_v61  ;;  %12112 = vmatprep.mubr.f32.mxu0 %v19583_v32 }
0x1316   : > { %12150 = vmatpush1.msra.mxu1 %v19079_v53  ;;  %12183 = vmatprep.mubr.f32.mxu1 %v19583_v32 }
0x1317   : > { %12236 = vmatprep.subr.mxu0 %v18818_v22  ;;  %12307 = vmatprep.subr.mxu1 %v18822_v38 }
0x13b6   : > { %v11926_v9 = vpop.f32.mrf.mxu0  ;;  %v11997_v59 = vpop.f32.mrf.mxu1 }
0x13b7   : > { %v12006_v1 = vrot.slane %v11926_v9, 4  ;;  %v12008_v22 = vrot.slane %v11997_v59, 4 }
0x13b8   : > { %v11928_v35 = vpop.f32.mrf.mxu0  ;;  %v11999_v25 = vpop.f32.mrf.mxu1 }
0x13b9   : > { %v12014_v34 = vadd.f32 %v12006_v1, %v19540_v36  ;;  %v12007_v63 = vrot.slane %v11928_v35, 4  ;;  %v12009_v53 = vrot.slane %v11999_v25, 4  ;;  %v12016_v9 = vadd.f32 %v12008_v22, %v18599_v8 }
0x13bb   : > { %v14278_v61 = vmul.f32 -1.442695, %v12014_v34  ;;  %v12015_v20 = vadd.f32 %v12007_v63, %v18590_v27  ;;  %v12017_v32 = vadd.f32 %v12009_v53, %v18595_v56  ;;  %v19609_v53 = vld [vmem:[#allocation32_spill] sm:$0xff] }
0x13bd   : > { %16080 = vpow2.f32 %v14278_v61  ;;  %v14279_v15 = vmul.f32 -1.442695, %v12015_v20  ;;  %v14280_v3 = vmul.f32 -1.442695, %v12017_v32 }
0x13bf   : > { %16082 = vpow2.f32 %v14279_v15  ;;  %v12038_v15 = vrot.slane %v18830_v42, 7  ;;  %v19607_v42 = vld [vmem:[#allocation28_spill] sm:$0xff] }
0x13c0   : > { %16084 = vpow2.f32 %v14280_v3  ;;  %v19608_v3 = vld [vmem:[#allocation31_spill] sm:$0xff] }
0x13ca   : > { %v16081_v38 = vpop.eup %16080 }
0x13cb   : > { %v12021_v30 = vadd.f32 1.0, %v16081_v38 }
0x13cc   : > { %v16083_v51 = vpop.eup %16082 }
0x13cd   : > { %16086 = vrcp.f32 %v12021_v30  ;;  %v12027_v35 = vadd.f32 1.0, %v16083_v51  ;;  %v16085_v63 = vpop.eup %16084 }
0x13ce   : > { %16088 = vtanh.f32 %v12016_v9  ;;  %v12034_v34 = vadd.f32 1.0, %v16085_v63  ;;  %v19610_v9 = vld [vmem:[#allocation33_spill] sm:$0xff]  ;;  %v19612_v63 = vld [vmem:[#allocation26_spill] sm:$0xff] }
0x13cf   : > { %16090 = vrcp.f32 %v12027_v35  ;;  %v19611_v35 = vld [vmem:[#allocation34_spill] sm:$0xff] }
0x13d0   : > { %16092 = vrcp.f32 %v12034_v34  ;;  %v19617_v34 = vld [vmem:[#allocation37_spill] sm:$0xff] }
0x13da   : > { %v16087_v1 = vpop.eup %16086 }
0x13db   : > { %v16089_v20 = vpop.eup %16088 }
0x13dc   : > { %v16091_v25 = vpop.eup %16090  ;;  %v12041_v61 = vmul.f32 %v16089_v20, %v16087_v1  ;;  %v19613_v1 = vld [vmem:[#allocation29_spill] sm:$0xff]  ;;  %v19614_v20 = vld [vmem:[#allocation30_spill] sm:$0xff] }
0x13dd   : > { %v12040_v59 = vmul.f32 %v16091_v25, %v12038_v15  ;;  %v16093_v22 = vpop.eup %16092  ;;  %v19615_v15 = vld [vmem:[#allocation35_spill] sm:$0xff]  ;;  %v19616_v25 = vld [vmem:[#allocation36_spill] sm:$0xff] }
0x13df   : > { %v19090_v32 = vadd.f32 %v12041_v61, %v12040_v59  ;;  %v19618_v61 = vld [vmem:[#allocation38_spill] sm:$0xff]  ;;  %v19619_v59 = vld [vmem:[#allocation39_spill] sm:$0xff] }
0x13e1   : > { %16094 = vtanh.f32 %v19090_v32 }
0x13ee   : > { %v16095_v38 = vpop.eup %16094 }
0x13ef   : > { %v12044_v30 = vmul.f32 %v16095_v38, %v16093_v22  ;;  %v19620_v22 = vld [vmem:[#allocation40_spill] sm:$0xff]  ;;  %v19621_v38 = vld [vmem:[#allocation41_spill] sm:$0xff] }
0x13f1   : > { %v12046_v51 = vrot.slane %v12044_v30, 4  ;;  %v19622_v30 = vld [vmem:[#allocation42_spill] sm:$0xff] }
0x13f3   : > { %12113 = vmatmul.mubr.f32.vlgmr.msra.gmra.mxu0 %v12046_v51  ;;  %12184 = vmatmul.mubr.f32.vlgmr.msra.gmra.mxu1 %v12046_v51  ;;  %v19623_v51 = vld [vmem:[#allocation43_spill] sm:$0xff] }
0x13f4   : > { %12237 = vmatpush1.msra.mxu0 %v18834_v2  ;;  %12308 = vmatpush1.msra.mxu1 %v18838_v54 }
0x13f5   : > { %12238 = vmatprep.subr.mxu0 %v18842_v11  ;;  %12309 = vmatprep.subr.mxu1 %v18846_v62 }
0x13f6   : > { %12239 = vmatpush1.msra.mxu0 %v18850_v17  ;;  %12310 = vmatpush1.msra.mxu1 %v18854_v24 }
0x13f7   : > { %12240 = vmatprep.subr.mxu0 %v18858_v23  ;;  %12311 = vmatprep.subr.mxu1 %v18862_v55 }
0x13f8   : > { %12241 = vmatpush1.msra.mxu0 %v18866_v12  ;;  %12312 = vmatpush1.msra.mxu1 %v18870_v60 }
0x13f9   : > { %12242 = vmatprep.subr.mxu0 %v18874_v47  ;;  %12313 = vmatprep.subr.mxu1 %v18878_v10 }
0x13fa   : > { %12243 = vmatpush1.msra.mxu0 %v18882_v31  ;;  %12314 = vmatpush1.msra.mxu1 %v18886_v13 }
0x13fb   : > { %12244 = vmatprep.subr.mxu0 %v18890_v45  ;;  %12315 = vmatprep.subr.mxu1 %v18894_v40 }
0x13fc   : > { %12245 = vmatpush1.msra.mxu0 %v18898_v39  ;;  %12316 = vmatpush1.msra.mxu1 %v18902_v48 }
0x13fd   : > { %12246 = vmatprep.subr.mxu0 %v18906_v50  ;;  %12317 = vmatprep.subr.mxu1 %v18910_v29 }
0x13fe   : > { %12247 = vmatpush1.msra.mxu0 %v18914_v33  ;;  %12318 = vmatpush1.msra.mxu1 %v18918_v14 }
0x13ff   : > { %12248 = vmatprep.subr.mxu0 %v18922_v46  ;;  %12319 = vmatprep.subr.mxu1 %v18926_v5 }
0x1400   : > { %12249 = vmatpush1.msra.mxu0 %v18930_v7  ;;  %12320 = vmatpush1.msra.mxu1 %v18934_v16 }
0x1401   : > { %12250 = vmatprep.subr.mxu0 %v18938_v4  ;;  %12321 = vmatprep.subr.mxu1 %v18942_v49 }
0x1402   : > { %12251 = vmatpush1.msra.mxu0 %v18946_v19  ;;  %12322 = vmatpush1.msra.mxu1 %v18950_v28 }
0x1403   : > { %12252 = vmatprep.subr.mxu0 %v18954_v44  ;;  %12323 = vmatprep.subr.mxu1 %v18958_v41 }
0x1404   : > { %12253 = vmatpush1.msra.mxu0 %v18962_v21  ;;  %12324 = vmatpush1.msra.mxu1 %v18966_v26 }
0x1405   : > { %12254 = vmatprep.subr.mxu0 %v18970_v37  ;;  %12325 = vmatprep.subr.mxu1 %v18974_v18 }
0x1406   : > { %12255 = vmatpush1.msra.mxu0 %v18978_v58  ;;  %12326 = vmatpush1.msra.mxu1 %v18982_v43 }
0x1407   : > { %12256 = vmatprep.subr.mxu0 %v18986_v52  ;;  %12327 = vmatprep.subr.mxu1 %v18990_v57 }
0x1408   : > { %12257 = vmatpush1.msra.mxu0 %v18994_v0  ;;  %12328 = vmatpush1.msra.mxu1 %v18998_v6 }
0x1409   : > { %12258 = vmatprep.subr.mxu0 %v19607_v42  ;;  %12329 = vmatprep.subr.mxu1 %v19608_v3 }
0x140a   : > { %12259 = vmatpush1.msra.mxu0 %v19609_v53  ;;  %12330 = vmatpush1.msra.mxu1 %v19610_v9 }
0x140b   : > { %12260 = vmatprep.subr.mxu0 %v19611_v35  ;;  %12331 = vmatprep.subr.mxu1 %v19612_v63 }
0x140c   : > { %12261 = vmatpush1.msra.mxu0 %v19613_v1  ;;  %12332 = vmatpush1.msra.mxu1 %v19614_v20  ;;  %v19624_v1 = vld [vmem:[#allocation44_spill] sm:$0xff]  ;;  %v19625_v20 = vld [vmem:[#allocation45_spill] sm:$0xff] }
0x140d   : > { %12262 = vmatprep.subr.mxu0 %v19615_v15  ;;  %12333 = vmatprep.subr.mxu1 %v19616_v25  ;;  %v19626_v15 = vmov 0.0   ;;  %v19627_v25 = vld [vmem:[#allocation46_spill] sm:$0xff] }
0x140e   : > { %12263 = vmatpush1.msra.mxu0 %v19617_v34  ;;  %12334 = vmatpush1.msra.mxu1 %v19618_v61  ;;  %v19628_v61 = vld [vmem:[#allocation27_spill] sm:$0xff] }
0x140f   : > { %12264 = vmatprep.subr.mxu0 %v19619_v59  ;;  %12335 = vmatprep.subr.mxu1 %v19620_v22  ;;  %v19629_v59 = vld [vmem:[#allocation25_spill] sm:$0xff] }
0x1410   : > { %12265 = vmatpush1.msra.mxu0 %v19621_v38  ;;  %12336 = vmatpush1.msra.mxu1 %v19622_v30 }
0x1411   : > { %12266 = vmatprep.subr.mxu0 %v19623_v51  ;;  %12337 = vmatprep.subr.mxu1 %v19624_v1 }
0x1412   : > { %12267 = vmatpush1.msra.mxu0 %v19625_v20  ;;  %12300 = vmatprep.mubr.f32.mxu0 %v19626_v15 }
0x1413   : > { %12338 = vmatpush1.msra.mxu1 %v19627_v25  ;;  %12371 = vmatprep.mubr.f32.mxu1 %v19626_v15 }
0x1414   : > { %12424 = vmatprep.subr.mxu0 %v19628_v61  ;;  %12495 = vmatprep.subr.mxu1 %v19629_v59 }
0x14b3   : > { %v12114_v22 = vpop.f32.mrf.mxu0  ;;  %v12185_v51 = vpop.f32.mrf.mxu1 }
0x14b4   : > { %v12194_v38 = vrot.slane %v12114_v22, 3  ;;  %v12196_v61 = vrot.slane %v12185_v51, 3 }
0x14b5   : > { %v12116_v34 = vpop.f32.mrf.mxu0  ;;  %v12187_v9 = vpop.f32.mrf.mxu1 }
0x14b6   : > { %v12202_v30 = vadd.f32 %v12194_v38, %v19540_v36  ;;  %v12195_v63 = vrot.slane %v12116_v34, 3  ;;  %v12197_v25 = vrot.slane %v12187_v9, 3  ;;  %v12204_v22 = vadd.f32 %v12196_v61, %v18599_v8 }
0x14b8   : > { %v14281_v1 = vmul.f32 -1.442695, %v12202_v30  ;;  %v12203_v20 = vadd.f32 %v12195_v63, %v18590_v27  ;;  %v12205_v15 = vadd.f32 %v12197_v25, %v18595_v56 }
0x14ba   : > { %16096 = vpow2.f32 %v14281_v1  ;;  %v14282_v35 = vmul.f32 -1.442695, %v12203_v20  ;;  %v14283_v53 = vmul.f32 -1.442695, %v12205_v15 }
0x14bc   : > { %16098 = vpow2.f32 %v14282_v35  ;;  %v12226_v35 = vrot.slane %v19090_v32, 7 }
0x14bd   : > { %16100 = vpow2.f32 %v14283_v53 }
0x14c7   : > { %v16097_v59 = vpop.eup %16096 }
0x14c8   : > { %v12209_v3 = vadd.f32 1.0, %v16097_v59 }
0x14c9   : > { %v16099_v42 = vpop.eup %16098 }
0x14ca   : > { %16102 = vrcp.f32 %v12209_v3  ;;  %v12215_v34 = vadd.f32 1.0, %v16099_v42  ;;  %v16101_v63 = vpop.eup %16100 }
0x14cb   : > { %16104 = vtanh.f32 %v12204_v22  ;;  %v12222_v38 = vadd.f32 1.0, %v16101_v63 }
0x14cc   : > { %16106 = vrcp.f32 %v12215_v34 }
0x14cd   : > { %16108 = vrcp.f32 %v12222_v38 }
0x14d7   : > { %v16103_v1 = vpop.eup %16102 }
0x14d8   : > { %v16105_v20 = vpop.eup %16104 }
0x14d9   : > { %v16107_v9 = vpop.eup %16106  ;;  %v12229_v25 = vmul.f32 %v16105_v20, %v16103_v1 }
0x14da   : > { %v12228_v30 = vmul.f32 %v16107_v9, %v12226_v35  ;;  %v16109_v51 = vpop.eup %16108 }
0x14dc   : > { %v19164_v15 = vadd.f32 %v12229_v25, %v12228_v30  ;;  %v12624_v25 = vld [vmem:[%s19456_s4 + $0x78] sm:$0xff]  ;;  %v12623_v30 = vld [vmem:[%s19456_s4 + $0x70] sm:$0xff] }
0x14de   : > { %16110 = vtanh.f32 %v19164_v15  ;;  %v12414_v61 = vrot.slane %v19164_v15, 7  ;;  %v12622_v15 = vld [vmem:[%s19456_s4 + $0x68] sm:$0xff] }
0x14eb   : > { %v16111_v53 = vpop.eup %16110 }
0x14ec   : > { %v12232_v3 = vmul.f32 %v16111_v53, %v16109_v51  ;;  %v12621_v51 = vld [vmem:[%s19456_s4 + $0x60] sm:$0xff]  ;;  %v12620_v53 = vld [vmem:[%s19456_s4 + $0x58] sm:$0xff] }
0x14ee   : > { %v12234_v42 = vrot.slane %v12232_v3, 5  ;;  %v12619_v3 = vld [vmem:[%s19456_s4 + $0x50] sm:$0xff] }
0x14f0   : > { %12301 = vmatmul.mubr.f32.vlgmr.msra.gmra.mxu0 %v12234_v42  ;;  %12372 = vmatmul.mubr.f32.vlgmr.msra.gmra.mxu1 %v12234_v42  ;;  %v12618_v42 = vld [vmem:[%s19456_s4 + $0x48] sm:$0xff] }
0x14f1   : > { %12425 = vmatpush1.msra.mxu0 %v18834_v2  ;;  %12496 = vmatpush1.msra.mxu1 %v18838_v54  ;;  %v19630_v2 = vld [vmem:[#allocation28_spill] sm:$0xff]  ;;  %v19631_v54 = vld [vmem:[#allocation31_spill] sm:$0xff] }
0x14f2   : > { %12426 = vmatprep.subr.mxu0 %v18842_v11  ;;  %12497 = vmatprep.subr.mxu1 %v18846_v62  ;;  %v19632_v11 = vld [vmem:[#allocation32_spill] sm:$0xff]  ;;  %v19633_v62 = vld [vmem:[#allocation33_spill] sm:$0xff] }
0x14f3   : > { %12427 = vmatpush1.msra.mxu0 %v18850_v17  ;;  %12498 = vmatpush1.msra.mxu1 %v18854_v24  ;;  %v19634_v17 = vld [vmem:[#allocation34_spill] sm:$0xff] }
0x14f4   : > { %12428 = vmatprep.subr.mxu0 %v18858_v23  ;;  %12499 = vmatprep.subr.mxu1 %v18862_v55  ;;  %v19635_v24 = vld [vmem:[#allocation26_spill] sm:$0xff]  ;;  %v19636_v23 = vld [vmem:[#allocation29_spill] sm:$0xff] }
0x14f5   : > { %12429 = vmatpush1.msra.mxu0 %v18866_v12  ;;  %12500 = vmatpush1.msra.mxu1 %v18870_v60  ;;  %v19637_v55 = vld [vmem:[#allocation30_spill] sm:$0xff]  ;;  %v19638_v12 = vld [vmem:[#allocation35_spill] sm:$0xff]  ;;  %v19639_v60 = vld [vmem:[#allocation36_spill] sm:$0xff] }
0x14f6   : > { %12430 = vmatprep.subr.mxu0 %v18874_v47  ;;  %12501 = vmatprep.subr.mxu1 %v18878_v10  ;;  %v19640_v47 = vld [vmem:[#allocation37_spill] sm:$0xff]  ;;  %v19641_v10 = vld [vmem:[#allocation38_spill] sm:$0xff] }
0x14f7   : > { %12431 = vmatpush1.msra.mxu0 %v18882_v31  ;;  %12502 = vmatpush1.msra.mxu1 %v18886_v13  ;;  %v19642_v31 = vld [vmem:[#allocation39_spill] sm:$0xff]  ;;  %v19643_v13 = vld [vmem:[#allocation40_spill] sm:$0xff] }
0x14f8   : > { %12432 = vmatprep.subr.mxu0 %v18890_v45  ;;  %12503 = vmatprep.subr.mxu1 %v18894_v40  ;;  %v19644_v45 = vld [vmem:[#allocation41_spill] sm:$0xff]  ;;  %v19645_v40 = vld [vmem:[#allocation42_spill] sm:$0xff] }
0x14f9   : > { %12433 = vmatpush1.msra.mxu0 %v18898_v39  ;;  %12504 = vmatpush1.msra.mxu1 %v18902_v48  ;;  %v19646_v39 = vld [vmem:[#allocation43_spill] sm:$0xff]  ;;  %v19647_v48 = vld [vmem:[#allocation44_spill] sm:$0xff] }
0x14fa   : > { %12434 = vmatprep.subr.mxu0 %v18906_v50  ;;  %12505 = vmatprep.subr.mxu1 %v18910_v29  ;;  %v19648_v50 = vld [vmem:[#allocation45_spill] sm:$0xff]  ;;  %v19649_v29 = vmov 0.0  }
0x14fb   : > { %12435 = vmatpush1.msra.mxu0 %v18914_v33  ;;  %12506 = vmatpush1.msra.mxu1 %v18918_v14  ;;  %v19650_v33 = vld [vmem:[#allocation46_spill] sm:$0xff] }
0x14fc   : > { %12436 = vmatprep.subr.mxu0 %v18922_v46  ;;  %12507 = vmatprep.subr.mxu1 %v18926_v5 }
0x14fd   : > { %12437 = vmatpush1.msra.mxu0 %v18930_v7  ;;  %12508 = vmatpush1.msra.mxu1 %v18934_v16 }
0x14fe   : > { %12438 = vmatprep.subr.mxu0 %v18938_v4  ;;  %12509 = vmatprep.subr.mxu1 %v18942_v49 }
0x14ff   : > { %12439 = vmatpush1.msra.mxu0 %v18946_v19  ;;  %12510 = vmatpush1.msra.mxu1 %v18950_v28 }
0x1500   : > { %12440 = vmatprep.subr.mxu0 %v18954_v44  ;;  %12511 = vmatprep.subr.mxu1 %v18958_v41 }
0x1501   : > { %12441 = vmatpush1.msra.mxu0 %v18962_v21  ;;  %12512 = vmatpush1.msra.mxu1 %v18966_v26 }
0x1502   : > { %12442 = vmatprep.subr.mxu0 %v18970_v37  ;;  %12513 = vmatprep.subr.mxu1 %v18974_v18 }
0x1503   : > { %12443 = vmatpush1.msra.mxu0 %v18978_v58  ;;  %12514 = vmatpush1.msra.mxu1 %v18982_v43 }
0x1504   : > { %12444 = vmatprep.subr.mxu0 %v18986_v52  ;;  %12515 = vmatprep.subr.mxu1 %v18990_v57 }
0x1505   : > { %12445 = vmatpush1.msra.mxu0 %v18994_v0  ;;  %12516 = vmatpush1.msra.mxu1 %v18998_v6 }
0x1506   : > { %12446 = vmatprep.subr.mxu0 %v19630_v2  ;;  %12517 = vmatprep.subr.mxu1 %v19631_v54  ;;  %v12617_v2 = vld [vmem:[%s19456_s4 + $0x40] sm:$0xff]  ;;  %v12616_v54 = vld [vmem:[%s19456_s4 + $0x38] sm:$0xff] }
0x1507   : > { %12447 = vmatpush1.msra.mxu0 %v19632_v11  ;;  %12518 = vmatpush1.msra.mxu1 %v19633_v62  ;;  %v12615_v11 = vld [vmem:[%s19456_s4 + $0x30] sm:$0xff]  ;;  %v12614_v62 = vld [vmem:[%s19456_s4 + $0x28] sm:$0xff] }
0x1508   : > { %12448 = vmatprep.subr.mxu0 %v19634_v17  ;;  %12519 = vmatprep.subr.mxu1 %v19635_v24  ;;  %v12613_v17 = vld [vmem:[%s19456_s4 + $0x20] sm:$0xff]  ;;  %v12612_v24 = vld [vmem:[%s19456_s4 + $0x18] sm:$0xff] }
0x1509   : > { %12449 = vmatpush1.msra.mxu0 %v19636_v23  ;;  %12520 = vmatpush1.msra.mxu1 %v19637_v55  ;;  %v12611_v23 = vld [vmem:[%s19456_s4 + $0x10] sm:$0xff]  ;;  %v12610_v55 = vld [vmem:[%s19456_s4 + $0x8] sm:$0xff] }
0x150a   : > { %12450 = vmatprep.subr.mxu0 %v19638_v12  ;;  %12521 = vmatprep.subr.mxu1 %v19639_v60  ;;  %v12609_v12 = vld [vmem:[%s19456_s4] sm:$0xff]  ;;  %s12725_s4 = sshll.u32 %s950_s3, 4  ;;  %s12726_s4 = int_to_ptr.vmem [resolvable:$true] %s12725_s4 }
0x150b   : > { %12451 = vmatpush1.msra.mxu0 %v19640_v47  ;;  %12522 = vmatpush1.msra.mxu1 %v19641_v10  ;;  %s16212_s7 = scalar_lea.vmem %s12726_s4, 16  ;;  %p16219_p0 = scmp.lt.s32.totalorder %s12726_s4, %s16217_s9 }
0x150c   : > { %12452 = vmatprep.subr.mxu0 %v19642_v31  ;;  %12523 = vmatprep.subr.mxu1 %v19643_v13  ;;  %p16213_p11 = scmp.ne.s32.totalorder %s12726_s4, %s16212_s7  ;;  %p16220_p1 = scmp.lt.s32.totalorder %s16218_s10, %s16212_s7 }
0x150d   : > { %12453 = vmatpush1.msra.mxu0 %v19644_v45  ;;  %12524 = vmatpush1.msra.mxu1 %v19645_v40 }
0x150e   : > { %12454 = vmatprep.subr.mxu0 %v19646_v39  ;;  %12525 = vmatprep.subr.mxu1 %v19647_v48  ;;  %p16214_p12 = pnand %p16213_p11, %p16514_p5  ;;  %p16221_p2 = por %p16220_p1, %p16219_p0 }
0x150f   : > { %12455 = vmatpush1.msra.mxu0 %v19648_v50  ;;  %12488 = vmatprep.mubr.f32.mxu0 %v19649_v29 }
0x1510   : > { %12526 = vmatpush1.msra.mxu1 %v19650_v33  ;;  %12559 = vmatprep.mubr.f32.mxu1 %v19649_v29  ;;  %p16215_p13 = pneg %p16214_p12 }
0x1511   : > { %14918 = vmatprep.subr.mxu0 %v19649_v29 }
0x1512   : > { %p16222_p3 = pnand %p16221_p2, %p16215_p13 }
0x15b0   : > { %v12302_v14 = vpop.f32.mrf.mxu0  ;;  %v12373_v16 = vpop.f32.mrf.mxu1 }
0x15b1   : > { %v12382_v46 = vrot.slane %v12302_v14, 2  ;;  %v12384_v26 = vrot.slane %v12373_v16, 2 }
0x15b2   : > { %v12304_v5 = vpop.f32.mrf.mxu0  ;;  %v12375_v44 = vpop.f32.mrf.mxu1 }
0x15b3   : > { %v12390_v7 = vadd.f32 %v12382_v46, %v19540_v36  ;;  %v12383_v4 = vrot.slane %v12304_v5, 2  ;;  %v12385_v41 = vrot.slane %v12375_v44, 2  ;;  %v12392_v58 = vadd.f32 %v12384_v26, %v18599_v8 }
0x15b5   : > { %v14284_v49 = vmul.f32 -1.442695, %v12390_v7  ;;  %v12391_v19 = vadd.f32 %v12383_v4, %v18590_v27  ;;  %v12393_v21 = vadd.f32 %v12385_v41, %v18595_v56 }
0x15b7   : > { %16112 = vpow2.f32 %v14284_v49  ;;  %v14285_v28 = vmul.f32 -1.442695, %v12391_v19  ;;  %v14286_v37 = vmul.f32 -1.442695, %v12393_v21 }
0x15b9   : > { %16114 = vpow2.f32 %v14285_v28 }
0x15ba   : > { %16116 = vpow2.f32 %v14286_v37 }
0x15c4   : > { %v16113_v18 = vpop.eup %16112 }
0x15c5   : > { %v12397_v43 = vadd.f32 1.0, %v16113_v18 }
0x15c6   : > { %v16115_v52 = vpop.eup %16114 }
0x15c7   : > { %16118 = vrcp.f32 %v12397_v43  ;;  %v12403_v57 = vadd.f32 1.0, %v16115_v52  ;;  %v16117_v0 = vpop.eup %16116  ;;  %v12625_v43 = vld [vmem:[%s16469_s12] sm:$0x1] }
0x15c8   : > { %16120 = vtanh.f32 %v12392_v58  ;;  %v12410_v22 = vadd.f32 1.0, %v16117_v0 }
0x15c9   : > { %16122 = vrcp.f32 %v12403_v57 }
0x15ca   : > { %16124 = vrcp.f32 %v12410_v22 }
0x15d4   : > { %v16119_v6 = vpop.eup %16118 }
0x15d5   : > { %v16121_v32 = vpop.eup %16120 }
0x15d6   : > { %v16123_v59 = vpop.eup %16122  ;;  %v12417_v34 = vmul.f32 %v16121_v32, %v16119_v6 }
0x15d7   : > { %v12416_v63 = vmul.f32 %v16123_v59, %v12414_v61  ;;  %v16125_v20 = vpop.eup %16124 }
0x15d9   : > { %v19237_v1 = vadd.f32 %v12417_v34, %v12416_v63 }
0x15db   : > { %16126 = vtanh.f32 %v19237_v1  ;;  %v12602_v28 = vrot.slane %v19237_v1, 7 }
0x15e8   : > { %v16127_v35 = vpop.eup %16126 }
0x15e9   : > { %v12420_v9 = vmul.f32 %v16127_v35, %v16125_v20 }
0x15eb   : > { %v12422_v38 = vrot.slane %v12420_v9, 6 }
0x15ed   : > { %12489 = vmatmul.mubr.f32.vlgmr.msra.gmra.mxu0 %v12422_v38  ;;  %12560 = vmatmul.mubr.f32.vlgmr.msra.gmra.mxu1 %v12422_v38 }
0x15ee   : > { %14950 = vmatprep.mubr.msk.f32.mxu0 %vm16307_vm7, %v19649_v29  ;;  %14919 = vmatpush3.msra.mxu0 %v12624_v25 }
0x15ef   : > { %14920 = vmatprep.subr.mxu0 %v19649_v29 }
0x15f0   : > { %14921 = vmatpush3.msra.mxu0 %v12623_v30 }
0x15f1   : > { %14922 = vmatprep.subr.mxu0 %v19649_v29 }
0x15f2   : > { %14923 = vmatpush3.msra.mxu0 %v12622_v15 }
0x15f3   : > { %14924 = vmatprep.subr.mxu0 %v19649_v29 }
0x15f4   : > { %14925 = vmatpush3.msra.mxu0 %v12621_v51 }
0x15f5   : > { %14926 = vmatprep.subr.mxu0 %v19649_v29 }
0x15f6   : > { %14927 = vmatpush3.msra.mxu0 %v12620_v53 }
0x15f7   : > { %14928 = vmatprep.subr.mxu0 %v19649_v29 }
0x15f8   : > { %14929 = vmatpush3.msra.mxu0 %v12619_v3 }
0x15f9   : > { %14930 = vmatprep.subr.mxu0 %v19649_v29 }
0x15fa   : > { %14931 = vmatpush3.msra.mxu0 %v12618_v42 }
0x15fb   : > { %14932 = vmatprep.subr.mxu0 %v19649_v29 }
0x15fc   : > { %14933 = vmatpush3.msra.mxu0 %v12617_v2 }
0x15fd   : > { %14934 = vmatprep.subr.mxu0 %v19649_v29 }
0x15fe   : > { %14935 = vmatpush3.msra.mxu0 %v12616_v54 }
0x15ff   : > { %14936 = vmatprep.subr.mxu0 %v19649_v29 }
0x1600   : > { %14937 = vmatpush3.msra.mxu0 %v12615_v11 }
0x1601   : > { %14938 = vmatprep.subr.mxu0 %v19649_v29 }
0x1602   : > { %14939 = vmatpush3.msra.mxu0 %v12614_v62 }
0x1603   : > { %14940 = vmatprep.subr.mxu0 %v19649_v29 }
0x1604   : > { %14941 = vmatpush3.msra.mxu0 %v12613_v17 }
0x1605   : > { %14942 = vmatprep.subr.mxu0 %v19649_v29 }
0x1606   : > { %14943 = vmatpush3.msra.mxu0 %v12612_v24 }
0x1607   : > { %14944 = vmatprep.subr.mxu0 %v19649_v29 }
0x1608   : > { %14945 = vmatpush3.msra.mxu0 %v12611_v23 }
0x1609   : > { %14946 = vmatprep.subr.mxu0 %v19649_v29 }
0x160a   : > { %14947 = vmatpush3.msra.mxu0 %v12610_v55 }
0x160b   : > { %14948 = vmatprep.subr.mxu0 %v19649_v29 }
0x160c   : > { %14949 = vmatpush3.msra.mxu0 %v12609_v12 }
0x16ad   : > { %v12490_v60 = vpop.f32.mrf.mxu0  ;;  %v12561_v13 = vpop.f32.mrf.mxu1 }
0x16ae   : > { %v12570_v47 = vrot.slane %v12490_v60, 1  ;;  %v12572_v46 = vrot.slane %v12561_v13, 1 }
0x16af   : > { %v12492_v10 = vpop.f32.mrf.mxu0  ;;  %v12563_v50 = vpop.f32.mrf.mxu1 }
0x16b0   : > { %v12578_v31 = vadd.f32 %v12570_v47, %v19540_v36  ;;  %v12571_v45 = vrot.slane %v12492_v10, 1  ;;  %v12573_v33 = vrot.slane %v12563_v50, 1  ;;  %v12580_v7 = vadd.f32 %v12572_v46, %v18599_v8 }
0x16b2   : > { %v14287_v40 = vmul.f32 -1.442695, %v12578_v31  ;;  %v12579_v39 = vadd.f32 %v12571_v45, %v18590_v27  ;;  %v12581_v14 = vadd.f32 %v12573_v33, %v18595_v56 }
0x16b4   : > { %16128 = vpow2.f32 %v14287_v40  ;;  %v14288_v48 = vmul.f32 -1.442695, %v12579_v39  ;;  %v14289_v29 = vmul.f32 -1.442695, %v12581_v14 }
0x16b6   : > { %16130 = vpow2.f32 %v14288_v48 }
0x16b7   : > { %16132 = vpow2.f32 %v14289_v29 }
0x16c1   : > { %v16129_v5 = vpop.eup %16128 }
0x16c2   : > { %v12585_v16 = vadd.f32 1.0, %v16129_v5 }
0x16c3   : > { %v16131_v4 = vpop.eup %16130 }
0x16c4   : > { %16134 = vrcp.f32 %v12585_v16  ;;  %v12591_v36 = vadd.f32 1.0, %v16131_v4  ;;  %v16133_v27 = vpop.eup %16132 }
0x16c5   : > { %16136 = vtanh.f32 %v12580_v7  ;;  %v12598_v56 = vadd.f32 1.0, %v16133_v27 }
0x16c6   : > { %16138 = vrcp.f32 %v12591_v36 }
0x16c7   : > { %16140 = vrcp.f32 %v12598_v56 }
0x16d1   : > { %v16135_v49 = vpop.eup %16134 }
0x16d2   : > { %v16137_v19 = vpop.eup %16136 }
0x16d3   : > { %v16139_v44 = vpop.eup %16138  ;;  %v12605_v41 = vmul.f32 %v16137_v19, %v16135_v49 }
0x16d4   : > { %v12604_v21 = vmul.f32 %v16139_v44, %v12602_v28  ;;  %v16141_v8 = vpop.eup %16140 }
0x16d6   : > { %v12606_v26 = vadd.f32 %v12605_v41, %v12604_v21 }
0x16d8   : > { %16142 = vtanh.f32 %v12606_v26 }
0x16e5   : > { %v16143_v37 = vpop.eup %16142 }
0x16e6   : > { %v12608_v18 = vmul.f32 %v16143_v37, %v16141_v8 }
0x16e8   : > { %v12627_v58 = vrot.slane %v12608_v18, 7 }
0x16ea   : > { %14951 = vmatmul.mubr.f32.vlgmr.msra.gmra.mxu0 %v12627_v58 }
0x17aa   : > { %v12695_v52 = vpop.f32.mrf.mxu0 }
0x17ab   : > { %v12696_v57 = vadd.f32 %v12695_v52, %v12625_v43 }
0x17ac   : > { %v14952_v0 = vpop.f32.mrf.mxu0 }
0x17ad   : > { %v12700_v6 = vsel %vm12699_vm0, %v12696_v57, -inf }
0x17ae   : > { %12701 = vmax.xlane.f32.xlu1 %v12700_v6 }
0x1837   : > { %v12702_v32 = vpop.xlane.xlu1 %12701 }
0x1838   : > { %v12703_v61 = vsub.f32 %v12696_v57, %v12702_v32 }
0x183a   : > { %v12704_v59 = vmul.f32 1.442695, %v12703_v61 }
0x183c   : > { %16144 = vpow2.f32 %v12704_v59 }
0x1849   : > { %v16145_v22 = vpop.eup %16144 }
0x184a   : > { %v12706_v34 = vsel %vm12699_vm0, %v16145_v22, 0.0 }
0x184b   : > { %12707 = vadd.xlane.f32.xlu0 %v12706_v34 }
0x18d4   : > { %v12708_v63 = vpop.xlane.xlu0 %12707 }
0x18d5   : > { %16146 = vrcp.f32 %v12708_v63 }
0x18e2   : > { %v16147_v1 = vpop.eup %16146 }
0x18e3   : > { %v12710_v20 = vmul.f32 %v16147_v1, %v16145_v22 }
0x18e5   : > { %12711 = vst.msk [vmem:[%s950_s3] sm:$0x1] %vm12699_vm0, %v12710_v20 }
0x18e6   : > { %16225 = shalt.err (!%p16222_p3)
}
0x18e7   : > { %s16226_s0 = scalar_lea.hbm %s12723_s5, 16  ;;  %s16230_s3 = scalar_lea.hbm %s16474_s20, 32 }
0x18e8   : > { %p16227_p4 = scmp.ne.s32.totalorder %s12723_s5, %s16226_s0  ;;  %p16231_p9 = scmp.lt.s32.totalorder %s12723_s5, %s16474_s20 }
0x18e9   : > { %p16232_p10 = scmp.lt.s32.totalorder %s16230_s3, %s16226_s0 }
0x18ea   : > { %p16228_p7 = pnand %p16227_p4, %p16514_p5 }
0x18eb   : > { %p16233_p11 = por %p16232_p10, %p16231_p9 }
0x18ec   : > { %p16229_p8 = pneg %p16228_p7 }
0x18ee   : > { %p16234_p12 = pnand %p16233_p11, %p16229_p8 }
0x18f0   : > { %16237 = shalt.err (!%p16234_p12)
}
0x18f1   : > { %14954 = dma.vmem_to_hbm [thread:$0]  (%p16514_p5), %s12726_s4, 16, %s12723_s5, %s12713_s6  }
0x18f2 PF: > { %p14960_p13 = scmp.ge.s32.totalorder %s16272_s28, 2  ;;  %s12737_s9 = sand.u32 1, %s16260_s22  }
0x18f3   : > { %s12738_s8 = scalar_lea.sflag [#allocation3], %s12737_s9 }
0x18f4   : > { %p14957_p0 = pnand %p14960_p13, %p16518_p6 }
0x18f6   : > { %p14958_p1 = pneg %p14957_p0 }
0x18f8   : > { %16255 = dma.done.wait (%p14958_p1), %s12738_s8, 16  }
0x18f9   : > { %16257 = vsyncadd (%p14958_p1), %s12738_s8, 4294967280  ;;  %p73_p2 = scmp.ge.s32.totalorder %s16501_s2, 4   ;;  %s19651_s22 = smov %s16264_s23 }
0x18fa   : > { %s19652_s23 = smov %s16268_s26  ;;  %s19653_s26 = smov %s16512_s11 }
0x18fb   : > { %s19654_s28 = smov %s16501_s2  ;;  %75 = sbr.rel (!%p73_p2) target bundleno = 63 (0x3f), region = 234 }
0x1900   :  { %12742 = vsyncpa [#allocation3], 1 }
0x1901   :  { %12744 = vsyncpa [#allocation3 + $0x1], 1 }

</bundles_post_ra>
